<compile_context>
chip_gen: v7x
topology: tpu7x:2x2x1
jax: 0.10.0
libtpu: 0.0.40
codegen_flags: <defaults>
</compile_context>

<pallas_src>
import jax
import jax.numpy as jnp
from jax.experimental import pallas as pl
from jax.experimental.pallas import tpu as pltpu

EPS = 1e-5

# Spatial geometry implied by the module: fc1 expects 357 = 21*17 features
# after three Residual2D blocks ending in 1 channel.
H, W = 21, 17                   # residual-block input/output spatial size
H1, W1 = H + 1, W + 1           # conv1 (2x2, pad 1) output spatial size (22x18)
GH, GW = H + 3, W + 3           # zero-padded per-sample working grid (24x20)
GSZ = GH * GW                   # 480 valid flat grid positions per sample
LANES = 128
SSTR = 512                      # per-sample padded stride (multiple of 128)
SUBS_PER_SAMPLE = SSTR // LANES  # 4 sublane rows of 128 lanes per sample

BLOCK_CHANNELS = ((4, 4), (4, 2), (2, 1))   # (cin, cout) of the 3 blocks

FC_ORDER = ('fcAw', 'fc1b', 'fc2w', 'fc2b', 'fc3w', 'fc3b',
            'fc4wp', 'fc4b', 'fc5w', 'fc5b', 'fc6w', 'fc6b')


# ---------------------------------------------------------------------------
# Parameter init (PyTorch-shaped, deterministic)
# ---------------------------------------------------------------------------
def init_residual2d(key, cin, cout):
    ks = jax.random.split(key, 6)
    p = {
        'conv1_w': 0.1 * jax.random.normal(ks[0], (cout, cin, 2, 2), jnp.float32),
        'conv1_b': 0.1 * jax.random.normal(ks[1], (cout,), jnp.float32),
        'conv2_w': 0.1 * jax.random.normal(ks[2], (cout, cout, 4, 4), jnp.float32),
        'conv2_b': 0.1 * jax.random.normal(ks[3], (cout,), jnp.float32),
        'bn1_g': jnp.ones((cout,), jnp.float32),
        'bn1_b': jnp.zeros((cout,), jnp.float32),
        'bn2_g': jnp.ones((cout,), jnp.float32),
        'bn2_b': jnp.zeros((cout,), jnp.float32),
    }
    if cin != cout:
        p['convx_w'] = 0.1 * jax.random.normal(ks[4], (cout, cin, 1, 1), jnp.float32)
        p['convx_b'] = 0.1 * jax.random.normal(ks[5], (cout,), jnp.float32)
    return p


def init_linear(key, fin, fout):
    k1, k2 = jax.random.split(key)
    return {'w': 0.1 * jax.random.normal(k1, (fout, fin), jnp.float32),
            'b': 0.1 * jax.random.normal(k2, (fout,), jnp.float32)}


def init_recon(key):
    ks = jax.random.split(key, 9)
    return {
        'block1': init_residual2d(ks[0], 4, 4),
        'block2': init_residual2d(ks[1], 4, 2),
        'block3': init_residual2d(ks[2], 2, 1),
        'fc1': init_linear(ks[3], H * W, 35),
        'fc2': init_linear(ks[4], 35, 16),
        'fc3': init_linear(ks[5], 16, 4),
        'fc4': init_linear(ks[6], H * W + 4, 35),
        'fc5': init_linear(ks[7], 35, 16),
        'fc6': init_linear(ks[8], 16, 4),
    }


# ---------------------------------------------------------------------------
# One-time packing (weights + static masks), outside the forward path
# ---------------------------------------------------------------------------
def pack_params(params, n):
    """Pack everything the kernel needs, once:
      * conv / BN scalars into a single flat f32 SMEM blob,
      * fc weights pre-transposed; fc1 and the seg-part of fc4 scattered onto
        the 512-padded per-sample working grid and fused column-wise,
      * the valid-region masks (depend only on n + geometry).
    conv1_b / conv2_b are NOT packed: a constant per-channel bias before
    train-mode BatchNorm is exactly cancelled by the mean subtraction."""
    parts, off = [], 0

    def push(a):
        nonlocal off
        a = jnp.asarray(a, jnp.float32).reshape(-1)
        start = off
        parts.append(a)
        off += a.shape[0]
        return start

    block_cfg = []
    for name, (cin, cout) in zip(('block1', 'block2', 'block3'), BLOCK_CHANNELS):
        p = params[name]
        cfg = {'cin': cin, 'cout': cout,
               'w1': push(p['conv1_w']), 'w2': push(p['conv2_w']),
               'g1': push(p['bn1_g']), 'b1': push(p['bn1_b']),
               'g2': push(p['bn2_g']), 'b2': push(p['bn2_b'])}
        if 'convx_w' in p:
            cfg['wx'] = push(p['convx_w'])
            cfg['bx'] = push(p['convx_b'])
        block_cfg.append(cfg)

    def embed(w_t):
        # (357, F) fc-weight rows scattered to their 512-padded grid positions.
        f = w_t.shape[1]
        g = jnp.zeros((GH, GW, f), jnp.float32)
        g = g.at[2:2 + H, 2:2 + W, :].set(w_t.reshape(H, W, f))
        return jnp.pad(g.reshape(GSZ, f), ((0, SSTR - GSZ), (0, 0)))   # (512, F)

    w1t = params['fc1']['w'].T                       # (357, 35)
    w4t = params['fc4']['w'].T                       # (361, 35)
    fcAw = jnp.concatenate([embed(w1t), embed(w4t[:H * W])], axis=1)   # (512, 70)

    # Static valid-region masks, in the kernel's (sub, 128) activation layout.
    sub = n * SUBS_PER_SAMPLE

    def mask(r0, nr, c0, nc):
        g = jnp.zeros((n, GH, GW), jnp.float32).at[:, r0:r0 + nr, c0:c0 + nc].set(1.0)
        g = jnp.pad(g.reshape(n, GSZ), ((0, 0), (0, SSTR - GSZ)))
        return g.reshape(1, sub, LANES)

    masks = jnp.concatenate([mask(1, H1, 1, W1),      # conv1-output (22x18) region
                             mask(2, H, 2, W)],       # block in/out (21x17) region
                            axis=0)                   # (2, sub, 128)

    packed = {
        'scal': jnp.concatenate(parts),
        'mask': masks,
        'fcAw': fcAw,
        'fc1b': params['fc1']['b'].reshape(1, -1),
        'fc2w': params['fc2']['w'].T, 'fc2b': params['fc2']['b'].reshape(1, -1),
        'fc3w': params['fc3']['w'].T, 'fc3b': params['fc3']['b'].reshape(1, -1),
        'fc4wp': w4t[H * W:],                          # (4, 35) pred-part of fc4
        'fc4b': params['fc4']['b'].reshape(1, -1),
        'fc5w': params['fc5']['w'].T, 'fc5b': params['fc5']['b'].reshape(1, -1),
        'fc6w': params['fc6']['w'].T, 'fc6b': params['fc6']['b'].reshape(1, -1),
    }
    return packed, tuple(block_cfg)


# ---------------------------------------------------------------------------
# The fused Pallas kernel
# ---------------------------------------------------------------------------
def make_kernel(n, block_cfg):
    sub = n * SUBS_PER_SAMPLE          # sublane rows per channel ( = 8 at n=2 )
    cnt_mid = float(n * H1 * W1)       # valid elements per channel after conv1
    cnt_out = float(n * H * W)         # valid elements per channel after conv2

    def kernel(xg_ref, mask_ref, scal_ref,
               fcAw, fc1b, fc2w, fc2b, fc3w, fc3b,
               fc4wp, fc4b, fc5w, fc5b, fc6w, fc6b,
               out_ref):
        mask_mid = mask_ref[0]                                   # (sub, 128)
        mask_out = mask_ref[1]
        lane = jax.lax.broadcasted_iota(jnp.int32, (sub, LANES), 1)

        def shift_read(r, s, carry_hi):
            """out[p] = r_flat[p + s] for all valid positions (wrap garbage only
            lands in masked-out / padded slots).  One lane roll + at most one
            sublane roll + one select, each on a (sub, 128) tile."""
            b = s % LANES
            a = s // LANES
            y = r if b == 0 else pltpu.roll(r, shift=(LANES - b) % LANES, axis=1)
            ka = (-a) % sub
            za = y if ka == 0 else pltpu.roll(y, shift=ka, axis=0)
            if b == 0:
                return za
            kb = (-(a + 1)) % sub
            zb = y if kb == 0 else pltpu.roll(y, shift=kb, axis=0)
            return jnp.where(carry_hi, zb, za)

        def conv(in_rows, cout, kh, kw, w_off, d0):
            """kh x kw conv (pad 1) as shifted scalar-broadcast MACs on the VPU."""
            cin = len(in_rows)
            acc = [None] * cout
            for i in range(kh):
                for j in range(kw):
                    s = (d0 + i) * GW + (d0 + j)
                    b = s % LANES
                    carry_hi = None if b == 0 else (lane >= LANES - b)
                    sh = [shift_read(r, s, carry_hi) for r in in_rows]
                    for co in range(cout):
                        for ci in range(cin):
                            w = scal_ref[w_off + ((co * cin + ci) * kh + i) * kw + j]
                            t = w * sh[ci]
                            acc[co] = t if acc[co] is None else acc[co] + t
            return acc

        def fullsum(v):                      # (sub, 128) -> (1, 1)
            return jnp.sum(jnp.sum(v, axis=1, keepdims=True), axis=0, keepdims=True)

        def batchnorm(rows_in, g_off, b_off, mask, cnt):
            """Train-mode BN: masked one-pass batch stats + single folded FMA."""
            inv_cnt = 1.0 / cnt
            out = []
            for c, r in enumerate(rows_in):
                rm = r * mask
                mean = fullsum(rm) * inv_cnt
                var = fullsum(rm * r) * inv_cnt - mean * mean
                scale = scal_ref[g_off + c] * jax.lax.rsqrt(var + EPS)
                shift = scal_ref[b_off + c] - mean * scale
                out.append(r * scale + shift)
            return out

        def residual_block(in_rows, cfg):
            cout, cin = cfg['cout'], cfg['cin']
            # conv1 (2x2, pad 1) -> BN1 -> ReLU   (conv bias cancelled by BN).
            y1 = conv(in_rows, cout, 2, 2, cfg['w1'], 0)
            y1 = batchnorm(y1, cfg['g1'], cfg['b1'], mask_mid, cnt_mid)
            y1 = [jnp.maximum(r, 0.0) * mask_mid for r in y1]
            # conv2 (4x4, pad 1) -> BN2.
            y2 = conv(y1, cout, 4, 4, cfg['w2'], -2)
            y2 = batchnorm(y2, cfg['g2'], cfg['b2'], mask_out, cnt_out)
            # Shortcut (1x1 conv when the channel count changes, else identity).
            if 'wx' in cfg:
                skip = []
                for co in range(cout):
                    sacc = None
                    for ci in range(cin):
                        t = scal_ref[cfg['wx'] + co * cin + ci] * in_rows[ci]
                        sacc = t if sacc is None else sacc + t
                    skip.append(sacc + scal_ref[cfg['bx'] + co])
            else:
                skip = in_rows
            return [jnp.maximum(a + b, 0.0) * mask_out for a, b in zip(y2, skip)]

        # Residual trunk: activations as per-channel (sub, 128) full-vreg tiles.
        rows = [xg_ref[c] for c in range(block_cfg[0]['cin'])]
        for cfg in block_cfg:
            rows = residual_block(rows, cfg)
        rows0 = rows[0]                    # single channel; sample k, chunk g at row k*4+g

        # Fused fc1 | fc4(seg-part): contraction over the 512-padded per-sample
        # grid done in four 128-wide (vreg-aligned) K chunks so only a
        # (128, 70) weight slab is live at a time.
        y = None
        for g in range(SUBS_PER_SAMPLE):
            seg_g = jnp.concatenate(
                [rows0[k * SUBS_PER_SAMPLE + g: k * SUBS_PER_SAMPLE + g + 1, :]
                 for k in range(n)], axis=0)                       # (n, 128)
            part = jnp.dot(seg_g, fcAw[pl.ds(g * LANES, LANES), :],
                           preferred_element_type=jnp.float32)     # (n, 70)
            y = part if y is None else y + part

        def dense(h, w_ref, b_ref, relu):
            z = jnp.dot(h, w_ref[...], preferred_element_type=jnp.float32) + b_ref[...]
            return jnp.maximum(z, 0.0) if relu else z

        h = jnp.maximum(y[:, :35] + fc1b[...], 0.0)
        h = dense(h, fc2w, fc2b, True)
        pred = dense(h, fc3w, fc3b, False)                         # (n, 4)

        # torch .clone().detach() == stop_gradient: identity in the forward pass.
        he = jnp.maximum(y[:, 35:] +
                         jnp.dot(pred, fc4wp[...],
                                 preferred_element_type=jnp.float32) +
                         fc4b[...], 0.0)
        he = dense(he, fc5w, fc5b, True)
        perr = dense(he, fc6w, fc6b, False)                        # (n, 4)

        out_ref[...] = jnp.concatenate([pred, perr], axis=1)       # single (n, 8) store

    return kernel


def make_forward(block_cfg):
    """Returns the jit-able fused forward; static config (channel counts and
    SMEM weight offsets) is closed over."""

    def forward(x, packed):
        n, cin = x.shape[0], x.shape[1]
        sub = n * SUBS_PER_SAMPLE

        # Embed the NCHW input into the zero, 512-strided working grid:
        # channel c / sample k / flat grid index q -> [c, k*4 + q//128, q%128].
        xg = jnp.zeros((cin, n, GH, GW), jnp.float32)
        xg = xg.at[:, :, 2:2 + H, 2:2 + W].set(
            jnp.transpose(x.astype(jnp.float32), (1, 0, 2, 3)))
        xg = jnp.pad(xg.reshape(cin, n, GSZ), ((0, 0), (0, 0), (0, SSTR - GSZ)))
        xg = xg.reshape(cin, sub, LANES)

        vmem = lambda: pl.BlockSpec(memory_space=pltpu.MemorySpace.VMEM)
        smem = lambda: pl.BlockSpec(memory_space=pltpu.MemorySpace.SMEM)

        out = pl.pallas_call(
            make_kernel(n, block_cfg),
            out_shape=jax.ShapeDtypeStruct((n, 8), jnp.float32),
            in_specs=[vmem(), vmem(), smem()] + [vmem() for _ in FC_ORDER],
            out_specs=vmem(),
        )(xg, packed['mask'], packed['scal'], *[packed[k] for k in FC_ORDER])
        return out[:, :4], out[:, 4:]

    return forward


# ---------------------------------------------------------------------------
# Plain-JAX reference (PyTorch semantics) for an in-script correctness check
# ---------------------------------------------------------------------------
def reference_forward(x, params):
    x = x.astype(jnp.float32)
    hi = jax.lax.Precision.HIGHEST

    def conv(h, w, b, pad):
        y = jax.lax.conv_general_dilated(
            h, w, (1, 1), [(pad, pad), (pad, pad)],
            dimension_numbers=('NCHW', 'OIHW', 'NCHW'), precision=hi)
        return y + b[None, :, None, None]

    def bn(y, g, b):
        mean = jnp.mean(y, axis=(0, 2, 3), keepdims=True)
        var = jnp.mean(jnp.square(y - mean), axis=(0, 2, 3), keepdims=True)
        return ((y - mean) / jnp.sqrt(var + EPS)) * g[None, :, None, None] \
            + b[None, :, None, None]

    def block(h, p):
        y1 = jax.nn.relu(bn(conv(h, p['conv1_w'], p['conv1_b'], 1),
                            p['bn1_g'], p['bn1_b']))
        y2 = bn(conv(y1, p['conv2_w'], p['conv2_b'], 1), p['bn2_g'], p['bn2_b'])
        sc = conv(h, p['convx_w'], p['convx_b'], 0) if 'convx_w' in p else h
        return jax.nn.relu(y2 + sc)

    y = block(block(block(x, params['block1']), params['block2']), params['block3'])
    y0 = y.reshape(y.shape[0], -1)

    def lin(h, p):
        return jnp.dot(h, p['w'].T, precision=hi) + p['b']

    h = jax.nn.relu(lin(y0, params['fc1']))
    h = jax.nn.relu(lin(h, params['fc2']))
    pred = lin(h, params['fc3'])
    xerr = jnp.concatenate([y0, pred], axis=-1)      # .clone().detach(): fwd no-op
    h = jax.nn.relu(lin(xerr, params['fc4']))
    h = jax.nn.relu(lin(h, params['fc5']))
    return pred, lin(h, params['fc6'])


if __name__ == "__main__":
    key = jax.random.PRNGKey(0)
    k_x, k_p = jax.random.split(key)

    # Input implied by the module: (N, 4, 21, 17) so that the flattened trunk
    # output has 357 features for fc1.
    x = jax.random.normal(k_x, (2, 4, 21, 17), jnp.float32)
    params = init_recon(k_p)

    packed, block_cfg = pack_params(params, n=x.shape[0])   # one-time packing
    forward = jax.jit(make_forward(block_cfg))

    pred, pred_err = forward(x, packed)
    jax.block_until_ready((pred, pred_err))
    assert pred.shape == (2, 4) and pred_err.shape == (2, 4)

    # Cross-check the fused kernel against a plain-JAX reference of the module.
    ref_pred, ref_perr = reference_forward(x, params)
    err = max(float(jnp.max(jnp.abs(pred - ref_pred))),
              float(jnp.max(jnp.abs(pred_err - ref_perr))))
    assert err < 2e-2, f"kernel/reference mismatch: max abs err = {err}"

    print("KERNEL_OK")
</pallas_src>

<mosaic_0001>
module attributes {stable_mosaic.version = 11 : i64} {
  func.func @kernel(%arg0: memref<4x8x128xf32, #tpu.memory_space<vmem>>, %arg1: memref<2x8x128xf32, #tpu.memory_space<vmem>>, %arg2: memref<481xf32, #tpu.memory_space<smem>>, %arg3: memref<512x70xf32, #tpu.memory_space<vmem>>, %arg4: memref<1x35xf32, #tpu.memory_space<vmem>>, %arg5: memref<35x16xf32, #tpu.memory_space<vmem>>, %arg6: memref<1x16xf32, #tpu.memory_space<vmem>>, %arg7: memref<16x4xf32, #tpu.memory_space<vmem>>, %arg8: memref<1x4xf32, #tpu.memory_space<vmem>>, %arg9: memref<4x35xf32, #tpu.memory_space<vmem>>, %arg10: memref<1x35xf32, #tpu.memory_space<vmem>>, %arg11: memref<35x16xf32, #tpu.memory_space<vmem>>, %arg12: memref<1x16xf32, #tpu.memory_space<vmem>>, %arg13: memref<16x4xf32, #tpu.memory_space<vmem>>, %arg14: memref<1x4xf32, #tpu.memory_space<vmem>>, %arg15: memref<2x8xf32, #tpu.memory_space<vmem>>) attributes {dimension_semantics = [], scalar_prefetch = 0 : i64, scratch_operands = 0 : i64, tpu.core_type = #tpu.core_type<tc>} {
    %c0 = arith.constant 0 : index
    %c0_0 = arith.constant 0 : index
    %c0_1 = arith.constant 0 : index
    %0 = vector.load %arg1[%c0, %c0_0, %c0_1] : memref<2x8x128xf32, #tpu.memory_space<vmem>>, vector<1x8x128xf32>
    %1 = vector.shape_cast %0 : vector<1x8x128xf32> to vector<8x128xf32>
    %c1 = arith.constant 1 : index
    %c0_2 = arith.constant 0 : index
    %c0_3 = arith.constant 0 : index
    %2 = vector.load %arg1[%c1, %c0_2, %c0_3] : memref<2x8x128xf32, #tpu.memory_space<vmem>>, vector<1x8x128xf32>
    %3 = vector.shape_cast %2 : vector<1x8x128xf32> to vector<8x128xf32>
    %4 = tpu.iota {dimensions = array<i32: 1>} : vector<8x128xi32>
    %c0_4 = arith.constant 0 : index
    %c0_5 = arith.constant 0 : index
    %c0_6 = arith.constant 0 : index
    %5 = vector.load %arg0[%c0_4, %c0_5, %c0_6] : memref<4x8x128xf32, #tpu.memory_space<vmem>>, vector<1x8x128xf32>
    %6 = vector.shape_cast %5 : vector<1x8x128xf32> to vector<8x128xf32>
    %c1_7 = arith.constant 1 : index
    %c0_8 = arith.constant 0 : index
    %c0_9 = arith.constant 0 : index
    %7 = vector.load %arg0[%c1_7, %c0_8, %c0_9] : memref<4x8x128xf32, #tpu.memory_space<vmem>>, vector<1x8x128xf32>
    %8 = vector.shape_cast %7 : vector<1x8x128xf32> to vector<8x128xf32>
    %c2 = arith.constant 2 : index
    %c0_10 = arith.constant 0 : index
    %c0_11 = arith.constant 0 : index
    %9 = vector.load %arg0[%c2, %c0_10, %c0_11] : memref<4x8x128xf32, #tpu.memory_space<vmem>>, vector<1x8x128xf32>
    %10 = vector.shape_cast %9 : vector<1x8x128xf32> to vector<8x128xf32>
    %c3 = arith.constant 3 : index
    %c0_12 = arith.constant 0 : index
    %c0_13 = arith.constant 0 : index
    %11 = vector.load %arg0[%c3, %c0_12, %c0_13] : memref<4x8x128xf32, #tpu.memory_space<vmem>>, vector<1x8x128xf32>
    %12 = vector.shape_cast %11 : vector<1x8x128xf32> to vector<8x128xf32>
    %c0_14 = arith.constant 0 : index
    %13 = memref.load %arg2[%c0_14] : memref<481xf32, #tpu.memory_space<smem>>
    %14 = vector.broadcast %13 : f32 to vector<8x128xf32>
    %15 = arith.mulf %14, %6 : vector<8x128xf32>
    %c4 = arith.constant 4 : index
    %16 = memref.load %arg2[%c4] : memref<481xf32, #tpu.memory_space<smem>>
    %17 = vector.broadcast %16 : f32 to vector<8x128xf32>
    %18 = arith.mulf %17, %8 : vector<8x128xf32>
    %19 = arith.addf %15, %18 : vector<8x128xf32>
    %c8 = arith.constant 8 : index
    %20 = memref.load %arg2[%c8] : memref<481xf32, #tpu.memory_space<smem>>
    %21 = vector.broadcast %20 : f32 to vector<8x128xf32>
    %22 = arith.mulf %21, %10 : vector<8x128xf32>
    %23 = arith.addf %19, %22 : vector<8x128xf32>
    %c12 = arith.constant 12 : index
    %24 = memref.load %arg2[%c12] : memref<481xf32, #tpu.memory_space<smem>>
    %25 = vector.broadcast %24 : f32 to vector<8x128xf32>
    %26 = arith.mulf %25, %12 : vector<8x128xf32>
    %27 = arith.addf %23, %26 : vector<8x128xf32>
    %c16 = arith.constant 16 : index
    %28 = memref.load %arg2[%c16] : memref<481xf32, #tpu.memory_space<smem>>
    %29 = vector.broadcast %28 : f32 to vector<8x128xf32>
    %30 = arith.mulf %29, %6 : vector<8x128xf32>
    %c20 = arith.constant 20 : index
    %31 = memref.load %arg2[%c20] : memref<481xf32, #tpu.memory_space<smem>>
    %32 = vector.broadcast %31 : f32 to vector<8x128xf32>
    %33 = arith.mulf %32, %8 : vector<8x128xf32>
    %34 = arith.addf %30, %33 : vector<8x128xf32>
    %c24 = arith.constant 24 : index
    %35 = memref.load %arg2[%c24] : memref<481xf32, #tpu.memory_space<smem>>
    %36 = vector.broadcast %35 : f32 to vector<8x128xf32>
    %37 = arith.mulf %36, %10 : vector<8x128xf32>
    %38 = arith.addf %34, %37 : vector<8x128xf32>
    %c28 = arith.constant 28 : index
    %39 = memref.load %arg2[%c28] : memref<481xf32, #tpu.memory_space<smem>>
    %40 = vector.broadcast %39 : f32 to vector<8x128xf32>
    %41 = arith.mulf %40, %12 : vector<8x128xf32>
    %42 = arith.addf %38, %41 : vector<8x128xf32>
    %c32 = arith.constant 32 : index
    %43 = memref.load %arg2[%c32] : memref<481xf32, #tpu.memory_space<smem>>
    %44 = vector.broadcast %43 : f32 to vector<8x128xf32>
    %45 = arith.mulf %44, %6 : vector<8x128xf32>
    %c36 = arith.constant 36 : index
    %46 = memref.load %arg2[%c36] : memref<481xf32, #tpu.memory_space<smem>>
    %47 = vector.broadcast %46 : f32 to vector<8x128xf32>
    %48 = arith.mulf %47, %8 : vector<8x128xf32>
    %49 = arith.addf %45, %48 : vector<8x128xf32>
    %c40 = arith.constant 40 : index
    %50 = memref.load %arg2[%c40] : memref<481xf32, #tpu.memory_space<smem>>
    %51 = vector.broadcast %50 : f32 to vector<8x128xf32>
    %52 = arith.mulf %51, %10 : vector<8x128xf32>
    %53 = arith.addf %49, %52 : vector<8x128xf32>
    %c44 = arith.constant 44 : index
    %54 = memref.load %arg2[%c44] : memref<481xf32, #tpu.memory_space<smem>>
    %55 = vector.broadcast %54 : f32 to vector<8x128xf32>
    %56 = arith.mulf %55, %12 : vector<8x128xf32>
    %57 = arith.addf %53, %56 : vector<8x128xf32>
    %c48 = arith.constant 48 : index
    %58 = memref.load %arg2[%c48] : memref<481xf32, #tpu.memory_space<smem>>
    %59 = vector.broadcast %58 : f32 to vector<8x128xf32>
    %60 = arith.mulf %59, %6 : vector<8x128xf32>
    %c52 = arith.constant 52 : index
    %61 = memref.load %arg2[%c52] : memref<481xf32, #tpu.memory_space<smem>>
    %62 = vector.broadcast %61 : f32 to vector<8x128xf32>
    %63 = arith.mulf %62, %8 : vector<8x128xf32>
    %64 = arith.addf %60, %63 : vector<8x128xf32>
    %c56 = arith.constant 56 : index
    %65 = memref.load %arg2[%c56] : memref<481xf32, #tpu.memory_space<smem>>
    %66 = vector.broadcast %65 : f32 to vector<8x128xf32>
    %67 = arith.mulf %66, %10 : vector<8x128xf32>
    %68 = arith.addf %64, %67 : vector<8x128xf32>
    %c60 = arith.constant 60 : index
    %69 = memref.load %arg2[%c60] : memref<481xf32, #tpu.memory_space<smem>>
    %70 = vector.broadcast %69 : f32 to vector<8x128xf32>
    %71 = arith.mulf %70, %12 : vector<8x128xf32>
    %72 = arith.addf %68, %71 : vector<8x128xf32>
    %c127_i32 = arith.constant 127 : i32
    %73 = vector.broadcast %c127_i32 : i32 to vector<8x128xi32>
    %74 = arith.cmpi sge, %4, %73 : vector<8x128xi32>
    %c127_i32_15 = arith.constant 127 : i32
    %75 = tpu.dynamic_rotate %6 by %c127_i32_15 dim 1 : vector<8x128xf32>, i32 -> vector<8x128xf32>
    %c7_i32 = arith.constant 7 : i32
    %76 = tpu.dynamic_rotate %75 by %c7_i32 dim 0 : vector<8x128xf32>, i32 -> vector<8x128xf32>
    %77 = arith.select %74, %76, %75 : vector<8x128xi1>, vector<8x128xf32>
    %c127_i32_16 = arith.constant 127 : i32
    %78 = tpu.dynamic_rotate %8 by %c127_i32_16 dim 1 : vector<8x128xf32>, i32 -> vector<8x128xf32>
    %c7_i32_17 = arith.constant 7 : i32
    %79 = tpu.dynamic_rotate %78 by %c7_i32_17 dim 0 : vector<8x128xf32>, i32 -> vector<8x128xf32>
    %80 = arith.select %74, %79, %78 : vector<8x128xi1>, vector<8x128xf32>
    %c127_i32_18 = arith.constant 127 : i32
    %81 = tpu.dynamic_rotate %10 by %c127_i32_18 dim 1 : vector<8x128xf32>, i32 -> vector<8x128xf32>
    %c7_i32_19 = arith.constant 7 : i32
    %82 = tpu.dynamic_rotate %81 by %c7_i32_19 dim 0 : vector<8x128xf32>, i32 -> vector<8x128xf32>
    %83 = arith.select %74, %82, %81 : vector<8x128xi1>, vector<8x128xf32>
    %c127_i32_20 = arith.constant 127 : i32
    %84 = tpu.dynamic_rotate %12 by %c127_i32_20 dim 1 : vector<8x128xf32>, i32 -> vector<8x128xf32>
    %c7_i32_21 = arith.constant 7 : i32
    %85 = tpu.dynamic_rotate %84 by %c7_i32_21 dim 0 : vector<8x128xf32>, i32 -> vector<8x128xf32>
    %86 = arith.select %74, %85, %84 : vector<8x128xi1>, vector<8x128xf32>
    %c1_22 = arith.constant 1 : index
    %87 = memref.load %arg2[%c1_22] : memref<481xf32, #tpu.memory_space<smem>>
    %88 = vector.broadcast %87 : f32 to vector<8x128xf32>
    %89 = arith.mulf %88, %77 : vector<8x128xf32>
    %90 = arith.addf %27, %89 : vector<8x128xf32>
    %c5 = arith.constant 5 : index
    %91 = memref.load %arg2[%c5] : memref<481xf32, #tpu.memory_space<smem>>
    %92 = vector.broadcast %91 : f32 to vector<8x128xf32>
    %93 = arith.mulf %92, %80 : vector<8x128xf32>
    %94 = arith.addf %90, %93 : vector<8x128xf32>
    %c9 = arith.constant 9 : index
    %95 = memref.load %arg2[%c9] : memref<481xf32, #tpu.memory_space<smem>>
    %96 = vector.broadcast %95 : f32 to vector<8x128xf32>
    %97 = arith.mulf %96, %83 : vector<8x128xf32>
    %98 = arith.addf %94, %97 : vector<8x128xf32>
    %c13 = arith.constant 13 : index
    %99 = memref.load %arg2[%c13] : memref<481xf32, #tpu.memory_space<smem>>
    %100 = vector.broadcast %99 : f32 to vector<8x128xf32>
    %101 = arith.mulf %100, %86 : vector<8x128xf32>
    %102 = arith.addf %98, %101 : vector<8x128xf32>
    %c17 = arith.constant 17 : index
    %103 = memref.load %arg2[%c17] : memref<481xf32, #tpu.memory_space<smem>>
    %104 = vector.broadcast %103 : f32 to vector<8x128xf32>
    %105 = arith.mulf %104, %77 : vector<8x128xf32>
    %106 = arith.addf %42, %105 : vector<8x128xf32>
    %c21 = arith.constant 21 : index
    %107 = memref.load %arg2[%c21] : memref<481xf32, #tpu.memory_space<smem>>
    %108 = vector.broadcast %107 : f32 to vector<8x128xf32>
    %109 = arith.mulf %108, %80 : vector<8x128xf32>
    %110 = arith.addf %106, %109 : vector<8x128xf32>
    %c25 = arith.constant 25 : index
    %111 = memref.load %arg2[%c25] : memref<481xf32, #tpu.memory_space<smem>>
    %112 = vector.broadcast %111 : f32 to vector<8x128xf32>
    %113 = arith.mulf %112, %83 : vector<8x128xf32>
    %114 = arith.addf %110, %113 : vector<8x128xf32>
    %c29 = arith.constant 29 : index
    %115 = memref.load %arg2[%c29] : memref<481xf32, #tpu.memory_space<smem>>
    %116 = vector.broadcast %115 : f32 to vector<8x128xf32>
    %117 = arith.mulf %116, %86 : vector<8x128xf32>
    %118 = arith.addf %114, %117 : vector<8x128xf32>
    %c33 = arith.constant 33 : index
    %119 = memref.load %arg2[%c33] : memref<481xf32, #tpu.memory_space<smem>>
    %120 = vector.broadcast %119 : f32 to vector<8x128xf32>
    %121 = arith.mulf %120, %77 : vector<8x128xf32>
    %122 = arith.addf %57, %121 : vector<8x128xf32>
    %c37 = arith.constant 37 : index
    %123 = memref.load %arg2[%c37] : memref<481xf32, #tpu.memory_space<smem>>
    %124 = vector.broadcast %123 : f32 to vector<8x128xf32>
    %125 = arith.mulf %124, %80 : vector<8x128xf32>
    %126 = arith.addf %122, %125 : vector<8x128xf32>
    %c41 = arith.constant 41 : index
    %127 = memref.load %arg2[%c41] : memref<481xf32, #tpu.memory_space<smem>>
    %128 = vector.broadcast %127 : f32 to vector<8x128xf32>
    %129 = arith.mulf %128, %83 : vector<8x128xf32>
    %130 = arith.addf %126, %129 : vector<8x128xf32>
    %c45 = arith.constant 45 : index
    %131 = memref.load %arg2[%c45] : memref<481xf32, #tpu.memory_space<smem>>
    %132 = vector.broadcast %131 : f32 to vector<8x128xf32>
    %133 = arith.mulf %132, %86 : vector<8x128xf32>
    %134 = arith.addf %130, %133 : vector<8x128xf32>
    %c49 = arith.constant 49 : index
    %135 = memref.load %arg2[%c49] : memref<481xf32, #tpu.memory_space<smem>>
    %136 = vector.broadcast %135 : f32 to vector<8x128xf32>
    %137 = arith.mulf %136, %77 : vector<8x128xf32>
    %138 = arith.addf %72, %137 : vector<8x128xf32>
    %c53 = arith.constant 53 : index
    %139 = memref.load %arg2[%c53] : memref<481xf32, #tpu.memory_space<smem>>
    %140 = vector.broadcast %139 : f32 to vector<8x128xf32>
    %141 = arith.mulf %140, %80 : vector<8x128xf32>
    %142 = arith.addf %138, %141 : vector<8x128xf32>
    %c57 = arith.constant 57 : index
    %143 = memref.load %arg2[%c57] : memref<481xf32, #tpu.memory_space<smem>>
    %144 = vector.broadcast %143 : f32 to vector<8x128xf32>
    %145 = arith.mulf %144, %83 : vector<8x128xf32>
    %146 = arith.addf %142, %145 : vector<8x128xf32>
    %c61 = arith.constant 61 : index
    %147 = memref.load %arg2[%c61] : memref<481xf32, #tpu.memory_space<smem>>
    %148 = vector.broadcast %147 : f32 to vector<8x128xf32>
    %149 = arith.mulf %148, %86 : vector<8x128xf32>
    %150 = arith.addf %146, %149 : vector<8x128xf32>
    %c108_i32 = arith.constant 108 : i32
    %151 = vector.broadcast %c108_i32 : i32 to vector<8x128xi32>
    %152 = arith.cmpi sge, %4, %151 : vector<8x128xi32>
    %c108_i32_23 = arith.constant 108 : i32
    %153 = tpu.dynamic_rotate %6 by %c108_i32_23 dim 1 : vector<8x128xf32>, i32 -> vector<8x128xf32>
    %c7_i32_24 = arith.constant 7 : i32
    %154 = tpu.dynamic_rotate %153 by %c7_i32_24 dim 0 : vector<8x128xf32>, i32 -> vector<8x128xf32>
    %155 = arith.select %152, %154, %153 : vector<8x128xi1>, vector<8x128xf32>
    %c108_i32_25 = arith.constant 108 : i32
    %156 = tpu.dynamic_rotate %8 by %c108_i32_25 dim 1 : vector<8x128xf32>, i32 -> vector<8x128xf32>
    %c7_i32_26 = arith.constant 7 : i32
    %157 = tpu.dynamic_rotate %156 by %c7_i32_26 dim 0 : vector<8x128xf32>, i32 -> vector<8x128xf32>
    %158 = arith.select %152, %157, %156 : vector<8x128xi1>, vector<8x128xf32>
    %c108_i32_27 = arith.constant 108 : i32
    %159 = tpu.dynamic_rotate %10 by %c108_i32_27 dim 1 : vector<8x128xf32>, i32 -> vector<8x128xf32>
    %c7_i32_28 = arith.constant 7 : i32
    %160 = tpu.dynamic_rotate %159 by %c7_i32_28 dim 0 : vector<8x128xf32>, i32 -> vector<8x128xf32>
    %161 = arith.select %152, %160, %159 : vector<8x128xi1>, vector<8x128xf32>
    %c108_i32_29 = arith.constant 108 : i32
    %162 = tpu.dynamic_rotate %12 by %c108_i32_29 dim 1 : vector<8x128xf32>, i32 -> vector<8x128xf32>
    %c7_i32_30 = arith.constant 7 : i32
    %163 = tpu.dynamic_rotate %162 by %c7_i32_30 dim 0 : vector<8x128xf32>, i32 -> vector<8x128xf32>
    %164 = arith.select %152, %163, %162 : vector<8x128xi1>, vector<8x128xf32>
    %c2_31 = arith.constant 2 : index
    %165 = memref.load %arg2[%c2_31] : memref<481xf32, #tpu.memory_space<smem>>
    %166 = vector.broadcast %165 : f32 to vector<8x128xf32>
    %167 = arith.mulf %166, %155 : vector<8x128xf32>
    %168 = arith.addf %102, %167 : vector<8x128xf32>
    %c6 = arith.constant 6 : index
    %169 = memref.load %arg2[%c6] : memref<481xf32, #tpu.memory_space<smem>>
    %170 = vector.broadcast %169 : f32 to vector<8x128xf32>
    %171 = arith.mulf %170, %158 : vector<8x128xf32>
    %172 = arith.addf %168, %171 : vector<8x128xf32>
    %c10 = arith.constant 10 : index
    %173 = memref.load %arg2[%c10] : memref<481xf32, #tpu.memory_space<smem>>
    %174 = vector.broadcast %173 : f32 to vector<8x128xf32>
    %175 = arith.mulf %174, %161 : vector<8x128xf32>
    %176 = arith.addf %172, %175 : vector<8x128xf32>
    %c14 = arith.constant 14 : index
    %177 = memref.load %arg2[%c14] : memref<481xf32, #tpu.memory_space<smem>>
    %178 = vector.broadcast %177 : f32 to vector<8x128xf32>
    %179 = arith.mulf %178, %164 : vector<8x128xf32>
    %180 = arith.addf %176, %179 : vector<8x128xf32>
    %c18 = arith.constant 18 : index
    %181 = memref.load %arg2[%c18] : memref<481xf32, #tpu.memory_space<smem>>
    %182 = vector.broadcast %181 : f32 to vector<8x128xf32>
    %183 = arith.mulf %182, %155 : vector<8x128xf32>
    %184 = arith.addf %118, %183 : vector<8x128xf32>
    %c22 = arith.constant 22 : index
    %185 = memref.load %arg2[%c22] : memref<481xf32, #tpu.memory_space<smem>>
    %186 = vector.broadcast %185 : f32 to vector<8x128xf32>
    %187 = arith.mulf %186, %158 : vector<8x128xf32>
    %188 = arith.addf %184, %187 : vector<8x128xf32>
    %c26 = arith.constant 26 : index
    %189 = memref.load %arg2[%c26] : memref<481xf32, #tpu.memory_space<smem>>
    %190 = vector.broadcast %189 : f32 to vector<8x128xf32>
    %191 = arith.mulf %190, %161 : vector<8x128xf32>
    %192 = arith.addf %188, %191 : vector<8x128xf32>
    %c30 = arith.constant 30 : index
    %193 = memref.load %arg2[%c30] : memref<481xf32, #tpu.memory_space<smem>>
    %194 = vector.broadcast %193 : f32 to vector<8x128xf32>
    %195 = arith.mulf %194, %164 : vector<8x128xf32>
    %196 = arith.addf %192, %195 : vector<8x128xf32>
    %c34 = arith.constant 34 : index
    %197 = memref.load %arg2[%c34] : memref<481xf32, #tpu.memory_space<smem>>
    %198 = vector.broadcast %197 : f32 to vector<8x128xf32>
    %199 = arith.mulf %198, %155 : vector<8x128xf32>
    %200 = arith.addf %134, %199 : vector<8x128xf32>
    %c38 = arith.constant 38 : index
    %201 = memref.load %arg2[%c38] : memref<481xf32, #tpu.memory_space<smem>>
    %202 = vector.broadcast %201 : f32 to vector<8x128xf32>
    %203 = arith.mulf %202, %158 : vector<8x128xf32>
    %204 = arith.addf %200, %203 : vector<8x128xf32>
    %c42 = arith.constant 42 : index
    %205 = memref.load %arg2[%c42] : memref<481xf32, #tpu.memory_space<smem>>
    %206 = vector.broadcast %205 : f32 to vector<8x128xf32>
    %207 = arith.mulf %206, %161 : vector<8x128xf32>
    %208 = arith.addf %204, %207 : vector<8x128xf32>
    %c46 = arith.constant 46 : index
    %209 = memref.load %arg2[%c46] : memref<481xf32, #tpu.memory_space<smem>>
    %210 = vector.broadcast %209 : f32 to vector<8x128xf32>
    %211 = arith.mulf %210, %164 : vector<8x128xf32>
    %212 = arith.addf %208, %211 : vector<8x128xf32>
    %c50 = arith.constant 50 : index
    %213 = memref.load %arg2[%c50] : memref<481xf32, #tpu.memory_space<smem>>
    %214 = vector.broadcast %213 : f32 to vector<8x128xf32>
    %215 = arith.mulf %214, %155 : vector<8x128xf32>
    %216 = arith.addf %150, %215 : vector<8x128xf32>
    %c54 = arith.constant 54 : index
    %217 = memref.load %arg2[%c54] : memref<481xf32, #tpu.memory_space<smem>>
    %218 = vector.broadcast %217 : f32 to vector<8x128xf32>
    %219 = arith.mulf %218, %158 : vector<8x128xf32>
    %220 = arith.addf %216, %219 : vector<8x128xf32>
    %c58 = arith.constant 58 : index
    %221 = memref.load %arg2[%c58] : memref<481xf32, #tpu.memory_space<smem>>
    %222 = vector.broadcast %221 : f32 to vector<8x128xf32>
    %223 = arith.mulf %222, %161 : vector<8x128xf32>
    %224 = arith.addf %220, %223 : vector<8x128xf32>
    %c62 = arith.constant 62 : index
    %225 = memref.load %arg2[%c62] : memref<481xf32, #tpu.memory_space<smem>>
    %226 = vector.broadcast %225 : f32 to vector<8x128xf32>
    %227 = arith.mulf %226, %164 : vector<8x128xf32>
    %228 = arith.addf %224, %227 : vector<8x128xf32>
    %c107_i32 = arith.constant 107 : i32
    %229 = vector.broadcast %c107_i32 : i32 to vector<8x128xi32>
    %230 = arith.cmpi sge, %4, %229 : vector<8x128xi32>
    %c107_i32_32 = arith.constant 107 : i32
    %231 = tpu.dynamic_rotate %6 by %c107_i32_32 dim 1 : vector<8x128xf32>, i32 -> vector<8x128xf32>
    %c7_i32_33 = arith.constant 7 : i32
    %232 = tpu.dynamic_rotate %231 by %c7_i32_33 dim 0 : vector<8x128xf32>, i32 -> vector<8x128xf32>
    %233 = arith.select %230, %232, %231 : vector<8x128xi1>, vector<8x128xf32>
    %c107_i32_34 = arith.constant 107 : i32
    %234 = tpu.dynamic_rotate %8 by %c107_i32_34 dim 1 : vector<8x128xf32>, i32 -> vector<8x128xf32>
    %c7_i32_35 = arith.constant 7 : i32
    %235 = tpu.dynamic_rotate %234 by %c7_i32_35 dim 0 : vector<8x128xf32>, i32 -> vector<8x128xf32>
    %236 = arith.select %230, %235, %234 : vector<8x128xi1>, vector<8x128xf32>
    %c107_i32_36 = arith.constant 107 : i32
    %237 = tpu.dynamic_rotate %10 by %c107_i32_36 dim 1 : vector<8x128xf32>, i32 -> vector<8x128xf32>
    %c7_i32_37 = arith.constant 7 : i32
    %238 = tpu.dynamic_rotate %237 by %c7_i32_37 dim 0 : vector<8x128xf32>, i32 -> vector<8x128xf32>
    %239 = arith.select %230, %238, %237 : vector<8x128xi1>, vector<8x128xf32>
    %c107_i32_38 = arith.constant 107 : i32
    %240 = tpu.dynamic_rotate %12 by %c107_i32_38 dim 1 : vector<8x128xf32>, i32 -> vector<8x128xf32>
    %c7_i32_39 = arith.constant 7 : i32
    %241 = tpu.dynamic_rotate %240 by %c7_i32_39 dim 0 : vector<8x128xf32>, i32 -> vector<8x128xf32>
    %242 = arith.select %230, %241, %240 : vector<8x128xi1>, vector<8x128xf32>
    %c3_40 = arith.constant 3 : index
    %243 = memref.load %arg2[%c3_40] : memref<481xf32, #tpu.memory_space<smem>>
    %244 = vector.broadcast %243 : f32 to vector<8x128xf32>
    %245 = arith.mulf %244, %233 : vector<8x128xf32>
    %246 = arith.addf %180, %245 : vector<8x128xf32>
    %c7 = arith.constant 7 : index
    %247 = memref.load %arg2[%c7] : memref<481xf32, #tpu.memory_space<smem>>
    %248 = vector.broadcast %247 : f32 to vector<8x128xf32>
    %249 = arith.mulf %248, %236 : vector<8x128xf32>
    %250 = arith.addf %246, %249 : vector<8x128xf32>
    %c11 = arith.constant 11 : index
    %251 = memref.load %arg2[%c11] : memref<481xf32, #tpu.memory_space<smem>>
    %252 = vector.broadcast %251 : f32 to vector<8x128xf32>
    %253 = arith.mulf %252, %239 : vector<8x128xf32>
    %254 = arith.addf %250, %253 : vector<8x128xf32>
    %c15 = arith.constant 15 : index
    %255 = memref.load %arg2[%c15] : memref<481xf32, #tpu.memory_space<smem>>
    %256 = vector.broadcast %255 : f32 to vector<8x128xf32>
    %257 = arith.mulf %256, %242 : vector<8x128xf32>
    %258 = arith.addf %254, %257 : vector<8x128xf32>
    %c19 = arith.constant 19 : index
    %259 = memref.load %arg2[%c19] : memref<481xf32, #tpu.memory_space<smem>>
    %260 = vector.broadcast %259 : f32 to vector<8x128xf32>
    %261 = arith.mulf %260, %233 : vector<8x128xf32>
    %262 = arith.addf %196, %261 : vector<8x128xf32>
    %c23 = arith.constant 23 : index
    %263 = memref.load %arg2[%c23] : memref<481xf32, #tpu.memory_space<smem>>
    %264 = vector.broadcast %263 : f32 to vector<8x128xf32>
    %265 = arith.mulf %264, %236 : vector<8x128xf32>
    %266 = arith.addf %262, %265 : vector<8x128xf32>
    %c27 = arith.constant 27 : index
    %267 = memref.load %arg2[%c27] : memref<481xf32, #tpu.memory_space<smem>>
    %268 = vector.broadcast %267 : f32 to vector<8x128xf32>
    %269 = arith.mulf %268, %239 : vector<8x128xf32>
    %270 = arith.addf %266, %269 : vector<8x128xf32>
    %c31 = arith.constant 31 : index
    %271 = memref.load %arg2[%c31] : memref<481xf32, #tpu.memory_space<smem>>
    %272 = vector.broadcast %271 : f32 to vector<8x128xf32>
    %273 = arith.mulf %272, %242 : vector<8x128xf32>
    %274 = arith.addf %270, %273 : vector<8x128xf32>
    %c35 = arith.constant 35 : index
    %275 = memref.load %arg2[%c35] : memref<481xf32, #tpu.memory_space<smem>>
    %276 = vector.broadcast %275 : f32 to vector<8x128xf32>
    %277 = arith.mulf %276, %233 : vector<8x128xf32>
    %278 = arith.addf %212, %277 : vector<8x128xf32>
    %c39 = arith.constant 39 : index
    %279 = memref.load %arg2[%c39] : memref<481xf32, #tpu.memory_space<smem>>
    %280 = vector.broadcast %279 : f32 to vector<8x128xf32>
    %281 = arith.mulf %280, %236 : vector<8x128xf32>
    %282 = arith.addf %278, %281 : vector<8x128xf32>
    %c43 = arith.constant 43 : index
    %283 = memref.load %arg2[%c43] : memref<481xf32, #tpu.memory_space<smem>>
    %284 = vector.broadcast %283 : f32 to vector<8x128xf32>
    %285 = arith.mulf %284, %239 : vector<8x128xf32>
    %286 = arith.addf %282, %285 : vector<8x128xf32>
    %c47 = arith.constant 47 : index
    %287 = memref.load %arg2[%c47] : memref<481xf32, #tpu.memory_space<smem>>
    %288 = vector.broadcast %287 : f32 to vector<8x128xf32>
    %289 = arith.mulf %288, %242 : vector<8x128xf32>
    %290 = arith.addf %286, %289 : vector<8x128xf32>
    %c51 = arith.constant 51 : index
    %291 = memref.load %arg2[%c51] : memref<481xf32, #tpu.memory_space<smem>>
    %292 = vector.broadcast %291 : f32 to vector<8x128xf32>
    %293 = arith.mulf %292, %233 : vector<8x128xf32>
    %294 = arith.addf %228, %293 : vector<8x128xf32>
    %c55 = arith.constant 55 : index
    %295 = memref.load %arg2[%c55] : memref<481xf32, #tpu.memory_space<smem>>
    %296 = vector.broadcast %295 : f32 to vector<8x128xf32>
    %297 = arith.mulf %296, %236 : vector<8x128xf32>
    %298 = arith.addf %294, %297 : vector<8x128xf32>
    %c59 = arith.constant 59 : index
    %299 = memref.load %arg2[%c59] : memref<481xf32, #tpu.memory_space<smem>>
    %300 = vector.broadcast %299 : f32 to vector<8x128xf32>
    %301 = arith.mulf %300, %239 : vector<8x128xf32>
    %302 = arith.addf %298, %301 : vector<8x128xf32>
    %c63 = arith.constant 63 : index
    %303 = memref.load %arg2[%c63] : memref<481xf32, #tpu.memory_space<smem>>
    %304 = vector.broadcast %303 : f32 to vector<8x128xf32>
    %305 = arith.mulf %304, %242 : vector<8x128xf32>
    %306 = arith.addf %302, %305 : vector<8x128xf32>
    %307 = arith.mulf %258, %1 : vector<8x128xf32>
    %cst = arith.constant dense<0.000000e+00> : vector<8xf32>
    %308 = vector.multi_reduction <add>, %307, %cst [1] : vector<8x128xf32> to vector<8xf32>
    %309 = vector.shape_cast %308 : vector<8xf32> to vector<8x1xf32>
    %cst_41 = arith.constant dense<0.000000e+00> : vector<1xf32>
    %310 = vector.multi_reduction <add>, %309, %cst_41 [0] : vector<8x1xf32> to vector<1xf32>
    %311 = vector.shape_cast %310 : vector<1xf32> to vector<1x1xf32>
    %cst_42 = arith.constant 0.00126262626 : f32
    %312 = vector.broadcast %cst_42 : f32 to vector<1x1xf32>
    %313 = arith.mulf %311, %312 : vector<1x1xf32>
    %314 = arith.mulf %307, %258 : vector<8x128xf32>
    %cst_43 = arith.constant dense<0.000000e+00> : vector<8xf32>
    %315 = vector.multi_reduction <add>, %314, %cst_43 [1] : vector<8x128xf32> to vector<8xf32>
    %316 = vector.shape_cast %315 : vector<8xf32> to vector<8x1xf32>
    %cst_44 = arith.constant dense<0.000000e+00> : vector<1xf32>
    %317 = vector.multi_reduction <add>, %316, %cst_44 [0] : vector<8x1xf32> to vector<1xf32>
    %318 = vector.shape_cast %317 : vector<1xf32> to vector<1x1xf32>
    %cst_45 = arith.constant 0.00126262626 : f32
    %319 = vector.broadcast %cst_45 : f32 to vector<1x1xf32>
    %320 = arith.mulf %318, %319 : vector<1x1xf32>
    %321 = arith.mulf %313, %313 : vector<1x1xf32>
    %322 = arith.subf %320, %321 : vector<1x1xf32>
    %c320 = arith.constant 320 : index
    %323 = memref.load %arg2[%c320] : memref<481xf32, #tpu.memory_space<smem>>
    %cst_46 = arith.constant 9.99999974E-6 : f32
    %324 = vector.broadcast %cst_46 : f32 to vector<1x1xf32>
    %325 = arith.addf %322, %324 : vector<1x1xf32>
    %326 = math.rsqrt %325 : vector<1x1xf32>
    %327 = vector.broadcast %323 : f32 to vector<1x1xf32>
    %328 = arith.mulf %327, %326 : vector<1x1xf32>
    %c324 = arith.constant 324 : index
    %329 = memref.load %arg2[%c324] : memref<481xf32, #tpu.memory_space<smem>>
    %330 = arith.mulf %313, %328 : vector<1x1xf32>
    %331 = vector.broadcast %329 : f32 to vector<1x1xf32>
    %332 = arith.subf %331, %330 : vector<1x1xf32>
    %333 = vector.broadcast %328 : vector<1x1xf32> to vector<8x128xf32>
    %334 = arith.mulf %258, %333 : vector<8x128xf32>
    %335 = vector.broadcast %332 : vector<1x1xf32> to vector<8x128xf32>
    %336 = arith.addf %334, %335 : vector<8x128xf32>
    %337 = arith.mulf %274, %1 : vector<8x128xf32>
    %cst_47 = arith.constant dense<0.000000e+00> : vector<8xf32>
    %338 = vector.multi_reduction <add>, %337, %cst_47 [1] : vector<8x128xf32> to vector<8xf32>
    %339 = vector.shape_cast %338 : vector<8xf32> to vector<8x1xf32>
    %cst_48 = arith.constant dense<0.000000e+00> : vector<1xf32>
    %340 = vector.multi_reduction <add>, %339, %cst_48 [0] : vector<8x1xf32> to vector<1xf32>
    %341 = vector.shape_cast %340 : vector<1xf32> to vector<1x1xf32>
    %cst_49 = arith.constant 0.00126262626 : f32
    %342 = vector.broadcast %cst_49 : f32 to vector<1x1xf32>
    %343 = arith.mulf %341, %342 : vector<1x1xf32>
    %344 = arith.mulf %337, %274 : vector<8x128xf32>
    %cst_50 = arith.constant dense<0.000000e+00> : vector<8xf32>
    %345 = vector.multi_reduction <add>, %344, %cst_50 [1] : vector<8x128xf32> to vector<8xf32>
    %346 = vector.shape_cast %345 : vector<8xf32> to vector<8x1xf32>
    %cst_51 = arith.constant dense<0.000000e+00> : vector<1xf32>
    %347 = vector.multi_reduction <add>, %346, %cst_51 [0] : vector<8x1xf32> to vector<1xf32>
    %348 = vector.shape_cast %347 : vector<1xf32> to vector<1x1xf32>
    %cst_52 = arith.constant 0.00126262626 : f32
    %349 = vector.broadcast %cst_52 : f32 to vector<1x1xf32>
    %350 = arith.mulf %348, %349 : vector<1x1xf32>
    %351 = arith.mulf %343, %343 : vector<1x1xf32>
    %352 = arith.subf %350, %351 : vector<1x1xf32>
    %c321 = arith.constant 321 : index
    %353 = memref.load %arg2[%c321] : memref<481xf32, #tpu.memory_space<smem>>
    %cst_53 = arith.constant 9.99999974E-6 : f32
    %354 = vector.broadcast %cst_53 : f32 to vector<1x1xf32>
    %355 = arith.addf %352, %354 : vector<1x1xf32>
    %356 = math.rsqrt %355 : vector<1x1xf32>
    %357 = vector.broadcast %353 : f32 to vector<1x1xf32>
    %358 = arith.mulf %357, %356 : vector<1x1xf32>
    %c325 = arith.constant 325 : index
    %359 = memref.load %arg2[%c325] : memref<481xf32, #tpu.memory_space<smem>>
    %360 = arith.mulf %343, %358 : vector<1x1xf32>
    %361 = vector.broadcast %359 : f32 to vector<1x1xf32>
    %362 = arith.subf %361, %360 : vector<1x1xf32>
    %363 = vector.broadcast %358 : vector<1x1xf32> to vector<8x128xf32>
    %364 = arith.mulf %274, %363 : vector<8x128xf32>
    %365 = vector.broadcast %362 : vector<1x1xf32> to vector<8x128xf32>
    %366 = arith.addf %364, %365 : vector<8x128xf32>
    %367 = arith.mulf %290, %1 : vector<8x128xf32>
    %cst_54 = arith.constant dense<0.000000e+00> : vector<8xf32>
    %368 = vector.multi_reduction <add>, %367, %cst_54 [1] : vector<8x128xf32> to vector<8xf32>
    %369 = vector.shape_cast %368 : vector<8xf32> to vector<8x1xf32>
    %cst_55 = arith.constant dense<0.000000e+00> : vector<1xf32>
    %370 = vector.multi_reduction <add>, %369, %cst_55 [0] : vector<8x1xf32> to vector<1xf32>
    %371 = vector.shape_cast %370 : vector<1xf32> to vector<1x1xf32>
    %cst_56 = arith.constant 0.00126262626 : f32
    %372 = vector.broadcast %cst_56 : f32 to vector<1x1xf32>
    %373 = arith.mulf %371, %372 : vector<1x1xf32>
    %374 = arith.mulf %367, %290 : vector<8x128xf32>
    %cst_57 = arith.constant dense<0.000000e+00> : vector<8xf32>
    %375 = vector.multi_reduction <add>, %374, %cst_57 [1] : vector<8x128xf32> to vector<8xf32>
    %376 = vector.shape_cast %375 : vector<8xf32> to vector<8x1xf32>
    %cst_58 = arith.constant dense<0.000000e+00> : vector<1xf32>
    %377 = vector.multi_reduction <add>, %376, %cst_58 [0] : vector<8x1xf32> to vector<1xf32>
    %378 = vector.shape_cast %377 : vector<1xf32> to vector<1x1xf32>
    %cst_59 = arith.constant 0.00126262626 : f32
    %379 = vector.broadcast %cst_59 : f32 to vector<1x1xf32>
    %380 = arith.mulf %378, %379 : vector<1x1xf32>
    %381 = arith.mulf %373, %373 : vector<1x1xf32>
    %382 = arith.subf %380, %381 : vector<1x1xf32>
    %c322 = arith.constant 322 : index
    %383 = memref.load %arg2[%c322] : memref<481xf32, #tpu.memory_space<smem>>
    %cst_60 = arith.constant 9.99999974E-6 : f32
    %384 = vector.broadcast %cst_60 : f32 to vector<1x1xf32>
    %385 = arith.addf %382, %384 : vector<1x1xf32>
    %386 = math.rsqrt %385 : vector<1x1xf32>
    %387 = vector.broadcast %383 : f32 to vector<1x1xf32>
    %388 = arith.mulf %387, %386 : vector<1x1xf32>
    %c326 = arith.constant 326 : index
    %389 = memref.load %arg2[%c326] : memref<481xf32, #tpu.memory_space<smem>>
    %390 = arith.mulf %373, %388 : vector<1x1xf32>
    %391 = vector.broadcast %389 : f32 to vector<1x1xf32>
    %392 = arith.subf %391, %390 : vector<1x1xf32>
    %393 = vector.broadcast %388 : vector<1x1xf32> to vector<8x128xf32>
    %394 = arith.mulf %290, %393 : vector<8x128xf32>
    %395 = vector.broadcast %392 : vector<1x1xf32> to vector<8x128xf32>
    %396 = arith.addf %394, %395 : vector<8x128xf32>
    %397 = arith.mulf %306, %1 : vector<8x128xf32>
    %cst_61 = arith.constant dense<0.000000e+00> : vector<8xf32>
    %398 = vector.multi_reduction <add>, %397, %cst_61 [1] : vector<8x128xf32> to vector<8xf32>
    %399 = vector.shape_cast %398 : vector<8xf32> to vector<8x1xf32>
    %cst_62 = arith.constant dense<0.000000e+00> : vector<1xf32>
    %400 = vector.multi_reduction <add>, %399, %cst_62 [0] : vector<8x1xf32> to vector<1xf32>
    %401 = vector.shape_cast %400 : vector<1xf32> to vector<1x1xf32>
    %cst_63 = arith.constant 0.00126262626 : f32
    %402 = vector.broadcast %cst_63 : f32 to vector<1x1xf32>
    %403 = arith.mulf %401, %402 : vector<1x1xf32>
    %404 = arith.mulf %397, %306 : vector<8x128xf32>
    %cst_64 = arith.constant dense<0.000000e+00> : vector<8xf32>
    %405 = vector.multi_reduction <add>, %404, %cst_64 [1] : vector<8x128xf32> to vector<8xf32>
    %406 = vector.shape_cast %405 : vector<8xf32> to vector<8x1xf32>
    %cst_65 = arith.constant dense<0.000000e+00> : vector<1xf32>
    %407 = vector.multi_reduction <add>, %406, %cst_65 [0] : vector<8x1xf32> to vector<1xf32>
    %408 = vector.shape_cast %407 : vector<1xf32> to vector<1x1xf32>
    %cst_66 = arith.constant 0.00126262626 : f32
    %409 = vector.broadcast %cst_66 : f32 to vector<1x1xf32>
    %410 = arith.mulf %408, %409 : vector<1x1xf32>
    %411 = arith.mulf %403, %403 : vector<1x1xf32>
    %412 = arith.subf %410, %411 : vector<1x1xf32>
    %c323 = arith.constant 323 : index
    %413 = memref.load %arg2[%c323] : memref<481xf32, #tpu.memory_space<smem>>
    %cst_67 = arith.constant 9.99999974E-6 : f32
    %414 = vector.broadcast %cst_67 : f32 to vector<1x1xf32>
    %415 = arith.addf %412, %414 : vector<1x1xf32>
    %416 = math.rsqrt %415 : vector<1x1xf32>
    %417 = vector.broadcast %413 : f32 to vector<1x1xf32>
    %418 = arith.mulf %417, %416 : vector<1x1xf32>
    %c327 = arith.constant 327 : index
    %419 = memref.load %arg2[%c327] : memref<481xf32, #tpu.memory_space<smem>>
    %420 = arith.mulf %403, %418 : vector<1x1xf32>
    %421 = vector.broadcast %419 : f32 to vector<1x1xf32>
    %422 = arith.subf %421, %420 : vector<1x1xf32>
    %423 = vector.broadcast %418 : vector<1x1xf32> to vector<8x128xf32>
    %424 = arith.mulf %306, %423 : vector<8x128xf32>
    %425 = vector.broadcast %422 : vector<1x1xf32> to vector<8x128xf32>
    %426 = arith.addf %424, %425 : vector<8x128xf32>
    %cst_68 = arith.constant 0.000000e+00 : f32
    %427 = vector.broadcast %cst_68 : f32 to vector<8x128xf32>
    %428 = arith.maximumf %336, %427 : vector<8x128xf32>
    %429 = arith.mulf %428, %1 : vector<8x128xf32>
    %cst_69 = arith.constant 0.000000e+00 : f32
    %430 = vector.broadcast %cst_69 : f32 to vector<8x128xf32>
    %431 = arith.maximumf %366, %430 : vector<8x128xf32>
    %432 = arith.mulf %431, %1 : vector<8x128xf32>
    %cst_70 = arith.constant 0.000000e+00 : f32
    %433 = vector.broadcast %cst_70 : f32 to vector<8x128xf32>
    %434 = arith.maximumf %396, %433 : vector<8x128xf32>
    %435 = arith.mulf %434, %1 : vector<8x128xf32>
    %cst_71 = arith.constant 0.000000e+00 : f32
    %436 = vector.broadcast %cst_71 : f32 to vector<8x128xf32>
    %437 = arith.maximumf %426, %436 : vector<8x128xf32>
    %438 = arith.mulf %437, %1 : vector<8x128xf32>
    %c42_i32 = arith.constant 42 : i32
    %439 = vector.broadcast %c42_i32 : i32 to vector<8x128xi32>
    %440 = arith.cmpi sge, %4, %439 : vector<8x128xi32>
    %c42_i32_72 = arith.constant 42 : i32
    %441 = tpu.dynamic_rotate %429 by %c42_i32_72 dim 1 : vector<8x128xf32>, i32 -> vector<8x128xf32>
    %c1_i32 = arith.constant 1 : i32
    %442 = tpu.dynamic_rotate %441 by %c1_i32 dim 0 : vector<8x128xf32>, i32 -> vector<8x128xf32>
    %443 = arith.select %440, %441, %442 : vector<8x128xi1>, vector<8x128xf32>
    %c42_i32_73 = arith.constant 42 : i32
    %444 = tpu.dynamic_rotate %432 by %c42_i32_73 dim 1 : vector<8x128xf32>, i32 -> vector<8x128xf32>
    %c1_i32_74 = arith.constant 1 : i32
    %445 = tpu.dynamic_rotate %444 by %c1_i32_74 dim 0 : vector<8x128xf32>, i32 -> vector<8x128xf32>
    %446 = arith.select %440, %444, %445 : vector<8x128xi1>, vector<8x128xf32>
    %c42_i32_75 = arith.constant 42 : i32
    %447 = tpu.dynamic_rotate %435 by %c42_i32_75 dim 1 : vector<8x128xf32>, i32 -> vector<8x128xf32>
    %c1_i32_76 = arith.constant 1 : i32
    %448 = tpu.dynamic_rotate %447 by %c1_i32_76 dim 0 : vector<8x128xf32>, i32 -> vector<8x128xf32>
    %449 = arith.select %440, %447, %448 : vector<8x128xi1>, vector<8x128xf32>
    %c42_i32_77 = arith.constant 42 : i32
    %450 = tpu.dynamic_rotate %438 by %c42_i32_77 dim 1 : vector<8x128xf32>, i32 -> vector<8x128xf32>
    %c1_i32_78 = arith.constant 1 : i32
    %451 = tpu.dynamic_rotate %450 by %c1_i32_78 dim 0 : vector<8x128xf32>, i32 -> vector<8x128xf32>
    %452 = arith.select %440, %450, %451 : vector<8x128xi1>, vector<8x128xf32>
    %c64 = arith.constant 64 : index
    %453 = memref.load %arg2[%c64] : memref<481xf32, #tpu.memory_space<smem>>
    %454 = vector.broadcast %453 : f32 to vector<8x128xf32>
    %455 = arith.mulf %454, %443 : vector<8x128xf32>
    %c80 = arith.constant 80 : index
    %456 = memref.load %arg2[%c80] : memref<481xf32, #tpu.memory_space<smem>>
    %457 = vector.broadcast %456 : f32 to vector<8x128xf32>
    %458 = arith.mulf %457, %446 : vector<8x128xf32>
    %459 = arith.addf %455, %458 : vector<8x128xf32>
    %c96 = arith.constant 96 : index
    %460 = memref.load %arg2[%c96] : memref<481xf32, #tpu.memory_space<smem>>
    %461 = vector.broadcast %460 : f32 to vector<8x128xf32>
    %462 = arith.mulf %461, %449 : vector<8x128xf32>
    %463 = arith.addf %459, %462 : vector<8x128xf32>
    %c112 = arith.constant 112 : index
    %464 = memref.load %arg2[%c112] : memref<481xf32, #tpu.memory_space<smem>>
    %465 = vector.broadcast %464 : f32 to vector<8x128xf32>
    %466 = arith.mulf %465, %452 : vector<8x128xf32>
    %467 = arith.addf %463, %466 : vector<8x128xf32>
    %c128 = arith.constant 128 : index
    %468 = memref.load %arg2[%c128] : memref<481xf32, #tpu.memory_space<smem>>
    %469 = vector.broadcast %468 : f32 to vector<8x128xf32>
    %470 = arith.mulf %469, %443 : vector<8x128xf32>
    %c144 = arith.constant 144 : index
    %471 = memref.load %arg2[%c144] : memref<481xf32, #tpu.memory_space<smem>>
    %472 = vector.broadcast %471 : f32 to vector<8x128xf32>
    %473 = arith.mulf %472, %446 : vector<8x128xf32>
    %474 = arith.addf %470, %473 : vector<8x128xf32>
    %c160 = arith.constant 160 : index
    %475 = memref.load %arg2[%c160] : memref<481xf32, #tpu.memory_space<smem>>
    %476 = vector.broadcast %475 : f32 to vector<8x128xf32>
    %477 = arith.mulf %476, %449 : vector<8x128xf32>
    %478 = arith.addf %474, %477 : vector<8x128xf32>
    %c176 = arith.constant 176 : index
    %479 = memref.load %arg2[%c176] : memref<481xf32, #tpu.memory_space<smem>>
    %480 = vector.broadcast %479 : f32 to vector<8x128xf32>
    %481 = arith.mulf %480, %452 : vector<8x128xf32>
    %482 = arith.addf %478, %481 : vector<8x128xf32>
    %c192 = arith.constant 192 : index
    %483 = memref.load %arg2[%c192] : memref<481xf32, #tpu.memory_space<smem>>
    %484 = vector.broadcast %483 : f32 to vector<8x128xf32>
    %485 = arith.mulf %484, %443 : vector<8x128xf32>
    %c208 = arith.constant 208 : index
    %486 = memref.load %arg2[%c208] : memref<481xf32, #tpu.memory_space<smem>>
    %487 = vector.broadcast %486 : f32 to vector<8x128xf32>
    %488 = arith.mulf %487, %446 : vector<8x128xf32>
    %489 = arith.addf %485, %488 : vector<8x128xf32>
    %c224 = arith.constant 224 : index
    %490 = memref.load %arg2[%c224] : memref<481xf32, #tpu.memory_space<smem>>
    %491 = vector.broadcast %490 : f32 to vector<8x128xf32>
    %492 = arith.mulf %491, %449 : vector<8x128xf32>
    %493 = arith.addf %489, %492 : vector<8x128xf32>
    %c240 = arith.constant 240 : index
    %494 = memref.load %arg2[%c240] : memref<481xf32, #tpu.memory_space<smem>>
    %495 = vector.broadcast %494 : f32 to vector<8x128xf32>
    %496 = arith.mulf %495, %452 : vector<8x128xf32>
    %497 = arith.addf %493, %496 : vector<8x128xf32>
    %c256 = arith.constant 256 : index
    %498 = memref.load %arg2[%c256] : memref<481xf32, #tpu.memory_space<smem>>
    %499 = vector.broadcast %498 : f32 to vector<8x128xf32>
    %500 = arith.mulf %499, %443 : vector<8x128xf32>
    %c272 = arith.constant 272 : index
    %501 = memref.load %arg2[%c272] : memref<481xf32, #tpu.memory_space<smem>>
    %502 = vector.broadcast %501 : f32 to vector<8x128xf32>
    %503 = arith.mulf %502, %446 : vector<8x128xf32>
    %504 = arith.addf %500, %503 : vector<8x128xf32>
    %c288 = arith.constant 288 : index
    %505 = memref.load %arg2[%c288] : memref<481xf32, #tpu.memory_space<smem>>
    %506 = vector.broadcast %505 : f32 to vector<8x128xf32>
    %507 = arith.mulf %506, %449 : vector<8x128xf32>
    %508 = arith.addf %504, %507 : vector<8x128xf32>
    %c304 = arith.constant 304 : index
    %509 = memref.load %arg2[%c304] : memref<481xf32, #tpu.memory_space<smem>>
    %510 = vector.broadcast %509 : f32 to vector<8x128xf32>
    %511 = arith.mulf %510, %452 : vector<8x128xf32>
    %512 = arith.addf %508, %511 : vector<8x128xf32>
    %c41_i32 = arith.constant 41 : i32
    %513 = vector.broadcast %c41_i32 : i32 to vector<8x128xi32>
    %514 = arith.cmpi sge, %4, %513 : vector<8x128xi32>
    %c41_i32_79 = arith.constant 41 : i32
    %515 = tpu.dynamic_rotate %429 by %c41_i32_79 dim 1 : vector<8x128xf32>, i32 -> vector<8x128xf32>
    %c1_i32_80 = arith.constant 1 : i32
    %516 = tpu.dynamic_rotate %515 by %c1_i32_80 dim 0 : vector<8x128xf32>, i32 -> vector<8x128xf32>
    %517 = arith.select %514, %515, %516 : vector<8x128xi1>, vector<8x128xf32>
    %c41_i32_81 = arith.constant 41 : i32
    %518 = tpu.dynamic_rotate %432 by %c41_i32_81 dim 1 : vector<8x128xf32>, i32 -> vector<8x128xf32>
    %c1_i32_82 = arith.constant 1 : i32
    %519 = tpu.dynamic_rotate %518 by %c1_i32_82 dim 0 : vector<8x128xf32>, i32 -> vector<8x128xf32>
    %520 = arith.select %514, %518, %519 : vector<8x128xi1>, vector<8x128xf32>
    %c41_i32_83 = arith.constant 41 : i32
    %521 = tpu.dynamic_rotate %435 by %c41_i32_83 dim 1 : vector<8x128xf32>, i32 -> vector<8x128xf32>
    %c1_i32_84 = arith.constant 1 : i32
    %522 = tpu.dynamic_rotate %521 by %c1_i32_84 dim 0 : vector<8x128xf32>, i32 -> vector<8x128xf32>
    %523 = arith.select %514, %521, %522 : vector<8x128xi1>, vector<8x128xf32>
    %c41_i32_85 = arith.constant 41 : i32
    %524 = tpu.dynamic_rotate %438 by %c41_i32_85 dim 1 : vector<8x128xf32>, i32 -> vector<8x128xf32>
    %c1_i32_86 = arith.constant 1 : i32
    %525 = tpu.dynamic_rotate %524 by %c1_i32_86 dim 0 : vector<8x128xf32>, i32 -> vector<8x128xf32>
    %526 = arith.select %514, %524, %525 : vector<8x128xi1>, vector<8x128xf32>
    %c65 = arith.constant 65 : index
    %527 = memref.load %arg2[%c65] : memref<481xf32, #tpu.memory_space<smem>>
    %528 = vector.broadcast %527 : f32 to vector<8x128xf32>
    %529 = arith.mulf %528, %517 : vector<8x128xf32>
    %530 = arith.addf %467, %529 : vector<8x128xf32>
    %c81 = arith.constant 81 : index
    %531 = memref.load %arg2[%c81] : memref<481xf32, #tpu.memory_space<smem>>
    %532 = vector.broadcast %531 : f32 to vector<8x128xf32>
    %533 = arith.mulf %532, %520 : vector<8x128xf32>
    %534 = arith.addf %530, %533 : vector<8x128xf32>
    %c97 = arith.constant 97 : index
    %535 = memref.load %arg2[%c97] : memref<481xf32, #tpu.memory_space<smem>>
    %536 = vector.broadcast %535 : f32 to vector<8x128xf32>
    %537 = arith.mulf %536, %523 : vector<8x128xf32>
    %538 = arith.addf %534, %537 : vector<8x128xf32>
    %c113 = arith.constant 113 : index
    %539 = memref.load %arg2[%c113] : memref<481xf32, #tpu.memory_space<smem>>
    %540 = vector.broadcast %539 : f32 to vector<8x128xf32>
    %541 = arith.mulf %540, %526 : vector<8x128xf32>
    %542 = arith.addf %538, %541 : vector<8x128xf32>
    %c129 = arith.constant 129 : index
    %543 = memref.load %arg2[%c129] : memref<481xf32, #tpu.memory_space<smem>>
    %544 = vector.broadcast %543 : f32 to vector<8x128xf32>
    %545 = arith.mulf %544, %517 : vector<8x128xf32>
    %546 = arith.addf %482, %545 : vector<8x128xf32>
    %c145 = arith.constant 145 : index
    %547 = memref.load %arg2[%c145] : memref<481xf32, #tpu.memory_space<smem>>
    %548 = vector.broadcast %547 : f32 to vector<8x128xf32>
    %549 = arith.mulf %548, %520 : vector<8x128xf32>
    %550 = arith.addf %546, %549 : vector<8x128xf32>
    %c161 = arith.constant 161 : index
    %551 = memref.load %arg2[%c161] : memref<481xf32, #tpu.memory_space<smem>>
    %552 = vector.broadcast %551 : f32 to vector<8x128xf32>
    %553 = arith.mulf %552, %523 : vector<8x128xf32>
    %554 = arith.addf %550, %553 : vector<8x128xf32>
    %c177 = arith.constant 177 : index
    %555 = memref.load %arg2[%c177] : memref<481xf32, #tpu.memory_space<smem>>
    %556 = vector.broadcast %555 : f32 to vector<8x128xf32>
    %557 = arith.mulf %556, %526 : vector<8x128xf32>
    %558 = arith.addf %554, %557 : vector<8x128xf32>
    %c193 = arith.constant 193 : index
    %559 = memref.load %arg2[%c193] : memref<481xf32, #tpu.memory_space<smem>>
    %560 = vector.broadcast %559 : f32 to vector<8x128xf32>
    %561 = arith.mulf %560, %517 : vector<8x128xf32>
    %562 = arith.addf %497, %561 : vector<8x128xf32>
    %c209 = arith.constant 209 : index
    %563 = memref.load %arg2[%c209] : memref<481xf32, #tpu.memory_space<smem>>
    %564 = vector.broadcast %563 : f32 to vector<8x128xf32>
    %565 = arith.mulf %564, %520 : vector<8x128xf32>
    %566 = arith.addf %562, %565 : vector<8x128xf32>
    %c225 = arith.constant 225 : index
    %567 = memref.load %arg2[%c225] : memref<481xf32, #tpu.memory_space<smem>>
    %568 = vector.broadcast %567 : f32 to vector<8x128xf32>
    %569 = arith.mulf %568, %523 : vector<8x128xf32>
    %570 = arith.addf %566, %569 : vector<8x128xf32>
    %c241 = arith.constant 241 : index
    %571 = memref.load %arg2[%c241] : memref<481xf32, #tpu.memory_space<smem>>
    %572 = vector.broadcast %571 : f32 to vector<8x128xf32>
    %573 = arith.mulf %572, %526 : vector<8x128xf32>
    %574 = arith.addf %570, %573 : vector<8x128xf32>
    %c257 = arith.constant 257 : index
    %575 = memref.load %arg2[%c257] : memref<481xf32, #tpu.memory_space<smem>>
    %576 = vector.broadcast %575 : f32 to vector<8x128xf32>
    %577 = arith.mulf %576, %517 : vector<8x128xf32>
    %578 = arith.addf %512, %577 : vector<8x128xf32>
    %c273 = arith.constant 273 : index
    %579 = memref.load %arg2[%c273] : memref<481xf32, #tpu.memory_space<smem>>
    %580 = vector.broadcast %579 : f32 to vector<8x128xf32>
    %581 = arith.mulf %580, %520 : vector<8x128xf32>
    %582 = arith.addf %578, %581 : vector<8x128xf32>
    %c289 = arith.constant 289 : index
    %583 = memref.load %arg2[%c289] : memref<481xf32, #tpu.memory_space<smem>>
    %584 = vector.broadcast %583 : f32 to vector<8x128xf32>
    %585 = arith.mulf %584, %523 : vector<8x128xf32>
    %586 = arith.addf %582, %585 : vector<8x128xf32>
    %c305 = arith.constant 305 : index
    %587 = memref.load %arg2[%c305] : memref<481xf32, #tpu.memory_space<smem>>
    %588 = vector.broadcast %587 : f32 to vector<8x128xf32>
    %589 = arith.mulf %588, %526 : vector<8x128xf32>
    %590 = arith.addf %586, %589 : vector<8x128xf32>
    %c40_i32 = arith.constant 40 : i32
    %591 = vector.broadcast %c40_i32 : i32 to vector<8x128xi32>
    %592 = arith.cmpi sge, %4, %591 : vector<8x128xi32>
    %c40_i32_87 = arith.constant 40 : i32
    %593 = tpu.dynamic_rotate %429 by %c40_i32_87 dim 1 : vector<8x128xf32>, i32 -> vector<8x128xf32>
    %c1_i32_88 = arith.constant 1 : i32
    %594 = tpu.dynamic_rotate %593 by %c1_i32_88 dim 0 : vector<8x128xf32>, i32 -> vector<8x128xf32>
    %595 = arith.select %592, %593, %594 : vector<8x128xi1>, vector<8x128xf32>
    %c40_i32_89 = arith.constant 40 : i32
    %596 = tpu.dynamic_rotate %432 by %c40_i32_89 dim 1 : vector<8x128xf32>, i32 -> vector<8x128xf32>
    %c1_i32_90 = arith.constant 1 : i32
    %597 = tpu.dynamic_rotate %596 by %c1_i32_90 dim 0 : vector<8x128xf32>, i32 -> vector<8x128xf32>
    %598 = arith.select %592, %596, %597 : vector<8x128xi1>, vector<8x128xf32>
    %c40_i32_91 = arith.constant 40 : i32
    %599 = tpu.dynamic_rotate %435 by %c40_i32_91 dim 1 : vector<8x128xf32>, i32 -> vector<8x128xf32>
    %c1_i32_92 = arith.constant 1 : i32
    %600 = tpu.dynamic_rotate %599 by %c1_i32_92 dim 0 : vector<8x128xf32>, i32 -> vector<8x128xf32>
    %601 = arith.select %592, %599, %600 : vector<8x128xi1>, vector<8x128xf32>
    %c40_i32_93 = arith.constant 40 : i32
    %602 = tpu.dynamic_rotate %438 by %c40_i32_93 dim 1 : vector<8x128xf32>, i32 -> vector<8x128xf32>
    %c1_i32_94 = arith.constant 1 : i32
    %603 = tpu.dynamic_rotate %602 by %c1_i32_94 dim 0 : vector<8x128xf32>, i32 -> vector<8x128xf32>
    %604 = arith.select %592, %602, %603 : vector<8x128xi1>, vector<8x128xf32>
    %c66 = arith.constant 66 : index
    %605 = memref.load %arg2[%c66] : memref<481xf32, #tpu.memory_space<smem>>
    %606 = vector.broadcast %605 : f32 to vector<8x128xf32>
    %607 = arith.mulf %606, %595 : vector<8x128xf32>
    %608 = arith.addf %542, %607 : vector<8x128xf32>
    %c82 = arith.constant 82 : index
    %609 = memref.load %arg2[%c82] : memref<481xf32, #tpu.memory_space<smem>>
    %610 = vector.broadcast %609 : f32 to vector<8x128xf32>
    %611 = arith.mulf %610, %598 : vector<8x128xf32>
    %612 = arith.addf %608, %611 : vector<8x128xf32>
    %c98 = arith.constant 98 : index
    %613 = memref.load %arg2[%c98] : memref<481xf32, #tpu.memory_space<smem>>
    %614 = vector.broadcast %613 : f32 to vector<8x128xf32>
    %615 = arith.mulf %614, %601 : vector<8x128xf32>
    %616 = arith.addf %612, %615 : vector<8x128xf32>
    %c114 = arith.constant 114 : index
    %617 = memref.load %arg2[%c114] : memref<481xf32, #tpu.memory_space<smem>>
    %618 = vector.broadcast %617 : f32 to vector<8x128xf32>
    %619 = arith.mulf %618, %604 : vector<8x128xf32>
    %620 = arith.addf %616, %619 : vector<8x128xf32>
    %c130 = arith.constant 130 : index
    %621 = memref.load %arg2[%c130] : memref<481xf32, #tpu.memory_space<smem>>
    %622 = vector.broadcast %621 : f32 to vector<8x128xf32>
    %623 = arith.mulf %622, %595 : vector<8x128xf32>
    %624 = arith.addf %558, %623 : vector<8x128xf32>
    %c146 = arith.constant 146 : index
    %625 = memref.load %arg2[%c146] : memref<481xf32, #tpu.memory_space<smem>>
    %626 = vector.broadcast %625 : f32 to vector<8x128xf32>
    %627 = arith.mulf %626, %598 : vector<8x128xf32>
    %628 = arith.addf %624, %627 : vector<8x128xf32>
    %c162 = arith.constant 162 : index
    %629 = memref.load %arg2[%c162] : memref<481xf32, #tpu.memory_space<smem>>
    %630 = vector.broadcast %629 : f32 to vector<8x128xf32>
    %631 = arith.mulf %630, %601 : vector<8x128xf32>
    %632 = arith.addf %628, %631 : vector<8x128xf32>
    %c178 = arith.constant 178 : index
    %633 = memref.load %arg2[%c178] : memref<481xf32, #tpu.memory_space<smem>>
    %634 = vector.broadcast %633 : f32 to vector<8x128xf32>
    %635 = arith.mulf %634, %604 : vector<8x128xf32>
    %636 = arith.addf %632, %635 : vector<8x128xf32>
    %c194 = arith.constant 194 : index
    %637 = memref.load %arg2[%c194] : memref<481xf32, #tpu.memory_space<smem>>
    %638 = vector.broadcast %637 : f32 to vector<8x128xf32>
    %639 = arith.mulf %638, %595 : vector<8x128xf32>
    %640 = arith.addf %574, %639 : vector<8x128xf32>
    %c210 = arith.constant 210 : index
    %641 = memref.load %arg2[%c210] : memref<481xf32, #tpu.memory_space<smem>>
    %642 = vector.broadcast %641 : f32 to vector<8x128xf32>
    %643 = arith.mulf %642, %598 : vector<8x128xf32>
    %644 = arith.addf %640, %643 : vector<8x128xf32>
    %c226 = arith.constant 226 : index
    %645 = memref.load %arg2[%c226] : memref<481xf32, #tpu.memory_space<smem>>
    %646 = vector.broadcast %645 : f32 to vector<8x128xf32>
    %647 = arith.mulf %646, %601 : vector<8x128xf32>
    %648 = arith.addf %644, %647 : vector<8x128xf32>
    %c242 = arith.constant 242 : index
    %649 = memref.load %arg2[%c242] : memref<481xf32, #tpu.memory_space<smem>>
    %650 = vector.broadcast %649 : f32 to vector<8x128xf32>
    %651 = arith.mulf %650, %604 : vector<8x128xf32>
    %652 = arith.addf %648, %651 : vector<8x128xf32>
    %c258 = arith.constant 258 : index
    %653 = memref.load %arg2[%c258] : memref<481xf32, #tpu.memory_space<smem>>
    %654 = vector.broadcast %653 : f32 to vector<8x128xf32>
    %655 = arith.mulf %654, %595 : vector<8x128xf32>
    %656 = arith.addf %590, %655 : vector<8x128xf32>
    %c274 = arith.constant 274 : index
    %657 = memref.load %arg2[%c274] : memref<481xf32, #tpu.memory_space<smem>>
    %658 = vector.broadcast %657 : f32 to vector<8x128xf32>
    %659 = arith.mulf %658, %598 : vector<8x128xf32>
    %660 = arith.addf %656, %659 : vector<8x128xf32>
    %c290 = arith.constant 290 : index
    %661 = memref.load %arg2[%c290] : memref<481xf32, #tpu.memory_space<smem>>
    %662 = vector.broadcast %661 : f32 to vector<8x128xf32>
    %663 = arith.mulf %662, %601 : vector<8x128xf32>
    %664 = arith.addf %660, %663 : vector<8x128xf32>
    %c306 = arith.constant 306 : index
    %665 = memref.load %arg2[%c306] : memref<481xf32, #tpu.memory_space<smem>>
    %666 = vector.broadcast %665 : f32 to vector<8x128xf32>
    %667 = arith.mulf %666, %604 : vector<8x128xf32>
    %668 = arith.addf %664, %667 : vector<8x128xf32>
    %c39_i32 = arith.constant 39 : i32
    %669 = vector.broadcast %c39_i32 : i32 to vector<8x128xi32>
    %670 = arith.cmpi sge, %4, %669 : vector<8x128xi32>
    %c39_i32_95 = arith.constant 39 : i32
    %671 = tpu.dynamic_rotate %429 by %c39_i32_95 dim 1 : vector<8x128xf32>, i32 -> vector<8x128xf32>
    %c1_i32_96 = arith.constant 1 : i32
    %672 = tpu.dynamic_rotate %671 by %c1_i32_96 dim 0 : vector<8x128xf32>, i32 -> vector<8x128xf32>
    %673 = arith.select %670, %671, %672 : vector<8x128xi1>, vector<8x128xf32>
    %c39_i32_97 = arith.constant 39 : i32
    %674 = tpu.dynamic_rotate %432 by %c39_i32_97 dim 1 : vector<8x128xf32>, i32 -> vector<8x128xf32>
    %c1_i32_98 = arith.constant 1 : i32
    %675 = tpu.dynamic_rotate %674 by %c1_i32_98 dim 0 : vector<8x128xf32>, i32 -> vector<8x128xf32>
    %676 = arith.select %670, %674, %675 : vector<8x128xi1>, vector<8x128xf32>
    %c39_i32_99 = arith.constant 39 : i32
    %677 = tpu.dynamic_rotate %435 by %c39_i32_99 dim 1 : vector<8x128xf32>, i32 -> vector<8x128xf32>
    %c1_i32_100 = arith.constant 1 : i32
    %678 = tpu.dynamic_rotate %677 by %c1_i32_100 dim 0 : vector<8x128xf32>, i32 -> vector<8x128xf32>
    %679 = arith.select %670, %677, %678 : vector<8x128xi1>, vector<8x128xf32>
    %c39_i32_101 = arith.constant 39 : i32
    %680 = tpu.dynamic_rotate %438 by %c39_i32_101 dim 1 : vector<8x128xf32>, i32 -> vector<8x128xf32>
    %c1_i32_102 = arith.constant 1 : i32
    %681 = tpu.dynamic_rotate %680 by %c1_i32_102 dim 0 : vector<8x128xf32>, i32 -> vector<8x128xf32>
    %682 = arith.select %670, %680, %681 : vector<8x128xi1>, vector<8x128xf32>
    %c67 = arith.constant 67 : index
    %683 = memref.load %arg2[%c67] : memref<481xf32, #tpu.memory_space<smem>>
    %684 = vector.broadcast %683 : f32 to vector<8x128xf32>
    %685 = arith.mulf %684, %673 : vector<8x128xf32>
    %686 = arith.addf %620, %685 : vector<8x128xf32>
    %c83 = arith.constant 83 : index
    %687 = memref.load %arg2[%c83] : memref<481xf32, #tpu.memory_space<smem>>
    %688 = vector.broadcast %687 : f32 to vector<8x128xf32>
    %689 = arith.mulf %688, %676 : vector<8x128xf32>
    %690 = arith.addf %686, %689 : vector<8x128xf32>
    %c99 = arith.constant 99 : index
    %691 = memref.load %arg2[%c99] : memref<481xf32, #tpu.memory_space<smem>>
    %692 = vector.broadcast %691 : f32 to vector<8x128xf32>
    %693 = arith.mulf %692, %679 : vector<8x128xf32>
    %694 = arith.addf %690, %693 : vector<8x128xf32>
    %c115 = arith.constant 115 : index
    %695 = memref.load %arg2[%c115] : memref<481xf32, #tpu.memory_space<smem>>
    %696 = vector.broadcast %695 : f32 to vector<8x128xf32>
    %697 = arith.mulf %696, %682 : vector<8x128xf32>
    %698 = arith.addf %694, %697 : vector<8x128xf32>
    %c131 = arith.constant 131 : index
    %699 = memref.load %arg2[%c131] : memref<481xf32, #tpu.memory_space<smem>>
    %700 = vector.broadcast %699 : f32 to vector<8x128xf32>
    %701 = arith.mulf %700, %673 : vector<8x128xf32>
    %702 = arith.addf %636, %701 : vector<8x128xf32>
    %c147 = arith.constant 147 : index
    %703 = memref.load %arg2[%c147] : memref<481xf32, #tpu.memory_space<smem>>
    %704 = vector.broadcast %703 : f32 to vector<8x128xf32>
    %705 = arith.mulf %704, %676 : vector<8x128xf32>
    %706 = arith.addf %702, %705 : vector<8x128xf32>
    %c163 = arith.constant 163 : index
    %707 = memref.load %arg2[%c163] : memref<481xf32, #tpu.memory_space<smem>>
    %708 = vector.broadcast %707 : f32 to vector<8x128xf32>
    %709 = arith.mulf %708, %679 : vector<8x128xf32>
    %710 = arith.addf %706, %709 : vector<8x128xf32>
    %c179 = arith.constant 179 : index
    %711 = memref.load %arg2[%c179] : memref<481xf32, #tpu.memory_space<smem>>
    %712 = vector.broadcast %711 : f32 to vector<8x128xf32>
    %713 = arith.mulf %712, %682 : vector<8x128xf32>
    %714 = arith.addf %710, %713 : vector<8x128xf32>
    %c195 = arith.constant 195 : index
    %715 = memref.load %arg2[%c195] : memref<481xf32, #tpu.memory_space<smem>>
    %716 = vector.broadcast %715 : f32 to vector<8x128xf32>
    %717 = arith.mulf %716, %673 : vector<8x128xf32>
    %718 = arith.addf %652, %717 : vector<8x128xf32>
    %c211 = arith.constant 211 : index
    %719 = memref.load %arg2[%c211] : memref<481xf32, #tpu.memory_space<smem>>
    %720 = vector.broadcast %719 : f32 to vector<8x128xf32>
    %721 = arith.mulf %720, %676 : vector<8x128xf32>
    %722 = arith.addf %718, %721 : vector<8x128xf32>
    %c227 = arith.constant 227 : index
    %723 = memref.load %arg2[%c227] : memref<481xf32, #tpu.memory_space<smem>>
    %724 = vector.broadcast %723 : f32 to vector<8x128xf32>
    %725 = arith.mulf %724, %679 : vector<8x128xf32>
    %726 = arith.addf %722, %725 : vector<8x128xf32>
    %c243 = arith.constant 243 : index
    %727 = memref.load %arg2[%c243] : memref<481xf32, #tpu.memory_space<smem>>
    %728 = vector.broadcast %727 : f32 to vector<8x128xf32>
    %729 = arith.mulf %728, %682 : vector<8x128xf32>
    %730 = arith.addf %726, %729 : vector<8x128xf32>
    %c259 = arith.constant 259 : index
    %731 = memref.load %arg2[%c259] : memref<481xf32, #tpu.memory_space<smem>>
    %732 = vector.broadcast %731 : f32 to vector<8x128xf32>
    %733 = arith.mulf %732, %673 : vector<8x128xf32>
    %734 = arith.addf %668, %733 : vector<8x128xf32>
    %c275 = arith.constant 275 : index
    %735 = memref.load %arg2[%c275] : memref<481xf32, #tpu.memory_space<smem>>
    %736 = vector.broadcast %735 : f32 to vector<8x128xf32>
    %737 = arith.mulf %736, %676 : vector<8x128xf32>
    %738 = arith.addf %734, %737 : vector<8x128xf32>
    %c291 = arith.constant 291 : index
    %739 = memref.load %arg2[%c291] : memref<481xf32, #tpu.memory_space<smem>>
    %740 = vector.broadcast %739 : f32 to vector<8x128xf32>
    %741 = arith.mulf %740, %679 : vector<8x128xf32>
    %742 = arith.addf %738, %741 : vector<8x128xf32>
    %c307 = arith.constant 307 : index
    %743 = memref.load %arg2[%c307] : memref<481xf32, #tpu.memory_space<smem>>
    %744 = vector.broadcast %743 : f32 to vector<8x128xf32>
    %745 = arith.mulf %744, %682 : vector<8x128xf32>
    %746 = arith.addf %742, %745 : vector<8x128xf32>
    %c22_i32 = arith.constant 22 : i32
    %747 = vector.broadcast %c22_i32 : i32 to vector<8x128xi32>
    %748 = arith.cmpi sge, %4, %747 : vector<8x128xi32>
    %c22_i32_103 = arith.constant 22 : i32
    %749 = tpu.dynamic_rotate %429 by %c22_i32_103 dim 1 : vector<8x128xf32>, i32 -> vector<8x128xf32>
    %c1_i32_104 = arith.constant 1 : i32
    %750 = tpu.dynamic_rotate %749 by %c1_i32_104 dim 0 : vector<8x128xf32>, i32 -> vector<8x128xf32>
    %751 = arith.select %748, %749, %750 : vector<8x128xi1>, vector<8x128xf32>
    %c22_i32_105 = arith.constant 22 : i32
    %752 = tpu.dynamic_rotate %432 by %c22_i32_105 dim 1 : vector<8x128xf32>, i32 -> vector<8x128xf32>
    %c1_i32_106 = arith.constant 1 : i32
    %753 = tpu.dynamic_rotate %752 by %c1_i32_106 dim 0 : vector<8x128xf32>, i32 -> vector<8x128xf32>
    %754 = arith.select %748, %752, %753 : vector<8x128xi1>, vector<8x128xf32>
    %c22_i32_107 = arith.constant 22 : i32
    %755 = tpu.dynamic_rotate %435 by %c22_i32_107 dim 1 : vector<8x128xf32>, i32 -> vector<8x128xf32>
    %c1_i32_108 = arith.constant 1 : i32
    %756 = tpu.dynamic_rotate %755 by %c1_i32_108 dim 0 : vector<8x128xf32>, i32 -> vector<8x128xf32>
    %757 = arith.select %748, %755, %756 : vector<8x128xi1>, vector<8x128xf32>
    %c22_i32_109 = arith.constant 22 : i32
    %758 = tpu.dynamic_rotate %438 by %c22_i32_109 dim 1 : vector<8x128xf32>, i32 -> vector<8x128xf32>
    %c1_i32_110 = arith.constant 1 : i32
    %759 = tpu.dynamic_rotate %758 by %c1_i32_110 dim 0 : vector<8x128xf32>, i32 -> vector<8x128xf32>
    %760 = arith.select %748, %758, %759 : vector<8x128xi1>, vector<8x128xf32>
    %c68 = arith.constant 68 : index
    %761 = memref.load %arg2[%c68] : memref<481xf32, #tpu.memory_space<smem>>
    %762 = vector.broadcast %761 : f32 to vector<8x128xf32>
    %763 = arith.mulf %762, %751 : vector<8x128xf32>
    %764 = arith.addf %698, %763 : vector<8x128xf32>
    %c84 = arith.constant 84 : index
    %765 = memref.load %arg2[%c84] : memref<481xf32, #tpu.memory_space<smem>>
    %766 = vector.broadcast %765 : f32 to vector<8x128xf32>
    %767 = arith.mulf %766, %754 : vector<8x128xf32>
    %768 = arith.addf %764, %767 : vector<8x128xf32>
    %c100 = arith.constant 100 : index
    %769 = memref.load %arg2[%c100] : memref<481xf32, #tpu.memory_space<smem>>
    %770 = vector.broadcast %769 : f32 to vector<8x128xf32>
    %771 = arith.mulf %770, %757 : vector<8x128xf32>
    %772 = arith.addf %768, %771 : vector<8x128xf32>
    %c116 = arith.constant 116 : index
    %773 = memref.load %arg2[%c116] : memref<481xf32, #tpu.memory_space<smem>>
    %774 = vector.broadcast %773 : f32 to vector<8x128xf32>
    %775 = arith.mulf %774, %760 : vector<8x128xf32>
    %776 = arith.addf %772, %775 : vector<8x128xf32>
    %c132 = arith.constant 132 : index
    %777 = memref.load %arg2[%c132] : memref<481xf32, #tpu.memory_space<smem>>
    %778 = vector.broadcast %777 : f32 to vector<8x128xf32>
    %779 = arith.mulf %778, %751 : vector<8x128xf32>
    %780 = arith.addf %714, %779 : vector<8x128xf32>
    %c148 = arith.constant 148 : index
    %781 = memref.load %arg2[%c148] : memref<481xf32, #tpu.memory_space<smem>>
    %782 = vector.broadcast %781 : f32 to vector<8x128xf32>
    %783 = arith.mulf %782, %754 : vector<8x128xf32>
    %784 = arith.addf %780, %783 : vector<8x128xf32>
    %c164 = arith.constant 164 : index
    %785 = memref.load %arg2[%c164] : memref<481xf32, #tpu.memory_space<smem>>
    %786 = vector.broadcast %785 : f32 to vector<8x128xf32>
    %787 = arith.mulf %786, %757 : vector<8x128xf32>
    %788 = arith.addf %784, %787 : vector<8x128xf32>
    %c180 = arith.constant 180 : index
    %789 = memref.load %arg2[%c180] : memref<481xf32, #tpu.memory_space<smem>>
    %790 = vector.broadcast %789 : f32 to vector<8x128xf32>
    %791 = arith.mulf %790, %760 : vector<8x128xf32>
    %792 = arith.addf %788, %791 : vector<8x128xf32>
    %c196 = arith.constant 196 : index
    %793 = memref.load %arg2[%c196] : memref<481xf32, #tpu.memory_space<smem>>
    %794 = vector.broadcast %793 : f32 to vector<8x128xf32>
    %795 = arith.mulf %794, %751 : vector<8x128xf32>
    %796 = arith.addf %730, %795 : vector<8x128xf32>
    %c212 = arith.constant 212 : index
    %797 = memref.load %arg2[%c212] : memref<481xf32, #tpu.memory_space<smem>>
    %798 = vector.broadcast %797 : f32 to vector<8x128xf32>
    %799 = arith.mulf %798, %754 : vector<8x128xf32>
    %800 = arith.addf %796, %799 : vector<8x128xf32>
    %c228 = arith.constant 228 : index
    %801 = memref.load %arg2[%c228] : memref<481xf32, #tpu.memory_space<smem>>
    %802 = vector.broadcast %801 : f32 to vector<8x128xf32>
    %803 = arith.mulf %802, %757 : vector<8x128xf32>
    %804 = arith.addf %800, %803 : vector<8x128xf32>
    %c244 = arith.constant 244 : index
    %805 = memref.load %arg2[%c244] : memref<481xf32, #tpu.memory_space<smem>>
    %806 = vector.broadcast %805 : f32 to vector<8x128xf32>
    %807 = arith.mulf %806, %760 : vector<8x128xf32>
    %808 = arith.addf %804, %807 : vector<8x128xf32>
    %c260 = arith.constant 260 : index
    %809 = memref.load %arg2[%c260] : memref<481xf32, #tpu.memory_space<smem>>
    %810 = vector.broadcast %809 : f32 to vector<8x128xf32>
    %811 = arith.mulf %810, %751 : vector<8x128xf32>
    %812 = arith.addf %746, %811 : vector<8x128xf32>
    %c276 = arith.constant 276 : index
    %813 = memref.load %arg2[%c276] : memref<481xf32, #tpu.memory_space<smem>>
    %814 = vector.broadcast %813 : f32 to vector<8x128xf32>
    %815 = arith.mulf %814, %754 : vector<8x128xf32>
    %816 = arith.addf %812, %815 : vector<8x128xf32>
    %c292 = arith.constant 292 : index
    %817 = memref.load %arg2[%c292] : memref<481xf32, #tpu.memory_space<smem>>
    %818 = vector.broadcast %817 : f32 to vector<8x128xf32>
    %819 = arith.mulf %818, %757 : vector<8x128xf32>
    %820 = arith.addf %816, %819 : vector<8x128xf32>
    %c308 = arith.constant 308 : index
    %821 = memref.load %arg2[%c308] : memref<481xf32, #tpu.memory_space<smem>>
    %822 = vector.broadcast %821 : f32 to vector<8x128xf32>
    %823 = arith.mulf %822, %760 : vector<8x128xf32>
    %824 = arith.addf %820, %823 : vector<8x128xf32>
    %c21_i32 = arith.constant 21 : i32
    %825 = vector.broadcast %c21_i32 : i32 to vector<8x128xi32>
    %826 = arith.cmpi sge, %4, %825 : vector<8x128xi32>
    %c21_i32_111 = arith.constant 21 : i32
    %827 = tpu.dynamic_rotate %429 by %c21_i32_111 dim 1 : vector<8x128xf32>, i32 -> vector<8x128xf32>
    %c1_i32_112 = arith.constant 1 : i32
    %828 = tpu.dynamic_rotate %827 by %c1_i32_112 dim 0 : vector<8x128xf32>, i32 -> vector<8x128xf32>
    %829 = arith.select %826, %827, %828 : vector<8x128xi1>, vector<8x128xf32>
    %c21_i32_113 = arith.constant 21 : i32
    %830 = tpu.dynamic_rotate %432 by %c21_i32_113 dim 1 : vector<8x128xf32>, i32 -> vector<8x128xf32>
    %c1_i32_114 = arith.constant 1 : i32
    %831 = tpu.dynamic_rotate %830 by %c1_i32_114 dim 0 : vector<8x128xf32>, i32 -> vector<8x128xf32>
    %832 = arith.select %826, %830, %831 : vector<8x128xi1>, vector<8x128xf32>
    %c21_i32_115 = arith.constant 21 : i32
    %833 = tpu.dynamic_rotate %435 by %c21_i32_115 dim 1 : vector<8x128xf32>, i32 -> vector<8x128xf32>
    %c1_i32_116 = arith.constant 1 : i32
    %834 = tpu.dynamic_rotate %833 by %c1_i32_116 dim 0 : vector<8x128xf32>, i32 -> vector<8x128xf32>
    %835 = arith.select %826, %833, %834 : vector<8x128xi1>, vector<8x128xf32>
    %c21_i32_117 = arith.constant 21 : i32
    %836 = tpu.dynamic_rotate %438 by %c21_i32_117 dim 1 : vector<8x128xf32>, i32 -> vector<8x128xf32>
    %c1_i32_118 = arith.constant 1 : i32
    %837 = tpu.dynamic_rotate %836 by %c1_i32_118 dim 0 : vector<8x128xf32>, i32 -> vector<8x128xf32>
    %838 = arith.select %826, %836, %837 : vector<8x128xi1>, vector<8x128xf32>
    %c69 = arith.constant 69 : index
    %839 = memref.load %arg2[%c69] : memref<481xf32, #tpu.memory_space<smem>>
    %840 = vector.broadcast %839 : f32 to vector<8x128xf32>
    %841 = arith.mulf %840, %829 : vector<8x128xf32>
    %842 = arith.addf %776, %841 : vector<8x128xf32>
    %c85 = arith.constant 85 : index
    %843 = memref.load %arg2[%c85] : memref<481xf32, #tpu.memory_space<smem>>
    %844 = vector.broadcast %843 : f32 to vector<8x128xf32>
    %845 = arith.mulf %844, %832 : vector<8x128xf32>
    %846 = arith.addf %842, %845 : vector<8x128xf32>
    %c101 = arith.constant 101 : index
    %847 = memref.load %arg2[%c101] : memref<481xf32, #tpu.memory_space<smem>>
    %848 = vector.broadcast %847 : f32 to vector<8x128xf32>
    %849 = arith.mulf %848, %835 : vector<8x128xf32>
    %850 = arith.addf %846, %849 : vector<8x128xf32>
    %c117 = arith.constant 117 : index
    %851 = memref.load %arg2[%c117] : memref<481xf32, #tpu.memory_space<smem>>
    %852 = vector.broadcast %851 : f32 to vector<8x128xf32>
    %853 = arith.mulf %852, %838 : vector<8x128xf32>
    %854 = arith.addf %850, %853 : vector<8x128xf32>
    %c133 = arith.constant 133 : index
    %855 = memref.load %arg2[%c133] : memref<481xf32, #tpu.memory_space<smem>>
    %856 = vector.broadcast %855 : f32 to vector<8x128xf32>
    %857 = arith.mulf %856, %829 : vector<8x128xf32>
    %858 = arith.addf %792, %857 : vector<8x128xf32>
    %c149 = arith.constant 149 : index
    %859 = memref.load %arg2[%c149] : memref<481xf32, #tpu.memory_space<smem>>
    %860 = vector.broadcast %859 : f32 to vector<8x128xf32>
    %861 = arith.mulf %860, %832 : vector<8x128xf32>
    %862 = arith.addf %858, %861 : vector<8x128xf32>
    %c165 = arith.constant 165 : index
    %863 = memref.load %arg2[%c165] : memref<481xf32, #tpu.memory_space<smem>>
    %864 = vector.broadcast %863 : f32 to vector<8x128xf32>
    %865 = arith.mulf %864, %835 : vector<8x128xf32>
    %866 = arith.addf %862, %865 : vector<8x128xf32>
    %c181 = arith.constant 181 : index
    %867 = memref.load %arg2[%c181] : memref<481xf32, #tpu.memory_space<smem>>
    %868 = vector.broadcast %867 : f32 to vector<8x128xf32>
    %869 = arith.mulf %868, %838 : vector<8x128xf32>
    %870 = arith.addf %866, %869 : vector<8x128xf32>
    %c197 = arith.constant 197 : index
    %871 = memref.load %arg2[%c197] : memref<481xf32, #tpu.memory_space<smem>>
    %872 = vector.broadcast %871 : f32 to vector<8x128xf32>
    %873 = arith.mulf %872, %829 : vector<8x128xf32>
    %874 = arith.addf %808, %873 : vector<8x128xf32>
    %c213 = arith.constant 213 : index
    %875 = memref.load %arg2[%c213] : memref<481xf32, #tpu.memory_space<smem>>
    %876 = vector.broadcast %875 : f32 to vector<8x128xf32>
    %877 = arith.mulf %876, %832 : vector<8x128xf32>
    %878 = arith.addf %874, %877 : vector<8x128xf32>
    %c229 = arith.constant 229 : index
    %879 = memref.load %arg2[%c229] : memref<481xf32, #tpu.memory_space<smem>>
    %880 = vector.broadcast %879 : f32 to vector<8x128xf32>
    %881 = arith.mulf %880, %835 : vector<8x128xf32>
    %882 = arith.addf %878, %881 : vector<8x128xf32>
    %c245 = arith.constant 245 : index
    %883 = memref.load %arg2[%c245] : memref<481xf32, #tpu.memory_space<smem>>
    %884 = vector.broadcast %883 : f32 to vector<8x128xf32>
    %885 = arith.mulf %884, %838 : vector<8x128xf32>
    %886 = arith.addf %882, %885 : vector<8x128xf32>
    %c261 = arith.constant 261 : index
    %887 = memref.load %arg2[%c261] : memref<481xf32, #tpu.memory_space<smem>>
    %888 = vector.broadcast %887 : f32 to vector<8x128xf32>
    %889 = arith.mulf %888, %829 : vector<8x128xf32>
    %890 = arith.addf %824, %889 : vector<8x128xf32>
    %c277 = arith.constant 277 : index
    %891 = memref.load %arg2[%c277] : memref<481xf32, #tpu.memory_space<smem>>
    %892 = vector.broadcast %891 : f32 to vector<8x128xf32>
    %893 = arith.mulf %892, %832 : vector<8x128xf32>
    %894 = arith.addf %890, %893 : vector<8x128xf32>
    %c293 = arith.constant 293 : index
    %895 = memref.load %arg2[%c293] : memref<481xf32, #tpu.memory_space<smem>>
    %896 = vector.broadcast %895 : f32 to vector<8x128xf32>
    %897 = arith.mulf %896, %835 : vector<8x128xf32>
    %898 = arith.addf %894, %897 : vector<8x128xf32>
    %c309 = arith.constant 309 : index
    %899 = memref.load %arg2[%c309] : memref<481xf32, #tpu.memory_space<smem>>
    %900 = vector.broadcast %899 : f32 to vector<8x128xf32>
    %901 = arith.mulf %900, %838 : vector<8x128xf32>
    %902 = arith.addf %898, %901 : vector<8x128xf32>
    %c20_i32 = arith.constant 20 : i32
    %903 = vector.broadcast %c20_i32 : i32 to vector<8x128xi32>
    %904 = arith.cmpi sge, %4, %903 : vector<8x128xi32>
    %c20_i32_119 = arith.constant 20 : i32
    %905 = tpu.dynamic_rotate %429 by %c20_i32_119 dim 1 : vector<8x128xf32>, i32 -> vector<8x128xf32>
    %c1_i32_120 = arith.constant 1 : i32
    %906 = tpu.dynamic_rotate %905 by %c1_i32_120 dim 0 : vector<8x128xf32>, i32 -> vector<8x128xf32>
    %907 = arith.select %904, %905, %906 : vector<8x128xi1>, vector<8x128xf32>
    %c20_i32_121 = arith.constant 20 : i32
    %908 = tpu.dynamic_rotate %432 by %c20_i32_121 dim 1 : vector<8x128xf32>, i32 -> vector<8x128xf32>
    %c1_i32_122 = arith.constant 1 : i32
    %909 = tpu.dynamic_rotate %908 by %c1_i32_122 dim 0 : vector<8x128xf32>, i32 -> vector<8x128xf32>
    %910 = arith.select %904, %908, %909 : vector<8x128xi1>, vector<8x128xf32>
    %c20_i32_123 = arith.constant 20 : i32
    %911 = tpu.dynamic_rotate %435 by %c20_i32_123 dim 1 : vector<8x128xf32>, i32 -> vector<8x128xf32>
    %c1_i32_124 = arith.constant 1 : i32
    %912 = tpu.dynamic_rotate %911 by %c1_i32_124 dim 0 : vector<8x128xf32>, i32 -> vector<8x128xf32>
    %913 = arith.select %904, %911, %912 : vector<8x128xi1>, vector<8x128xf32>
    %c20_i32_125 = arith.constant 20 : i32
    %914 = tpu.dynamic_rotate %438 by %c20_i32_125 dim 1 : vector<8x128xf32>, i32 -> vector<8x128xf32>
    %c1_i32_126 = arith.constant 1 : i32
    %915 = tpu.dynamic_rotate %914 by %c1_i32_126 dim 0 : vector<8x128xf32>, i32 -> vector<8x128xf32>
    %916 = arith.select %904, %914, %915 : vector<8x128xi1>, vector<8x128xf32>
    %c70 = arith.constant 70 : index
    %917 = memref.load %arg2[%c70] : memref<481xf32, #tpu.memory_space<smem>>
    %918 = vector.broadcast %917 : f32 to vector<8x128xf32>
    %919 = arith.mulf %918, %907 : vector<8x128xf32>
    %920 = arith.addf %854, %919 : vector<8x128xf32>
    %c86 = arith.constant 86 : index
    %921 = memref.load %arg2[%c86] : memref<481xf32, #tpu.memory_space<smem>>
    %922 = vector.broadcast %921 : f32 to vector<8x128xf32>
    %923 = arith.mulf %922, %910 : vector<8x128xf32>
    %924 = arith.addf %920, %923 : vector<8x128xf32>
    %c102 = arith.constant 102 : index
    %925 = memref.load %arg2[%c102] : memref<481xf32, #tpu.memory_space<smem>>
    %926 = vector.broadcast %925 : f32 to vector<8x128xf32>
    %927 = arith.mulf %926, %913 : vector<8x128xf32>
    %928 = arith.addf %924, %927 : vector<8x128xf32>
    %c118 = arith.constant 118 : index
    %929 = memref.load %arg2[%c118] : memref<481xf32, #tpu.memory_space<smem>>
    %930 = vector.broadcast %929 : f32 to vector<8x128xf32>
    %931 = arith.mulf %930, %916 : vector<8x128xf32>
    %932 = arith.addf %928, %931 : vector<8x128xf32>
    %c134 = arith.constant 134 : index
    %933 = memref.load %arg2[%c134] : memref<481xf32, #tpu.memory_space<smem>>
    %934 = vector.broadcast %933 : f32 to vector<8x128xf32>
    %935 = arith.mulf %934, %907 : vector<8x128xf32>
    %936 = arith.addf %870, %935 : vector<8x128xf32>
    %c150 = arith.constant 150 : index
    %937 = memref.load %arg2[%c150] : memref<481xf32, #tpu.memory_space<smem>>
    %938 = vector.broadcast %937 : f32 to vector<8x128xf32>
    %939 = arith.mulf %938, %910 : vector<8x128xf32>
    %940 = arith.addf %936, %939 : vector<8x128xf32>
    %c166 = arith.constant 166 : index
    %941 = memref.load %arg2[%c166] : memref<481xf32, #tpu.memory_space<smem>>
    %942 = vector.broadcast %941 : f32 to vector<8x128xf32>
    %943 = arith.mulf %942, %913 : vector<8x128xf32>
    %944 = arith.addf %940, %943 : vector<8x128xf32>
    %c182 = arith.constant 182 : index
    %945 = memref.load %arg2[%c182] : memref<481xf32, #tpu.memory_space<smem>>
    %946 = vector.broadcast %945 : f32 to vector<8x128xf32>
    %947 = arith.mulf %946, %916 : vector<8x128xf32>
    %948 = arith.addf %944, %947 : vector<8x128xf32>
    %c198 = arith.constant 198 : index
    %949 = memref.load %arg2[%c198] : memref<481xf32, #tpu.memory_space<smem>>
    %950 = vector.broadcast %949 : f32 to vector<8x128xf32>
    %951 = arith.mulf %950, %907 : vector<8x128xf32>
    %952 = arith.addf %886, %951 : vector<8x128xf32>
    %c214 = arith.constant 214 : index
    %953 = memref.load %arg2[%c214] : memref<481xf32, #tpu.memory_space<smem>>
    %954 = vector.broadcast %953 : f32 to vector<8x128xf32>
    %955 = arith.mulf %954, %910 : vector<8x128xf32>
    %956 = arith.addf %952, %955 : vector<8x128xf32>
    %c230 = arith.constant 230 : index
    %957 = memref.load %arg2[%c230] : memref<481xf32, #tpu.memory_space<smem>>
    %958 = vector.broadcast %957 : f32 to vector<8x128xf32>
    %959 = arith.mulf %958, %913 : vector<8x128xf32>
    %960 = arith.addf %956, %959 : vector<8x128xf32>
    %c246 = arith.constant 246 : index
    %961 = memref.load %arg2[%c246] : memref<481xf32, #tpu.memory_space<smem>>
    %962 = vector.broadcast %961 : f32 to vector<8x128xf32>
    %963 = arith.mulf %962, %916 : vector<8x128xf32>
    %964 = arith.addf %960, %963 : vector<8x128xf32>
    %c262 = arith.constant 262 : index
    %965 = memref.load %arg2[%c262] : memref<481xf32, #tpu.memory_space<smem>>
    %966 = vector.broadcast %965 : f32 to vector<8x128xf32>
    %967 = arith.mulf %966, %907 : vector<8x128xf32>
    %968 = arith.addf %902, %967 : vector<8x128xf32>
    %c278 = arith.constant 278 : index
    %969 = memref.load %arg2[%c278] : memref<481xf32, #tpu.memory_space<smem>>
    %970 = vector.broadcast %969 : f32 to vector<8x128xf32>
    %971 = arith.mulf %970, %910 : vector<8x128xf32>
    %972 = arith.addf %968, %971 : vector<8x128xf32>
    %c294 = arith.constant 294 : index
    %973 = memref.load %arg2[%c294] : memref<481xf32, #tpu.memory_space<smem>>
    %974 = vector.broadcast %973 : f32 to vector<8x128xf32>
    %975 = arith.mulf %974, %913 : vector<8x128xf32>
    %976 = arith.addf %972, %975 : vector<8x128xf32>
    %c310 = arith.constant 310 : index
    %977 = memref.load %arg2[%c310] : memref<481xf32, #tpu.memory_space<smem>>
    %978 = vector.broadcast %977 : f32 to vector<8x128xf32>
    %979 = arith.mulf %978, %916 : vector<8x128xf32>
    %980 = arith.addf %976, %979 : vector<8x128xf32>
    %c19_i32 = arith.constant 19 : i32
    %981 = vector.broadcast %c19_i32 : i32 to vector<8x128xi32>
    %982 = arith.cmpi sge, %4, %981 : vector<8x128xi32>
    %c19_i32_127 = arith.constant 19 : i32
    %983 = tpu.dynamic_rotate %429 by %c19_i32_127 dim 1 : vector<8x128xf32>, i32 -> vector<8x128xf32>
    %c1_i32_128 = arith.constant 1 : i32
    %984 = tpu.dynamic_rotate %983 by %c1_i32_128 dim 0 : vector<8x128xf32>, i32 -> vector<8x128xf32>
    %985 = arith.select %982, %983, %984 : vector<8x128xi1>, vector<8x128xf32>
    %c19_i32_129 = arith.constant 19 : i32
    %986 = tpu.dynamic_rotate %432 by %c19_i32_129 dim 1 : vector<8x128xf32>, i32 -> vector<8x128xf32>
    %c1_i32_130 = arith.constant 1 : i32
    %987 = tpu.dynamic_rotate %986 by %c1_i32_130 dim 0 : vector<8x128xf32>, i32 -> vector<8x128xf32>
    %988 = arith.select %982, %986, %987 : vector<8x128xi1>, vector<8x128xf32>
    %c19_i32_131 = arith.constant 19 : i32
    %989 = tpu.dynamic_rotate %435 by %c19_i32_131 dim 1 : vector<8x128xf32>, i32 -> vector<8x128xf32>
    %c1_i32_132 = arith.constant 1 : i32
    %990 = tpu.dynamic_rotate %989 by %c1_i32_132 dim 0 : vector<8x128xf32>, i32 -> vector<8x128xf32>
    %991 = arith.select %982, %989, %990 : vector<8x128xi1>, vector<8x128xf32>
    %c19_i32_133 = arith.constant 19 : i32
    %992 = tpu.dynamic_rotate %438 by %c19_i32_133 dim 1 : vector<8x128xf32>, i32 -> vector<8x128xf32>
    %c1_i32_134 = arith.constant 1 : i32
    %993 = tpu.dynamic_rotate %992 by %c1_i32_134 dim 0 : vector<8x128xf32>, i32 -> vector<8x128xf32>
    %994 = arith.select %982, %992, %993 : vector<8x128xi1>, vector<8x128xf32>
    %c71 = arith.constant 71 : index
    %995 = memref.load %arg2[%c71] : memref<481xf32, #tpu.memory_space<smem>>
    %996 = vector.broadcast %995 : f32 to vector<8x128xf32>
    %997 = arith.mulf %996, %985 : vector<8x128xf32>
    %998 = arith.addf %932, %997 : vector<8x128xf32>
    %c87 = arith.constant 87 : index
    %999 = memref.load %arg2[%c87] : memref<481xf32, #tpu.memory_space<smem>>
    %1000 = vector.broadcast %999 : f32 to vector<8x128xf32>
    %1001 = arith.mulf %1000, %988 : vector<8x128xf32>
    %1002 = arith.addf %998, %1001 : vector<8x128xf32>
    %c103 = arith.constant 103 : index
    %1003 = memref.load %arg2[%c103] : memref<481xf32, #tpu.memory_space<smem>>
    %1004 = vector.broadcast %1003 : f32 to vector<8x128xf32>
    %1005 = arith.mulf %1004, %991 : vector<8x128xf32>
    %1006 = arith.addf %1002, %1005 : vector<8x128xf32>
    %c119 = arith.constant 119 : index
    %1007 = memref.load %arg2[%c119] : memref<481xf32, #tpu.memory_space<smem>>
    %1008 = vector.broadcast %1007 : f32 to vector<8x128xf32>
    %1009 = arith.mulf %1008, %994 : vector<8x128xf32>
    %1010 = arith.addf %1006, %1009 : vector<8x128xf32>
    %c135 = arith.constant 135 : index
    %1011 = memref.load %arg2[%c135] : memref<481xf32, #tpu.memory_space<smem>>
    %1012 = vector.broadcast %1011 : f32 to vector<8x128xf32>
    %1013 = arith.mulf %1012, %985 : vector<8x128xf32>
    %1014 = arith.addf %948, %1013 : vector<8x128xf32>
    %c151 = arith.constant 151 : index
    %1015 = memref.load %arg2[%c151] : memref<481xf32, #tpu.memory_space<smem>>
    %1016 = vector.broadcast %1015 : f32 to vector<8x128xf32>
    %1017 = arith.mulf %1016, %988 : vector<8x128xf32>
    %1018 = arith.addf %1014, %1017 : vector<8x128xf32>
    %c167 = arith.constant 167 : index
    %1019 = memref.load %arg2[%c167] : memref<481xf32, #tpu.memory_space<smem>>
    %1020 = vector.broadcast %1019 : f32 to vector<8x128xf32>
    %1021 = arith.mulf %1020, %991 : vector<8x128xf32>
    %1022 = arith.addf %1018, %1021 : vector<8x128xf32>
    %c183 = arith.constant 183 : index
    %1023 = memref.load %arg2[%c183] : memref<481xf32, #tpu.memory_space<smem>>
    %1024 = vector.broadcast %1023 : f32 to vector<8x128xf32>
    %1025 = arith.mulf %1024, %994 : vector<8x128xf32>
    %1026 = arith.addf %1022, %1025 : vector<8x128xf32>
    %c199 = arith.constant 199 : index
    %1027 = memref.load %arg2[%c199] : memref<481xf32, #tpu.memory_space<smem>>
    %1028 = vector.broadcast %1027 : f32 to vector<8x128xf32>
    %1029 = arith.mulf %1028, %985 : vector<8x128xf32>
    %1030 = arith.addf %964, %1029 : vector<8x128xf32>
    %c215 = arith.constant 215 : index
    %1031 = memref.load %arg2[%c215] : memref<481xf32, #tpu.memory_space<smem>>
    %1032 = vector.broadcast %1031 : f32 to vector<8x128xf32>
    %1033 = arith.mulf %1032, %988 : vector<8x128xf32>
    %1034 = arith.addf %1030, %1033 : vector<8x128xf32>
    %c231 = arith.constant 231 : index
    %1035 = memref.load %arg2[%c231] : memref<481xf32, #tpu.memory_space<smem>>
    %1036 = vector.broadcast %1035 : f32 to vector<8x128xf32>
    %1037 = arith.mulf %1036, %991 : vector<8x128xf32>
    %1038 = arith.addf %1034, %1037 : vector<8x128xf32>
    %c247 = arith.constant 247 : index
    %1039 = memref.load %arg2[%c247] : memref<481xf32, #tpu.memory_space<smem>>
    %1040 = vector.broadcast %1039 : f32 to vector<8x128xf32>
    %1041 = arith.mulf %1040, %994 : vector<8x128xf32>
    %1042 = arith.addf %1038, %1041 : vector<8x128xf32>
    %c263 = arith.constant 263 : index
    %1043 = memref.load %arg2[%c263] : memref<481xf32, #tpu.memory_space<smem>>
    %1044 = vector.broadcast %1043 : f32 to vector<8x128xf32>
    %1045 = arith.mulf %1044, %985 : vector<8x128xf32>
    %1046 = arith.addf %980, %1045 : vector<8x128xf32>
    %c279 = arith.constant 279 : index
    %1047 = memref.load %arg2[%c279] : memref<481xf32, #tpu.memory_space<smem>>
    %1048 = vector.broadcast %1047 : f32 to vector<8x128xf32>
    %1049 = arith.mulf %1048, %988 : vector<8x128xf32>
    %1050 = arith.addf %1046, %1049 : vector<8x128xf32>
    %c295 = arith.constant 295 : index
    %1051 = memref.load %arg2[%c295] : memref<481xf32, #tpu.memory_space<smem>>
    %1052 = vector.broadcast %1051 : f32 to vector<8x128xf32>
    %1053 = arith.mulf %1052, %991 : vector<8x128xf32>
    %1054 = arith.addf %1050, %1053 : vector<8x128xf32>
    %c311 = arith.constant 311 : index
    %1055 = memref.load %arg2[%c311] : memref<481xf32, #tpu.memory_space<smem>>
    %1056 = vector.broadcast %1055 : f32 to vector<8x128xf32>
    %1057 = arith.mulf %1056, %994 : vector<8x128xf32>
    %1058 = arith.addf %1054, %1057 : vector<8x128xf32>
    %c2_i32 = arith.constant 2 : i32
    %1059 = vector.broadcast %c2_i32 : i32 to vector<8x128xi32>
    %1060 = arith.cmpi sge, %4, %1059 : vector<8x128xi32>
    %c2_i32_135 = arith.constant 2 : i32
    %1061 = tpu.dynamic_rotate %429 by %c2_i32_135 dim 1 : vector<8x128xf32>, i32 -> vector<8x128xf32>
    %c1_i32_136 = arith.constant 1 : i32
    %1062 = tpu.dynamic_rotate %1061 by %c1_i32_136 dim 0 : vector<8x128xf32>, i32 -> vector<8x128xf32>
    %1063 = arith.select %1060, %1061, %1062 : vector<8x128xi1>, vector<8x128xf32>
    %c2_i32_137 = arith.constant 2 : i32
    %1064 = tpu.dynamic_rotate %432 by %c2_i32_137 dim 1 : vector<8x128xf32>, i32 -> vector<8x128xf32>
    %c1_i32_138 = arith.constant 1 : i32
    %1065 = tpu.dynamic_rotate %1064 by %c1_i32_138 dim 0 : vector<8x128xf32>, i32 -> vector<8x128xf32>
    %1066 = arith.select %1060, %1064, %1065 : vector<8x128xi1>, vector<8x128xf32>
    %c2_i32_139 = arith.constant 2 : i32
    %1067 = tpu.dynamic_rotate %435 by %c2_i32_139 dim 1 : vector<8x128xf32>, i32 -> vector<8x128xf32>
    %c1_i32_140 = arith.constant 1 : i32
    %1068 = tpu.dynamic_rotate %1067 by %c1_i32_140 dim 0 : vector<8x128xf32>, i32 -> vector<8x128xf32>
    %1069 = arith.select %1060, %1067, %1068 : vector<8x128xi1>, vector<8x128xf32>
    %c2_i32_141 = arith.constant 2 : i32
    %1070 = tpu.dynamic_rotate %438 by %c2_i32_141 dim 1 : vector<8x128xf32>, i32 -> vector<8x128xf32>
    %c1_i32_142 = arith.constant 1 : i32
    %1071 = tpu.dynamic_rotate %1070 by %c1_i32_142 dim 0 : vector<8x128xf32>, i32 -> vector<8x128xf32>
    %1072 = arith.select %1060, %1070, %1071 : vector<8x128xi1>, vector<8x128xf32>
    %c72 = arith.constant 72 : index
    %1073 = memref.load %arg2[%c72] : memref<481xf32, #tpu.memory_space<smem>>
    %1074 = vector.broadcast %1073 : f32 to vector<8x128xf32>
    %1075 = arith.mulf %1074, %1063 : vector<8x128xf32>
    %1076 = arith.addf %1010, %1075 : vector<8x128xf32>
    %c88 = arith.constant 88 : index
    %1077 = memref.load %arg2[%c88] : memref<481xf32, #tpu.memory_space<smem>>
    %1078 = vector.broadcast %1077 : f32 to vector<8x128xf32>
    %1079 = arith.mulf %1078, %1066 : vector<8x128xf32>
    %1080 = arith.addf %1076, %1079 : vector<8x128xf32>
    %c104 = arith.constant 104 : index
    %1081 = memref.load %arg2[%c104] : memref<481xf32, #tpu.memory_space<smem>>
    %1082 = vector.broadcast %1081 : f32 to vector<8x128xf32>
    %1083 = arith.mulf %1082, %1069 : vector<8x128xf32>
    %1084 = arith.addf %1080, %1083 : vector<8x128xf32>
    %c120 = arith.constant 120 : index
    %1085 = memref.load %arg2[%c120] : memref<481xf32, #tpu.memory_space<smem>>
    %1086 = vector.broadcast %1085 : f32 to vector<8x128xf32>
    %1087 = arith.mulf %1086, %1072 : vector<8x128xf32>
    %1088 = arith.addf %1084, %1087 : vector<8x128xf32>
    %c136 = arith.constant 136 : index
    %1089 = memref.load %arg2[%c136] : memref<481xf32, #tpu.memory_space<smem>>
    %1090 = vector.broadcast %1089 : f32 to vector<8x128xf32>
    %1091 = arith.mulf %1090, %1063 : vector<8x128xf32>
    %1092 = arith.addf %1026, %1091 : vector<8x128xf32>
    %c152 = arith.constant 152 : index
    %1093 = memref.load %arg2[%c152] : memref<481xf32, #tpu.memory_space<smem>>
    %1094 = vector.broadcast %1093 : f32 to vector<8x128xf32>
    %1095 = arith.mulf %1094, %1066 : vector<8x128xf32>
    %1096 = arith.addf %1092, %1095 : vector<8x128xf32>
    %c168 = arith.constant 168 : index
    %1097 = memref.load %arg2[%c168] : memref<481xf32, #tpu.memory_space<smem>>
    %1098 = vector.broadcast %1097 : f32 to vector<8x128xf32>
    %1099 = arith.mulf %1098, %1069 : vector<8x128xf32>
    %1100 = arith.addf %1096, %1099 : vector<8x128xf32>
    %c184 = arith.constant 184 : index
    %1101 = memref.load %arg2[%c184] : memref<481xf32, #tpu.memory_space<smem>>
    %1102 = vector.broadcast %1101 : f32 to vector<8x128xf32>
    %1103 = arith.mulf %1102, %1072 : vector<8x128xf32>
    %1104 = arith.addf %1100, %1103 : vector<8x128xf32>
    %c200 = arith.constant 200 : index
    %1105 = memref.load %arg2[%c200] : memref<481xf32, #tpu.memory_space<smem>>
    %1106 = vector.broadcast %1105 : f32 to vector<8x128xf32>
    %1107 = arith.mulf %1106, %1063 : vector<8x128xf32>
    %1108 = arith.addf %1042, %1107 : vector<8x128xf32>
    %c216 = arith.constant 216 : index
    %1109 = memref.load %arg2[%c216] : memref<481xf32, #tpu.memory_space<smem>>
    %1110 = vector.broadcast %1109 : f32 to vector<8x128xf32>
    %1111 = arith.mulf %1110, %1066 : vector<8x128xf32>
    %1112 = arith.addf %1108, %1111 : vector<8x128xf32>
    %c232 = arith.constant 232 : index
    %1113 = memref.load %arg2[%c232] : memref<481xf32, #tpu.memory_space<smem>>
    %1114 = vector.broadcast %1113 : f32 to vector<8x128xf32>
    %1115 = arith.mulf %1114, %1069 : vector<8x128xf32>
    %1116 = arith.addf %1112, %1115 : vector<8x128xf32>
    %c248 = arith.constant 248 : index
    %1117 = memref.load %arg2[%c248] : memref<481xf32, #tpu.memory_space<smem>>
    %1118 = vector.broadcast %1117 : f32 to vector<8x128xf32>
    %1119 = arith.mulf %1118, %1072 : vector<8x128xf32>
    %1120 = arith.addf %1116, %1119 : vector<8x128xf32>
    %c264 = arith.constant 264 : index
    %1121 = memref.load %arg2[%c264] : memref<481xf32, #tpu.memory_space<smem>>
    %1122 = vector.broadcast %1121 : f32 to vector<8x128xf32>
    %1123 = arith.mulf %1122, %1063 : vector<8x128xf32>
    %1124 = arith.addf %1058, %1123 : vector<8x128xf32>
    %c280 = arith.constant 280 : index
    %1125 = memref.load %arg2[%c280] : memref<481xf32, #tpu.memory_space<smem>>
    %1126 = vector.broadcast %1125 : f32 to vector<8x128xf32>
    %1127 = arith.mulf %1126, %1066 : vector<8x128xf32>
    %1128 = arith.addf %1124, %1127 : vector<8x128xf32>
    %c296 = arith.constant 296 : index
    %1129 = memref.load %arg2[%c296] : memref<481xf32, #tpu.memory_space<smem>>
    %1130 = vector.broadcast %1129 : f32 to vector<8x128xf32>
    %1131 = arith.mulf %1130, %1069 : vector<8x128xf32>
    %1132 = arith.addf %1128, %1131 : vector<8x128xf32>
    %c312 = arith.constant 312 : index
    %1133 = memref.load %arg2[%c312] : memref<481xf32, #tpu.memory_space<smem>>
    %1134 = vector.broadcast %1133 : f32 to vector<8x128xf32>
    %1135 = arith.mulf %1134, %1072 : vector<8x128xf32>
    %1136 = arith.addf %1132, %1135 : vector<8x128xf32>
    %c1_i32_143 = arith.constant 1 : i32
    %1137 = vector.broadcast %c1_i32_143 : i32 to vector<8x128xi32>
    %1138 = arith.cmpi sge, %4, %1137 : vector<8x128xi32>
    %c1_i32_144 = arith.constant 1 : i32
    %1139 = tpu.dynamic_rotate %429 by %c1_i32_144 dim 1 : vector<8x128xf32>, i32 -> vector<8x128xf32>
    %c1_i32_145 = arith.constant 1 : i32
    %1140 = tpu.dynamic_rotate %1139 by %c1_i32_145 dim 0 : vector<8x128xf32>, i32 -> vector<8x128xf32>
    %1141 = arith.select %1138, %1139, %1140 : vector<8x128xi1>, vector<8x128xf32>
    %c1_i32_146 = arith.constant 1 : i32
    %1142 = tpu.dynamic_rotate %432 by %c1_i32_146 dim 1 : vector<8x128xf32>, i32 -> vector<8x128xf32>
    %c1_i32_147 = arith.constant 1 : i32
    %1143 = tpu.dynamic_rotate %1142 by %c1_i32_147 dim 0 : vector<8x128xf32>, i32 -> vector<8x128xf32>
    %1144 = arith.select %1138, %1142, %1143 : vector<8x128xi1>, vector<8x128xf32>
    %c1_i32_148 = arith.constant 1 : i32
    %1145 = tpu.dynamic_rotate %435 by %c1_i32_148 dim 1 : vector<8x128xf32>, i32 -> vector<8x128xf32>
    %c1_i32_149 = arith.constant 1 : i32
    %1146 = tpu.dynamic_rotate %1145 by %c1_i32_149 dim 0 : vector<8x128xf32>, i32 -> vector<8x128xf32>
    %1147 = arith.select %1138, %1145, %1146 : vector<8x128xi1>, vector<8x128xf32>
    %c1_i32_150 = arith.constant 1 : i32
    %1148 = tpu.dynamic_rotate %438 by %c1_i32_150 dim 1 : vector<8x128xf32>, i32 -> vector<8x128xf32>
    %c1_i32_151 = arith.constant 1 : i32
    %1149 = tpu.dynamic_rotate %1148 by %c1_i32_151 dim 0 : vector<8x128xf32>, i32 -> vector<8x128xf32>
    %1150 = arith.select %1138, %1148, %1149 : vector<8x128xi1>, vector<8x128xf32>
    %c73 = arith.constant 73 : index
    %1151 = memref.load %arg2[%c73] : memref<481xf32, #tpu.memory_space<smem>>
    %1152 = vector.broadcast %1151 : f32 to vector<8x128xf32>
    %1153 = arith.mulf %1152, %1141 : vector<8x128xf32>
    %1154 = arith.addf %1088, %1153 : vector<8x128xf32>
    %c89 = arith.constant 89 : index
    %1155 = memref.load %arg2[%c89] : memref<481xf32, #tpu.memory_space<smem>>
    %1156 = vector.broadcast %1155 : f32 to vector<8x128xf32>
    %1157 = arith.mulf %1156, %1144 : vector<8x128xf32>
    %1158 = arith.addf %1154, %1157 : vector<8x128xf32>
    %c105 = arith.constant 105 : index
    %1159 = memref.load %arg2[%c105] : memref<481xf32, #tpu.memory_space<smem>>
    %1160 = vector.broadcast %1159 : f32 to vector<8x128xf32>
    %1161 = arith.mulf %1160, %1147 : vector<8x128xf32>
    %1162 = arith.addf %1158, %1161 : vector<8x128xf32>
    %c121 = arith.constant 121 : index
    %1163 = memref.load %arg2[%c121] : memref<481xf32, #tpu.memory_space<smem>>
    %1164 = vector.broadcast %1163 : f32 to vector<8x128xf32>
    %1165 = arith.mulf %1164, %1150 : vector<8x128xf32>
    %1166 = arith.addf %1162, %1165 : vector<8x128xf32>
    %c137 = arith.constant 137 : index
    %1167 = memref.load %arg2[%c137] : memref<481xf32, #tpu.memory_space<smem>>
    %1168 = vector.broadcast %1167 : f32 to vector<8x128xf32>
    %1169 = arith.mulf %1168, %1141 : vector<8x128xf32>
    %1170 = arith.addf %1104, %1169 : vector<8x128xf32>
    %c153 = arith.constant 153 : index
    %1171 = memref.load %arg2[%c153] : memref<481xf32, #tpu.memory_space<smem>>
    %1172 = vector.broadcast %1171 : f32 to vector<8x128xf32>
    %1173 = arith.mulf %1172, %1144 : vector<8x128xf32>
    %1174 = arith.addf %1170, %1173 : vector<8x128xf32>
    %c169 = arith.constant 169 : index
    %1175 = memref.load %arg2[%c169] : memref<481xf32, #tpu.memory_space<smem>>
    %1176 = vector.broadcast %1175 : f32 to vector<8x128xf32>
    %1177 = arith.mulf %1176, %1147 : vector<8x128xf32>
    %1178 = arith.addf %1174, %1177 : vector<8x128xf32>
    %c185 = arith.constant 185 : index
    %1179 = memref.load %arg2[%c185] : memref<481xf32, #tpu.memory_space<smem>>
    %1180 = vector.broadcast %1179 : f32 to vector<8x128xf32>
    %1181 = arith.mulf %1180, %1150 : vector<8x128xf32>
    %1182 = arith.addf %1178, %1181 : vector<8x128xf32>
    %c201 = arith.constant 201 : index
    %1183 = memref.load %arg2[%c201] : memref<481xf32, #tpu.memory_space<smem>>
    %1184 = vector.broadcast %1183 : f32 to vector<8x128xf32>
    %1185 = arith.mulf %1184, %1141 : vector<8x128xf32>
    %1186 = arith.addf %1120, %1185 : vector<8x128xf32>
    %c217 = arith.constant 217 : index
    %1187 = memref.load %arg2[%c217] : memref<481xf32, #tpu.memory_space<smem>>
    %1188 = vector.broadcast %1187 : f32 to vector<8x128xf32>
    %1189 = arith.mulf %1188, %1144 : vector<8x128xf32>
    %1190 = arith.addf %1186, %1189 : vector<8x128xf32>
    %c233 = arith.constant 233 : index
    %1191 = memref.load %arg2[%c233] : memref<481xf32, #tpu.memory_space<smem>>
    %1192 = vector.broadcast %1191 : f32 to vector<8x128xf32>
    %1193 = arith.mulf %1192, %1147 : vector<8x128xf32>
    %1194 = arith.addf %1190, %1193 : vector<8x128xf32>
    %c249 = arith.constant 249 : index
    %1195 = memref.load %arg2[%c249] : memref<481xf32, #tpu.memory_space<smem>>
    %1196 = vector.broadcast %1195 : f32 to vector<8x128xf32>
    %1197 = arith.mulf %1196, %1150 : vector<8x128xf32>
    %1198 = arith.addf %1194, %1197 : vector<8x128xf32>
    %c265 = arith.constant 265 : index
    %1199 = memref.load %arg2[%c265] : memref<481xf32, #tpu.memory_space<smem>>
    %1200 = vector.broadcast %1199 : f32 to vector<8x128xf32>
    %1201 = arith.mulf %1200, %1141 : vector<8x128xf32>
    %1202 = arith.addf %1136, %1201 : vector<8x128xf32>
    %c281 = arith.constant 281 : index
    %1203 = memref.load %arg2[%c281] : memref<481xf32, #tpu.memory_space<smem>>
    %1204 = vector.broadcast %1203 : f32 to vector<8x128xf32>
    %1205 = arith.mulf %1204, %1144 : vector<8x128xf32>
    %1206 = arith.addf %1202, %1205 : vector<8x128xf32>
    %c297 = arith.constant 297 : index
    %1207 = memref.load %arg2[%c297] : memref<481xf32, #tpu.memory_space<smem>>
    %1208 = vector.broadcast %1207 : f32 to vector<8x128xf32>
    %1209 = arith.mulf %1208, %1147 : vector<8x128xf32>
    %1210 = arith.addf %1206, %1209 : vector<8x128xf32>
    %c313 = arith.constant 313 : index
    %1211 = memref.load %arg2[%c313] : memref<481xf32, #tpu.memory_space<smem>>
    %1212 = vector.broadcast %1211 : f32 to vector<8x128xf32>
    %1213 = arith.mulf %1212, %1150 : vector<8x128xf32>
    %1214 = arith.addf %1210, %1213 : vector<8x128xf32>
    %c74 = arith.constant 74 : index
    %1215 = memref.load %arg2[%c74] : memref<481xf32, #tpu.memory_space<smem>>
    %1216 = vector.broadcast %1215 : f32 to vector<8x128xf32>
    %1217 = arith.mulf %1216, %429 : vector<8x128xf32>
    %1218 = arith.addf %1166, %1217 : vector<8x128xf32>
    %c90 = arith.constant 90 : index
    %1219 = memref.load %arg2[%c90] : memref<481xf32, #tpu.memory_space<smem>>
    %1220 = vector.broadcast %1219 : f32 to vector<8x128xf32>
    %1221 = arith.mulf %1220, %432 : vector<8x128xf32>
    %1222 = arith.addf %1218, %1221 : vector<8x128xf32>
    %c106 = arith.constant 106 : index
    %1223 = memref.load %arg2[%c106] : memref<481xf32, #tpu.memory_space<smem>>
    %1224 = vector.broadcast %1223 : f32 to vector<8x128xf32>
    %1225 = arith.mulf %1224, %435 : vector<8x128xf32>
    %1226 = arith.addf %1222, %1225 : vector<8x128xf32>
    %c122 = arith.constant 122 : index
    %1227 = memref.load %arg2[%c122] : memref<481xf32, #tpu.memory_space<smem>>
    %1228 = vector.broadcast %1227 : f32 to vector<8x128xf32>
    %1229 = arith.mulf %1228, %438 : vector<8x128xf32>
    %1230 = arith.addf %1226, %1229 : vector<8x128xf32>
    %c138 = arith.constant 138 : index
    %1231 = memref.load %arg2[%c138] : memref<481xf32, #tpu.memory_space<smem>>
    %1232 = vector.broadcast %1231 : f32 to vector<8x128xf32>
    %1233 = arith.mulf %1232, %429 : vector<8x128xf32>
    %1234 = arith.addf %1182, %1233 : vector<8x128xf32>
    %c154 = arith.constant 154 : index
    %1235 = memref.load %arg2[%c154] : memref<481xf32, #tpu.memory_space<smem>>
    %1236 = vector.broadcast %1235 : f32 to vector<8x128xf32>
    %1237 = arith.mulf %1236, %432 : vector<8x128xf32>
    %1238 = arith.addf %1234, %1237 : vector<8x128xf32>
    %c170 = arith.constant 170 : index
    %1239 = memref.load %arg2[%c170] : memref<481xf32, #tpu.memory_space<smem>>
    %1240 = vector.broadcast %1239 : f32 to vector<8x128xf32>
    %1241 = arith.mulf %1240, %435 : vector<8x128xf32>
    %1242 = arith.addf %1238, %1241 : vector<8x128xf32>
    %c186 = arith.constant 186 : index
    %1243 = memref.load %arg2[%c186] : memref<481xf32, #tpu.memory_space<smem>>
    %1244 = vector.broadcast %1243 : f32 to vector<8x128xf32>
    %1245 = arith.mulf %1244, %438 : vector<8x128xf32>
    %1246 = arith.addf %1242, %1245 : vector<8x128xf32>
    %c202 = arith.constant 202 : index
    %1247 = memref.load %arg2[%c202] : memref<481xf32, #tpu.memory_space<smem>>
    %1248 = vector.broadcast %1247 : f32 to vector<8x128xf32>
    %1249 = arith.mulf %1248, %429 : vector<8x128xf32>
    %1250 = arith.addf %1198, %1249 : vector<8x128xf32>
    %c218 = arith.constant 218 : index
    %1251 = memref.load %arg2[%c218] : memref<481xf32, #tpu.memory_space<smem>>
    %1252 = vector.broadcast %1251 : f32 to vector<8x128xf32>
    %1253 = arith.mulf %1252, %432 : vector<8x128xf32>
    %1254 = arith.addf %1250, %1253 : vector<8x128xf32>
    %c234 = arith.constant 234 : index
    %1255 = memref.load %arg2[%c234] : memref<481xf32, #tpu.memory_space<smem>>
    %1256 = vector.broadcast %1255 : f32 to vector<8x128xf32>
    %1257 = arith.mulf %1256, %435 : vector<8x128xf32>
    %1258 = arith.addf %1254, %1257 : vector<8x128xf32>
    %c250 = arith.constant 250 : index
    %1259 = memref.load %arg2[%c250] : memref<481xf32, #tpu.memory_space<smem>>
    %1260 = vector.broadcast %1259 : f32 to vector<8x128xf32>
    %1261 = arith.mulf %1260, %438 : vector<8x128xf32>
    %1262 = arith.addf %1258, %1261 : vector<8x128xf32>
    %c266 = arith.constant 266 : index
    %1263 = memref.load %arg2[%c266] : memref<481xf32, #tpu.memory_space<smem>>
    %1264 = vector.broadcast %1263 : f32 to vector<8x128xf32>
    %1265 = arith.mulf %1264, %429 : vector<8x128xf32>
    %1266 = arith.addf %1214, %1265 : vector<8x128xf32>
    %c282 = arith.constant 282 : index
    %1267 = memref.load %arg2[%c282] : memref<481xf32, #tpu.memory_space<smem>>
    %1268 = vector.broadcast %1267 : f32 to vector<8x128xf32>
    %1269 = arith.mulf %1268, %432 : vector<8x128xf32>
    %1270 = arith.addf %1266, %1269 : vector<8x128xf32>
    %c298 = arith.constant 298 : index
    %1271 = memref.load %arg2[%c298] : memref<481xf32, #tpu.memory_space<smem>>
    %1272 = vector.broadcast %1271 : f32 to vector<8x128xf32>
    %1273 = arith.mulf %1272, %435 : vector<8x128xf32>
    %1274 = arith.addf %1270, %1273 : vector<8x128xf32>
    %c314 = arith.constant 314 : index
    %1275 = memref.load %arg2[%c314] : memref<481xf32, #tpu.memory_space<smem>>
    %1276 = vector.broadcast %1275 : f32 to vector<8x128xf32>
    %1277 = arith.mulf %1276, %438 : vector<8x128xf32>
    %1278 = arith.addf %1274, %1277 : vector<8x128xf32>
    %c127_i32_152 = arith.constant 127 : i32
    %1279 = vector.broadcast %c127_i32_152 : i32 to vector<8x128xi32>
    %1280 = arith.cmpi sge, %4, %1279 : vector<8x128xi32>
    %c127_i32_153 = arith.constant 127 : i32
    %1281 = tpu.dynamic_rotate %429 by %c127_i32_153 dim 1 : vector<8x128xf32>, i32 -> vector<8x128xf32>
    %c7_i32_154 = arith.constant 7 : i32
    %1282 = tpu.dynamic_rotate %1281 by %c7_i32_154 dim 0 : vector<8x128xf32>, i32 -> vector<8x128xf32>
    %1283 = arith.select %1280, %1282, %1281 : vector<8x128xi1>, vector<8x128xf32>
    %c127_i32_155 = arith.constant 127 : i32
    %1284 = tpu.dynamic_rotate %432 by %c127_i32_155 dim 1 : vector<8x128xf32>, i32 -> vector<8x128xf32>
    %c7_i32_156 = arith.constant 7 : i32
    %1285 = tpu.dynamic_rotate %1284 by %c7_i32_156 dim 0 : vector<8x128xf32>, i32 -> vector<8x128xf32>
    %1286 = arith.select %1280, %1285, %1284 : vector<8x128xi1>, vector<8x128xf32>
    %c127_i32_157 = arith.constant 127 : i32
    %1287 = tpu.dynamic_rotate %435 by %c127_i32_157 dim 1 : vector<8x128xf32>, i32 -> vector<8x128xf32>
    %c7_i32_158 = arith.constant 7 : i32
    %1288 = tpu.dynamic_rotate %1287 by %c7_i32_158 dim 0 : vector<8x128xf32>, i32 -> vector<8x128xf32>
    %1289 = arith.select %1280, %1288, %1287 : vector<8x128xi1>, vector<8x128xf32>
    %c127_i32_159 = arith.constant 127 : i32
    %1290 = tpu.dynamic_rotate %438 by %c127_i32_159 dim 1 : vector<8x128xf32>, i32 -> vector<8x128xf32>
    %c7_i32_160 = arith.constant 7 : i32
    %1291 = tpu.dynamic_rotate %1290 by %c7_i32_160 dim 0 : vector<8x128xf32>, i32 -> vector<8x128xf32>
    %1292 = arith.select %1280, %1291, %1290 : vector<8x128xi1>, vector<8x128xf32>
    %c75 = arith.constant 75 : index
    %1293 = memref.load %arg2[%c75] : memref<481xf32, #tpu.memory_space<smem>>
    %1294 = vector.broadcast %1293 : f32 to vector<8x128xf32>
    %1295 = arith.mulf %1294, %1283 : vector<8x128xf32>
    %1296 = arith.addf %1230, %1295 : vector<8x128xf32>
    %c91 = arith.constant 91 : index
    %1297 = memref.load %arg2[%c91] : memref<481xf32, #tpu.memory_space<smem>>
    %1298 = vector.broadcast %1297 : f32 to vector<8x128xf32>
    %1299 = arith.mulf %1298, %1286 : vector<8x128xf32>
    %1300 = arith.addf %1296, %1299 : vector<8x128xf32>
    %c107 = arith.constant 107 : index
    %1301 = memref.load %arg2[%c107] : memref<481xf32, #tpu.memory_space<smem>>
    %1302 = vector.broadcast %1301 : f32 to vector<8x128xf32>
    %1303 = arith.mulf %1302, %1289 : vector<8x128xf32>
    %1304 = arith.addf %1300, %1303 : vector<8x128xf32>
    %c123 = arith.constant 123 : index
    %1305 = memref.load %arg2[%c123] : memref<481xf32, #tpu.memory_space<smem>>
    %1306 = vector.broadcast %1305 : f32 to vector<8x128xf32>
    %1307 = arith.mulf %1306, %1292 : vector<8x128xf32>
    %1308 = arith.addf %1304, %1307 : vector<8x128xf32>
    %c139 = arith.constant 139 : index
    %1309 = memref.load %arg2[%c139] : memref<481xf32, #tpu.memory_space<smem>>
    %1310 = vector.broadcast %1309 : f32 to vector<8x128xf32>
    %1311 = arith.mulf %1310, %1283 : vector<8x128xf32>
    %1312 = arith.addf %1246, %1311 : vector<8x128xf32>
    %c155 = arith.constant 155 : index
    %1313 = memref.load %arg2[%c155] : memref<481xf32, #tpu.memory_space<smem>>
    %1314 = vector.broadcast %1313 : f32 to vector<8x128xf32>
    %1315 = arith.mulf %1314, %1286 : vector<8x128xf32>
    %1316 = arith.addf %1312, %1315 : vector<8x128xf32>
    %c171 = arith.constant 171 : index
    %1317 = memref.load %arg2[%c171] : memref<481xf32, #tpu.memory_space<smem>>
    %1318 = vector.broadcast %1317 : f32 to vector<8x128xf32>
    %1319 = arith.mulf %1318, %1289 : vector<8x128xf32>
    %1320 = arith.addf %1316, %1319 : vector<8x128xf32>
    %c187 = arith.constant 187 : index
    %1321 = memref.load %arg2[%c187] : memref<481xf32, #tpu.memory_space<smem>>
    %1322 = vector.broadcast %1321 : f32 to vector<8x128xf32>
    %1323 = arith.mulf %1322, %1292 : vector<8x128xf32>
    %1324 = arith.addf %1320, %1323 : vector<8x128xf32>
    %c203 = arith.constant 203 : index
    %1325 = memref.load %arg2[%c203] : memref<481xf32, #tpu.memory_space<smem>>
    %1326 = vector.broadcast %1325 : f32 to vector<8x128xf32>
    %1327 = arith.mulf %1326, %1283 : vector<8x128xf32>
    %1328 = arith.addf %1262, %1327 : vector<8x128xf32>
    %c219 = arith.constant 219 : index
    %1329 = memref.load %arg2[%c219] : memref<481xf32, #tpu.memory_space<smem>>
    %1330 = vector.broadcast %1329 : f32 to vector<8x128xf32>
    %1331 = arith.mulf %1330, %1286 : vector<8x128xf32>
    %1332 = arith.addf %1328, %1331 : vector<8x128xf32>
    %c235 = arith.constant 235 : index
    %1333 = memref.load %arg2[%c235] : memref<481xf32, #tpu.memory_space<smem>>
    %1334 = vector.broadcast %1333 : f32 to vector<8x128xf32>
    %1335 = arith.mulf %1334, %1289 : vector<8x128xf32>
    %1336 = arith.addf %1332, %1335 : vector<8x128xf32>
    %c251 = arith.constant 251 : index
    %1337 = memref.load %arg2[%c251] : memref<481xf32, #tpu.memory_space<smem>>
    %1338 = vector.broadcast %1337 : f32 to vector<8x128xf32>
    %1339 = arith.mulf %1338, %1292 : vector<8x128xf32>
    %1340 = arith.addf %1336, %1339 : vector<8x128xf32>
    %c267 = arith.constant 267 : index
    %1341 = memref.load %arg2[%c267] : memref<481xf32, #tpu.memory_space<smem>>
    %1342 = vector.broadcast %1341 : f32 to vector<8x128xf32>
    %1343 = arith.mulf %1342, %1283 : vector<8x128xf32>
    %1344 = arith.addf %1278, %1343 : vector<8x128xf32>
    %c283 = arith.constant 283 : index
    %1345 = memref.load %arg2[%c283] : memref<481xf32, #tpu.memory_space<smem>>
    %1346 = vector.broadcast %1345 : f32 to vector<8x128xf32>
    %1347 = arith.mulf %1346, %1286 : vector<8x128xf32>
    %1348 = arith.addf %1344, %1347 : vector<8x128xf32>
    %c299 = arith.constant 299 : index
    %1349 = memref.load %arg2[%c299] : memref<481xf32, #tpu.memory_space<smem>>
    %1350 = vector.broadcast %1349 : f32 to vector<8x128xf32>
    %1351 = arith.mulf %1350, %1289 : vector<8x128xf32>
    %1352 = arith.addf %1348, %1351 : vector<8x128xf32>
    %c315 = arith.constant 315 : index
    %1353 = memref.load %arg2[%c315] : memref<481xf32, #tpu.memory_space<smem>>
    %1354 = vector.broadcast %1353 : f32 to vector<8x128xf32>
    %1355 = arith.mulf %1354, %1292 : vector<8x128xf32>
    %1356 = arith.addf %1352, %1355 : vector<8x128xf32>
    %c110_i32 = arith.constant 110 : i32
    %1357 = vector.broadcast %c110_i32 : i32 to vector<8x128xi32>
    %1358 = arith.cmpi sge, %4, %1357 : vector<8x128xi32>
    %c110_i32_161 = arith.constant 110 : i32
    %1359 = tpu.dynamic_rotate %429 by %c110_i32_161 dim 1 : vector<8x128xf32>, i32 -> vector<8x128xf32>
    %c7_i32_162 = arith.constant 7 : i32
    %1360 = tpu.dynamic_rotate %1359 by %c7_i32_162 dim 0 : vector<8x128xf32>, i32 -> vector<8x128xf32>
    %1361 = arith.select %1358, %1360, %1359 : vector<8x128xi1>, vector<8x128xf32>
    %c110_i32_163 = arith.constant 110 : i32
    %1362 = tpu.dynamic_rotate %432 by %c110_i32_163 dim 1 : vector<8x128xf32>, i32 -> vector<8x128xf32>
    %c7_i32_164 = arith.constant 7 : i32
    %1363 = tpu.dynamic_rotate %1362 by %c7_i32_164 dim 0 : vector<8x128xf32>, i32 -> vector<8x128xf32>
    %1364 = arith.select %1358, %1363, %1362 : vector<8x128xi1>, vector<8x128xf32>
    %c110_i32_165 = arith.constant 110 : i32
    %1365 = tpu.dynamic_rotate %435 by %c110_i32_165 dim 1 : vector<8x128xf32>, i32 -> vector<8x128xf32>
    %c7_i32_166 = arith.constant 7 : i32
    %1366 = tpu.dynamic_rotate %1365 by %c7_i32_166 dim 0 : vector<8x128xf32>, i32 -> vector<8x128xf32>
    %1367 = arith.select %1358, %1366, %1365 : vector<8x128xi1>, vector<8x128xf32>
    %c110_i32_167 = arith.constant 110 : i32
    %1368 = tpu.dynamic_rotate %438 by %c110_i32_167 dim 1 : vector<8x128xf32>, i32 -> vector<8x128xf32>
    %c7_i32_168 = arith.constant 7 : i32
    %1369 = tpu.dynamic_rotate %1368 by %c7_i32_168 dim 0 : vector<8x128xf32>, i32 -> vector<8x128xf32>
    %1370 = arith.select %1358, %1369, %1368 : vector<8x128xi1>, vector<8x128xf32>
    %c76 = arith.constant 76 : index
    %1371 = memref.load %arg2[%c76] : memref<481xf32, #tpu.memory_space<smem>>
    %1372 = vector.broadcast %1371 : f32 to vector<8x128xf32>
    %1373 = arith.mulf %1372, %1361 : vector<8x128xf32>
    %1374 = arith.addf %1308, %1373 : vector<8x128xf32>
    %c92 = arith.constant 92 : index
    %1375 = memref.load %arg2[%c92] : memref<481xf32, #tpu.memory_space<smem>>
    %1376 = vector.broadcast %1375 : f32 to vector<8x128xf32>
    %1377 = arith.mulf %1376, %1364 : vector<8x128xf32>
    %1378 = arith.addf %1374, %1377 : vector<8x128xf32>
    %c108 = arith.constant 108 : index
    %1379 = memref.load %arg2[%c108] : memref<481xf32, #tpu.memory_space<smem>>
    %1380 = vector.broadcast %1379 : f32 to vector<8x128xf32>
    %1381 = arith.mulf %1380, %1367 : vector<8x128xf32>
    %1382 = arith.addf %1378, %1381 : vector<8x128xf32>
    %c124 = arith.constant 124 : index
    %1383 = memref.load %arg2[%c124] : memref<481xf32, #tpu.memory_space<smem>>
    %1384 = vector.broadcast %1383 : f32 to vector<8x128xf32>
    %1385 = arith.mulf %1384, %1370 : vector<8x128xf32>
    %1386 = arith.addf %1382, %1385 : vector<8x128xf32>
    %c140 = arith.constant 140 : index
    %1387 = memref.load %arg2[%c140] : memref<481xf32, #tpu.memory_space<smem>>
    %1388 = vector.broadcast %1387 : f32 to vector<8x128xf32>
    %1389 = arith.mulf %1388, %1361 : vector<8x128xf32>
    %1390 = arith.addf %1324, %1389 : vector<8x128xf32>
    %c156 = arith.constant 156 : index
    %1391 = memref.load %arg2[%c156] : memref<481xf32, #tpu.memory_space<smem>>
    %1392 = vector.broadcast %1391 : f32 to vector<8x128xf32>
    %1393 = arith.mulf %1392, %1364 : vector<8x128xf32>
    %1394 = arith.addf %1390, %1393 : vector<8x128xf32>
    %c172 = arith.constant 172 : index
    %1395 = memref.load %arg2[%c172] : memref<481xf32, #tpu.memory_space<smem>>
    %1396 = vector.broadcast %1395 : f32 to vector<8x128xf32>
    %1397 = arith.mulf %1396, %1367 : vector<8x128xf32>
    %1398 = arith.addf %1394, %1397 : vector<8x128xf32>
    %c188 = arith.constant 188 : index
    %1399 = memref.load %arg2[%c188] : memref<481xf32, #tpu.memory_space<smem>>
    %1400 = vector.broadcast %1399 : f32 to vector<8x128xf32>
    %1401 = arith.mulf %1400, %1370 : vector<8x128xf32>
    %1402 = arith.addf %1398, %1401 : vector<8x128xf32>
    %c204 = arith.constant 204 : index
    %1403 = memref.load %arg2[%c204] : memref<481xf32, #tpu.memory_space<smem>>
    %1404 = vector.broadcast %1403 : f32 to vector<8x128xf32>
    %1405 = arith.mulf %1404, %1361 : vector<8x128xf32>
    %1406 = arith.addf %1340, %1405 : vector<8x128xf32>
    %c220 = arith.constant 220 : index
    %1407 = memref.load %arg2[%c220] : memref<481xf32, #tpu.memory_space<smem>>
    %1408 = vector.broadcast %1407 : f32 to vector<8x128xf32>
    %1409 = arith.mulf %1408, %1364 : vector<8x128xf32>
    %1410 = arith.addf %1406, %1409 : vector<8x128xf32>
    %c236 = arith.constant 236 : index
    %1411 = memref.load %arg2[%c236] : memref<481xf32, #tpu.memory_space<smem>>
    %1412 = vector.broadcast %1411 : f32 to vector<8x128xf32>
    %1413 = arith.mulf %1412, %1367 : vector<8x128xf32>
    %1414 = arith.addf %1410, %1413 : vector<8x128xf32>
    %c252 = arith.constant 252 : index
    %1415 = memref.load %arg2[%c252] : memref<481xf32, #tpu.memory_space<smem>>
    %1416 = vector.broadcast %1415 : f32 to vector<8x128xf32>
    %1417 = arith.mulf %1416, %1370 : vector<8x128xf32>
    %1418 = arith.addf %1414, %1417 : vector<8x128xf32>
    %c268 = arith.constant 268 : index
    %1419 = memref.load %arg2[%c268] : memref<481xf32, #tpu.memory_space<smem>>
    %1420 = vector.broadcast %1419 : f32 to vector<8x128xf32>
    %1421 = arith.mulf %1420, %1361 : vector<8x128xf32>
    %1422 = arith.addf %1356, %1421 : vector<8x128xf32>
    %c284 = arith.constant 284 : index
    %1423 = memref.load %arg2[%c284] : memref<481xf32, #tpu.memory_space<smem>>
    %1424 = vector.broadcast %1423 : f32 to vector<8x128xf32>
    %1425 = arith.mulf %1424, %1364 : vector<8x128xf32>
    %1426 = arith.addf %1422, %1425 : vector<8x128xf32>
    %c300 = arith.constant 300 : index
    %1427 = memref.load %arg2[%c300] : memref<481xf32, #tpu.memory_space<smem>>
    %1428 = vector.broadcast %1427 : f32 to vector<8x128xf32>
    %1429 = arith.mulf %1428, %1367 : vector<8x128xf32>
    %1430 = arith.addf %1426, %1429 : vector<8x128xf32>
    %c316 = arith.constant 316 : index
    %1431 = memref.load %arg2[%c316] : memref<481xf32, #tpu.memory_space<smem>>
    %1432 = vector.broadcast %1431 : f32 to vector<8x128xf32>
    %1433 = arith.mulf %1432, %1370 : vector<8x128xf32>
    %1434 = arith.addf %1430, %1433 : vector<8x128xf32>
    %c109_i32 = arith.constant 109 : i32
    %1435 = vector.broadcast %c109_i32 : i32 to vector<8x128xi32>
    %1436 = arith.cmpi sge, %4, %1435 : vector<8x128xi32>
    %c109_i32_169 = arith.constant 109 : i32
    %1437 = tpu.dynamic_rotate %429 by %c109_i32_169 dim 1 : vector<8x128xf32>, i32 -> vector<8x128xf32>
    %c7_i32_170 = arith.constant 7 : i32
    %1438 = tpu.dynamic_rotate %1437 by %c7_i32_170 dim 0 : vector<8x128xf32>, i32 -> vector<8x128xf32>
    %1439 = arith.select %1436, %1438, %1437 : vector<8x128xi1>, vector<8x128xf32>
    %c109_i32_171 = arith.constant 109 : i32
    %1440 = tpu.dynamic_rotate %432 by %c109_i32_171 dim 1 : vector<8x128xf32>, i32 -> vector<8x128xf32>
    %c7_i32_172 = arith.constant 7 : i32
    %1441 = tpu.dynamic_rotate %1440 by %c7_i32_172 dim 0 : vector<8x128xf32>, i32 -> vector<8x128xf32>
    %1442 = arith.select %1436, %1441, %1440 : vector<8x128xi1>, vector<8x128xf32>
    %c109_i32_173 = arith.constant 109 : i32
    %1443 = tpu.dynamic_rotate %435 by %c109_i32_173 dim 1 : vector<8x128xf32>, i32 -> vector<8x128xf32>
    %c7_i32_174 = arith.constant 7 : i32
    %1444 = tpu.dynamic_rotate %1443 by %c7_i32_174 dim 0 : vector<8x128xf32>, i32 -> vector<8x128xf32>
    %1445 = arith.select %1436, %1444, %1443 : vector<8x128xi1>, vector<8x128xf32>
    %c109_i32_175 = arith.constant 109 : i32
    %1446 = tpu.dynamic_rotate %438 by %c109_i32_175 dim 1 : vector<8x128xf32>, i32 -> vector<8x128xf32>
    %c7_i32_176 = arith.constant 7 : i32
    %1447 = tpu.dynamic_rotate %1446 by %c7_i32_176 dim 0 : vector<8x128xf32>, i32 -> vector<8x128xf32>
    %1448 = arith.select %1436, %1447, %1446 : vector<8x128xi1>, vector<8x128xf32>
    %c77 = arith.constant 77 : index
    %1449 = memref.load %arg2[%c77] : memref<481xf32, #tpu.memory_space<smem>>
    %1450 = vector.broadcast %1449 : f32 to vector<8x128xf32>
    %1451 = arith.mulf %1450, %1439 : vector<8x128xf32>
    %1452 = arith.addf %1386, %1451 : vector<8x128xf32>
    %c93 = arith.constant 93 : index
    %1453 = memref.load %arg2[%c93] : memref<481xf32, #tpu.memory_space<smem>>
    %1454 = vector.broadcast %1453 : f32 to vector<8x128xf32>
    %1455 = arith.mulf %1454, %1442 : vector<8x128xf32>
    %1456 = arith.addf %1452, %1455 : vector<8x128xf32>
    %c109 = arith.constant 109 : index
    %1457 = memref.load %arg2[%c109] : memref<481xf32, #tpu.memory_space<smem>>
    %1458 = vector.broadcast %1457 : f32 to vector<8x128xf32>
    %1459 = arith.mulf %1458, %1445 : vector<8x128xf32>
    %1460 = arith.addf %1456, %1459 : vector<8x128xf32>
    %c125 = arith.constant 125 : index
    %1461 = memref.load %arg2[%c125] : memref<481xf32, #tpu.memory_space<smem>>
    %1462 = vector.broadcast %1461 : f32 to vector<8x128xf32>
    %1463 = arith.mulf %1462, %1448 : vector<8x128xf32>
    %1464 = arith.addf %1460, %1463 : vector<8x128xf32>
    %c141 = arith.constant 141 : index
    %1465 = memref.load %arg2[%c141] : memref<481xf32, #tpu.memory_space<smem>>
    %1466 = vector.broadcast %1465 : f32 to vector<8x128xf32>
    %1467 = arith.mulf %1466, %1439 : vector<8x128xf32>
    %1468 = arith.addf %1402, %1467 : vector<8x128xf32>
    %c157 = arith.constant 157 : index
    %1469 = memref.load %arg2[%c157] : memref<481xf32, #tpu.memory_space<smem>>
    %1470 = vector.broadcast %1469 : f32 to vector<8x128xf32>
    %1471 = arith.mulf %1470, %1442 : vector<8x128xf32>
    %1472 = arith.addf %1468, %1471 : vector<8x128xf32>
    %c173 = arith.constant 173 : index
    %1473 = memref.load %arg2[%c173] : memref<481xf32, #tpu.memory_space<smem>>
    %1474 = vector.broadcast %1473 : f32 to vector<8x128xf32>
    %1475 = arith.mulf %1474, %1445 : vector<8x128xf32>
    %1476 = arith.addf %1472, %1475 : vector<8x128xf32>
    %c189 = arith.constant 189 : index
    %1477 = memref.load %arg2[%c189] : memref<481xf32, #tpu.memory_space<smem>>
    %1478 = vector.broadcast %1477 : f32 to vector<8x128xf32>
    %1479 = arith.mulf %1478, %1448 : vector<8x128xf32>
    %1480 = arith.addf %1476, %1479 : vector<8x128xf32>
    %c205 = arith.constant 205 : index
    %1481 = memref.load %arg2[%c205] : memref<481xf32, #tpu.memory_space<smem>>
    %1482 = vector.broadcast %1481 : f32 to vector<8x128xf32>
    %1483 = arith.mulf %1482, %1439 : vector<8x128xf32>
    %1484 = arith.addf %1418, %1483 : vector<8x128xf32>
    %c221 = arith.constant 221 : index
    %1485 = memref.load %arg2[%c221] : memref<481xf32, #tpu.memory_space<smem>>
    %1486 = vector.broadcast %1485 : f32 to vector<8x128xf32>
    %1487 = arith.mulf %1486, %1442 : vector<8x128xf32>
    %1488 = arith.addf %1484, %1487 : vector<8x128xf32>
    %c237 = arith.constant 237 : index
    %1489 = memref.load %arg2[%c237] : memref<481xf32, #tpu.memory_space<smem>>
    %1490 = vector.broadcast %1489 : f32 to vector<8x128xf32>
    %1491 = arith.mulf %1490, %1445 : vector<8x128xf32>
    %1492 = arith.addf %1488, %1491 : vector<8x128xf32>
    %c253 = arith.constant 253 : index
    %1493 = memref.load %arg2[%c253] : memref<481xf32, #tpu.memory_space<smem>>
    %1494 = vector.broadcast %1493 : f32 to vector<8x128xf32>
    %1495 = arith.mulf %1494, %1448 : vector<8x128xf32>
    %1496 = arith.addf %1492, %1495 : vector<8x128xf32>
    %c269 = arith.constant 269 : index
    %1497 = memref.load %arg2[%c269] : memref<481xf32, #tpu.memory_space<smem>>
    %1498 = vector.broadcast %1497 : f32 to vector<8x128xf32>
    %1499 = arith.mulf %1498, %1439 : vector<8x128xf32>
    %1500 = arith.addf %1434, %1499 : vector<8x128xf32>
    %c285 = arith.constant 285 : index
    %1501 = memref.load %arg2[%c285] : memref<481xf32, #tpu.memory_space<smem>>
    %1502 = vector.broadcast %1501 : f32 to vector<8x128xf32>
    %1503 = arith.mulf %1502, %1442 : vector<8x128xf32>
    %1504 = arith.addf %1500, %1503 : vector<8x128xf32>
    %c301 = arith.constant 301 : index
    %1505 = memref.load %arg2[%c301] : memref<481xf32, #tpu.memory_space<smem>>
    %1506 = vector.broadcast %1505 : f32 to vector<8x128xf32>
    %1507 = arith.mulf %1506, %1445 : vector<8x128xf32>
    %1508 = arith.addf %1504, %1507 : vector<8x128xf32>
    %c317 = arith.constant 317 : index
    %1509 = memref.load %arg2[%c317] : memref<481xf32, #tpu.memory_space<smem>>
    %1510 = vector.broadcast %1509 : f32 to vector<8x128xf32>
    %1511 = arith.mulf %1510, %1448 : vector<8x128xf32>
    %1512 = arith.addf %1508, %1511 : vector<8x128xf32>
    %c108_i32_177 = arith.constant 108 : i32
    %1513 = vector.broadcast %c108_i32_177 : i32 to vector<8x128xi32>
    %1514 = arith.cmpi sge, %4, %1513 : vector<8x128xi32>
    %c108_i32_178 = arith.constant 108 : i32
    %1515 = tpu.dynamic_rotate %429 by %c108_i32_178 dim 1 : vector<8x128xf32>, i32 -> vector<8x128xf32>
    %c7_i32_179 = arith.constant 7 : i32
    %1516 = tpu.dynamic_rotate %1515 by %c7_i32_179 dim 0 : vector<8x128xf32>, i32 -> vector<8x128xf32>
    %1517 = arith.select %1514, %1516, %1515 : vector<8x128xi1>, vector<8x128xf32>
    %c108_i32_180 = arith.constant 108 : i32
    %1518 = tpu.dynamic_rotate %432 by %c108_i32_180 dim 1 : vector<8x128xf32>, i32 -> vector<8x128xf32>
    %c7_i32_181 = arith.constant 7 : i32
    %1519 = tpu.dynamic_rotate %1518 by %c7_i32_181 dim 0 : vector<8x128xf32>, i32 -> vector<8x128xf32>
    %1520 = arith.select %1514, %1519, %1518 : vector<8x128xi1>, vector<8x128xf32>
    %c108_i32_182 = arith.constant 108 : i32
    %1521 = tpu.dynamic_rotate %435 by %c108_i32_182 dim 1 : vector<8x128xf32>, i32 -> vector<8x128xf32>
    %c7_i32_183 = arith.constant 7 : i32
    %1522 = tpu.dynamic_rotate %1521 by %c7_i32_183 dim 0 : vector<8x128xf32>, i32 -> vector<8x128xf32>
    %1523 = arith.select %1514, %1522, %1521 : vector<8x128xi1>, vector<8x128xf32>
    %c108_i32_184 = arith.constant 108 : i32
    %1524 = tpu.dynamic_rotate %438 by %c108_i32_184 dim 1 : vector<8x128xf32>, i32 -> vector<8x128xf32>
    %c7_i32_185 = arith.constant 7 : i32
    %1525 = tpu.dynamic_rotate %1524 by %c7_i32_185 dim 0 : vector<8x128xf32>, i32 -> vector<8x128xf32>
    %1526 = arith.select %1514, %1525, %1524 : vector<8x128xi1>, vector<8x128xf32>
    %c78 = arith.constant 78 : index
    %1527 = memref.load %arg2[%c78] : memref<481xf32, #tpu.memory_space<smem>>
    %1528 = vector.broadcast %1527 : f32 to vector<8x128xf32>
    %1529 = arith.mulf %1528, %1517 : vector<8x128xf32>
    %1530 = arith.addf %1464, %1529 : vector<8x128xf32>
    %c94 = arith.constant 94 : index
    %1531 = memref.load %arg2[%c94] : memref<481xf32, #tpu.memory_space<smem>>
    %1532 = vector.broadcast %1531 : f32 to vector<8x128xf32>
    %1533 = arith.mulf %1532, %1520 : vector<8x128xf32>
    %1534 = arith.addf %1530, %1533 : vector<8x128xf32>
    %c110 = arith.constant 110 : index
    %1535 = memref.load %arg2[%c110] : memref<481xf32, #tpu.memory_space<smem>>
    %1536 = vector.broadcast %1535 : f32 to vector<8x128xf32>
    %1537 = arith.mulf %1536, %1523 : vector<8x128xf32>
    %1538 = arith.addf %1534, %1537 : vector<8x128xf32>
    %c126 = arith.constant 126 : index
    %1539 = memref.load %arg2[%c126] : memref<481xf32, #tpu.memory_space<smem>>
    %1540 = vector.broadcast %1539 : f32 to vector<8x128xf32>
    %1541 = arith.mulf %1540, %1526 : vector<8x128xf32>
    %1542 = arith.addf %1538, %1541 : vector<8x128xf32>
    %c142 = arith.constant 142 : index
    %1543 = memref.load %arg2[%c142] : memref<481xf32, #tpu.memory_space<smem>>
    %1544 = vector.broadcast %1543 : f32 to vector<8x128xf32>
    %1545 = arith.mulf %1544, %1517 : vector<8x128xf32>
    %1546 = arith.addf %1480, %1545 : vector<8x128xf32>
    %c158 = arith.constant 158 : index
    %1547 = memref.load %arg2[%c158] : memref<481xf32, #tpu.memory_space<smem>>
    %1548 = vector.broadcast %1547 : f32 to vector<8x128xf32>
    %1549 = arith.mulf %1548, %1520 : vector<8x128xf32>
    %1550 = arith.addf %1546, %1549 : vector<8x128xf32>
    %c174 = arith.constant 174 : index
    %1551 = memref.load %arg2[%c174] : memref<481xf32, #tpu.memory_space<smem>>
    %1552 = vector.broadcast %1551 : f32 to vector<8x128xf32>
    %1553 = arith.mulf %1552, %1523 : vector<8x128xf32>
    %1554 = arith.addf %1550, %1553 : vector<8x128xf32>
    %c190 = arith.constant 190 : index
    %1555 = memref.load %arg2[%c190] : memref<481xf32, #tpu.memory_space<smem>>
    %1556 = vector.broadcast %1555 : f32 to vector<8x128xf32>
    %1557 = arith.mulf %1556, %1526 : vector<8x128xf32>
    %1558 = arith.addf %1554, %1557 : vector<8x128xf32>
    %c206 = arith.constant 206 : index
    %1559 = memref.load %arg2[%c206] : memref<481xf32, #tpu.memory_space<smem>>
    %1560 = vector.broadcast %1559 : f32 to vector<8x128xf32>
    %1561 = arith.mulf %1560, %1517 : vector<8x128xf32>
    %1562 = arith.addf %1496, %1561 : vector<8x128xf32>
    %c222 = arith.constant 222 : index
    %1563 = memref.load %arg2[%c222] : memref<481xf32, #tpu.memory_space<smem>>
    %1564 = vector.broadcast %1563 : f32 to vector<8x128xf32>
    %1565 = arith.mulf %1564, %1520 : vector<8x128xf32>
    %1566 = arith.addf %1562, %1565 : vector<8x128xf32>
    %c238 = arith.constant 238 : index
    %1567 = memref.load %arg2[%c238] : memref<481xf32, #tpu.memory_space<smem>>
    %1568 = vector.broadcast %1567 : f32 to vector<8x128xf32>
    %1569 = arith.mulf %1568, %1523 : vector<8x128xf32>
    %1570 = arith.addf %1566, %1569 : vector<8x128xf32>
    %c254 = arith.constant 254 : index
    %1571 = memref.load %arg2[%c254] : memref<481xf32, #tpu.memory_space<smem>>
    %1572 = vector.broadcast %1571 : f32 to vector<8x128xf32>
    %1573 = arith.mulf %1572, %1526 : vector<8x128xf32>
    %1574 = arith.addf %1570, %1573 : vector<8x128xf32>
    %c270 = arith.constant 270 : index
    %1575 = memref.load %arg2[%c270] : memref<481xf32, #tpu.memory_space<smem>>
    %1576 = vector.broadcast %1575 : f32 to vector<8x128xf32>
    %1577 = arith.mulf %1576, %1517 : vector<8x128xf32>
    %1578 = arith.addf %1512, %1577 : vector<8x128xf32>
    %c286 = arith.constant 286 : index
    %1579 = memref.load %arg2[%c286] : memref<481xf32, #tpu.memory_space<smem>>
    %1580 = vector.broadcast %1579 : f32 to vector<8x128xf32>
    %1581 = arith.mulf %1580, %1520 : vector<8x128xf32>
    %1582 = arith.addf %1578, %1581 : vector<8x128xf32>
    %c302 = arith.constant 302 : index
    %1583 = memref.load %arg2[%c302] : memref<481xf32, #tpu.memory_space<smem>>
    %1584 = vector.broadcast %1583 : f32 to vector<8x128xf32>
    %1585 = arith.mulf %1584, %1523 : vector<8x128xf32>
    %1586 = arith.addf %1582, %1585 : vector<8x128xf32>
    %c318 = arith.constant 318 : index
    %1587 = memref.load %arg2[%c318] : memref<481xf32, #tpu.memory_space<smem>>
    %1588 = vector.broadcast %1587 : f32 to vector<8x128xf32>
    %1589 = arith.mulf %1588, %1526 : vector<8x128xf32>
    %1590 = arith.addf %1586, %1589 : vector<8x128xf32>
    %c107_i32_186 = arith.constant 107 : i32
    %1591 = vector.broadcast %c107_i32_186 : i32 to vector<8x128xi32>
    %1592 = arith.cmpi sge, %4, %1591 : vector<8x128xi32>
    %c107_i32_187 = arith.constant 107 : i32
    %1593 = tpu.dynamic_rotate %429 by %c107_i32_187 dim 1 : vector<8x128xf32>, i32 -> vector<8x128xf32>
    %c7_i32_188 = arith.constant 7 : i32
    %1594 = tpu.dynamic_rotate %1593 by %c7_i32_188 dim 0 : vector<8x128xf32>, i32 -> vector<8x128xf32>
    %1595 = arith.select %1592, %1594, %1593 : vector<8x128xi1>, vector<8x128xf32>
    %c107_i32_189 = arith.constant 107 : i32
    %1596 = tpu.dynamic_rotate %432 by %c107_i32_189 dim 1 : vector<8x128xf32>, i32 -> vector<8x128xf32>
    %c7_i32_190 = arith.constant 7 : i32
    %1597 = tpu.dynamic_rotate %1596 by %c7_i32_190 dim 0 : vector<8x128xf32>, i32 -> vector<8x128xf32>
    %1598 = arith.select %1592, %1597, %1596 : vector<8x128xi1>, vector<8x128xf32>
    %c107_i32_191 = arith.constant 107 : i32
    %1599 = tpu.dynamic_rotate %435 by %c107_i32_191 dim 1 : vector<8x128xf32>, i32 -> vector<8x128xf32>
    %c7_i32_192 = arith.constant 7 : i32
    %1600 = tpu.dynamic_rotate %1599 by %c7_i32_192 dim 0 : vector<8x128xf32>, i32 -> vector<8x128xf32>
    %1601 = arith.select %1592, %1600, %1599 : vector<8x128xi1>, vector<8x128xf32>
    %c107_i32_193 = arith.constant 107 : i32
    %1602 = tpu.dynamic_rotate %438 by %c107_i32_193 dim 1 : vector<8x128xf32>, i32 -> vector<8x128xf32>
    %c7_i32_194 = arith.constant 7 : i32
    %1603 = tpu.dynamic_rotate %1602 by %c7_i32_194 dim 0 : vector<8x128xf32>, i32 -> vector<8x128xf32>
    %1604 = arith.select %1592, %1603, %1602 : vector<8x128xi1>, vector<8x128xf32>
    %c79 = arith.constant 79 : index
    %1605 = memref.load %arg2[%c79] : memref<481xf32, #tpu.memory_space<smem>>
    %1606 = vector.broadcast %1605 : f32 to vector<8x128xf32>
    %1607 = arith.mulf %1606, %1595 : vector<8x128xf32>
    %1608 = arith.addf %1542, %1607 : vector<8x128xf32>
    %c95 = arith.constant 95 : index
    %1609 = memref.load %arg2[%c95] : memref<481xf32, #tpu.memory_space<smem>>
    %1610 = vector.broadcast %1609 : f32 to vector<8x128xf32>
    %1611 = arith.mulf %1610, %1598 : vector<8x128xf32>
    %1612 = arith.addf %1608, %1611 : vector<8x128xf32>
    %c111 = arith.constant 111 : index
    %1613 = memref.load %arg2[%c111] : memref<481xf32, #tpu.memory_space<smem>>
    %1614 = vector.broadcast %1613 : f32 to vector<8x128xf32>
    %1615 = arith.mulf %1614, %1601 : vector<8x128xf32>
    %1616 = arith.addf %1612, %1615 : vector<8x128xf32>
    %c127 = arith.constant 127 : index
    %1617 = memref.load %arg2[%c127] : memref<481xf32, #tpu.memory_space<smem>>
    %1618 = vector.broadcast %1617 : f32 to vector<8x128xf32>
    %1619 = arith.mulf %1618, %1604 : vector<8x128xf32>
    %1620 = arith.addf %1616, %1619 : vector<8x128xf32>
    %c143 = arith.constant 143 : index
    %1621 = memref.load %arg2[%c143] : memref<481xf32, #tpu.memory_space<smem>>
    %1622 = vector.broadcast %1621 : f32 to vector<8x128xf32>
    %1623 = arith.mulf %1622, %1595 : vector<8x128xf32>
    %1624 = arith.addf %1558, %1623 : vector<8x128xf32>
    %c159 = arith.constant 159 : index
    %1625 = memref.load %arg2[%c159] : memref<481xf32, #tpu.memory_space<smem>>
    %1626 = vector.broadcast %1625 : f32 to vector<8x128xf32>
    %1627 = arith.mulf %1626, %1598 : vector<8x128xf32>
    %1628 = arith.addf %1624, %1627 : vector<8x128xf32>
    %c175 = arith.constant 175 : index
    %1629 = memref.load %arg2[%c175] : memref<481xf32, #tpu.memory_space<smem>>
    %1630 = vector.broadcast %1629 : f32 to vector<8x128xf32>
    %1631 = arith.mulf %1630, %1601 : vector<8x128xf32>
    %1632 = arith.addf %1628, %1631 : vector<8x128xf32>
    %c191 = arith.constant 191 : index
    %1633 = memref.load %arg2[%c191] : memref<481xf32, #tpu.memory_space<smem>>
    %1634 = vector.broadcast %1633 : f32 to vector<8x128xf32>
    %1635 = arith.mulf %1634, %1604 : vector<8x128xf32>
    %1636 = arith.addf %1632, %1635 : vector<8x128xf32>
    %c207 = arith.constant 207 : index
    %1637 = memref.load %arg2[%c207] : memref<481xf32, #tpu.memory_space<smem>>
    %1638 = vector.broadcast %1637 : f32 to vector<8x128xf32>
    %1639 = arith.mulf %1638, %1595 : vector<8x128xf32>
    %1640 = arith.addf %1574, %1639 : vector<8x128xf32>
    %c223 = arith.constant 223 : index
    %1641 = memref.load %arg2[%c223] : memref<481xf32, #tpu.memory_space<smem>>
    %1642 = vector.broadcast %1641 : f32 to vector<8x128xf32>
    %1643 = arith.mulf %1642, %1598 : vector<8x128xf32>
    %1644 = arith.addf %1640, %1643 : vector<8x128xf32>
    %c239 = arith.constant 239 : index
    %1645 = memref.load %arg2[%c239] : memref<481xf32, #tpu.memory_space<smem>>
    %1646 = vector.broadcast %1645 : f32 to vector<8x128xf32>
    %1647 = arith.mulf %1646, %1601 : vector<8x128xf32>
    %1648 = arith.addf %1644, %1647 : vector<8x128xf32>
    %c255 = arith.constant 255 : index
    %1649 = memref.load %arg2[%c255] : memref<481xf32, #tpu.memory_space<smem>>
    %1650 = vector.broadcast %1649 : f32 to vector<8x128xf32>
    %1651 = arith.mulf %1650, %1604 : vector<8x128xf32>
    %1652 = arith.addf %1648, %1651 : vector<8x128xf32>
    %c271 = arith.constant 271 : index
    %1653 = memref.load %arg2[%c271] : memref<481xf32, #tpu.memory_space<smem>>
    %1654 = vector.broadcast %1653 : f32 to vector<8x128xf32>
    %1655 = arith.mulf %1654, %1595 : vector<8x128xf32>
    %1656 = arith.addf %1590, %1655 : vector<8x128xf32>
    %c287 = arith.constant 287 : index
    %1657 = memref.load %arg2[%c287] : memref<481xf32, #tpu.memory_space<smem>>
    %1658 = vector.broadcast %1657 : f32 to vector<8x128xf32>
    %1659 = arith.mulf %1658, %1598 : vector<8x128xf32>
    %1660 = arith.addf %1656, %1659 : vector<8x128xf32>
    %c303 = arith.constant 303 : index
    %1661 = memref.load %arg2[%c303] : memref<481xf32, #tpu.memory_space<smem>>
    %1662 = vector.broadcast %1661 : f32 to vector<8x128xf32>
    %1663 = arith.mulf %1662, %1601 : vector<8x128xf32>
    %1664 = arith.addf %1660, %1663 : vector<8x128xf32>
    %c319 = arith.constant 319 : index
    %1665 = memref.load %arg2[%c319] : memref<481xf32, #tpu.memory_space<smem>>
    %1666 = vector.broadcast %1665 : f32 to vector<8x128xf32>
    %1667 = arith.mulf %1666, %1604 : vector<8x128xf32>
    %1668 = arith.addf %1664, %1667 : vector<8x128xf32>
    %1669 = arith.mulf %1620, %3 : vector<8x128xf32>
    %cst_195 = arith.constant dense<0.000000e+00> : vector<8xf32>
    %1670 = vector.multi_reduction <add>, %1669, %cst_195 [1] : vector<8x128xf32> to vector<8xf32>
    %1671 = vector.shape_cast %1670 : vector<8xf32> to vector<8x1xf32>
    %cst_196 = arith.constant dense<0.000000e+00> : vector<1xf32>
    %1672 = vector.multi_reduction <add>, %1671, %cst_196 [0] : vector<8x1xf32> to vector<1xf32>
    %1673 = vector.shape_cast %1672 : vector<1xf32> to vector<1x1xf32>
    %cst_197 = arith.constant 0.00140056026 : f32
    %1674 = vector.broadcast %cst_197 : f32 to vector<1x1xf32>
    %1675 = arith.mulf %1673, %1674 : vector<1x1xf32>
    %1676 = arith.mulf %1669, %1620 : vector<8x128xf32>
    %cst_198 = arith.constant dense<0.000000e+00> : vector<8xf32>
    %1677 = vector.multi_reduction <add>, %1676, %cst_198 [1] : vector<8x128xf32> to vector<8xf32>
    %1678 = vector.shape_cast %1677 : vector<8xf32> to vector<8x1xf32>
    %cst_199 = arith.constant dense<0.000000e+00> : vector<1xf32>
    %1679 = vector.multi_reduction <add>, %1678, %cst_199 [0] : vector<8x1xf32> to vector<1xf32>
    %1680 = vector.shape_cast %1679 : vector<1xf32> to vector<1x1xf32>
    %cst_200 = arith.constant 0.00140056026 : f32
    %1681 = vector.broadcast %cst_200 : f32 to vector<1x1xf32>
    %1682 = arith.mulf %1680, %1681 : vector<1x1xf32>
    %1683 = arith.mulf %1675, %1675 : vector<1x1xf32>
    %1684 = arith.subf %1682, %1683 : vector<1x1xf32>
    %c328 = arith.constant 328 : index
    %1685 = memref.load %arg2[%c328] : memref<481xf32, #tpu.memory_space<smem>>
    %cst_201 = arith.constant 9.99999974E-6 : f32
    %1686 = vector.broadcast %cst_201 : f32 to vector<1x1xf32>
    %1687 = arith.addf %1684, %1686 : vector<1x1xf32>
    %1688 = math.rsqrt %1687 : vector<1x1xf32>
    %1689 = vector.broadcast %1685 : f32 to vector<1x1xf32>
    %1690 = arith.mulf %1689, %1688 : vector<1x1xf32>
    %c332 = arith.constant 332 : index
    %1691 = memref.load %arg2[%c332] : memref<481xf32, #tpu.memory_space<smem>>
    %1692 = arith.mulf %1675, %1690 : vector<1x1xf32>
    %1693 = vector.broadcast %1691 : f32 to vector<1x1xf32>
    %1694 = arith.subf %1693, %1692 : vector<1x1xf32>
    %1695 = vector.broadcast %1690 : vector<1x1xf32> to vector<8x128xf32>
    %1696 = arith.mulf %1620, %1695 : vector<8x128xf32>
    %1697 = vector.broadcast %1694 : vector<1x1xf32> to vector<8x128xf32>
    %1698 = arith.addf %1696, %1697 : vector<8x128xf32>
    %1699 = arith.mulf %1636, %3 : vector<8x128xf32>
    %cst_202 = arith.constant dense<0.000000e+00> : vector<8xf32>
    %1700 = vector.multi_reduction <add>, %1699, %cst_202 [1] : vector<8x128xf32> to vector<8xf32>
    %1701 = vector.shape_cast %1700 : vector<8xf32> to vector<8x1xf32>
    %cst_203 = arith.constant dense<0.000000e+00> : vector<1xf32>
    %1702 = vector.multi_reduction <add>, %1701, %cst_203 [0] : vector<8x1xf32> to vector<1xf32>
    %1703 = vector.shape_cast %1702 : vector<1xf32> to vector<1x1xf32>
    %cst_204 = arith.constant 0.00140056026 : f32
    %1704 = vector.broadcast %cst_204 : f32 to vector<1x1xf32>
    %1705 = arith.mulf %1703, %1704 : vector<1x1xf32>
    %1706 = arith.mulf %1699, %1636 : vector<8x128xf32>
    %cst_205 = arith.constant dense<0.000000e+00> : vector<8xf32>
    %1707 = vector.multi_reduction <add>, %1706, %cst_205 [1] : vector<8x128xf32> to vector<8xf32>
    %1708 = vector.shape_cast %1707 : vector<8xf32> to vector<8x1xf32>
    %cst_206 = arith.constant dense<0.000000e+00> : vector<1xf32>
    %1709 = vector.multi_reduction <add>, %1708, %cst_206 [0] : vector<8x1xf32> to vector<1xf32>
    %1710 = vector.shape_cast %1709 : vector<1xf32> to vector<1x1xf32>
    %cst_207 = arith.constant 0.00140056026 : f32
    %1711 = vector.broadcast %cst_207 : f32 to vector<1x1xf32>
    %1712 = arith.mulf %1710, %1711 : vector<1x1xf32>
    %1713 = arith.mulf %1705, %1705 : vector<1x1xf32>
    %1714 = arith.subf %1712, %1713 : vector<1x1xf32>
    %c329 = arith.constant 329 : index
    %1715 = memref.load %arg2[%c329] : memref<481xf32, #tpu.memory_space<smem>>
    %cst_208 = arith.constant 9.99999974E-6 : f32
    %1716 = vector.broadcast %cst_208 : f32 to vector<1x1xf32>
    %1717 = arith.addf %1714, %1716 : vector<1x1xf32>
    %1718 = math.rsqrt %1717 : vector<1x1xf32>
    %1719 = vector.broadcast %1715 : f32 to vector<1x1xf32>
    %1720 = arith.mulf %1719, %1718 : vector<1x1xf32>
    %c333 = arith.constant 333 : index
    %1721 = memref.load %arg2[%c333] : memref<481xf32, #tpu.memory_space<smem>>
    %1722 = arith.mulf %1705, %1720 : vector<1x1xf32>
    %1723 = vector.broadcast %1721 : f32 to vector<1x1xf32>
    %1724 = arith.subf %1723, %1722 : vector<1x1xf32>
    %1725 = vector.broadcast %1720 : vector<1x1xf32> to vector<8x128xf32>
    %1726 = arith.mulf %1636, %1725 : vector<8x128xf32>
    %1727 = vector.broadcast %1724 : vector<1x1xf32> to vector<8x128xf32>
    %1728 = arith.addf %1726, %1727 : vector<8x128xf32>
    %1729 = arith.mulf %1652, %3 : vector<8x128xf32>
    %cst_209 = arith.constant dense<0.000000e+00> : vector<8xf32>
    %1730 = vector.multi_reduction <add>, %1729, %cst_209 [1] : vector<8x128xf32> to vector<8xf32>
    %1731 = vector.shape_cast %1730 : vector<8xf32> to vector<8x1xf32>
    %cst_210 = arith.constant dense<0.000000e+00> : vector<1xf32>
    %1732 = vector.multi_reduction <add>, %1731, %cst_210 [0] : vector<8x1xf32> to vector<1xf32>
    %1733 = vector.shape_cast %1732 : vector<1xf32> to vector<1x1xf32>
    %cst_211 = arith.constant 0.00140056026 : f32
    %1734 = vector.broadcast %cst_211 : f32 to vector<1x1xf32>
    %1735 = arith.mulf %1733, %1734 : vector<1x1xf32>
    %1736 = arith.mulf %1729, %1652 : vector<8x128xf32>
    %cst_212 = arith.constant dense<0.000000e+00> : vector<8xf32>
    %1737 = vector.multi_reduction <add>, %1736, %cst_212 [1] : vector<8x128xf32> to vector<8xf32>
    %1738 = vector.shape_cast %1737 : vector<8xf32> to vector<8x1xf32>
    %cst_213 = arith.constant dense<0.000000e+00> : vector<1xf32>
    %1739 = vector.multi_reduction <add>, %1738, %cst_213 [0] : vector<8x1xf32> to vector<1xf32>
    %1740 = vector.shape_cast %1739 : vector<1xf32> to vector<1x1xf32>
    %cst_214 = arith.constant 0.00140056026 : f32
    %1741 = vector.broadcast %cst_214 : f32 to vector<1x1xf32>
    %1742 = arith.mulf %1740, %1741 : vector<1x1xf32>
    %1743 = arith.mulf %1735, %1735 : vector<1x1xf32>
    %1744 = arith.subf %1742, %1743 : vector<1x1xf32>
    %c330 = arith.constant 330 : index
    %1745 = memref.load %arg2[%c330] : memref<481xf32, #tpu.memory_space<smem>>
    %cst_215 = arith.constant 9.99999974E-6 : f32
    %1746 = vector.broadcast %cst_215 : f32 to vector<1x1xf32>
    %1747 = arith.addf %1744, %1746 : vector<1x1xf32>
    %1748 = math.rsqrt %1747 : vector<1x1xf32>
    %1749 = vector.broadcast %1745 : f32 to vector<1x1xf32>
    %1750 = arith.mulf %1749, %1748 : vector<1x1xf32>
    %c334 = arith.constant 334 : index
    %1751 = memref.load %arg2[%c334] : memref<481xf32, #tpu.memory_space<smem>>
    %1752 = arith.mulf %1735, %1750 : vector<1x1xf32>
    %1753 = vector.broadcast %1751 : f32 to vector<1x1xf32>
    %1754 = arith.subf %1753, %1752 : vector<1x1xf32>
    %1755 = vector.broadcast %1750 : vector<1x1xf32> to vector<8x128xf32>
    %1756 = arith.mulf %1652, %1755 : vector<8x128xf32>
    %1757 = vector.broadcast %1754 : vector<1x1xf32> to vector<8x128xf32>
    %1758 = arith.addf %1756, %1757 : vector<8x128xf32>
    %1759 = arith.mulf %1668, %3 : vector<8x128xf32>
    %cst_216 = arith.constant dense<0.000000e+00> : vector<8xf32>
    %1760 = vector.multi_reduction <add>, %1759, %cst_216 [1] : vector<8x128xf32> to vector<8xf32>
    %1761 = vector.shape_cast %1760 : vector<8xf32> to vector<8x1xf32>
    %cst_217 = arith.constant dense<0.000000e+00> : vector<1xf32>
    %1762 = vector.multi_reduction <add>, %1761, %cst_217 [0] : vector<8x1xf32> to vector<1xf32>
    %1763 = vector.shape_cast %1762 : vector<1xf32> to vector<1x1xf32>
    %cst_218 = arith.constant 0.00140056026 : f32
    %1764 = vector.broadcast %cst_218 : f32 to vector<1x1xf32>
    %1765 = arith.mulf %1763, %1764 : vector<1x1xf32>
    %1766 = arith.mulf %1759, %1668 : vector<8x128xf32>
    %cst_219 = arith.constant dense<0.000000e+00> : vector<8xf32>
    %1767 = vector.multi_reduction <add>, %1766, %cst_219 [1] : vector<8x128xf32> to vector<8xf32>
    %1768 = vector.shape_cast %1767 : vector<8xf32> to vector<8x1xf32>
    %cst_220 = arith.constant dense<0.000000e+00> : vector<1xf32>
    %1769 = vector.multi_reduction <add>, %1768, %cst_220 [0] : vector<8x1xf32> to vector<1xf32>
    %1770 = vector.shape_cast %1769 : vector<1xf32> to vector<1x1xf32>
    %cst_221 = arith.constant 0.00140056026 : f32
    %1771 = vector.broadcast %cst_221 : f32 to vector<1x1xf32>
    %1772 = arith.mulf %1770, %1771 : vector<1x1xf32>
    %1773 = arith.mulf %1765, %1765 : vector<1x1xf32>
    %1774 = arith.subf %1772, %1773 : vector<1x1xf32>
    %c331 = arith.constant 331 : index
    %1775 = memref.load %arg2[%c331] : memref<481xf32, #tpu.memory_space<smem>>
    %cst_222 = arith.constant 9.99999974E-6 : f32
    %1776 = vector.broadcast %cst_222 : f32 to vector<1x1xf32>
    %1777 = arith.addf %1774, %1776 : vector<1x1xf32>
    %1778 = math.rsqrt %1777 : vector<1x1xf32>
    %1779 = vector.broadcast %1775 : f32 to vector<1x1xf32>
    %1780 = arith.mulf %1779, %1778 : vector<1x1xf32>
    %c335 = arith.constant 335 : index
    %1781 = memref.load %arg2[%c335] : memref<481xf32, #tpu.memory_space<smem>>
    %1782 = arith.mulf %1765, %1780 : vector<1x1xf32>
    %1783 = vector.broadcast %1781 : f32 to vector<1x1xf32>
    %1784 = arith.subf %1783, %1782 : vector<1x1xf32>
    %1785 = vector.broadcast %1780 : vector<1x1xf32> to vector<8x128xf32>
    %1786 = arith.mulf %1668, %1785 : vector<8x128xf32>
    %1787 = vector.broadcast %1784 : vector<1x1xf32> to vector<8x128xf32>
    %1788 = arith.addf %1786, %1787 : vector<8x128xf32>
    %1789 = arith.addf %1698, %6 : vector<8x128xf32>
    %cst_223 = arith.constant 0.000000e+00 : f32
    %1790 = vector.broadcast %cst_223 : f32 to vector<8x128xf32>
    %1791 = arith.maximumf %1789, %1790 : vector<8x128xf32>
    %1792 = arith.mulf %1791, %3 : vector<8x128xf32>
    %1793 = arith.addf %1728, %8 : vector<8x128xf32>
    %cst_224 = arith.constant 0.000000e+00 : f32
    %1794 = vector.broadcast %cst_224 : f32 to vector<8x128xf32>
    %1795 = arith.maximumf %1793, %1794 : vector<8x128xf32>
    %1796 = arith.mulf %1795, %3 : vector<8x128xf32>
    %1797 = arith.addf %1758, %10 : vector<8x128xf32>
    %cst_225 = arith.constant 0.000000e+00 : f32
    %1798 = vector.broadcast %cst_225 : f32 to vector<8x128xf32>
    %1799 = arith.maximumf %1797, %1798 : vector<8x128xf32>
    %1800 = arith.mulf %1799, %3 : vector<8x128xf32>
    %1801 = arith.addf %1788, %12 : vector<8x128xf32>
    %cst_226 = arith.constant 0.000000e+00 : f32
    %1802 = vector.broadcast %cst_226 : f32 to vector<8x128xf32>
    %1803 = arith.maximumf %1801, %1802 : vector<8x128xf32>
    %1804 = arith.mulf %1803, %3 : vector<8x128xf32>
    %c336 = arith.constant 336 : index
    %1805 = memref.load %arg2[%c336] : memref<481xf32, #tpu.memory_space<smem>>
    %1806 = vector.broadcast %1805 : f32 to vector<8x128xf32>
    %1807 = arith.mulf %1806, %1792 : vector<8x128xf32>
    %c340 = arith.constant 340 : index
    %1808 = memref.load %arg2[%c340] : memref<481xf32, #tpu.memory_space<smem>>
    %1809 = vector.broadcast %1808 : f32 to vector<8x128xf32>
    %1810 = arith.mulf %1809, %1796 : vector<8x128xf32>
    %1811 = arith.addf %1807, %1810 : vector<8x128xf32>
    %c344 = arith.constant 344 : index
    %1812 = memref.load %arg2[%c344] : memref<481xf32, #tpu.memory_space<smem>>
    %1813 = vector.broadcast %1812 : f32 to vector<8x128xf32>
    %1814 = arith.mulf %1813, %1800 : vector<8x128xf32>
    %1815 = arith.addf %1811, %1814 : vector<8x128xf32>
    %c348 = arith.constant 348 : index
    %1816 = memref.load %arg2[%c348] : memref<481xf32, #tpu.memory_space<smem>>
    %1817 = vector.broadcast %1816 : f32 to vector<8x128xf32>
    %1818 = arith.mulf %1817, %1804 : vector<8x128xf32>
    %1819 = arith.addf %1815, %1818 : vector<8x128xf32>
    %c352 = arith.constant 352 : index
    %1820 = memref.load %arg2[%c352] : memref<481xf32, #tpu.memory_space<smem>>
    %1821 = vector.broadcast %1820 : f32 to vector<8x128xf32>
    %1822 = arith.mulf %1821, %1792 : vector<8x128xf32>
    %c356 = arith.constant 356 : index
    %1823 = memref.load %arg2[%c356] : memref<481xf32, #tpu.memory_space<smem>>
    %1824 = vector.broadcast %1823 : f32 to vector<8x128xf32>
    %1825 = arith.mulf %1824, %1796 : vector<8x128xf32>
    %1826 = arith.addf %1822, %1825 : vector<8x128xf32>
    %c360 = arith.constant 360 : index
    %1827 = memref.load %arg2[%c360] : memref<481xf32, #tpu.memory_space<smem>>
    %1828 = vector.broadcast %1827 : f32 to vector<8x128xf32>
    %1829 = arith.mulf %1828, %1800 : vector<8x128xf32>
    %1830 = arith.addf %1826, %1829 : vector<8x128xf32>
    %c364 = arith.constant 364 : index
    %1831 = memref.load %arg2[%c364] : memref<481xf32, #tpu.memory_space<smem>>
    %1832 = vector.broadcast %1831 : f32 to vector<8x128xf32>
    %1833 = arith.mulf %1832, %1804 : vector<8x128xf32>
    %1834 = arith.addf %1830, %1833 : vector<8x128xf32>
    %c127_i32_227 = arith.constant 127 : i32
    %1835 = vector.broadcast %c127_i32_227 : i32 to vector<8x128xi32>
    %1836 = arith.cmpi sge, %4, %1835 : vector<8x128xi32>
    %c127_i32_228 = arith.constant 127 : i32
    %1837 = tpu.dynamic_rotate %1792 by %c127_i32_228 dim 1 : vector<8x128xf32>, i32 -> vector<8x128xf32>
    %c7_i32_229 = arith.constant 7 : i32
    %1838 = tpu.dynamic_rotate %1837 by %c7_i32_229 dim 0 : vector<8x128xf32>, i32 -> vector<8x128xf32>
    %1839 = arith.select %1836, %1838, %1837 : vector<8x128xi1>, vector<8x128xf32>
    %c127_i32_230 = arith.constant 127 : i32
    %1840 = tpu.dynamic_rotate %1796 by %c127_i32_230 dim 1 : vector<8x128xf32>, i32 -> vector<8x128xf32>
    %c7_i32_231 = arith.constant 7 : i32
    %1841 = tpu.dynamic_rotate %1840 by %c7_i32_231 dim 0 : vector<8x128xf32>, i32 -> vector<8x128xf32>
    %1842 = arith.select %1836, %1841, %1840 : vector<8x128xi1>, vector<8x128xf32>
    %c127_i32_232 = arith.constant 127 : i32
    %1843 = tpu.dynamic_rotate %1800 by %c127_i32_232 dim 1 : vector<8x128xf32>, i32 -> vector<8x128xf32>
    %c7_i32_233 = arith.constant 7 : i32
    %1844 = tpu.dynamic_rotate %1843 by %c7_i32_233 dim 0 : vector<8x128xf32>, i32 -> vector<8x128xf32>
    %1845 = arith.select %1836, %1844, %1843 : vector<8x128xi1>, vector<8x128xf32>
    %c127_i32_234 = arith.constant 127 : i32
    %1846 = tpu.dynamic_rotate %1804 by %c127_i32_234 dim 1 : vector<8x128xf32>, i32 -> vector<8x128xf32>
    %c7_i32_235 = arith.constant 7 : i32
    %1847 = tpu.dynamic_rotate %1846 by %c7_i32_235 dim 0 : vector<8x128xf32>, i32 -> vector<8x128xf32>
    %1848 = arith.select %1836, %1847, %1846 : vector<8x128xi1>, vector<8x128xf32>
    %c337 = arith.constant 337 : index
    %1849 = memref.load %arg2[%c337] : memref<481xf32, #tpu.memory_space<smem>>
    %1850 = vector.broadcast %1849 : f32 to vector<8x128xf32>
    %1851 = arith.mulf %1850, %1839 : vector<8x128xf32>
    %1852 = arith.addf %1819, %1851 : vector<8x128xf32>
    %c341 = arith.constant 341 : index
    %1853 = memref.load %arg2[%c341] : memref<481xf32, #tpu.memory_space<smem>>
    %1854 = vector.broadcast %1853 : f32 to vector<8x128xf32>
    %1855 = arith.mulf %1854, %1842 : vector<8x128xf32>
    %1856 = arith.addf %1852, %1855 : vector<8x128xf32>
    %c345 = arith.constant 345 : index
    %1857 = memref.load %arg2[%c345] : memref<481xf32, #tpu.memory_space<smem>>
    %1858 = vector.broadcast %1857 : f32 to vector<8x128xf32>
    %1859 = arith.mulf %1858, %1845 : vector<8x128xf32>
    %1860 = arith.addf %1856, %1859 : vector<8x128xf32>
    %c349 = arith.constant 349 : index
    %1861 = memref.load %arg2[%c349] : memref<481xf32, #tpu.memory_space<smem>>
    %1862 = vector.broadcast %1861 : f32 to vector<8x128xf32>
    %1863 = arith.mulf %1862, %1848 : vector<8x128xf32>
    %1864 = arith.addf %1860, %1863 : vector<8x128xf32>
    %c353 = arith.constant 353 : index
    %1865 = memref.load %arg2[%c353] : memref<481xf32, #tpu.memory_space<smem>>
    %1866 = vector.broadcast %1865 : f32 to vector<8x128xf32>
    %1867 = arith.mulf %1866, %1839 : vector<8x128xf32>
    %1868 = arith.addf %1834, %1867 : vector<8x128xf32>
    %c357 = arith.constant 357 : index
    %1869 = memref.load %arg2[%c357] : memref<481xf32, #tpu.memory_space<smem>>
    %1870 = vector.broadcast %1869 : f32 to vector<8x128xf32>
    %1871 = arith.mulf %1870, %1842 : vector<8x128xf32>
    %1872 = arith.addf %1868, %1871 : vector<8x128xf32>
    %c361 = arith.constant 361 : index
    %1873 = memref.load %arg2[%c361] : memref<481xf32, #tpu.memory_space<smem>>
    %1874 = vector.broadcast %1873 : f32 to vector<8x128xf32>
    %1875 = arith.mulf %1874, %1845 : vector<8x128xf32>
    %1876 = arith.addf %1872, %1875 : vector<8x128xf32>
    %c365 = arith.constant 365 : index
    %1877 = memref.load %arg2[%c365] : memref<481xf32, #tpu.memory_space<smem>>
    %1878 = vector.broadcast %1877 : f32 to vector<8x128xf32>
    %1879 = arith.mulf %1878, %1848 : vector<8x128xf32>
    %1880 = arith.addf %1876, %1879 : vector<8x128xf32>
    %c108_i32_236 = arith.constant 108 : i32
    %1881 = vector.broadcast %c108_i32_236 : i32 to vector<8x128xi32>
    %1882 = arith.cmpi sge, %4, %1881 : vector<8x128xi32>
    %c108_i32_237 = arith.constant 108 : i32
    %1883 = tpu.dynamic_rotate %1792 by %c108_i32_237 dim 1 : vector<8x128xf32>, i32 -> vector<8x128xf32>
    %c7_i32_238 = arith.constant 7 : i32
    %1884 = tpu.dynamic_rotate %1883 by %c7_i32_238 dim 0 : vector<8x128xf32>, i32 -> vector<8x128xf32>
    %1885 = arith.select %1882, %1884, %1883 : vector<8x128xi1>, vector<8x128xf32>
    %c108_i32_239 = arith.constant 108 : i32
    %1886 = tpu.dynamic_rotate %1796 by %c108_i32_239 dim 1 : vector<8x128xf32>, i32 -> vector<8x128xf32>
    %c7_i32_240 = arith.constant 7 : i32
    %1887 = tpu.dynamic_rotate %1886 by %c7_i32_240 dim 0 : vector<8x128xf32>, i32 -> vector<8x128xf32>
    %1888 = arith.select %1882, %1887, %1886 : vector<8x128xi1>, vector<8x128xf32>
    %c108_i32_241 = arith.constant 108 : i32
    %1889 = tpu.dynamic_rotate %1800 by %c108_i32_241 dim 1 : vector<8x128xf32>, i32 -> vector<8x128xf32>
    %c7_i32_242 = arith.constant 7 : i32
    %1890 = tpu.dynamic_rotate %1889 by %c7_i32_242 dim 0 : vector<8x128xf32>, i32 -> vector<8x128xf32>
    %1891 = arith.select %1882, %1890, %1889 : vector<8x128xi1>, vector<8x128xf32>
    %c108_i32_243 = arith.constant 108 : i32
    %1892 = tpu.dynamic_rotate %1804 by %c108_i32_243 dim 1 : vector<8x128xf32>, i32 -> vector<8x128xf32>
    %c7_i32_244 = arith.constant 7 : i32
    %1893 = tpu.dynamic_rotate %1892 by %c7_i32_244 dim 0 : vector<8x128xf32>, i32 -> vector<8x128xf32>
    %1894 = arith.select %1882, %1893, %1892 : vector<8x128xi1>, vector<8x128xf32>
    %c338 = arith.constant 338 : index
    %1895 = memref.load %arg2[%c338] : memref<481xf32, #tpu.memory_space<smem>>
    %1896 = vector.broadcast %1895 : f32 to vector<8x128xf32>
    %1897 = arith.mulf %1896, %1885 : vector<8x128xf32>
    %1898 = arith.addf %1864, %1897 : vector<8x128xf32>
    %c342 = arith.constant 342 : index
    %1899 = memref.load %arg2[%c342] : memref<481xf32, #tpu.memory_space<smem>>
    %1900 = vector.broadcast %1899 : f32 to vector<8x128xf32>
    %1901 = arith.mulf %1900, %1888 : vector<8x128xf32>
    %1902 = arith.addf %1898, %1901 : vector<8x128xf32>
    %c346 = arith.constant 346 : index
    %1903 = memref.load %arg2[%c346] : memref<481xf32, #tpu.memory_space<smem>>
    %1904 = vector.broadcast %1903 : f32 to vector<8x128xf32>
    %1905 = arith.mulf %1904, %1891 : vector<8x128xf32>
    %1906 = arith.addf %1902, %1905 : vector<8x128xf32>
    %c350 = arith.constant 350 : index
    %1907 = memref.load %arg2[%c350] : memref<481xf32, #tpu.memory_space<smem>>
    %1908 = vector.broadcast %1907 : f32 to vector<8x128xf32>
    %1909 = arith.mulf %1908, %1894 : vector<8x128xf32>
    %1910 = arith.addf %1906, %1909 : vector<8x128xf32>
    %c354 = arith.constant 354 : index
    %1911 = memref.load %arg2[%c354] : memref<481xf32, #tpu.memory_space<smem>>
    %1912 = vector.broadcast %1911 : f32 to vector<8x128xf32>
    %1913 = arith.mulf %1912, %1885 : vector<8x128xf32>
    %1914 = arith.addf %1880, %1913 : vector<8x128xf32>
    %c358 = arith.constant 358 : index
    %1915 = memref.load %arg2[%c358] : memref<481xf32, #tpu.memory_space<smem>>
    %1916 = vector.broadcast %1915 : f32 to vector<8x128xf32>
    %1917 = arith.mulf %1916, %1888 : vector<8x128xf32>
    %1918 = arith.addf %1914, %1917 : vector<8x128xf32>
    %c362 = arith.constant 362 : index
    %1919 = memref.load %arg2[%c362] : memref<481xf32, #tpu.memory_space<smem>>
    %1920 = vector.broadcast %1919 : f32 to vector<8x128xf32>
    %1921 = arith.mulf %1920, %1891 : vector<8x128xf32>
    %1922 = arith.addf %1918, %1921 : vector<8x128xf32>
    %c366 = arith.constant 366 : index
    %1923 = memref.load %arg2[%c366] : memref<481xf32, #tpu.memory_space<smem>>
    %1924 = vector.broadcast %1923 : f32 to vector<8x128xf32>
    %1925 = arith.mulf %1924, %1894 : vector<8x128xf32>
    %1926 = arith.addf %1922, %1925 : vector<8x128xf32>
    %c107_i32_245 = arith.constant 107 : i32
    %1927 = vector.broadcast %c107_i32_245 : i32 to vector<8x128xi32>
    %1928 = arith.cmpi sge, %4, %1927 : vector<8x128xi32>
    %c107_i32_246 = arith.constant 107 : i32
    %1929 = tpu.dynamic_rotate %1792 by %c107_i32_246 dim 1 : vector<8x128xf32>, i32 -> vector<8x128xf32>
    %c7_i32_247 = arith.constant 7 : i32
    %1930 = tpu.dynamic_rotate %1929 by %c7_i32_247 dim 0 : vector<8x128xf32>, i32 -> vector<8x128xf32>
    %1931 = arith.select %1928, %1930, %1929 : vector<8x128xi1>, vector<8x128xf32>
    %c107_i32_248 = arith.constant 107 : i32
    %1932 = tpu.dynamic_rotate %1796 by %c107_i32_248 dim 1 : vector<8x128xf32>, i32 -> vector<8x128xf32>
    %c7_i32_249 = arith.constant 7 : i32
    %1933 = tpu.dynamic_rotate %1932 by %c7_i32_249 dim 0 : vector<8x128xf32>, i32 -> vector<8x128xf32>
    %1934 = arith.select %1928, %1933, %1932 : vector<8x128xi1>, vector<8x128xf32>
    %c107_i32_250 = arith.constant 107 : i32
    %1935 = tpu.dynamic_rotate %1800 by %c107_i32_250 dim 1 : vector<8x128xf32>, i32 -> vector<8x128xf32>
    %c7_i32_251 = arith.constant 7 : i32
    %1936 = tpu.dynamic_rotate %1935 by %c7_i32_251 dim 0 : vector<8x128xf32>, i32 -> vector<8x128xf32>
    %1937 = arith.select %1928, %1936, %1935 : vector<8x128xi1>, vector<8x128xf32>
    %c107_i32_252 = arith.constant 107 : i32
    %1938 = tpu.dynamic_rotate %1804 by %c107_i32_252 dim 1 : vector<8x128xf32>, i32 -> vector<8x128xf32>
    %c7_i32_253 = arith.constant 7 : i32
    %1939 = tpu.dynamic_rotate %1938 by %c7_i32_253 dim 0 : vector<8x128xf32>, i32 -> vector<8x128xf32>
    %1940 = arith.select %1928, %1939, %1938 : vector<8x128xi1>, vector<8x128xf32>
    %c339 = arith.constant 339 : index
    %1941 = memref.load %arg2[%c339] : memref<481xf32, #tpu.memory_space<smem>>
    %1942 = vector.broadcast %1941 : f32 to vector<8x128xf32>
    %1943 = arith.mulf %1942, %1931 : vector<8x128xf32>
    %1944 = arith.addf %1910, %1943 : vector<8x128xf32>
    %c343 = arith.constant 343 : index
    %1945 = memref.load %arg2[%c343] : memref<481xf32, #tpu.memory_space<smem>>
    %1946 = vector.broadcast %1945 : f32 to vector<8x128xf32>
    %1947 = arith.mulf %1946, %1934 : vector<8x128xf32>
    %1948 = arith.addf %1944, %1947 : vector<8x128xf32>
    %c347 = arith.constant 347 : index
    %1949 = memref.load %arg2[%c347] : memref<481xf32, #tpu.memory_space<smem>>
    %1950 = vector.broadcast %1949 : f32 to vector<8x128xf32>
    %1951 = arith.mulf %1950, %1937 : vector<8x128xf32>
    %1952 = arith.addf %1948, %1951 : vector<8x128xf32>
    %c351 = arith.constant 351 : index
    %1953 = memref.load %arg2[%c351] : memref<481xf32, #tpu.memory_space<smem>>
    %1954 = vector.broadcast %1953 : f32 to vector<8x128xf32>
    %1955 = arith.mulf %1954, %1940 : vector<8x128xf32>
    %1956 = arith.addf %1952, %1955 : vector<8x128xf32>
    %c355 = arith.constant 355 : index
    %1957 = memref.load %arg2[%c355] : memref<481xf32, #tpu.memory_space<smem>>
    %1958 = vector.broadcast %1957 : f32 to vector<8x128xf32>
    %1959 = arith.mulf %1958, %1931 : vector<8x128xf32>
    %1960 = arith.addf %1926, %1959 : vector<8x128xf32>
    %c359 = arith.constant 359 : index
    %1961 = memref.load %arg2[%c359] : memref<481xf32, #tpu.memory_space<smem>>
    %1962 = vector.broadcast %1961 : f32 to vector<8x128xf32>
    %1963 = arith.mulf %1962, %1934 : vector<8x128xf32>
    %1964 = arith.addf %1960, %1963 : vector<8x128xf32>
    %c363 = arith.constant 363 : index
    %1965 = memref.load %arg2[%c363] : memref<481xf32, #tpu.memory_space<smem>>
    %1966 = vector.broadcast %1965 : f32 to vector<8x128xf32>
    %1967 = arith.mulf %1966, %1937 : vector<8x128xf32>
    %1968 = arith.addf %1964, %1967 : vector<8x128xf32>
    %c367 = arith.constant 367 : index
    %1969 = memref.load %arg2[%c367] : memref<481xf32, #tpu.memory_space<smem>>
    %1970 = vector.broadcast %1969 : f32 to vector<8x128xf32>
    %1971 = arith.mulf %1970, %1940 : vector<8x128xf32>
    %1972 = arith.addf %1968, %1971 : vector<8x128xf32>
    %1973 = arith.mulf %1956, %1 : vector<8x128xf32>
    %cst_254 = arith.constant dense<0.000000e+00> : vector<8xf32>
    %1974 = vector.multi_reduction <add>, %1973, %cst_254 [1] : vector<8x128xf32> to vector<8xf32>
    %1975 = vector.shape_cast %1974 : vector<8xf32> to vector<8x1xf32>
    %cst_255 = arith.constant dense<0.000000e+00> : vector<1xf32>
    %1976 = vector.multi_reduction <add>, %1975, %cst_255 [0] : vector<8x1xf32> to vector<1xf32>
    %1977 = vector.shape_cast %1976 : vector<1xf32> to vector<1x1xf32>
    %cst_256 = arith.constant 0.00126262626 : f32
    %1978 = vector.broadcast %cst_256 : f32 to vector<1x1xf32>
    %1979 = arith.mulf %1977, %1978 : vector<1x1xf32>
    %1980 = arith.mulf %1973, %1956 : vector<8x128xf32>
    %cst_257 = arith.constant dense<0.000000e+00> : vector<8xf32>
    %1981 = vector.multi_reduction <add>, %1980, %cst_257 [1] : vector<8x128xf32> to vector<8xf32>
    %1982 = vector.shape_cast %1981 : vector<8xf32> to vector<8x1xf32>
    %cst_258 = arith.constant dense<0.000000e+00> : vector<1xf32>
    %1983 = vector.multi_reduction <add>, %1982, %cst_258 [0] : vector<8x1xf32> to vector<1xf32>
    %1984 = vector.shape_cast %1983 : vector<1xf32> to vector<1x1xf32>
    %cst_259 = arith.constant 0.00126262626 : f32
    %1985 = vector.broadcast %cst_259 : f32 to vector<1x1xf32>
    %1986 = arith.mulf %1984, %1985 : vector<1x1xf32>
    %1987 = arith.mulf %1979, %1979 : vector<1x1xf32>
    %1988 = arith.subf %1986, %1987 : vector<1x1xf32>
    %c432 = arith.constant 432 : index
    %1989 = memref.load %arg2[%c432] : memref<481xf32, #tpu.memory_space<smem>>
    %cst_260 = arith.constant 9.99999974E-6 : f32
    %1990 = vector.broadcast %cst_260 : f32 to vector<1x1xf32>
    %1991 = arith.addf %1988, %1990 : vector<1x1xf32>
    %1992 = math.rsqrt %1991 : vector<1x1xf32>
    %1993 = vector.broadcast %1989 : f32 to vector<1x1xf32>
    %1994 = arith.mulf %1993, %1992 : vector<1x1xf32>
    %c434 = arith.constant 434 : index
    %1995 = memref.load %arg2[%c434] : memref<481xf32, #tpu.memory_space<smem>>
    %1996 = arith.mulf %1979, %1994 : vector<1x1xf32>
    %1997 = vector.broadcast %1995 : f32 to vector<1x1xf32>
    %1998 = arith.subf %1997, %1996 : vector<1x1xf32>
    %1999 = vector.broadcast %1994 : vector<1x1xf32> to vector<8x128xf32>
    %2000 = arith.mulf %1956, %1999 : vector<8x128xf32>
    %2001 = vector.broadcast %1998 : vector<1x1xf32> to vector<8x128xf32>
    %2002 = arith.addf %2000, %2001 : vector<8x128xf32>
    %2003 = arith.mulf %1972, %1 : vector<8x128xf32>
    %cst_261 = arith.constant dense<0.000000e+00> : vector<8xf32>
    %2004 = vector.multi_reduction <add>, %2003, %cst_261 [1] : vector<8x128xf32> to vector<8xf32>
    %2005 = vector.shape_cast %2004 : vector<8xf32> to vector<8x1xf32>
    %cst_262 = arith.constant dense<0.000000e+00> : vector<1xf32>
    %2006 = vector.multi_reduction <add>, %2005, %cst_262 [0] : vector<8x1xf32> to vector<1xf32>
    %2007 = vector.shape_cast %2006 : vector<1xf32> to vector<1x1xf32>
    %cst_263 = arith.constant 0.00126262626 : f32
    %2008 = vector.broadcast %cst_263 : f32 to vector<1x1xf32>
    %2009 = arith.mulf %2007, %2008 : vector<1x1xf32>
    %2010 = arith.mulf %2003, %1972 : vector<8x128xf32>
    %cst_264 = arith.constant dense<0.000000e+00> : vector<8xf32>
    %2011 = vector.multi_reduction <add>, %2010, %cst_264 [1] : vector<8x128xf32> to vector<8xf32>
    %2012 = vector.shape_cast %2011 : vector<8xf32> to vector<8x1xf32>
    %cst_265 = arith.constant dense<0.000000e+00> : vector<1xf32>
    %2013 = vector.multi_reduction <add>, %2012, %cst_265 [0] : vector<8x1xf32> to vector<1xf32>
    %2014 = vector.shape_cast %2013 : vector<1xf32> to vector<1x1xf32>
    %cst_266 = arith.constant 0.00126262626 : f32
    %2015 = vector.broadcast %cst_266 : f32 to vector<1x1xf32>
    %2016 = arith.mulf %2014, %2015 : vector<1x1xf32>
    %2017 = arith.mulf %2009, %2009 : vector<1x1xf32>
    %2018 = arith.subf %2016, %2017 : vector<1x1xf32>
    %c433 = arith.constant 433 : index
    %2019 = memref.load %arg2[%c433] : memref<481xf32, #tpu.memory_space<smem>>
    %cst_267 = arith.constant 9.99999974E-6 : f32
    %2020 = vector.broadcast %cst_267 : f32 to vector<1x1xf32>
    %2021 = arith.addf %2018, %2020 : vector<1x1xf32>
    %2022 = math.rsqrt %2021 : vector<1x1xf32>
    %2023 = vector.broadcast %2019 : f32 to vector<1x1xf32>
    %2024 = arith.mulf %2023, %2022 : vector<1x1xf32>
    %c435 = arith.constant 435 : index
    %2025 = memref.load %arg2[%c435] : memref<481xf32, #tpu.memory_space<smem>>
    %2026 = arith.mulf %2009, %2024 : vector<1x1xf32>
    %2027 = vector.broadcast %2025 : f32 to vector<1x1xf32>
    %2028 = arith.subf %2027, %2026 : vector<1x1xf32>
    %2029 = vector.broadcast %2024 : vector<1x1xf32> to vector<8x128xf32>
    %2030 = arith.mulf %1972, %2029 : vector<8x128xf32>
    %2031 = vector.broadcast %2028 : vector<1x1xf32> to vector<8x128xf32>
    %2032 = arith.addf %2030, %2031 : vector<8x128xf32>
    %cst_268 = arith.constant 0.000000e+00 : f32
    %2033 = vector.broadcast %cst_268 : f32 to vector<8x128xf32>
    %2034 = arith.maximumf %2002, %2033 : vector<8x128xf32>
    %2035 = arith.mulf %2034, %1 : vector<8x128xf32>
    %cst_269 = arith.constant 0.000000e+00 : f32
    %2036 = vector.broadcast %cst_269 : f32 to vector<8x128xf32>
    %2037 = arith.maximumf %2032, %2036 : vector<8x128xf32>
    %2038 = arith.mulf %2037, %1 : vector<8x128xf32>
    %c42_i32_270 = arith.constant 42 : i32
    %2039 = vector.broadcast %c42_i32_270 : i32 to vector<8x128xi32>
    %2040 = arith.cmpi sge, %4, %2039 : vector<8x128xi32>
    %c42_i32_271 = arith.constant 42 : i32
    %2041 = tpu.dynamic_rotate %2035 by %c42_i32_271 dim 1 : vector<8x128xf32>, i32 -> vector<8x128xf32>
    %c1_i32_272 = arith.constant 1 : i32
    %2042 = tpu.dynamic_rotate %2041 by %c1_i32_272 dim 0 : vector<8x128xf32>, i32 -> vector<8x128xf32>
    %2043 = arith.select %2040, %2041, %2042 : vector<8x128xi1>, vector<8x128xf32>
    %c42_i32_273 = arith.constant 42 : i32
    %2044 = tpu.dynamic_rotate %2038 by %c42_i32_273 dim 1 : vector<8x128xf32>, i32 -> vector<8x128xf32>
    %c1_i32_274 = arith.constant 1 : i32
    %2045 = tpu.dynamic_rotate %2044 by %c1_i32_274 dim 0 : vector<8x128xf32>, i32 -> vector<8x128xf32>
    %2046 = arith.select %2040, %2044, %2045 : vector<8x128xi1>, vector<8x128xf32>
    %c368 = arith.constant 368 : index
    %2047 = memref.load %arg2[%c368] : memref<481xf32, #tpu.memory_space<smem>>
    %2048 = vector.broadcast %2047 : f32 to vector<8x128xf32>
    %2049 = arith.mulf %2048, %2043 : vector<8x128xf32>
    %c384 = arith.constant 384 : index
    %2050 = memref.load %arg2[%c384] : memref<481xf32, #tpu.memory_space<smem>>
    %2051 = vector.broadcast %2050 : f32 to vector<8x128xf32>
    %2052 = arith.mulf %2051, %2046 : vector<8x128xf32>
    %2053 = arith.addf %2049, %2052 : vector<8x128xf32>
    %c400 = arith.constant 400 : index
    %2054 = memref.load %arg2[%c400] : memref<481xf32, #tpu.memory_space<smem>>
    %2055 = vector.broadcast %2054 : f32 to vector<8x128xf32>
    %2056 = arith.mulf %2055, %2043 : vector<8x128xf32>
    %c416 = arith.constant 416 : index
    %2057 = memref.load %arg2[%c416] : memref<481xf32, #tpu.memory_space<smem>>
    %2058 = vector.broadcast %2057 : f32 to vector<8x128xf32>
    %2059 = arith.mulf %2058, %2046 : vector<8x128xf32>
    %2060 = arith.addf %2056, %2059 : vector<8x128xf32>
    %c41_i32_275 = arith.constant 41 : i32
    %2061 = vector.broadcast %c41_i32_275 : i32 to vector<8x128xi32>
    %2062 = arith.cmpi sge, %4, %2061 : vector<8x128xi32>
    %c41_i32_276 = arith.constant 41 : i32
    %2063 = tpu.dynamic_rotate %2035 by %c41_i32_276 dim 1 : vector<8x128xf32>, i32 -> vector<8x128xf32>
    %c1_i32_277 = arith.constant 1 : i32
    %2064 = tpu.dynamic_rotate %2063 by %c1_i32_277 dim 0 : vector<8x128xf32>, i32 -> vector<8x128xf32>
    %2065 = arith.select %2062, %2063, %2064 : vector<8x128xi1>, vector<8x128xf32>
    %c41_i32_278 = arith.constant 41 : i32
    %2066 = tpu.dynamic_rotate %2038 by %c41_i32_278 dim 1 : vector<8x128xf32>, i32 -> vector<8x128xf32>
    %c1_i32_279 = arith.constant 1 : i32
    %2067 = tpu.dynamic_rotate %2066 by %c1_i32_279 dim 0 : vector<8x128xf32>, i32 -> vector<8x128xf32>
    %2068 = arith.select %2062, %2066, %2067 : vector<8x128xi1>, vector<8x128xf32>
    %c369 = arith.constant 369 : index
    %2069 = memref.load %arg2[%c369] : memref<481xf32, #tpu.memory_space<smem>>
    %2070 = vector.broadcast %2069 : f32 to vector<8x128xf32>
    %2071 = arith.mulf %2070, %2065 : vector<8x128xf32>
    %2072 = arith.addf %2053, %2071 : vector<8x128xf32>
    %c385 = arith.constant 385 : index
    %2073 = memref.load %arg2[%c385] : memref<481xf32, #tpu.memory_space<smem>>
    %2074 = vector.broadcast %2073 : f32 to vector<8x128xf32>
    %2075 = arith.mulf %2074, %2068 : vector<8x128xf32>
    %2076 = arith.addf %2072, %2075 : vector<8x128xf32>
    %c401 = arith.constant 401 : index
    %2077 = memref.load %arg2[%c401] : memref<481xf32, #tpu.memory_space<smem>>
    %2078 = vector.broadcast %2077 : f32 to vector<8x128xf32>
    %2079 = arith.mulf %2078, %2065 : vector<8x128xf32>
    %2080 = arith.addf %2060, %2079 : vector<8x128xf32>
    %c417 = arith.constant 417 : index
    %2081 = memref.load %arg2[%c417] : memref<481xf32, #tpu.memory_space<smem>>
    %2082 = vector.broadcast %2081 : f32 to vector<8x128xf32>
    %2083 = arith.mulf %2082, %2068 : vector<8x128xf32>
    %2084 = arith.addf %2080, %2083 : vector<8x128xf32>
    %c40_i32_280 = arith.constant 40 : i32
    %2085 = vector.broadcast %c40_i32_280 : i32 to vector<8x128xi32>
    %2086 = arith.cmpi sge, %4, %2085 : vector<8x128xi32>
    %c40_i32_281 = arith.constant 40 : i32
    %2087 = tpu.dynamic_rotate %2035 by %c40_i32_281 dim 1 : vector<8x128xf32>, i32 -> vector<8x128xf32>
    %c1_i32_282 = arith.constant 1 : i32
    %2088 = tpu.dynamic_rotate %2087 by %c1_i32_282 dim 0 : vector<8x128xf32>, i32 -> vector<8x128xf32>
    %2089 = arith.select %2086, %2087, %2088 : vector<8x128xi1>, vector<8x128xf32>
    %c40_i32_283 = arith.constant 40 : i32
    %2090 = tpu.dynamic_rotate %2038 by %c40_i32_283 dim 1 : vector<8x128xf32>, i32 -> vector<8x128xf32>
    %c1_i32_284 = arith.constant 1 : i32
    %2091 = tpu.dynamic_rotate %2090 by %c1_i32_284 dim 0 : vector<8x128xf32>, i32 -> vector<8x128xf32>
    %2092 = arith.select %2086, %2090, %2091 : vector<8x128xi1>, vector<8x128xf32>
    %c370 = arith.constant 370 : index
    %2093 = memref.load %arg2[%c370] : memref<481xf32, #tpu.memory_space<smem>>
    %2094 = vector.broadcast %2093 : f32 to vector<8x128xf32>
    %2095 = arith.mulf %2094, %2089 : vector<8x128xf32>
    %2096 = arith.addf %2076, %2095 : vector<8x128xf32>
    %c386 = arith.constant 386 : index
    %2097 = memref.load %arg2[%c386] : memref<481xf32, #tpu.memory_space<smem>>
    %2098 = vector.broadcast %2097 : f32 to vector<8x128xf32>
    %2099 = arith.mulf %2098, %2092 : vector<8x128xf32>
    %2100 = arith.addf %2096, %2099 : vector<8x128xf32>
    %c402 = arith.constant 402 : index
    %2101 = memref.load %arg2[%c402] : memref<481xf32, #tpu.memory_space<smem>>
    %2102 = vector.broadcast %2101 : f32 to vector<8x128xf32>
    %2103 = arith.mulf %2102, %2089 : vector<8x128xf32>
    %2104 = arith.addf %2084, %2103 : vector<8x128xf32>
    %c418 = arith.constant 418 : index
    %2105 = memref.load %arg2[%c418] : memref<481xf32, #tpu.memory_space<smem>>
    %2106 = vector.broadcast %2105 : f32 to vector<8x128xf32>
    %2107 = arith.mulf %2106, %2092 : vector<8x128xf32>
    %2108 = arith.addf %2104, %2107 : vector<8x128xf32>
    %c39_i32_285 = arith.constant 39 : i32
    %2109 = vector.broadcast %c39_i32_285 : i32 to vector<8x128xi32>
    %2110 = arith.cmpi sge, %4, %2109 : vector<8x128xi32>
    %c39_i32_286 = arith.constant 39 : i32
    %2111 = tpu.dynamic_rotate %2035 by %c39_i32_286 dim 1 : vector<8x128xf32>, i32 -> vector<8x128xf32>
    %c1_i32_287 = arith.constant 1 : i32
    %2112 = tpu.dynamic_rotate %2111 by %c1_i32_287 dim 0 : vector<8x128xf32>, i32 -> vector<8x128xf32>
    %2113 = arith.select %2110, %2111, %2112 : vector<8x128xi1>, vector<8x128xf32>
    %c39_i32_288 = arith.constant 39 : i32
    %2114 = tpu.dynamic_rotate %2038 by %c39_i32_288 dim 1 : vector<8x128xf32>, i32 -> vector<8x128xf32>
    %c1_i32_289 = arith.constant 1 : i32
    %2115 = tpu.dynamic_rotate %2114 by %c1_i32_289 dim 0 : vector<8x128xf32>, i32 -> vector<8x128xf32>
    %2116 = arith.select %2110, %2114, %2115 : vector<8x128xi1>, vector<8x128xf32>
    %c371 = arith.constant 371 : index
    %2117 = memref.load %arg2[%c371] : memref<481xf32, #tpu.memory_space<smem>>
    %2118 = vector.broadcast %2117 : f32 to vector<8x128xf32>
    %2119 = arith.mulf %2118, %2113 : vector<8x128xf32>
    %2120 = arith.addf %2100, %2119 : vector<8x128xf32>
    %c387 = arith.constant 387 : index
    %2121 = memref.load %arg2[%c387] : memref<481xf32, #tpu.memory_space<smem>>
    %2122 = vector.broadcast %2121 : f32 to vector<8x128xf32>
    %2123 = arith.mulf %2122, %2116 : vector<8x128xf32>
    %2124 = arith.addf %2120, %2123 : vector<8x128xf32>
    %c403 = arith.constant 403 : index
    %2125 = memref.load %arg2[%c403] : memref<481xf32, #tpu.memory_space<smem>>
    %2126 = vector.broadcast %2125 : f32 to vector<8x128xf32>
    %2127 = arith.mulf %2126, %2113 : vector<8x128xf32>
    %2128 = arith.addf %2108, %2127 : vector<8x128xf32>
    %c419 = arith.constant 419 : index
    %2129 = memref.load %arg2[%c419] : memref<481xf32, #tpu.memory_space<smem>>
    %2130 = vector.broadcast %2129 : f32 to vector<8x128xf32>
    %2131 = arith.mulf %2130, %2116 : vector<8x128xf32>
    %2132 = arith.addf %2128, %2131 : vector<8x128xf32>
    %c22_i32_290 = arith.constant 22 : i32
    %2133 = vector.broadcast %c22_i32_290 : i32 to vector<8x128xi32>
    %2134 = arith.cmpi sge, %4, %2133 : vector<8x128xi32>
    %c22_i32_291 = arith.constant 22 : i32
    %2135 = tpu.dynamic_rotate %2035 by %c22_i32_291 dim 1 : vector<8x128xf32>, i32 -> vector<8x128xf32>
    %c1_i32_292 = arith.constant 1 : i32
    %2136 = tpu.dynamic_rotate %2135 by %c1_i32_292 dim 0 : vector<8x128xf32>, i32 -> vector<8x128xf32>
    %2137 = arith.select %2134, %2135, %2136 : vector<8x128xi1>, vector<8x128xf32>
    %c22_i32_293 = arith.constant 22 : i32
    %2138 = tpu.dynamic_rotate %2038 by %c22_i32_293 dim 1 : vector<8x128xf32>, i32 -> vector<8x128xf32>
    %c1_i32_294 = arith.constant 1 : i32
    %2139 = tpu.dynamic_rotate %2138 by %c1_i32_294 dim 0 : vector<8x128xf32>, i32 -> vector<8x128xf32>
    %2140 = arith.select %2134, %2138, %2139 : vector<8x128xi1>, vector<8x128xf32>
    %c372 = arith.constant 372 : index
    %2141 = memref.load %arg2[%c372] : memref<481xf32, #tpu.memory_space<smem>>
    %2142 = vector.broadcast %2141 : f32 to vector<8x128xf32>
    %2143 = arith.mulf %2142, %2137 : vector<8x128xf32>
    %2144 = arith.addf %2124, %2143 : vector<8x128xf32>
    %c388 = arith.constant 388 : index
    %2145 = memref.load %arg2[%c388] : memref<481xf32, #tpu.memory_space<smem>>
    %2146 = vector.broadcast %2145 : f32 to vector<8x128xf32>
    %2147 = arith.mulf %2146, %2140 : vector<8x128xf32>
    %2148 = arith.addf %2144, %2147 : vector<8x128xf32>
    %c404 = arith.constant 404 : index
    %2149 = memref.load %arg2[%c404] : memref<481xf32, #tpu.memory_space<smem>>
    %2150 = vector.broadcast %2149 : f32 to vector<8x128xf32>
    %2151 = arith.mulf %2150, %2137 : vector<8x128xf32>
    %2152 = arith.addf %2132, %2151 : vector<8x128xf32>
    %c420 = arith.constant 420 : index
    %2153 = memref.load %arg2[%c420] : memref<481xf32, #tpu.memory_space<smem>>
    %2154 = vector.broadcast %2153 : f32 to vector<8x128xf32>
    %2155 = arith.mulf %2154, %2140 : vector<8x128xf32>
    %2156 = arith.addf %2152, %2155 : vector<8x128xf32>
    %c21_i32_295 = arith.constant 21 : i32
    %2157 = vector.broadcast %c21_i32_295 : i32 to vector<8x128xi32>
    %2158 = arith.cmpi sge, %4, %2157 : vector<8x128xi32>
    %c21_i32_296 = arith.constant 21 : i32
    %2159 = tpu.dynamic_rotate %2035 by %c21_i32_296 dim 1 : vector<8x128xf32>, i32 -> vector<8x128xf32>
    %c1_i32_297 = arith.constant 1 : i32
    %2160 = tpu.dynamic_rotate %2159 by %c1_i32_297 dim 0 : vector<8x128xf32>, i32 -> vector<8x128xf32>
    %2161 = arith.select %2158, %2159, %2160 : vector<8x128xi1>, vector<8x128xf32>
    %c21_i32_298 = arith.constant 21 : i32
    %2162 = tpu.dynamic_rotate %2038 by %c21_i32_298 dim 1 : vector<8x128xf32>, i32 -> vector<8x128xf32>
    %c1_i32_299 = arith.constant 1 : i32
    %2163 = tpu.dynamic_rotate %2162 by %c1_i32_299 dim 0 : vector<8x128xf32>, i32 -> vector<8x128xf32>
    %2164 = arith.select %2158, %2162, %2163 : vector<8x128xi1>, vector<8x128xf32>
    %c373 = arith.constant 373 : index
    %2165 = memref.load %arg2[%c373] : memref<481xf32, #tpu.memory_space<smem>>
    %2166 = vector.broadcast %2165 : f32 to vector<8x128xf32>
    %2167 = arith.mulf %2166, %2161 : vector<8x128xf32>
    %2168 = arith.addf %2148, %2167 : vector<8x128xf32>
    %c389 = arith.constant 389 : index
    %2169 = memref.load %arg2[%c389] : memref<481xf32, #tpu.memory_space<smem>>
    %2170 = vector.broadcast %2169 : f32 to vector<8x128xf32>
    %2171 = arith.mulf %2170, %2164 : vector<8x128xf32>
    %2172 = arith.addf %2168, %2171 : vector<8x128xf32>
    %c405 = arith.constant 405 : index
    %2173 = memref.load %arg2[%c405] : memref<481xf32, #tpu.memory_space<smem>>
    %2174 = vector.broadcast %2173 : f32 to vector<8x128xf32>
    %2175 = arith.mulf %2174, %2161 : vector<8x128xf32>
    %2176 = arith.addf %2156, %2175 : vector<8x128xf32>
    %c421 = arith.constant 421 : index
    %2177 = memref.load %arg2[%c421] : memref<481xf32, #tpu.memory_space<smem>>
    %2178 = vector.broadcast %2177 : f32 to vector<8x128xf32>
    %2179 = arith.mulf %2178, %2164 : vector<8x128xf32>
    %2180 = arith.addf %2176, %2179 : vector<8x128xf32>
    %c20_i32_300 = arith.constant 20 : i32
    %2181 = vector.broadcast %c20_i32_300 : i32 to vector<8x128xi32>
    %2182 = arith.cmpi sge, %4, %2181 : vector<8x128xi32>
    %c20_i32_301 = arith.constant 20 : i32
    %2183 = tpu.dynamic_rotate %2035 by %c20_i32_301 dim 1 : vector<8x128xf32>, i32 -> vector<8x128xf32>
    %c1_i32_302 = arith.constant 1 : i32
    %2184 = tpu.dynamic_rotate %2183 by %c1_i32_302 dim 0 : vector<8x128xf32>, i32 -> vector<8x128xf32>
    %2185 = arith.select %2182, %2183, %2184 : vector<8x128xi1>, vector<8x128xf32>
    %c20_i32_303 = arith.constant 20 : i32
    %2186 = tpu.dynamic_rotate %2038 by %c20_i32_303 dim 1 : vector<8x128xf32>, i32 -> vector<8x128xf32>
    %c1_i32_304 = arith.constant 1 : i32
    %2187 = tpu.dynamic_rotate %2186 by %c1_i32_304 dim 0 : vector<8x128xf32>, i32 -> vector<8x128xf32>
    %2188 = arith.select %2182, %2186, %2187 : vector<8x128xi1>, vector<8x128xf32>
    %c374 = arith.constant 374 : index
    %2189 = memref.load %arg2[%c374] : memref<481xf32, #tpu.memory_space<smem>>
    %2190 = vector.broadcast %2189 : f32 to vector<8x128xf32>
    %2191 = arith.mulf %2190, %2185 : vector<8x128xf32>
    %2192 = arith.addf %2172, %2191 : vector<8x128xf32>
    %c390 = arith.constant 390 : index
    %2193 = memref.load %arg2[%c390] : memref<481xf32, #tpu.memory_space<smem>>
    %2194 = vector.broadcast %2193 : f32 to vector<8x128xf32>
    %2195 = arith.mulf %2194, %2188 : vector<8x128xf32>
    %2196 = arith.addf %2192, %2195 : vector<8x128xf32>
    %c406 = arith.constant 406 : index
    %2197 = memref.load %arg2[%c406] : memref<481xf32, #tpu.memory_space<smem>>
    %2198 = vector.broadcast %2197 : f32 to vector<8x128xf32>
    %2199 = arith.mulf %2198, %2185 : vector<8x128xf32>
    %2200 = arith.addf %2180, %2199 : vector<8x128xf32>
    %c422 = arith.constant 422 : index
    %2201 = memref.load %arg2[%c422] : memref<481xf32, #tpu.memory_space<smem>>
    %2202 = vector.broadcast %2201 : f32 to vector<8x128xf32>
    %2203 = arith.mulf %2202, %2188 : vector<8x128xf32>
    %2204 = arith.addf %2200, %2203 : vector<8x128xf32>
    %c19_i32_305 = arith.constant 19 : i32
    %2205 = vector.broadcast %c19_i32_305 : i32 to vector<8x128xi32>
    %2206 = arith.cmpi sge, %4, %2205 : vector<8x128xi32>
    %c19_i32_306 = arith.constant 19 : i32
    %2207 = tpu.dynamic_rotate %2035 by %c19_i32_306 dim 1 : vector<8x128xf32>, i32 -> vector<8x128xf32>
    %c1_i32_307 = arith.constant 1 : i32
    %2208 = tpu.dynamic_rotate %2207 by %c1_i32_307 dim 0 : vector<8x128xf32>, i32 -> vector<8x128xf32>
    %2209 = arith.select %2206, %2207, %2208 : vector<8x128xi1>, vector<8x128xf32>
    %c19_i32_308 = arith.constant 19 : i32
    %2210 = tpu.dynamic_rotate %2038 by %c19_i32_308 dim 1 : vector<8x128xf32>, i32 -> vector<8x128xf32>
    %c1_i32_309 = arith.constant 1 : i32
    %2211 = tpu.dynamic_rotate %2210 by %c1_i32_309 dim 0 : vector<8x128xf32>, i32 -> vector<8x128xf32>
    %2212 = arith.select %2206, %2210, %2211 : vector<8x128xi1>, vector<8x128xf32>
    %c375 = arith.constant 375 : index
    %2213 = memref.load %arg2[%c375] : memref<481xf32, #tpu.memory_space<smem>>
    %2214 = vector.broadcast %2213 : f32 to vector<8x128xf32>
    %2215 = arith.mulf %2214, %2209 : vector<8x128xf32>
    %2216 = arith.addf %2196, %2215 : vector<8x128xf32>
    %c391 = arith.constant 391 : index
    %2217 = memref.load %arg2[%c391] : memref<481xf32, #tpu.memory_space<smem>>
    %2218 = vector.broadcast %2217 : f32 to vector<8x128xf32>
    %2219 = arith.mulf %2218, %2212 : vector<8x128xf32>
    %2220 = arith.addf %2216, %2219 : vector<8x128xf32>
    %c407 = arith.constant 407 : index
    %2221 = memref.load %arg2[%c407] : memref<481xf32, #tpu.memory_space<smem>>
    %2222 = vector.broadcast %2221 : f32 to vector<8x128xf32>
    %2223 = arith.mulf %2222, %2209 : vector<8x128xf32>
    %2224 = arith.addf %2204, %2223 : vector<8x128xf32>
    %c423 = arith.constant 423 : index
    %2225 = memref.load %arg2[%c423] : memref<481xf32, #tpu.memory_space<smem>>
    %2226 = vector.broadcast %2225 : f32 to vector<8x128xf32>
    %2227 = arith.mulf %2226, %2212 : vector<8x128xf32>
    %2228 = arith.addf %2224, %2227 : vector<8x128xf32>
    %c2_i32_310 = arith.constant 2 : i32
    %2229 = vector.broadcast %c2_i32_310 : i32 to vector<8x128xi32>
    %2230 = arith.cmpi sge, %4, %2229 : vector<8x128xi32>
    %c2_i32_311 = arith.constant 2 : i32
    %2231 = tpu.dynamic_rotate %2035 by %c2_i32_311 dim 1 : vector<8x128xf32>, i32 -> vector<8x128xf32>
    %c1_i32_312 = arith.constant 1 : i32
    %2232 = tpu.dynamic_rotate %2231 by %c1_i32_312 dim 0 : vector<8x128xf32>, i32 -> vector<8x128xf32>
    %2233 = arith.select %2230, %2231, %2232 : vector<8x128xi1>, vector<8x128xf32>
    %c2_i32_313 = arith.constant 2 : i32
    %2234 = tpu.dynamic_rotate %2038 by %c2_i32_313 dim 1 : vector<8x128xf32>, i32 -> vector<8x128xf32>
    %c1_i32_314 = arith.constant 1 : i32
    %2235 = tpu.dynamic_rotate %2234 by %c1_i32_314 dim 0 : vector<8x128xf32>, i32 -> vector<8x128xf32>
    %2236 = arith.select %2230, %2234, %2235 : vector<8x128xi1>, vector<8x128xf32>
    %c376 = arith.constant 376 : index
    %2237 = memref.load %arg2[%c376] : memref<481xf32, #tpu.memory_space<smem>>
    %2238 = vector.broadcast %2237 : f32 to vector<8x128xf32>
    %2239 = arith.mulf %2238, %2233 : vector<8x128xf32>
    %2240 = arith.addf %2220, %2239 : vector<8x128xf32>
    %c392 = arith.constant 392 : index
    %2241 = memref.load %arg2[%c392] : memref<481xf32, #tpu.memory_space<smem>>
    %2242 = vector.broadcast %2241 : f32 to vector<8x128xf32>
    %2243 = arith.mulf %2242, %2236 : vector<8x128xf32>
    %2244 = arith.addf %2240, %2243 : vector<8x128xf32>
    %c408 = arith.constant 408 : index
    %2245 = memref.load %arg2[%c408] : memref<481xf32, #tpu.memory_space<smem>>
    %2246 = vector.broadcast %2245 : f32 to vector<8x128xf32>
    %2247 = arith.mulf %2246, %2233 : vector<8x128xf32>
    %2248 = arith.addf %2228, %2247 : vector<8x128xf32>
    %c424 = arith.constant 424 : index
    %2249 = memref.load %arg2[%c424] : memref<481xf32, #tpu.memory_space<smem>>
    %2250 = vector.broadcast %2249 : f32 to vector<8x128xf32>
    %2251 = arith.mulf %2250, %2236 : vector<8x128xf32>
    %2252 = arith.addf %2248, %2251 : vector<8x128xf32>
    %c1_i32_315 = arith.constant 1 : i32
    %2253 = vector.broadcast %c1_i32_315 : i32 to vector<8x128xi32>
    %2254 = arith.cmpi sge, %4, %2253 : vector<8x128xi32>
    %c1_i32_316 = arith.constant 1 : i32
    %2255 = tpu.dynamic_rotate %2035 by %c1_i32_316 dim 1 : vector<8x128xf32>, i32 -> vector<8x128xf32>
    %c1_i32_317 = arith.constant 1 : i32
    %2256 = tpu.dynamic_rotate %2255 by %c1_i32_317 dim 0 : vector<8x128xf32>, i32 -> vector<8x128xf32>
    %2257 = arith.select %2254, %2255, %2256 : vector<8x128xi1>, vector<8x128xf32>
    %c1_i32_318 = arith.constant 1 : i32
    %2258 = tpu.dynamic_rotate %2038 by %c1_i32_318 dim 1 : vector<8x128xf32>, i32 -> vector<8x128xf32>
    %c1_i32_319 = arith.constant 1 : i32
    %2259 = tpu.dynamic_rotate %2258 by %c1_i32_319 dim 0 : vector<8x128xf32>, i32 -> vector<8x128xf32>
    %2260 = arith.select %2254, %2258, %2259 : vector<8x128xi1>, vector<8x128xf32>
    %c377 = arith.constant 377 : index
    %2261 = memref.load %arg2[%c377] : memref<481xf32, #tpu.memory_space<smem>>
    %2262 = vector.broadcast %2261 : f32 to vector<8x128xf32>
    %2263 = arith.mulf %2262, %2257 : vector<8x128xf32>
    %2264 = arith.addf %2244, %2263 : vector<8x128xf32>
    %c393 = arith.constant 393 : index
    %2265 = memref.load %arg2[%c393] : memref<481xf32, #tpu.memory_space<smem>>
    %2266 = vector.broadcast %2265 : f32 to vector<8x128xf32>
    %2267 = arith.mulf %2266, %2260 : vector<8x128xf32>
    %2268 = arith.addf %2264, %2267 : vector<8x128xf32>
    %c409 = arith.constant 409 : index
    %2269 = memref.load %arg2[%c409] : memref<481xf32, #tpu.memory_space<smem>>
    %2270 = vector.broadcast %2269 : f32 to vector<8x128xf32>
    %2271 = arith.mulf %2270, %2257 : vector<8x128xf32>
    %2272 = arith.addf %2252, %2271 : vector<8x128xf32>
    %c425 = arith.constant 425 : index
    %2273 = memref.load %arg2[%c425] : memref<481xf32, #tpu.memory_space<smem>>
    %2274 = vector.broadcast %2273 : f32 to vector<8x128xf32>
    %2275 = arith.mulf %2274, %2260 : vector<8x128xf32>
    %2276 = arith.addf %2272, %2275 : vector<8x128xf32>
    %c378 = arith.constant 378 : index
    %2277 = memref.load %arg2[%c378] : memref<481xf32, #tpu.memory_space<smem>>
    %2278 = vector.broadcast %2277 : f32 to vector<8x128xf32>
    %2279 = arith.mulf %2278, %2035 : vector<8x128xf32>
    %2280 = arith.addf %2268, %2279 : vector<8x128xf32>
    %c394 = arith.constant 394 : index
    %2281 = memref.load %arg2[%c394] : memref<481xf32, #tpu.memory_space<smem>>
    %2282 = vector.broadcast %2281 : f32 to vector<8x128xf32>
    %2283 = arith.mulf %2282, %2038 : vector<8x128xf32>
    %2284 = arith.addf %2280, %2283 : vector<8x128xf32>
    %c410 = arith.constant 410 : index
    %2285 = memref.load %arg2[%c410] : memref<481xf32, #tpu.memory_space<smem>>
    %2286 = vector.broadcast %2285 : f32 to vector<8x128xf32>
    %2287 = arith.mulf %2286, %2035 : vector<8x128xf32>
    %2288 = arith.addf %2276, %2287 : vector<8x128xf32>
    %c426 = arith.constant 426 : index
    %2289 = memref.load %arg2[%c426] : memref<481xf32, #tpu.memory_space<smem>>
    %2290 = vector.broadcast %2289 : f32 to vector<8x128xf32>
    %2291 = arith.mulf %2290, %2038 : vector<8x128xf32>
    %2292 = arith.addf %2288, %2291 : vector<8x128xf32>
    %c127_i32_320 = arith.constant 127 : i32
    %2293 = vector.broadcast %c127_i32_320 : i32 to vector<8x128xi32>
    %2294 = arith.cmpi sge, %4, %2293 : vector<8x128xi32>
    %c127_i32_321 = arith.constant 127 : i32
    %2295 = tpu.dynamic_rotate %2035 by %c127_i32_321 dim 1 : vector<8x128xf32>, i32 -> vector<8x128xf32>
    %c7_i32_322 = arith.constant 7 : i32
    %2296 = tpu.dynamic_rotate %2295 by %c7_i32_322 dim 0 : vector<8x128xf32>, i32 -> vector<8x128xf32>
    %2297 = arith.select %2294, %2296, %2295 : vector<8x128xi1>, vector<8x128xf32>
    %c127_i32_323 = arith.constant 127 : i32
    %2298 = tpu.dynamic_rotate %2038 by %c127_i32_323 dim 1 : vector<8x128xf32>, i32 -> vector<8x128xf32>
    %c7_i32_324 = arith.constant 7 : i32
    %2299 = tpu.dynamic_rotate %2298 by %c7_i32_324 dim 0 : vector<8x128xf32>, i32 -> vector<8x128xf32>
    %2300 = arith.select %2294, %2299, %2298 : vector<8x128xi1>, vector<8x128xf32>
    %c379 = arith.constant 379 : index
    %2301 = memref.load %arg2[%c379] : memref<481xf32, #tpu.memory_space<smem>>
    %2302 = vector.broadcast %2301 : f32 to vector<8x128xf32>
    %2303 = arith.mulf %2302, %2297 : vector<8x128xf32>
    %2304 = arith.addf %2284, %2303 : vector<8x128xf32>
    %c395 = arith.constant 395 : index
    %2305 = memref.load %arg2[%c395] : memref<481xf32, #tpu.memory_space<smem>>
    %2306 = vector.broadcast %2305 : f32 to vector<8x128xf32>
    %2307 = arith.mulf %2306, %2300 : vector<8x128xf32>
    %2308 = arith.addf %2304, %2307 : vector<8x128xf32>
    %c411 = arith.constant 411 : index
    %2309 = memref.load %arg2[%c411] : memref<481xf32, #tpu.memory_space<smem>>
    %2310 = vector.broadcast %2309 : f32 to vector<8x128xf32>
    %2311 = arith.mulf %2310, %2297 : vector<8x128xf32>
    %2312 = arith.addf %2292, %2311 : vector<8x128xf32>
    %c427 = arith.constant 427 : index
    %2313 = memref.load %arg2[%c427] : memref<481xf32, #tpu.memory_space<smem>>
    %2314 = vector.broadcast %2313 : f32 to vector<8x128xf32>
    %2315 = arith.mulf %2314, %2300 : vector<8x128xf32>
    %2316 = arith.addf %2312, %2315 : vector<8x128xf32>
    %c110_i32_325 = arith.constant 110 : i32
    %2317 = vector.broadcast %c110_i32_325 : i32 to vector<8x128xi32>
    %2318 = arith.cmpi sge, %4, %2317 : vector<8x128xi32>
    %c110_i32_326 = arith.constant 110 : i32
    %2319 = tpu.dynamic_rotate %2035 by %c110_i32_326 dim 1 : vector<8x128xf32>, i32 -> vector<8x128xf32>
    %c7_i32_327 = arith.constant 7 : i32
    %2320 = tpu.dynamic_rotate %2319 by %c7_i32_327 dim 0 : vector<8x128xf32>, i32 -> vector<8x128xf32>
    %2321 = arith.select %2318, %2320, %2319 : vector<8x128xi1>, vector<8x128xf32>
    %c110_i32_328 = arith.constant 110 : i32
    %2322 = tpu.dynamic_rotate %2038 by %c110_i32_328 dim 1 : vector<8x128xf32>, i32 -> vector<8x128xf32>
    %c7_i32_329 = arith.constant 7 : i32
    %2323 = tpu.dynamic_rotate %2322 by %c7_i32_329 dim 0 : vector<8x128xf32>, i32 -> vector<8x128xf32>
    %2324 = arith.select %2318, %2323, %2322 : vector<8x128xi1>, vector<8x128xf32>
    %c380 = arith.constant 380 : index
    %2325 = memref.load %arg2[%c380] : memref<481xf32, #tpu.memory_space<smem>>
    %2326 = vector.broadcast %2325 : f32 to vector<8x128xf32>
    %2327 = arith.mulf %2326, %2321 : vector<8x128xf32>
    %2328 = arith.addf %2308, %2327 : vector<8x128xf32>
    %c396 = arith.constant 396 : index
    %2329 = memref.load %arg2[%c396] : memref<481xf32, #tpu.memory_space<smem>>
    %2330 = vector.broadcast %2329 : f32 to vector<8x128xf32>
    %2331 = arith.mulf %2330, %2324 : vector<8x128xf32>
    %2332 = arith.addf %2328, %2331 : vector<8x128xf32>
    %c412 = arith.constant 412 : index
    %2333 = memref.load %arg2[%c412] : memref<481xf32, #tpu.memory_space<smem>>
    %2334 = vector.broadcast %2333 : f32 to vector<8x128xf32>
    %2335 = arith.mulf %2334, %2321 : vector<8x128xf32>
    %2336 = arith.addf %2316, %2335 : vector<8x128xf32>
    %c428 = arith.constant 428 : index
    %2337 = memref.load %arg2[%c428] : memref<481xf32, #tpu.memory_space<smem>>
    %2338 = vector.broadcast %2337 : f32 to vector<8x128xf32>
    %2339 = arith.mulf %2338, %2324 : vector<8x128xf32>
    %2340 = arith.addf %2336, %2339 : vector<8x128xf32>
    %c109_i32_330 = arith.constant 109 : i32
    %2341 = vector.broadcast %c109_i32_330 : i32 to vector<8x128xi32>
    %2342 = arith.cmpi sge, %4, %2341 : vector<8x128xi32>
    %c109_i32_331 = arith.constant 109 : i32
    %2343 = tpu.dynamic_rotate %2035 by %c109_i32_331 dim 1 : vector<8x128xf32>, i32 -> vector<8x128xf32>
    %c7_i32_332 = arith.constant 7 : i32
    %2344 = tpu.dynamic_rotate %2343 by %c7_i32_332 dim 0 : vector<8x128xf32>, i32 -> vector<8x128xf32>
    %2345 = arith.select %2342, %2344, %2343 : vector<8x128xi1>, vector<8x128xf32>
    %c109_i32_333 = arith.constant 109 : i32
    %2346 = tpu.dynamic_rotate %2038 by %c109_i32_333 dim 1 : vector<8x128xf32>, i32 -> vector<8x128xf32>
    %c7_i32_334 = arith.constant 7 : i32
    %2347 = tpu.dynamic_rotate %2346 by %c7_i32_334 dim 0 : vector<8x128xf32>, i32 -> vector<8x128xf32>
    %2348 = arith.select %2342, %2347, %2346 : vector<8x128xi1>, vector<8x128xf32>
    %c381 = arith.constant 381 : index
    %2349 = memref.load %arg2[%c381] : memref<481xf32, #tpu.memory_space<smem>>
    %2350 = vector.broadcast %2349 : f32 to vector<8x128xf32>
    %2351 = arith.mulf %2350, %2345 : vector<8x128xf32>
    %2352 = arith.addf %2332, %2351 : vector<8x128xf32>
    %c397 = arith.constant 397 : index
    %2353 = memref.load %arg2[%c397] : memref<481xf32, #tpu.memory_space<smem>>
    %2354 = vector.broadcast %2353 : f32 to vector<8x128xf32>
    %2355 = arith.mulf %2354, %2348 : vector<8x128xf32>
    %2356 = arith.addf %2352, %2355 : vector<8x128xf32>
    %c413 = arith.constant 413 : index
    %2357 = memref.load %arg2[%c413] : memref<481xf32, #tpu.memory_space<smem>>
    %2358 = vector.broadcast %2357 : f32 to vector<8x128xf32>
    %2359 = arith.mulf %2358, %2345 : vector<8x128xf32>
    %2360 = arith.addf %2340, %2359 : vector<8x128xf32>
    %c429 = arith.constant 429 : index
    %2361 = memref.load %arg2[%c429] : memref<481xf32, #tpu.memory_space<smem>>
    %2362 = vector.broadcast %2361 : f32 to vector<8x128xf32>
    %2363 = arith.mulf %2362, %2348 : vector<8x128xf32>
    %2364 = arith.addf %2360, %2363 : vector<8x128xf32>
    %c108_i32_335 = arith.constant 108 : i32
    %2365 = vector.broadcast %c108_i32_335 : i32 to vector<8x128xi32>
    %2366 = arith.cmpi sge, %4, %2365 : vector<8x128xi32>
    %c108_i32_336 = arith.constant 108 : i32
    %2367 = tpu.dynamic_rotate %2035 by %c108_i32_336 dim 1 : vector<8x128xf32>, i32 -> vector<8x128xf32>
    %c7_i32_337 = arith.constant 7 : i32
    %2368 = tpu.dynamic_rotate %2367 by %c7_i32_337 dim 0 : vector<8x128xf32>, i32 -> vector<8x128xf32>
    %2369 = arith.select %2366, %2368, %2367 : vector<8x128xi1>, vector<8x128xf32>
    %c108_i32_338 = arith.constant 108 : i32
    %2370 = tpu.dynamic_rotate %2038 by %c108_i32_338 dim 1 : vector<8x128xf32>, i32 -> vector<8x128xf32>
    %c7_i32_339 = arith.constant 7 : i32
    %2371 = tpu.dynamic_rotate %2370 by %c7_i32_339 dim 0 : vector<8x128xf32>, i32 -> vector<8x128xf32>
    %2372 = arith.select %2366, %2371, %2370 : vector<8x128xi1>, vector<8x128xf32>
    %c382 = arith.constant 382 : index
    %2373 = memref.load %arg2[%c382] : memref<481xf32, #tpu.memory_space<smem>>
    %2374 = vector.broadcast %2373 : f32 to vector<8x128xf32>
    %2375 = arith.mulf %2374, %2369 : vector<8x128xf32>
    %2376 = arith.addf %2356, %2375 : vector<8x128xf32>
    %c398 = arith.constant 398 : index
    %2377 = memref.load %arg2[%c398] : memref<481xf32, #tpu.memory_space<smem>>
    %2378 = vector.broadcast %2377 : f32 to vector<8x128xf32>
    %2379 = arith.mulf %2378, %2372 : vector<8x128xf32>
    %2380 = arith.addf %2376, %2379 : vector<8x128xf32>
    %c414 = arith.constant 414 : index
    %2381 = memref.load %arg2[%c414] : memref<481xf32, #tpu.memory_space<smem>>
    %2382 = vector.broadcast %2381 : f32 to vector<8x128xf32>
    %2383 = arith.mulf %2382, %2369 : vector<8x128xf32>
    %2384 = arith.addf %2364, %2383 : vector<8x128xf32>
    %c430 = arith.constant 430 : index
    %2385 = memref.load %arg2[%c430] : memref<481xf32, #tpu.memory_space<smem>>
    %2386 = vector.broadcast %2385 : f32 to vector<8x128xf32>
    %2387 = arith.mulf %2386, %2372 : vector<8x128xf32>
    %2388 = arith.addf %2384, %2387 : vector<8x128xf32>
    %c107_i32_340 = arith.constant 107 : i32
    %2389 = vector.broadcast %c107_i32_340 : i32 to vector<8x128xi32>
    %2390 = arith.cmpi sge, %4, %2389 : vector<8x128xi32>
    %c107_i32_341 = arith.constant 107 : i32
    %2391 = tpu.dynamic_rotate %2035 by %c107_i32_341 dim 1 : vector<8x128xf32>, i32 -> vector<8x128xf32>
    %c7_i32_342 = arith.constant 7 : i32
    %2392 = tpu.dynamic_rotate %2391 by %c7_i32_342 dim 0 : vector<8x128xf32>, i32 -> vector<8x128xf32>
    %2393 = arith.select %2390, %2392, %2391 : vector<8x128xi1>, vector<8x128xf32>
    %c107_i32_343 = arith.constant 107 : i32
    %2394 = tpu.dynamic_rotate %2038 by %c107_i32_343 dim 1 : vector<8x128xf32>, i32 -> vector<8x128xf32>
    %c7_i32_344 = arith.constant 7 : i32
    %2395 = tpu.dynamic_rotate %2394 by %c7_i32_344 dim 0 : vector<8x128xf32>, i32 -> vector<8x128xf32>
    %2396 = arith.select %2390, %2395, %2394 : vector<8x128xi1>, vector<8x128xf32>
    %c383 = arith.constant 383 : index
    %2397 = memref.load %arg2[%c383] : memref<481xf32, #tpu.memory_space<smem>>
    %2398 = vector.broadcast %2397 : f32 to vector<8x128xf32>
    %2399 = arith.mulf %2398, %2393 : vector<8x128xf32>
    %2400 = arith.addf %2380, %2399 : vector<8x128xf32>
    %c399 = arith.constant 399 : index
    %2401 = memref.load %arg2[%c399] : memref<481xf32, #tpu.memory_space<smem>>
    %2402 = vector.broadcast %2401 : f32 to vector<8x128xf32>
    %2403 = arith.mulf %2402, %2396 : vector<8x128xf32>
    %2404 = arith.addf %2400, %2403 : vector<8x128xf32>
    %c415 = arith.constant 415 : index
    %2405 = memref.load %arg2[%c415] : memref<481xf32, #tpu.memory_space<smem>>
    %2406 = vector.broadcast %2405 : f32 to vector<8x128xf32>
    %2407 = arith.mulf %2406, %2393 : vector<8x128xf32>
    %2408 = arith.addf %2388, %2407 : vector<8x128xf32>
    %c431 = arith.constant 431 : index
    %2409 = memref.load %arg2[%c431] : memref<481xf32, #tpu.memory_space<smem>>
    %2410 = vector.broadcast %2409 : f32 to vector<8x128xf32>
    %2411 = arith.mulf %2410, %2396 : vector<8x128xf32>
    %2412 = arith.addf %2408, %2411 : vector<8x128xf32>
    %2413 = arith.mulf %2404, %3 : vector<8x128xf32>
    %cst_345 = arith.constant dense<0.000000e+00> : vector<8xf32>
    %2414 = vector.multi_reduction <add>, %2413, %cst_345 [1] : vector<8x128xf32> to vector<8xf32>
    %2415 = vector.shape_cast %2414 : vector<8xf32> to vector<8x1xf32>
    %cst_346 = arith.constant dense<0.000000e+00> : vector<1xf32>
    %2416 = vector.multi_reduction <add>, %2415, %cst_346 [0] : vector<8x1xf32> to vector<1xf32>
    %2417 = vector.shape_cast %2416 : vector<1xf32> to vector<1x1xf32>
    %cst_347 = arith.constant 0.00140056026 : f32
    %2418 = vector.broadcast %cst_347 : f32 to vector<1x1xf32>
    %2419 = arith.mulf %2417, %2418 : vector<1x1xf32>
    %2420 = arith.mulf %2413, %2404 : vector<8x128xf32>
    %cst_348 = arith.constant dense<0.000000e+00> : vector<8xf32>
    %2421 = vector.multi_reduction <add>, %2420, %cst_348 [1] : vector<8x128xf32> to vector<8xf32>
    %2422 = vector.shape_cast %2421 : vector<8xf32> to vector<8x1xf32>
    %cst_349 = arith.constant dense<0.000000e+00> : vector<1xf32>
    %2423 = vector.multi_reduction <add>, %2422, %cst_349 [0] : vector<8x1xf32> to vector<1xf32>
    %2424 = vector.shape_cast %2423 : vector<1xf32> to vector<1x1xf32>
    %cst_350 = arith.constant 0.00140056026 : f32
    %2425 = vector.broadcast %cst_350 : f32 to vector<1x1xf32>
    %2426 = arith.mulf %2424, %2425 : vector<1x1xf32>
    %2427 = arith.mulf %2419, %2419 : vector<1x1xf32>
    %2428 = arith.subf %2426, %2427 : vector<1x1xf32>
    %c436 = arith.constant 436 : index
    %2429 = memref.load %arg2[%c436] : memref<481xf32, #tpu.memory_space<smem>>
    %cst_351 = arith.constant 9.99999974E-6 : f32
    %2430 = vector.broadcast %cst_351 : f32 to vector<1x1xf32>
    %2431 = arith.addf %2428, %2430 : vector<1x1xf32>
    %2432 = math.rsqrt %2431 : vector<1x1xf32>
    %2433 = vector.broadcast %2429 : f32 to vector<1x1xf32>
    %2434 = arith.mulf %2433, %2432 : vector<1x1xf32>
    %c438 = arith.constant 438 : index
    %2435 = memref.load %arg2[%c438] : memref<481xf32, #tpu.memory_space<smem>>
    %2436 = arith.mulf %2419, %2434 : vector<1x1xf32>
    %2437 = vector.broadcast %2435 : f32 to vector<1x1xf32>
    %2438 = arith.subf %2437, %2436 : vector<1x1xf32>
    %2439 = vector.broadcast %2434 : vector<1x1xf32> to vector<8x128xf32>
    %2440 = arith.mulf %2404, %2439 : vector<8x128xf32>
    %2441 = vector.broadcast %2438 : vector<1x1xf32> to vector<8x128xf32>
    %2442 = arith.addf %2440, %2441 : vector<8x128xf32>
    %2443 = arith.mulf %2412, %3 : vector<8x128xf32>
    %cst_352 = arith.constant dense<0.000000e+00> : vector<8xf32>
    %2444 = vector.multi_reduction <add>, %2443, %cst_352 [1] : vector<8x128xf32> to vector<8xf32>
    %2445 = vector.shape_cast %2444 : vector<8xf32> to vector<8x1xf32>
    %cst_353 = arith.constant dense<0.000000e+00> : vector<1xf32>
    %2446 = vector.multi_reduction <add>, %2445, %cst_353 [0] : vector<8x1xf32> to vector<1xf32>
    %2447 = vector.shape_cast %2446 : vector<1xf32> to vector<1x1xf32>
    %cst_354 = arith.constant 0.00140056026 : f32
    %2448 = vector.broadcast %cst_354 : f32 to vector<1x1xf32>
    %2449 = arith.mulf %2447, %2448 : vector<1x1xf32>
    %2450 = arith.mulf %2443, %2412 : vector<8x128xf32>
    %cst_355 = arith.constant dense<0.000000e+00> : vector<8xf32>
    %2451 = vector.multi_reduction <add>, %2450, %cst_355 [1] : vector<8x128xf32> to vector<8xf32>
    %2452 = vector.shape_cast %2451 : vector<8xf32> to vector<8x1xf32>
    %cst_356 = arith.constant dense<0.000000e+00> : vector<1xf32>
    %2453 = vector.multi_reduction <add>, %2452, %cst_356 [0] : vector<8x1xf32> to vector<1xf32>
    %2454 = vector.shape_cast %2453 : vector<1xf32> to vector<1x1xf32>
    %cst_357 = arith.constant 0.00140056026 : f32
    %2455 = vector.broadcast %cst_357 : f32 to vector<1x1xf32>
    %2456 = arith.mulf %2454, %2455 : vector<1x1xf32>
    %2457 = arith.mulf %2449, %2449 : vector<1x1xf32>
    %2458 = arith.subf %2456, %2457 : vector<1x1xf32>
    %c437 = arith.constant 437 : index
    %2459 = memref.load %arg2[%c437] : memref<481xf32, #tpu.memory_space<smem>>
    %cst_358 = arith.constant 9.99999974E-6 : f32
    %2460 = vector.broadcast %cst_358 : f32 to vector<1x1xf32>
    %2461 = arith.addf %2458, %2460 : vector<1x1xf32>
    %2462 = math.rsqrt %2461 : vector<1x1xf32>
    %2463 = vector.broadcast %2459 : f32 to vector<1x1xf32>
    %2464 = arith.mulf %2463, %2462 : vector<1x1xf32>
    %c439 = arith.constant 439 : index
    %2465 = memref.load %arg2[%c439] : memref<481xf32, #tpu.memory_space<smem>>
    %2466 = arith.mulf %2449, %2464 : vector<1x1xf32>
    %2467 = vector.broadcast %2465 : f32 to vector<1x1xf32>
    %2468 = arith.subf %2467, %2466 : vector<1x1xf32>
    %2469 = vector.broadcast %2464 : vector<1x1xf32> to vector<8x128xf32>
    %2470 = arith.mulf %2412, %2469 : vector<8x128xf32>
    %2471 = vector.broadcast %2468 : vector<1x1xf32> to vector<8x128xf32>
    %2472 = arith.addf %2470, %2471 : vector<8x128xf32>
    %c440 = arith.constant 440 : index
    %2473 = memref.load %arg2[%c440] : memref<481xf32, #tpu.memory_space<smem>>
    %2474 = vector.broadcast %2473 : f32 to vector<8x128xf32>
    %2475 = arith.mulf %2474, %1792 : vector<8x128xf32>
    %c441 = arith.constant 441 : index
    %2476 = memref.load %arg2[%c441] : memref<481xf32, #tpu.memory_space<smem>>
    %2477 = vector.broadcast %2476 : f32 to vector<8x128xf32>
    %2478 = arith.mulf %2477, %1796 : vector<8x128xf32>
    %2479 = arith.addf %2475, %2478 : vector<8x128xf32>
    %c442 = arith.constant 442 : index
    %2480 = memref.load %arg2[%c442] : memref<481xf32, #tpu.memory_space<smem>>
    %2481 = vector.broadcast %2480 : f32 to vector<8x128xf32>
    %2482 = arith.mulf %2481, %1800 : vector<8x128xf32>
    %2483 = arith.addf %2479, %2482 : vector<8x128xf32>
    %c443 = arith.constant 443 : index
    %2484 = memref.load %arg2[%c443] : memref<481xf32, #tpu.memory_space<smem>>
    %2485 = vector.broadcast %2484 : f32 to vector<8x128xf32>
    %2486 = arith.mulf %2485, %1804 : vector<8x128xf32>
    %2487 = arith.addf %2483, %2486 : vector<8x128xf32>
    %c448 = arith.constant 448 : index
    %2488 = memref.load %arg2[%c448] : memref<481xf32, #tpu.memory_space<smem>>
    %2489 = vector.broadcast %2488 : f32 to vector<8x128xf32>
    %2490 = arith.addf %2487, %2489 : vector<8x128xf32>
    %c444 = arith.constant 444 : index
    %2491 = memref.load %arg2[%c444] : memref<481xf32, #tpu.memory_space<smem>>
    %2492 = vector.broadcast %2491 : f32 to vector<8x128xf32>
    %2493 = arith.mulf %2492, %1792 : vector<8x128xf32>
    %c445 = arith.constant 445 : index
    %2494 = memref.load %arg2[%c445] : memref<481xf32, #tpu.memory_space<smem>>
    %2495 = vector.broadcast %2494 : f32 to vector<8x128xf32>
    %2496 = arith.mulf %2495, %1796 : vector<8x128xf32>
    %2497 = arith.addf %2493, %2496 : vector<8x128xf32>
    %c446 = arith.constant 446 : index
    %2498 = memref.load %arg2[%c446] : memref<481xf32, #tpu.memory_space<smem>>
    %2499 = vector.broadcast %2498 : f32 to vector<8x128xf32>
    %2500 = arith.mulf %2499, %1800 : vector<8x128xf32>
    %2501 = arith.addf %2497, %2500 : vector<8x128xf32>
    %c447 = arith.constant 447 : index
    %2502 = memref.load %arg2[%c447] : memref<481xf32, #tpu.memory_space<smem>>
    %2503 = vector.broadcast %2502 : f32 to vector<8x128xf32>
    %2504 = arith.mulf %2503, %1804 : vector<8x128xf32>
    %2505 = arith.addf %2501, %2504 : vector<8x128xf32>
    %c449 = arith.constant 449 : index
    %2506 = memref.load %arg2[%c449] : memref<481xf32, #tpu.memory_space<smem>>
    %2507 = vector.broadcast %2506 : f32 to vector<8x128xf32>
    %2508 = arith.addf %2505, %2507 : vector<8x128xf32>
    %2509 = arith.addf %2442, %2490 : vector<8x128xf32>
    %cst_359 = arith.constant 0.000000e+00 : f32
    %2510 = vector.broadcast %cst_359 : f32 to vector<8x128xf32>
    %2511 = arith.maximumf %2509, %2510 : vector<8x128xf32>
    %2512 = arith.mulf %2511, %3 : vector<8x128xf32>
    %2513 = arith.addf %2472, %2508 : vector<8x128xf32>
    %cst_360 = arith.constant 0.000000e+00 : f32
    %2514 = vector.broadcast %cst_360 : f32 to vector<8x128xf32>
    %2515 = arith.maximumf %2513, %2514 : vector<8x128xf32>
    %2516 = arith.mulf %2515, %3 : vector<8x128xf32>
    %c450 = arith.constant 450 : index
    %2517 = memref.load %arg2[%c450] : memref<481xf32, #tpu.memory_space<smem>>
    %2518 = vector.broadcast %2517 : f32 to vector<8x128xf32>
    %2519 = arith.mulf %2518, %2512 : vector<8x128xf32>
    %c454 = arith.constant 454 : index
    %2520 = memref.load %arg2[%c454] : memref<481xf32, #tpu.memory_space<smem>>
    %2521 = vector.broadcast %2520 : f32 to vector<8x128xf32>
    %2522 = arith.mulf %2521, %2516 : vector<8x128xf32>
    %2523 = arith.addf %2519, %2522 : vector<8x128xf32>
    %c127_i32_361 = arith.constant 127 : i32
    %2524 = vector.broadcast %c127_i32_361 : i32 to vector<8x128xi32>
    %2525 = arith.cmpi sge, %4, %2524 : vector<8x128xi32>
    %c127_i32_362 = arith.constant 127 : i32
    %2526 = tpu.dynamic_rotate %2512 by %c127_i32_362 dim 1 : vector<8x128xf32>, i32 -> vector<8x128xf32>
    %c7_i32_363 = arith.constant 7 : i32
    %2527 = tpu.dynamic_rotate %2526 by %c7_i32_363 dim 0 : vector<8x128xf32>, i32 -> vector<8x128xf32>
    %2528 = arith.select %2525, %2527, %2526 : vector<8x128xi1>, vector<8x128xf32>
    %c127_i32_364 = arith.constant 127 : i32
    %2529 = tpu.dynamic_rotate %2516 by %c127_i32_364 dim 1 : vector<8x128xf32>, i32 -> vector<8x128xf32>
    %c7_i32_365 = arith.constant 7 : i32
    %2530 = tpu.dynamic_rotate %2529 by %c7_i32_365 dim 0 : vector<8x128xf32>, i32 -> vector<8x128xf32>
    %2531 = arith.select %2525, %2530, %2529 : vector<8x128xi1>, vector<8x128xf32>
    %c451 = arith.constant 451 : index
    %2532 = memref.load %arg2[%c451] : memref<481xf32, #tpu.memory_space<smem>>
    %2533 = vector.broadcast %2532 : f32 to vector<8x128xf32>
    %2534 = arith.mulf %2533, %2528 : vector<8x128xf32>
    %2535 = arith.addf %2523, %2534 : vector<8x128xf32>
    %c455 = arith.constant 455 : index
    %2536 = memref.load %arg2[%c455] : memref<481xf32, #tpu.memory_space<smem>>
    %2537 = vector.broadcast %2536 : f32 to vector<8x128xf32>
    %2538 = arith.mulf %2537, %2531 : vector<8x128xf32>
    %2539 = arith.addf %2535, %2538 : vector<8x128xf32>
    %c108_i32_366 = arith.constant 108 : i32
    %2540 = vector.broadcast %c108_i32_366 : i32 to vector<8x128xi32>
    %2541 = arith.cmpi sge, %4, %2540 : vector<8x128xi32>
    %c108_i32_367 = arith.constant 108 : i32
    %2542 = tpu.dynamic_rotate %2512 by %c108_i32_367 dim 1 : vector<8x128xf32>, i32 -> vector<8x128xf32>
    %c7_i32_368 = arith.constant 7 : i32
    %2543 = tpu.dynamic_rotate %2542 by %c7_i32_368 dim 0 : vector<8x128xf32>, i32 -> vector<8x128xf32>
    %2544 = arith.select %2541, %2543, %2542 : vector<8x128xi1>, vector<8x128xf32>
    %c108_i32_369 = arith.constant 108 : i32
    %2545 = tpu.dynamic_rotate %2516 by %c108_i32_369 dim 1 : vector<8x128xf32>, i32 -> vector<8x128xf32>
    %c7_i32_370 = arith.constant 7 : i32
    %2546 = tpu.dynamic_rotate %2545 by %c7_i32_370 dim 0 : vector<8x128xf32>, i32 -> vector<8x128xf32>
    %2547 = arith.select %2541, %2546, %2545 : vector<8x128xi1>, vector<8x128xf32>
    %c452 = arith.constant 452 : index
    %2548 = memref.load %arg2[%c452] : memref<481xf32, #tpu.memory_space<smem>>
    %2549 = vector.broadcast %2548 : f32 to vector<8x128xf32>
    %2550 = arith.mulf %2549, %2544 : vector<8x128xf32>
    %2551 = arith.addf %2539, %2550 : vector<8x128xf32>
    %c456 = arith.constant 456 : index
    %2552 = memref.load %arg2[%c456] : memref<481xf32, #tpu.memory_space<smem>>
    %2553 = vector.broadcast %2552 : f32 to vector<8x128xf32>
    %2554 = arith.mulf %2553, %2547 : vector<8x128xf32>
    %2555 = arith.addf %2551, %2554 : vector<8x128xf32>
    %c107_i32_371 = arith.constant 107 : i32
    %2556 = vector.broadcast %c107_i32_371 : i32 to vector<8x128xi32>
    %2557 = arith.cmpi sge, %4, %2556 : vector<8x128xi32>
    %c107_i32_372 = arith.constant 107 : i32
    %2558 = tpu.dynamic_rotate %2512 by %c107_i32_372 dim 1 : vector<8x128xf32>, i32 -> vector<8x128xf32>
    %c7_i32_373 = arith.constant 7 : i32
    %2559 = tpu.dynamic_rotate %2558 by %c7_i32_373 dim 0 : vector<8x128xf32>, i32 -> vector<8x128xf32>
    %2560 = arith.select %2557, %2559, %2558 : vector<8x128xi1>, vector<8x128xf32>
    %c107_i32_374 = arith.constant 107 : i32
    %2561 = tpu.dynamic_rotate %2516 by %c107_i32_374 dim 1 : vector<8x128xf32>, i32 -> vector<8x128xf32>
    %c7_i32_375 = arith.constant 7 : i32
    %2562 = tpu.dynamic_rotate %2561 by %c7_i32_375 dim 0 : vector<8x128xf32>, i32 -> vector<8x128xf32>
    %2563 = arith.select %2557, %2562, %2561 : vector<8x128xi1>, vector<8x128xf32>
    %c453 = arith.constant 453 : index
    %2564 = memref.load %arg2[%c453] : memref<481xf32, #tpu.memory_space<smem>>
    %2565 = vector.broadcast %2564 : f32 to vector<8x128xf32>
    %2566 = arith.mulf %2565, %2560 : vector<8x128xf32>
    %2567 = arith.addf %2555, %2566 : vector<8x128xf32>
    %c457 = arith.constant 457 : index
    %2568 = memref.load %arg2[%c457] : memref<481xf32, #tpu.memory_space<smem>>
    %2569 = vector.broadcast %2568 : f32 to vector<8x128xf32>
    %2570 = arith.mulf %2569, %2563 : vector<8x128xf32>
    %2571 = arith.addf %2567, %2570 : vector<8x128xf32>
    %2572 = arith.mulf %2571, %1 : vector<8x128xf32>
    %cst_376 = arith.constant dense<0.000000e+00> : vector<8xf32>
    %2573 = vector.multi_reduction <add>, %2572, %cst_376 [1] : vector<8x128xf32> to vector<8xf32>
    %2574 = vector.shape_cast %2573 : vector<8xf32> to vector<8x1xf32>
    %cst_377 = arith.constant dense<0.000000e+00> : vector<1xf32>
    %2575 = vector.multi_reduction <add>, %2574, %cst_377 [0] : vector<8x1xf32> to vector<1xf32>
    %2576 = vector.shape_cast %2575 : vector<1xf32> to vector<1x1xf32>
    %cst_378 = arith.constant 0.00126262626 : f32
    %2577 = vector.broadcast %cst_378 : f32 to vector<1x1xf32>
    %2578 = arith.mulf %2576, %2577 : vector<1x1xf32>
    %2579 = arith.mulf %2572, %2571 : vector<8x128xf32>
    %cst_379 = arith.constant dense<0.000000e+00> : vector<8xf32>
    %2580 = vector.multi_reduction <add>, %2579, %cst_379 [1] : vector<8x128xf32> to vector<8xf32>
    %2581 = vector.shape_cast %2580 : vector<8xf32> to vector<8x1xf32>
    %cst_380 = arith.constant dense<0.000000e+00> : vector<1xf32>
    %2582 = vector.multi_reduction <add>, %2581, %cst_380 [0] : vector<8x1xf32> to vector<1xf32>
    %2583 = vector.shape_cast %2582 : vector<1xf32> to vector<1x1xf32>
    %cst_381 = arith.constant 0.00126262626 : f32
    %2584 = vector.broadcast %cst_381 : f32 to vector<1x1xf32>
    %2585 = arith.mulf %2583, %2584 : vector<1x1xf32>
    %2586 = arith.mulf %2578, %2578 : vector<1x1xf32>
    %2587 = arith.subf %2585, %2586 : vector<1x1xf32>
    %c474 = arith.constant 474 : index
    %2588 = memref.load %arg2[%c474] : memref<481xf32, #tpu.memory_space<smem>>
    %cst_382 = arith.constant 9.99999974E-6 : f32
    %2589 = vector.broadcast %cst_382 : f32 to vector<1x1xf32>
    %2590 = arith.addf %2587, %2589 : vector<1x1xf32>
    %2591 = math.rsqrt %2590 : vector<1x1xf32>
    %2592 = vector.broadcast %2588 : f32 to vector<1x1xf32>
    %2593 = arith.mulf %2592, %2591 : vector<1x1xf32>
    %c475 = arith.constant 475 : index
    %2594 = memref.load %arg2[%c475] : memref<481xf32, #tpu.memory_space<smem>>
    %2595 = arith.mulf %2578, %2593 : vector<1x1xf32>
    %2596 = vector.broadcast %2594 : f32 to vector<1x1xf32>
    %2597 = arith.subf %2596, %2595 : vector<1x1xf32>
    %2598 = vector.broadcast %2593 : vector<1x1xf32> to vector<8x128xf32>
    %2599 = arith.mulf %2571, %2598 : vector<8x128xf32>
    %2600 = vector.broadcast %2597 : vector<1x1xf32> to vector<8x128xf32>
    %2601 = arith.addf %2599, %2600 : vector<8x128xf32>
    %cst_383 = arith.constant 0.000000e+00 : f32
    %2602 = vector.broadcast %cst_383 : f32 to vector<8x128xf32>
    %2603 = arith.maximumf %2601, %2602 : vector<8x128xf32>
    %2604 = arith.mulf %2603, %1 : vector<8x128xf32>
    %c42_i32_384 = arith.constant 42 : i32
    %2605 = vector.broadcast %c42_i32_384 : i32 to vector<8x128xi32>
    %2606 = arith.cmpi sge, %4, %2605 : vector<8x128xi32>
    %c42_i32_385 = arith.constant 42 : i32
    %2607 = tpu.dynamic_rotate %2604 by %c42_i32_385 dim 1 : vector<8x128xf32>, i32 -> vector<8x128xf32>
    %c1_i32_386 = arith.constant 1 : i32
    %2608 = tpu.dynamic_rotate %2607 by %c1_i32_386 dim 0 : vector<8x128xf32>, i32 -> vector<8x128xf32>
    %2609 = arith.select %2606, %2607, %2608 : vector<8x128xi1>, vector<8x128xf32>
    %c458 = arith.constant 458 : index
    %2610 = memref.load %arg2[%c458] : memref<481xf32, #tpu.memory_space<smem>>
    %2611 = vector.broadcast %2610 : f32 to vector<8x128xf32>
    %2612 = arith.mulf %2611, %2609 : vector<8x128xf32>
    %c41_i32_387 = arith.constant 41 : i32
    %2613 = vector.broadcast %c41_i32_387 : i32 to vector<8x128xi32>
    %2614 = arith.cmpi sge, %4, %2613 : vector<8x128xi32>
    %c41_i32_388 = arith.constant 41 : i32
    %2615 = tpu.dynamic_rotate %2604 by %c41_i32_388 dim 1 : vector<8x128xf32>, i32 -> vector<8x128xf32>
    %c1_i32_389 = arith.constant 1 : i32
    %2616 = tpu.dynamic_rotate %2615 by %c1_i32_389 dim 0 : vector<8x128xf32>, i32 -> vector<8x128xf32>
    %2617 = arith.select %2614, %2615, %2616 : vector<8x128xi1>, vector<8x128xf32>
    %c459 = arith.constant 459 : index
    %2618 = memref.load %arg2[%c459] : memref<481xf32, #tpu.memory_space<smem>>
    %2619 = vector.broadcast %2618 : f32 to vector<8x128xf32>
    %2620 = arith.mulf %2619, %2617 : vector<8x128xf32>
    %2621 = arith.addf %2612, %2620 : vector<8x128xf32>
    %c40_i32_390 = arith.constant 40 : i32
    %2622 = vector.broadcast %c40_i32_390 : i32 to vector<8x128xi32>
    %2623 = arith.cmpi sge, %4, %2622 : vector<8x128xi32>
    %c40_i32_391 = arith.constant 40 : i32
    %2624 = tpu.dynamic_rotate %2604 by %c40_i32_391 dim 1 : vector<8x128xf32>, i32 -> vector<8x128xf32>
    %c1_i32_392 = arith.constant 1 : i32
    %2625 = tpu.dynamic_rotate %2624 by %c1_i32_392 dim 0 : vector<8x128xf32>, i32 -> vector<8x128xf32>
    %2626 = arith.select %2623, %2624, %2625 : vector<8x128xi1>, vector<8x128xf32>
    %c460 = arith.constant 460 : index
    %2627 = memref.load %arg2[%c460] : memref<481xf32, #tpu.memory_space<smem>>
    %2628 = vector.broadcast %2627 : f32 to vector<8x128xf32>
    %2629 = arith.mulf %2628, %2626 : vector<8x128xf32>
    %2630 = arith.addf %2621, %2629 : vector<8x128xf32>
    %c39_i32_393 = arith.constant 39 : i32
    %2631 = vector.broadcast %c39_i32_393 : i32 to vector<8x128xi32>
    %2632 = arith.cmpi sge, %4, %2631 : vector<8x128xi32>
    %c39_i32_394 = arith.constant 39 : i32
    %2633 = tpu.dynamic_rotate %2604 by %c39_i32_394 dim 1 : vector<8x128xf32>, i32 -> vector<8x128xf32>
    %c1_i32_395 = arith.constant 1 : i32
    %2634 = tpu.dynamic_rotate %2633 by %c1_i32_395 dim 0 : vector<8x128xf32>, i32 -> vector<8x128xf32>
    %2635 = arith.select %2632, %2633, %2634 : vector<8x128xi1>, vector<8x128xf32>
    %c461 = arith.constant 461 : index
    %2636 = memref.load %arg2[%c461] : memref<481xf32, #tpu.memory_space<smem>>
    %2637 = vector.broadcast %2636 : f32 to vector<8x128xf32>
    %2638 = arith.mulf %2637, %2635 : vector<8x128xf32>
    %2639 = arith.addf %2630, %2638 : vector<8x128xf32>
    %c22_i32_396 = arith.constant 22 : i32
    %2640 = vector.broadcast %c22_i32_396 : i32 to vector<8x128xi32>
    %2641 = arith.cmpi sge, %4, %2640 : vector<8x128xi32>
    %c22_i32_397 = arith.constant 22 : i32
    %2642 = tpu.dynamic_rotate %2604 by %c22_i32_397 dim 1 : vector<8x128xf32>, i32 -> vector<8x128xf32>
    %c1_i32_398 = arith.constant 1 : i32
    %2643 = tpu.dynamic_rotate %2642 by %c1_i32_398 dim 0 : vector<8x128xf32>, i32 -> vector<8x128xf32>
    %2644 = arith.select %2641, %2642, %2643 : vector<8x128xi1>, vector<8x128xf32>
    %c462 = arith.constant 462 : index
    %2645 = memref.load %arg2[%c462] : memref<481xf32, #tpu.memory_space<smem>>
    %2646 = vector.broadcast %2645 : f32 to vector<8x128xf32>
    %2647 = arith.mulf %2646, %2644 : vector<8x128xf32>
    %2648 = arith.addf %2639, %2647 : vector<8x128xf32>
    %c21_i32_399 = arith.constant 21 : i32
    %2649 = vector.broadcast %c21_i32_399 : i32 to vector<8x128xi32>
    %2650 = arith.cmpi sge, %4, %2649 : vector<8x128xi32>
    %c21_i32_400 = arith.constant 21 : i32
    %2651 = tpu.dynamic_rotate %2604 by %c21_i32_400 dim 1 : vector<8x128xf32>, i32 -> vector<8x128xf32>
    %c1_i32_401 = arith.constant 1 : i32
    %2652 = tpu.dynamic_rotate %2651 by %c1_i32_401 dim 0 : vector<8x128xf32>, i32 -> vector<8x128xf32>
    %2653 = arith.select %2650, %2651, %2652 : vector<8x128xi1>, vector<8x128xf32>
    %c463 = arith.constant 463 : index
    %2654 = memref.load %arg2[%c463] : memref<481xf32, #tpu.memory_space<smem>>
    %2655 = vector.broadcast %2654 : f32 to vector<8x128xf32>
    %2656 = arith.mulf %2655, %2653 : vector<8x128xf32>
    %2657 = arith.addf %2648, %2656 : vector<8x128xf32>
    %c20_i32_402 = arith.constant 20 : i32
    %2658 = vector.broadcast %c20_i32_402 : i32 to vector<8x128xi32>
    %2659 = arith.cmpi sge, %4, %2658 : vector<8x128xi32>
    %c20_i32_403 = arith.constant 20 : i32
    %2660 = tpu.dynamic_rotate %2604 by %c20_i32_403 dim 1 : vector<8x128xf32>, i32 -> vector<8x128xf32>
    %c1_i32_404 = arith.constant 1 : i32
    %2661 = tpu.dynamic_rotate %2660 by %c1_i32_404 dim 0 : vector<8x128xf32>, i32 -> vector<8x128xf32>
    %2662 = arith.select %2659, %2660, %2661 : vector<8x128xi1>, vector<8x128xf32>
    %c464 = arith.constant 464 : index
    %2663 = memref.load %arg2[%c464] : memref<481xf32, #tpu.memory_space<smem>>
    %2664 = vector.broadcast %2663 : f32 to vector<8x128xf32>
    %2665 = arith.mulf %2664, %2662 : vector<8x128xf32>
    %2666 = arith.addf %2657, %2665 : vector<8x128xf32>
    %c19_i32_405 = arith.constant 19 : i32
    %2667 = vector.broadcast %c19_i32_405 : i32 to vector<8x128xi32>
    %2668 = arith.cmpi sge, %4, %2667 : vector<8x128xi32>
    %c19_i32_406 = arith.constant 19 : i32
    %2669 = tpu.dynamic_rotate %2604 by %c19_i32_406 dim 1 : vector<8x128xf32>, i32 -> vector<8x128xf32>
    %c1_i32_407 = arith.constant 1 : i32
    %2670 = tpu.dynamic_rotate %2669 by %c1_i32_407 dim 0 : vector<8x128xf32>, i32 -> vector<8x128xf32>
    %2671 = arith.select %2668, %2669, %2670 : vector<8x128xi1>, vector<8x128xf32>
    %c465 = arith.constant 465 : index
    %2672 = memref.load %arg2[%c465] : memref<481xf32, #tpu.memory_space<smem>>
    %2673 = vector.broadcast %2672 : f32 to vector<8x128xf32>
    %2674 = arith.mulf %2673, %2671 : vector<8x128xf32>
    %2675 = arith.addf %2666, %2674 : vector<8x128xf32>
    %c2_i32_408 = arith.constant 2 : i32
    %2676 = vector.broadcast %c2_i32_408 : i32 to vector<8x128xi32>
    %2677 = arith.cmpi sge, %4, %2676 : vector<8x128xi32>
    %c2_i32_409 = arith.constant 2 : i32
    %2678 = tpu.dynamic_rotate %2604 by %c2_i32_409 dim 1 : vector<8x128xf32>, i32 -> vector<8x128xf32>
    %c1_i32_410 = arith.constant 1 : i32
    %2679 = tpu.dynamic_rotate %2678 by %c1_i32_410 dim 0 : vector<8x128xf32>, i32 -> vector<8x128xf32>
    %2680 = arith.select %2677, %2678, %2679 : vector<8x128xi1>, vector<8x128xf32>
    %c466 = arith.constant 466 : index
    %2681 = memref.load %arg2[%c466] : memref<481xf32, #tpu.memory_space<smem>>
    %2682 = vector.broadcast %2681 : f32 to vector<8x128xf32>
    %2683 = arith.mulf %2682, %2680 : vector<8x128xf32>
    %2684 = arith.addf %2675, %2683 : vector<8x128xf32>
    %c1_i32_411 = arith.constant 1 : i32
    %2685 = vector.broadcast %c1_i32_411 : i32 to vector<8x128xi32>
    %2686 = arith.cmpi sge, %4, %2685 : vector<8x128xi32>
    %c1_i32_412 = arith.constant 1 : i32
    %2687 = tpu.dynamic_rotate %2604 by %c1_i32_412 dim 1 : vector<8x128xf32>, i32 -> vector<8x128xf32>
    %c1_i32_413 = arith.constant 1 : i32
    %2688 = tpu.dynamic_rotate %2687 by %c1_i32_413 dim 0 : vector<8x128xf32>, i32 -> vector<8x128xf32>
    %2689 = arith.select %2686, %2687, %2688 : vector<8x128xi1>, vector<8x128xf32>
    %c467 = arith.constant 467 : index
    %2690 = memref.load %arg2[%c467] : memref<481xf32, #tpu.memory_space<smem>>
    %2691 = vector.broadcast %2690 : f32 to vector<8x128xf32>
    %2692 = arith.mulf %2691, %2689 : vector<8x128xf32>
    %2693 = arith.addf %2684, %2692 : vector<8x128xf32>
    %c468 = arith.constant 468 : index
    %2694 = memref.load %arg2[%c468] : memref<481xf32, #tpu.memory_space<smem>>
    %2695 = vector.broadcast %2694 : f32 to vector<8x128xf32>
    %2696 = arith.mulf %2695, %2604 : vector<8x128xf32>
    %2697 = arith.addf %2693, %2696 : vector<8x128xf32>
    %c127_i32_414 = arith.constant 127 : i32
    %2698 = vector.broadcast %c127_i32_414 : i32 to vector<8x128xi32>
    %2699 = arith.cmpi sge, %4, %2698 : vector<8x128xi32>
    %c127_i32_415 = arith.constant 127 : i32
    %2700 = tpu.dynamic_rotate %2604 by %c127_i32_415 dim 1 : vector<8x128xf32>, i32 -> vector<8x128xf32>
    %c7_i32_416 = arith.constant 7 : i32
    %2701 = tpu.dynamic_rotate %2700 by %c7_i32_416 dim 0 : vector<8x128xf32>, i32 -> vector<8x128xf32>
    %2702 = arith.select %2699, %2701, %2700 : vector<8x128xi1>, vector<8x128xf32>
    %c469 = arith.constant 469 : index
    %2703 = memref.load %arg2[%c469] : memref<481xf32, #tpu.memory_space<smem>>
    %2704 = vector.broadcast %2703 : f32 to vector<8x128xf32>
    %2705 = arith.mulf %2704, %2702 : vector<8x128xf32>
    %2706 = arith.addf %2697, %2705 : vector<8x128xf32>
    %c110_i32_417 = arith.constant 110 : i32
    %2707 = vector.broadcast %c110_i32_417 : i32 to vector<8x128xi32>
    %2708 = arith.cmpi sge, %4, %2707 : vector<8x128xi32>
    %c110_i32_418 = arith.constant 110 : i32
    %2709 = tpu.dynamic_rotate %2604 by %c110_i32_418 dim 1 : vector<8x128xf32>, i32 -> vector<8x128xf32>
    %c7_i32_419 = arith.constant 7 : i32
    %2710 = tpu.dynamic_rotate %2709 by %c7_i32_419 dim 0 : vector<8x128xf32>, i32 -> vector<8x128xf32>
    %2711 = arith.select %2708, %2710, %2709 : vector<8x128xi1>, vector<8x128xf32>
    %c470 = arith.constant 470 : index
    %2712 = memref.load %arg2[%c470] : memref<481xf32, #tpu.memory_space<smem>>
    %2713 = vector.broadcast %2712 : f32 to vector<8x128xf32>
    %2714 = arith.mulf %2713, %2711 : vector<8x128xf32>
    %2715 = arith.addf %2706, %2714 : vector<8x128xf32>
    %c109_i32_420 = arith.constant 109 : i32
    %2716 = vector.broadcast %c109_i32_420 : i32 to vector<8x128xi32>
    %2717 = arith.cmpi sge, %4, %2716 : vector<8x128xi32>
    %c109_i32_421 = arith.constant 109 : i32
    %2718 = tpu.dynamic_rotate %2604 by %c109_i32_421 dim 1 : vector<8x128xf32>, i32 -> vector<8x128xf32>
    %c7_i32_422 = arith.constant 7 : i32
    %2719 = tpu.dynamic_rotate %2718 by %c7_i32_422 dim 0 : vector<8x128xf32>, i32 -> vector<8x128xf32>
    %2720 = arith.select %2717, %2719, %2718 : vector<8x128xi1>, vector<8x128xf32>
    %c471 = arith.constant 471 : index
    %2721 = memref.load %arg2[%c471] : memref<481xf32, #tpu.memory_space<smem>>
    %2722 = vector.broadcast %2721 : f32 to vector<8x128xf32>
    %2723 = arith.mulf %2722, %2720 : vector<8x128xf32>
    %2724 = arith.addf %2715, %2723 : vector<8x128xf32>
    %c108_i32_423 = arith.constant 108 : i32
    %2725 = vector.broadcast %c108_i32_423 : i32 to vector<8x128xi32>
    %2726 = arith.cmpi sge, %4, %2725 : vector<8x128xi32>
    %c108_i32_424 = arith.constant 108 : i32
    %2727 = tpu.dynamic_rotate %2604 by %c108_i32_424 dim 1 : vector<8x128xf32>, i32 -> vector<8x128xf32>
    %c7_i32_425 = arith.constant 7 : i32
    %2728 = tpu.dynamic_rotate %2727 by %c7_i32_425 dim 0 : vector<8x128xf32>, i32 -> vector<8x128xf32>
    %2729 = arith.select %2726, %2728, %2727 : vector<8x128xi1>, vector<8x128xf32>
    %c472 = arith.constant 472 : index
    %2730 = memref.load %arg2[%c472] : memref<481xf32, #tpu.memory_space<smem>>
    %2731 = vector.broadcast %2730 : f32 to vector<8x128xf32>
    %2732 = arith.mulf %2731, %2729 : vector<8x128xf32>
    %2733 = arith.addf %2724, %2732 : vector<8x128xf32>
    %c107_i32_426 = arith.constant 107 : i32
    %2734 = vector.broadcast %c107_i32_426 : i32 to vector<8x128xi32>
    %2735 = arith.cmpi sge, %4, %2734 : vector<8x128xi32>
    %c107_i32_427 = arith.constant 107 : i32
    %2736 = tpu.dynamic_rotate %2604 by %c107_i32_427 dim 1 : vector<8x128xf32>, i32 -> vector<8x128xf32>
    %c7_i32_428 = arith.constant 7 : i32
    %2737 = tpu.dynamic_rotate %2736 by %c7_i32_428 dim 0 : vector<8x128xf32>, i32 -> vector<8x128xf32>
    %2738 = arith.select %2735, %2737, %2736 : vector<8x128xi1>, vector<8x128xf32>
    %c473 = arith.constant 473 : index
    %2739 = memref.load %arg2[%c473] : memref<481xf32, #tpu.memory_space<smem>>
    %2740 = vector.broadcast %2739 : f32 to vector<8x128xf32>
    %2741 = arith.mulf %2740, %2738 : vector<8x128xf32>
    %2742 = arith.addf %2733, %2741 : vector<8x128xf32>
    %2743 = arith.mulf %2742, %3 : vector<8x128xf32>
    %cst_429 = arith.constant dense<0.000000e+00> : vector<8xf32>
    %2744 = vector.multi_reduction <add>, %2743, %cst_429 [1] : vector<8x128xf32> to vector<8xf32>
    %2745 = vector.shape_cast %2744 : vector<8xf32> to vector<8x1xf32>
    %cst_430 = arith.constant dense<0.000000e+00> : vector<1xf32>
    %2746 = vector.multi_reduction <add>, %2745, %cst_430 [0] : vector<8x1xf32> to vector<1xf32>
    %2747 = vector.shape_cast %2746 : vector<1xf32> to vector<1x1xf32>
    %cst_431 = arith.constant 0.00140056026 : f32
    %2748 = vector.broadcast %cst_431 : f32 to vector<1x1xf32>
    %2749 = arith.mulf %2747, %2748 : vector<1x1xf32>
    %2750 = arith.mulf %2743, %2742 : vector<8x128xf32>
    %cst_432 = arith.constant dense<0.000000e+00> : vector<8xf32>
    %2751 = vector.multi_reduction <add>, %2750, %cst_432 [1] : vector<8x128xf32> to vector<8xf32>
    %2752 = vector.shape_cast %2751 : vector<8xf32> to vector<8x1xf32>
    %cst_433 = arith.constant dense<0.000000e+00> : vector<1xf32>
    %2753 = vector.multi_reduction <add>, %2752, %cst_433 [0] : vector<8x1xf32> to vector<1xf32>
    %2754 = vector.shape_cast %2753 : vector<1xf32> to vector<1x1xf32>
    %cst_434 = arith.constant 0.00140056026 : f32
    %2755 = vector.broadcast %cst_434 : f32 to vector<1x1xf32>
    %2756 = arith.mulf %2754, %2755 : vector<1x1xf32>
    %2757 = arith.mulf %2749, %2749 : vector<1x1xf32>
    %2758 = arith.subf %2756, %2757 : vector<1x1xf32>
    %c476 = arith.constant 476 : index
    %2759 = memref.load %arg2[%c476] : memref<481xf32, #tpu.memory_space<smem>>
    %cst_435 = arith.constant 9.99999974E-6 : f32
    %2760 = vector.broadcast %cst_435 : f32 to vector<1x1xf32>
    %2761 = arith.addf %2758, %2760 : vector<1x1xf32>
    %2762 = math.rsqrt %2761 : vector<1x1xf32>
    %2763 = vector.broadcast %2759 : f32 to vector<1x1xf32>
    %2764 = arith.mulf %2763, %2762 : vector<1x1xf32>
    %c477 = arith.constant 477 : index
    %2765 = memref.load %arg2[%c477] : memref<481xf32, #tpu.memory_space<smem>>
    %2766 = arith.mulf %2749, %2764 : vector<1x1xf32>
    %2767 = vector.broadcast %2765 : f32 to vector<1x1xf32>
    %2768 = arith.subf %2767, %2766 : vector<1x1xf32>
    %2769 = vector.broadcast %2764 : vector<1x1xf32> to vector<8x128xf32>
    %2770 = arith.mulf %2742, %2769 : vector<8x128xf32>
    %2771 = vector.broadcast %2768 : vector<1x1xf32> to vector<8x128xf32>
    %2772 = arith.addf %2770, %2771 : vector<8x128xf32>
    %c478 = arith.constant 478 : index
    %2773 = memref.load %arg2[%c478] : memref<481xf32, #tpu.memory_space<smem>>
    %2774 = vector.broadcast %2773 : f32 to vector<8x128xf32>
    %2775 = arith.mulf %2774, %2512 : vector<8x128xf32>
    %c479 = arith.constant 479 : index
    %2776 = memref.load %arg2[%c479] : memref<481xf32, #tpu.memory_space<smem>>
    %2777 = vector.broadcast %2776 : f32 to vector<8x128xf32>
    %2778 = arith.mulf %2777, %2516 : vector<8x128xf32>
    %2779 = arith.addf %2775, %2778 : vector<8x128xf32>
    %c480 = arith.constant 480 : index
    %2780 = memref.load %arg2[%c480] : memref<481xf32, #tpu.memory_space<smem>>
    %2781 = vector.broadcast %2780 : f32 to vector<8x128xf32>
    %2782 = arith.addf %2779, %2781 : vector<8x128xf32>
    %2783 = arith.addf %2772, %2782 : vector<8x128xf32>
    %cst_436 = arith.constant 0.000000e+00 : f32
    %2784 = vector.broadcast %cst_436 : f32 to vector<8x128xf32>
    %2785 = arith.maximumf %2783, %2784 : vector<8x128xf32>
    %2786 = arith.mulf %2785, %3 : vector<8x128xf32>
    %2787 = vector.extract_strided_slice %2786 {offsets = [0, 0], sizes = [1, 128], strides = [1, 1]} : vector<8x128xf32> to vector<1x128xf32>
    %2788 = vector.extract_strided_slice %2786 {offsets = [4, 0], sizes = [1, 128], strides = [1, 1]} : vector<8x128xf32> to vector<1x128xf32>
    %2789 = tpu.concatenate %2787, %2788 in 0 : vector<1x128xf32>, vector<1x128xf32> -> vector<2x128xf32>
    %c0_437 = arith.constant 0 : index
    %c0_438 = arith.constant 0 : index
    %2790 = vector.load %arg3[%c0_437, %c0_438] : memref<512x70xf32, #tpu.memory_space<vmem>>, vector<128x70xf32>
    %cst_439 = arith.constant dense<0.000000e+00> : vector<2x70xf32>
    %2791 = tpu.matmul %2789, %2790, %cst_439 {dimension_numbers = #tpu.dot_dimension_numbers<[1], [0], [0], [1], [0, 0, 1, 1], [], []>} : vector<2x128xf32>, vector<128x70xf32>, vector<2x70xf32> -> vector<2x70xf32>
    %2792 = vector.extract_strided_slice %2786 {offsets = [1, 0], sizes = [1, 128], strides = [1, 1]} : vector<8x128xf32> to vector<1x128xf32>
    %2793 = vector.extract_strided_slice %2786 {offsets = [5, 0], sizes = [1, 128], strides = [1, 1]} : vector<8x128xf32> to vector<1x128xf32>
    %2794 = tpu.concatenate %2792, %2793 in 0 : vector<1x128xf32>, vector<1x128xf32> -> vector<2x128xf32>
    %c128_440 = arith.constant 128 : index
    %c0_441 = arith.constant 0 : index
    %2795 = vector.load %arg3[%c128_440, %c0_441] : memref<512x70xf32, #tpu.memory_space<vmem>>, vector<128x70xf32>
    %cst_442 = arith.constant dense<0.000000e+00> : vector<2x70xf32>
    %2796 = tpu.matmul %2794, %2795, %cst_442 {dimension_numbers = #tpu.dot_dimension_numbers<[1], [0], [0], [1], [0, 0, 1, 1], [], []>} : vector<2x128xf32>, vector<128x70xf32>, vector<2x70xf32> -> vector<2x70xf32>
    %2797 = arith.addf %2791, %2796 : vector<2x70xf32>
    %2798 = vector.extract_strided_slice %2786 {offsets = [2, 0], sizes = [1, 128], strides = [1, 1]} : vector<8x128xf32> to vector<1x128xf32>
    %2799 = vector.extract_strided_slice %2786 {offsets = [6, 0], sizes = [1, 128], strides = [1, 1]} : vector<8x128xf32> to vector<1x128xf32>
    %2800 = tpu.concatenate %2798, %2799 in 0 : vector<1x128xf32>, vector<1x128xf32> -> vector<2x128xf32>
    %c256_443 = arith.constant 256 : index
    %c0_444 = arith.constant 0 : index
    %2801 = vector.load %arg3[%c256_443, %c0_444] : memref<512x70xf32, #tpu.memory_space<vmem>>, vector<128x70xf32>
    %cst_445 = arith.constant dense<0.000000e+00> : vector<2x70xf32>
    %2802 = tpu.matmul %2800, %2801, %cst_445 {dimension_numbers = #tpu.dot_dimension_numbers<[1], [0], [0], [1], [0, 0, 1, 1], [], []>} : vector<2x128xf32>, vector<128x70xf32>, vector<2x70xf32> -> vector<2x70xf32>
    %2803 = arith.addf %2797, %2802 : vector<2x70xf32>
    %2804 = vector.extract_strided_slice %2786 {offsets = [3, 0], sizes = [1, 128], strides = [1, 1]} : vector<8x128xf32> to vector<1x128xf32>
    %2805 = vector.extract_strided_slice %2786 {offsets = [7, 0], sizes = [1, 128], strides = [1, 1]} : vector<8x128xf32> to vector<1x128xf32>
    %2806 = tpu.concatenate %2804, %2805 in 0 : vector<1x128xf32>, vector<1x128xf32> -> vector<2x128xf32>
    %c384_446 = arith.constant 384 : index
    %c0_447 = arith.constant 0 : index
    %2807 = vector.load %arg3[%c384_446, %c0_447] : memref<512x70xf32, #tpu.memory_space<vmem>>, vector<128x70xf32>
    %cst_448 = arith.constant dense<0.000000e+00> : vector<2x70xf32>
    %2808 = tpu.matmul %2806, %2807, %cst_448 {dimension_numbers = #tpu.dot_dimension_numbers<[1], [0], [0], [1], [0, 0, 1, 1], [], []>} : vector<2x128xf32>, vector<128x70xf32>, vector<2x70xf32> -> vector<2x70xf32>
    %2809 = arith.addf %2803, %2808 : vector<2x70xf32>
    %2810 = vector.extract_strided_slice %2809 {offsets = [0, 0], sizes = [2, 35], strides = [1, 1]} : vector<2x70xf32> to vector<2x35xf32>
    %c0_449 = arith.constant 0 : index
    %c0_450 = arith.constant 0 : index
    %2811 = vector.load %arg4[%c0_449, %c0_450] : memref<1x35xf32, #tpu.memory_space<vmem>>, vector<1x35xf32>
    %2812 = vector.broadcast %2811 : vector<1x35xf32> to vector<2x35xf32>
    %2813 = arith.addf %2810, %2812 : vector<2x35xf32>
    %cst_451 = arith.constant 0.000000e+00 : f32
    %2814 = vector.broadcast %cst_451 : f32 to vector<2x35xf32>
    %2815 = arith.maximumf %2813, %2814 : vector<2x35xf32>
    %c0_452 = arith.constant 0 : index
    %c0_453 = arith.constant 0 : index
    %2816 = vector.load %arg5[%c0_452, %c0_453] : memref<35x16xf32, #tpu.memory_space<vmem>>, vector<35x16xf32>
    %cst_454 = arith.constant dense<0.000000e+00> : vector<2x16xf32>
    %2817 = tpu.matmul %2815, %2816, %cst_454 {dimension_numbers = #tpu.dot_dimension_numbers<[1], [0], [0], [1], [0, 0, 1, 1], [], []>} : vector<2x35xf32>, vector<35x16xf32>, vector<2x16xf32> -> vector<2x16xf32>
    %c0_455 = arith.constant 0 : index
    %c0_456 = arith.constant 0 : index
    %2818 = vector.load %arg6[%c0_455, %c0_456] : memref<1x16xf32, #tpu.memory_space<vmem>>, vector<1x16xf32>
    %2819 = vector.broadcast %2818 : vector<1x16xf32> to vector<2x16xf32>
    %2820 = arith.addf %2817, %2819 : vector<2x16xf32>
    %cst_457 = arith.constant 0.000000e+00 : f32
    %2821 = vector.broadcast %cst_457 : f32 to vector<2x16xf32>
    %2822 = arith.maximumf %2820, %2821 : vector<2x16xf32>
    %c0_458 = arith.constant 0 : index
    %c0_459 = arith.constant 0 : index
    %2823 = vector.load %arg7[%c0_458, %c0_459] : memref<16x4xf32, #tpu.memory_space<vmem>>, vector<16x4xf32>
    %cst_460 = arith.constant dense<0.000000e+00> : vector<2x4xf32>
    %2824 = tpu.matmul %2822, %2823, %cst_460 {dimension_numbers = #tpu.dot_dimension_numbers<[1], [0], [0], [1], [0, 0, 1, 1], [], []>} : vector<2x16xf32>, vector<16x4xf32>, vector<2x4xf32> -> vector<2x4xf32>
    %c0_461 = arith.constant 0 : index
    %c0_462 = arith.constant 0 : index
    %2825 = vector.load %arg8[%c0_461, %c0_462] : memref<1x4xf32, #tpu.memory_space<vmem>>, vector<1x4xf32>
    %2826 = vector.broadcast %2825 : vector<1x4xf32> to vector<2x4xf32>
    %2827 = arith.addf %2824, %2826 : vector<2x4xf32>
    %2828 = vector.extract_strided_slice %2809 {offsets = [0, 35], sizes = [2, 35], strides = [1, 1]} : vector<2x70xf32> to vector<2x35xf32>
    %c0_463 = arith.constant 0 : index
    %c0_464 = arith.constant 0 : index
    %2829 = vector.load %arg9[%c0_463, %c0_464] : memref<4x35xf32, #tpu.memory_space<vmem>>, vector<4x35xf32>
    %cst_465 = arith.constant dense<0.000000e+00> : vector<2x35xf32>
    %2830 = tpu.matmul %2827, %2829, %cst_465 {dimension_numbers = #tpu.dot_dimension_numbers<[1], [0], [0], [1], [0, 0, 1, 1], [], []>} : vector<2x4xf32>, vector<4x35xf32>, vector<2x35xf32> -> vector<2x35xf32>
    %2831 = arith.addf %2828, %2830 : vector<2x35xf32>
    %c0_466 = arith.constant 0 : index
    %c0_467 = arith.constant 0 : index
    %2832 = vector.load %arg10[%c0_466, %c0_467] : memref<1x35xf32, #tpu.memory_space<vmem>>, vector<1x35xf32>
    %2833 = vector.broadcast %2832 : vector<1x35xf32> to vector<2x35xf32>
    %2834 = arith.addf %2831, %2833 : vector<2x35xf32>
    %cst_468 = arith.constant 0.000000e+00 : f32
    %2835 = vector.broadcast %cst_468 : f32 to vector<2x35xf32>
    %2836 = arith.maximumf %2834, %2835 : vector<2x35xf32>
    %c0_469 = arith.constant 0 : index
    %c0_470 = arith.constant 0 : index
    %2837 = vector.load %arg11[%c0_469, %c0_470] : memref<35x16xf32, #tpu.memory_space<vmem>>, vector<35x16xf32>
    %cst_471 = arith.constant dense<0.000000e+00> : vector<2x16xf32>
    %2838 = tpu.matmul %2836, %2837, %cst_471 {dimension_numbers = #tpu.dot_dimension_numbers<[1], [0], [0], [1], [0, 0, 1, 1], [], []>} : vector<2x35xf32>, vector<35x16xf32>, vector<2x16xf32> -> vector<2x16xf32>
    %c0_472 = arith.constant 0 : index
    %c0_473 = arith.constant 0 : index
    %2839 = vector.load %arg12[%c0_472, %c0_473] : memref<1x16xf32, #tpu.memory_space<vmem>>, vector<1x16xf32>
    %2840 = vector.broadcast %2839 : vector<1x16xf32> to vector<2x16xf32>
    %2841 = arith.addf %2838, %2840 : vector<2x16xf32>
    %cst_474 = arith.constant 0.000000e+00 : f32
    %2842 = vector.broadcast %cst_474 : f32 to vector<2x16xf32>
    %2843 = arith.maximumf %2841, %2842 : vector<2x16xf32>
    %c0_475 = arith.constant 0 : index
    %c0_476 = arith.constant 0 : index
    %2844 = vector.load %arg13[%c0_475, %c0_476] : memref<16x4xf32, #tpu.memory_space<vmem>>, vector<16x4xf32>
    %cst_477 = arith.constant dense<0.000000e+00> : vector<2x4xf32>
    %2845 = tpu.matmul %2843, %2844, %cst_477 {dimension_numbers = #tpu.dot_dimension_numbers<[1], [0], [0], [1], [0, 0, 1, 1], [], []>} : vector<2x16xf32>, vector<16x4xf32>, vector<2x4xf32> -> vector<2x4xf32>
    %c0_478 = arith.constant 0 : index
    %c0_479 = arith.constant 0 : index
    %2846 = vector.load %arg14[%c0_478, %c0_479] : memref<1x4xf32, #tpu.memory_space<vmem>>, vector<1x4xf32>
    %2847 = vector.broadcast %2846 : vector<1x4xf32> to vector<2x4xf32>
    %2848 = arith.addf %2845, %2847 : vector<2x4xf32>
    %2849 = tpu.concatenate %2827, %2848 in 1 : vector<2x4xf32>, vector<2x4xf32> -> vector<2x8xf32>
    %c0_480 = arith.constant 0 : index
    %c0_481 = arith.constant 0 : index
    %2850 = vector.load %arg15[%c0_480, %c0_481] : memref<2x8xf32, #tpu.memory_space<vmem>>, vector<2x8xf32>
    tpu.vector_store %arg15[%c0_480, %c0_481], %2849 {strides = array<i32>} : memref<2x8xf32, #tpu.memory_space<vmem>>, vector<2x8xf32>,
    return
  }
}

</mosaic_0001>

<bundles_post_ra>
// kernel: forward.1
= control target key start
LH: loop header
LB: loop body
LE: loop exit
PB: predicated region body
PF: predicated region fallthrough
CT: control target
= control target key end

     0   :  { %s7808_s0 = inlined_call_operand.vmem [shape: f32[4,8,128], index: 0, kind: input, shape index: {}]   ;;  %s7809_s1 = inlined_call_operand.vmem [shape: f32[2,8,128], index: 1, kind: input, shape index: {}]   ;;  %s7810_s2 = inlined_call_operand.vmem [shape: f32[481], index: 2, kind: input, shape index: {}]   ;;  %s7811_s3 = inlined_call_operand.vmem [shape: f32[512,70], index: 3, kind: input, shape index: {}]   ;;  %s7812_s4 = inlined_call_operand.vmem [shape: f32[1,35], index: 4, kind: input, shape index: {}]   ;;  %s7813_s5 = inlined_call_operand.vmem [shape: f32[35,16], index: 5, kind: input, shape index: {}]   ;;  %s7814_s6 = inlined_call_operand.vmem [shape: f32[1,16], index: 6, kind: input, shape index: {}]   ;;  %s7815_s7 = inlined_call_operand.vmem [shape: f32[16,4], index: 7, kind: input, shape index: {}]   ;;  %s7816_s8 = inlined_call_operand.vmem [shape: f32[1,4], index: 8, kind: input, shape index: {}]   ;;  %s7817_s9 = inlined_call_operand.vmem [shape: f32[4,35], index: 9, kind: input, shape index: {}]   ;;  %s7818_s10 = inlined_call_operand.vmem [shape: f32[1,35], index: 10, kind: input, shape index: {}]   ;;  %s7819_s11 = inlined_call_operand.vmem [shape: f32[35,16], index: 11, kind: input, shape index: {}]   ;;  %s7820_s12 = inlined_call_operand.vmem [shape: f32[1,16], index: 12, kind: input, shape index: {}]   ;;  %s7821_s13 = inlined_call_operand.vmem [shape: f32[16,4], index: 13, kind: input, shape index: {}]   ;;  %s7822_s14 = inlined_call_operand.vmem [shape: f32[1,4], index: 14, kind: input, shape index: {}]   ;;  %s7823_s15 = inlined_call_operand.vmem [shape: f32[2,8], index: 15, kind: output, shape index: {}]  }
   0x1   :  { %8095 = sst [smem:[#allocation195_spill]] %s7808_s0 }
   0x2   :  { %8096 = sst [smem:[#allocation196_spill]] %s7809_s1 }
   0x3   :  { %8097 = sst [smem:[#allocation197_spill]] %s7811_s3 }
   0x4   :  { %8098 = sst [smem:[#allocation198_spill]] %s7812_s4 }
   0x5   :  { %8099 = sst [smem:[#allocation199_spill]] %s7813_s5 }
   0x6   :  { %8100 = sst [smem:[#allocation200_spill]] %s7814_s6 }
   0x7   :  { %8101 = sst [smem:[#allocation201_spill]] %s7815_s7 }
   0x8   :  { %8102 = sst [smem:[#allocation202_spill]] %s7816_s8 }
   0x9   :  { %8103 = sst [smem:[#allocation203_spill]] %s7817_s9 }
   0xa   :  { %8104 = sst [smem:[#allocation204_spill]] %s7818_s10 }
   0xb   :  { %8105 = sst [smem:[#allocation205_spill]] %s7819_s11 }
   0xc   :  { %8106 = sst [smem:[#allocation206_spill]] %s7820_s12 }
   0xd   :  { %8107 = sst [smem:[#allocation207_spill]] %s7821_s13 }
   0xe   :  { %8108 = sst [smem:[#allocation208_spill]] %s7822_s14 }
   0xf   :  { %8109 = sst [smem:[#allocation209_spill]] %s7823_s15 }
  0x10   :  { %20 = vsyncpa [#allocation3], 0  ;;  %s31_s20 = sshll.u32 %s7810_s2, 4  ;;  %s32_s20 = int_to_ptr.vmem [resolvable:$true] %s31_s20 }
  0x11   :  { %s4693_s21 = scalar_lea.vmem %s32_s20, 64  ;;  %p4698_p1 = scmp.lt.s32.totalorder %s32_s20, %s32_s20 }
  0x12   :  { %p4694_p0 = scmp.ne.s32.totalorder %s32_s20, %s4693_s21  ;;  %p4699_p2 = scmp.lt.s32.totalorder %s4693_s21, %s4693_s21 }
  0x14   :  { %p4700_p3 = por %p4699_p2, %p4698_p1 }
  0x16   :  { %p4701_p4 = pnand %p4700_p3, %p4694_p0 }
  0x18   :  { %4704 = shalt.err (!%p4701_p4)
}
  0x19   :  { %s4707_s22 = smov [#allocation2]  }
  0x1a   :  { %34 = dma.vmem_to_smem %s32_s20, 64, %s4707_s22, [#allocation3]  }
  0x1b   :  { %4705 = dma.done.wait [#allocation3], 64  }
  0x1c   :  { %4706 = vsyncadd [#allocation3], 4294967232 }
  0x1d   :  { %62 = sfence }
  0x1e   :  { %v4815_v0 = vld [vmem:[%s7808_s0] sm:$0xff]  ;;  %v4820_v1 = vld [vmem:[%s7808_s0 + $0x10] sm:$0xff]  ;;  %s7828_s26 = smov 127   ;;  %v4829_v2 = vld [vmem:[%s7808_s0 + $0x8] sm:$0xff]  ;;  %s7826_s16 = smov 108   ;;  %v66_v18 = vlaneseq  ;;  %vm4724_vm15 = vmmov 0  }
  0x1f   :  { %136 = vrot.lane.b32.xlu0 %v4815_v0, %s7828_s26  ;;  %144 = vrot.lane.b32.xlu1 %v4820_v1, %s7828_s26  ;;  %v4834_v3 = vld [vmem:[%s7808_s0 + $0x18] sm:$0xff]  ;;  %s7824_s17 = smov 107   ;;  %s75_s18 = sld [smem:[#allocation2]] }
  0x20   :  { %s3750_s19 = sld [smem:[#allocation2 + $0x4]]  ;;  %s4856_s20 = sld [smem:[#allocation2 + $0x8]]  ;;  %v4943_v31 = vand.u32 127, %v66_v18 }
  0x21   :  { %s4858_s21 = sld [smem:[#allocation2 + $0xc]]  ;;  %s4860_s22 = sld [smem:[#allocation2 + $0x10]] }
  0x22   :  { %s4862_s23 = sld [smem:[#allocation2 + $0x14]]  ;;  %s4864_s24 = sld [smem:[#allocation2 + $0x20]]  ;;  %vm135_vm0 = vcmp.ge.s32.totalorder %v4943_v31, 127  ;;  %vm216_vm1 = vcmp.ge.s32.totalorder %v4943_v31, 108  ;;  %vm297_vm2 = vcmp.ge.s32.totalorder %v4943_v31, 107  ;;  %vm518_vm3 = vcmp.ge.s32.totalorder %v4943_v31, 42 }
  0x23   :  { %140 = vrot.lane.b32.xlu0 %v4829_v2, %s7828_s26  ;;  %148 = vrot.lane.b32.xlu1 %v4834_v3, %s7828_s26  ;;  %s4866_s25 = sld [smem:[#allocation2 + $0x24]]  ;;  %s4868_s2 = sld [smem:[#allocation2 + $0x30]]  ;;  %vm595_vm4 = vcmp.ge.s32.totalorder %v4943_v31, 41  ;;  %vm676_vm5 = vcmp.ge.s32.totalorder %v4943_v31, 40  ;;  %vm757_vm6 = vcmp.ge.s32.totalorder %v4943_v31, 39  ;;  %vm838_vm7 = vcmp.ge.s32.totalorder %v4943_v31, 22 }
  0x24   :  { %s4870_s27 = sld [smem:[#allocation2 + $0x34]]  ;;  %s4872_s28 = sld [smem:[#allocation2 + $0x18]]  ;;  %vm919_vm8 = vcmp.ge.s32.totalorder %v4943_v31, 21  ;;  %vm1000_vm9 = vcmp.ge.s32.totalorder %v4943_v31, 20  ;;  %vm1081_vm10 = vcmp.ge.s32.totalorder %v4943_v31, 19  ;;  %vm1162_vm11 = vcmp.ge.s32.totalorder %v4943_v31, 2 }
  0x25   :  { %s4874_s29 = sld [smem:[#allocation2 + $0x1c]]  ;;  %s4876_s30 = sld [smem:[#allocation2 + $0x28]]  ;;  %v76_v4 = vstv %s75_s18  ;;  %vm1243_vm12 = vcmp.ge.s32.totalorder %v4943_v31, 1  ;;  %vm1468_vm13 = vcmp.ge.s32.totalorder %v4943_v31, 110  ;;  %vm1549_vm14 = vcmp.ge.s32.totalorder %v4943_v31, 109 }
  0x26   :  { %v79_v5 = vstv %s3750_s19  ;;  %s4882_s26 = sld [smem:[#allocation2 + $0x3c]]  ;;  %s4884_s15 = sld [smem:[#allocation2 + $0x1]]  ;;  %v83_v7 = vstv %s4856_s20  ;;  %v77_v8 = vmul.f32 %v76_v4, %v4815_v0 }
  0x27   :  { %217 = vrot.lane.b32.xlu0 %v4815_v0, %s7826_s16  ;;  %221 = vrot.lane.b32.xlu1 %v4829_v2, %s7826_s16  ;;  %s4886_s14 = sld [smem:[#allocation2 + $0x11]]  ;;  %v80_v6 = vmul.f32 %v4829_v2, %v79_v5  ;;  %v91_v9 = vstv %s4860_s22  ;;  %s4909_s8 = sld [smem:[#allocation2 + $0x5]]  ;;  %v84_v15 = vmul.f32 %v4820_v1, %v83_v7  ;;  %v87_v16 = vstv %s4858_s21 }
  0x28   :  { %s4888_s12 = sld [smem:[#allocation2 + $0x21]]  ;;  %v94_v10 = vstv %s4862_s23  ;;  %v106_v11 = vstv %s4864_s24  ;;  %s4911_s20 = sld [smem:[#allocation2 + $0x15]]  ;;  %v92_v22 = vmul.f32 %v91_v9, %v4815_v0  ;;  %v88_v28 = vmul.f32 %v4834_v3, %v87_v16 }
  0x29   :  { %s4890_s13 = sld [smem:[#allocation2 + $0x31]]  ;;  %v109_v12 = vstv %s4866_s25  ;;  %v121_v13 = vstv %s4868_s2  ;;  %s4916_s22 = sld [smem:[#allocation2 + $0x25]]  ;;  %v95_v19 = vmul.f32 %v4829_v2, %v94_v10  ;;  %v81_v21 = vadd.f32 %v80_v6, %v77_v8 }
  0x2a   :  { %s4895_s18 = sld [smem:[#allocation2 + $0x9]]  ;;  %v124_v14 = vstv %s4870_s27  ;;  %v98_v17 = vstv %s4872_s28  ;;  %s4918_s23 = sld [smem:[#allocation2 + $0x35]]  ;;  %v110_v23 = vmul.f32 %v4829_v2, %v109_v12  ;;  %v107_v25 = vmul.f32 %v106_v11, %v4815_v0 }
  0x2b   :  { %225 = vrot.lane.b32.xlu0 %v4820_v1, %s7826_s16  ;;  %229 = vrot.lane.b32.xlu1 %v4834_v3, %s7826_s16  ;;  %s4880_s16 = sld [smem:[#allocation2 + $0x38]]  ;;  %s4897_s19 = sld [smem:[#allocation2 + $0x19]]  ;;  %v113_v20 = vstv %s4876_s30  ;;  %v125_v24 = vmul.f32 %v4829_v2, %v124_v14  ;;  %v122_v26 = vmul.f32 %v121_v13, %v4815_v0  ;;  %v99_v29 = vmul.f32 %v4820_v1, %v98_v17 }
  0x2c   :  { %8110 = sst [smem:[#allocation5_spill]] %s4884_s15  ;;  %s4901_s11 = sld [smem:[#allocation2 + $0x29]]  ;;  %v102_v30 = vstv %s4874_s29  ;;  %v114_v32 = vmul.f32 %v4820_v1, %v113_v20  ;;  %v85_v34 = vadd.f32 %v84_v15, %v81_v21  ;;  %v96_v35 = vadd.f32 %v95_v19, %v92_v22 }
  0x2d   :  { %8111 = sst [smem:[#allocation6_spill]] %s4886_s14  ;;  %s4923_s24 = sld [smem:[#allocation2 + $0xd]]  ;;  %v132_v37 = vstv %s4882_s26  ;;  %v111_v38 = vadd.f32 %v110_v23, %v107_v25  ;;  %v126_v39 = vadd.f32 %v125_v24, %v122_v26  ;;  %v103_v40 = vmul.f32 %v4834_v3, %v102_v30 }
  0x2e   :  { %s4903_s10 = sld [smem:[#allocation2 + $0x39]]  ;;  %s4925_s25 = sld [smem:[#allocation2 + $0x1d]]  ;;  %v133_v42 = vmul.f32 %v4834_v3, %v132_v37  ;;  %v153_v43 = vstv %s4884_s15  ;;  %v169_v44 = vstv %s4886_s14  ;;  %v100_v45 = vadd.f32 %v99_v29, %v96_v35 }
  0x2f   :  { %298 = vrot.lane.b32.xlu0 %v4815_v0, %s7824_s17  ;;  %302 = vrot.lane.b32.xlu1 %v4829_v2, %s7824_s17  ;;  %s4931_s21 = sld [smem:[#allocation2 + $0x2d]]  ;;  %s4936_s27 = sld [smem:[#allocation2 + $0x2]]  ;;  %v185_v46 = vstv %s4888_s12  ;;  %v4980_v47 = vadd.f32 %v88_v28, %v85_v34  ;;  %v115_v48 = vadd.f32 %v114_v32, %v111_v38  ;;  %v201_v50 = vstv %s4890_s13 }
  0x30   :  { %8112 = sst [smem:[#allocation7_spill]] %s4918_s23  ;;  %s4933_s2 = sld [smem:[#allocation2 + $0x3d]]  ;;  %v161_v51 = vstv %s4895_s18  ;;  %v157_v55 = vstv %s4909_s8  ;;  %v173_v56 = vstv %s4911_s20  ;;  %v189_v57 = vstv %s4916_s22 }
  0x31   :  { %v128_v27 = vstv %s4880_s16  ;;  %s4938_s28 = sld [smem:[#allocation2 + $0x12]]  ;;  %s4951_s16 = sld [smem:[#allocation2 + $0x6]]  ;;  %v177_v52 = vstv %s4897_s19  ;;  %v104_v58 = vadd.f32 %v103_v40, %v100_v45  ;;  %v205_v59 = vstv %s4918_s23 }
  0x32   :  { %s4945_s30 = sld [smem:[#allocation2 + $0x22]]  ;;  %s4953_s6 = sld [smem:[#allocation2 + $0x16]]  ;;  %v129_v36 = vmul.f32 %v4820_v1, %v128_v27  ;;  %v193_v53 = vstv %s4901_s11 }
  0x33   :  { %306 = vrot.lane.b32.xlu0 %v4820_v1, %s7824_s17  ;;  %310 = vrot.lane.b32.xlu1 %v4834_v3, %s7824_s17  ;;  %s4878_s17 = sld [smem:[#allocation2 + $0x2c]]  ;;  %8113 = sst [smem:[#allocation8_spill]] %s4923_s24  ;;  %v165_v60 = vstv %s4923_s24 }
  0x34   :  { %8114 = sst [smem:[#allocation9_spill]] %s4925_s25  ;;  %s4947_s9 = sld [smem:[#allocation2 + $0x32]]  ;;  %v130_v49 = vadd.f32 %v129_v36, %v126_v39  ;;  %v209_v54 = vstv %s4903_s10  ;;  %v181_v61 = vstv %s4925_s25 }
  0x35   :  { %s4957_s29 = sld [smem:[#allocation2 + $0x26]]  ;;  %s4961_s4 = sld [smem:[#allocation2 + $0xa]]  ;;  %v197_v0 = vstv %s4931_s21  ;;  %v234_v2 = vstv %s4936_s27 }
  0x36   :  { %8115 = sst [smem:[#allocation10_spill]] %s4933_s2  ;;  %s4959_s7 = sld [smem:[#allocation2 + $0x36]]  ;;  %v134_v63 = vadd.f32 %v133_v42, %v130_v49  ;;  %v213_v1 = vstv %s4933_s2 }
  0x37   :  { %s4967_s5 = sld [smem:[#allocation2 + $0x2a]]  ;;  %s4975_s3 = sld [smem:[#allocation2 + $0xe]]  ;;  %v238_v6 = vstv %s4951_s16 }
  0x38   :  { %8116 = sst [smem:[#allocation11_spill]] %s4945_s30  ;;  %s4969_s26 = sld [smem:[#allocation2 + $0x3a]]  ;;  %v266_v4 = vstv %s4945_s30  ;;  %v254_v7 = vstv %s4953_s6 }
  0x39   :  { %v117_v33 = vstv %s4878_s17  ;;  %s4963_s17 = sld [smem:[#allocation2 + $0x1a]]  ;;  %s4977_s0 = sld [smem:[#allocation2 + $0x1e]] }
  0x3a   :  { %8117 = sst [smem:[#allocation12_spill]] %s4947_s9  ;;  %v118_v41 = vmul.f32 %v4834_v3, %v117_v33  ;;  %s4982_s1 = sld [smem:[#allocation2 + $0x2e]]  ;;  %v250_v3 = vstv %s4938_s28  ;;  %v282_v5 = vstv %s4947_s9 }
  0x3b   :  { %s4984_s14 = sld [smem:[#allocation2 + $0x3e]]  ;;  %s4990_s15 = sld [smem:[#allocation2 + $0x3]]  ;;  %v270_v8 = vstv %s4957_s29  ;;  %v242_v12 = vstv %s4961_s4 }
  0x3c   :  { %s4998_s12 = sld [smem:[#allocation2 + $0x23]]  ;;  %s5005_s13 = sld [smem:[#allocation2 + $0x7]]  ;;  %v119_v62 = vadd.f32 %v118_v41, %v115_v48  ;;  %v286_v9 = vstv %s4959_s7 }
  0x3d   :  { %s5007_s10 = sld [smem:[#allocation2 + $0x17]]  ;;  %s5019_s24 = sld [smem:[#allocation2 + $0xb]]  ;;  %v274_v14 = vstv %s4967_s5  ;;  %v246_v18 = vstv %s4975_s3 }
  0x3e   :  { %s5011_s18 = sld [smem:[#allocation2 + $0x27]]  ;;  %s5021_s23 = sld [smem:[#allocation2 + $0x1b]]  ;;  %v290_v15 = vstv %s4969_s26 }
  0x3f   :  { %8118 = sst [smem:[#allocation13_spill]] %s4977_s0  ;;  %s4992_s0 = sld [smem:[#allocation2 + $0x13]]  ;;  %v258_v13 = vstv %s4963_s17 }
  0x40   :  { %s5013_s19 = sld [smem:[#allocation2 + $0x37]]  ;;  %s8122_s25 = sld [smem:[#allocation13_spill]]  ;;  %v278_v20 = vstv %s4982_s1 }
  0x41   :  { %8119 = sst [smem:[#allocation14_spill]] %s4984_s14  ;;  %s5000_s14 = sld [smem:[#allocation2 + $0x33]]  ;;  %v315_v22 = vstv %s4990_s15 }
  0x42   :  { %s8123_s2 = sld [smem:[#allocation14_spill]]  ;;  %v347_v26 = vstv %s4998_s12  ;;  %v319_v35 = vstv %s5005_s13  ;;  %s5102_s6 = sld [smem:[#allocation2 + $0x2b]] }
  0x43   :  { %v335_v36 = vstv %s5007_s10  ;;  %v323_v41 = vstv %s5019_s24  ;;  %s5112_s7 = sld [smem:[#allocation2 + $0xf]]  ;;  %s5128_s1 = sld [smem:[#allocation2 + $0x3b]] }
  0x44   :  { %v351_v37 = vstv %s5011_s18  ;;  %v339_v42 = vstv %s5021_s23  ;;  %s5130_s3 = sld [smem:[#allocation2 + $0x2f]]  ;;  %s8134_s22 = sld [smem:[#allocation196_spill]] }
  0x45   :  { %v331_v23 = vstv %s4992_s0  ;;  %s3812_s0 = sld [smem:[#allocation2 + $0x3f]]  ;;  %s3813_s23 = sld [smem:[#allocation2 + $0x140]] }
  0x46   :  { %8121 = sst [smem:[#allocation16_spill]] %s5013_s19  ;;  %v262_v19 = vstv %s8122_s25  ;;  %v367_v38 = vstv %s5013_s19  ;;  %s3814_s24 = sld [smem:[#allocation2 + $0x144]] }
  0x47   :  { %8120 = sst [smem:[#allocation15_spill]] %s5000_s14  ;;  %v363_v27 = vstv %s5000_s14  ;;  %s5114_s14 = sld [smem:[#allocation2 + $0x1f]] }
  0x48   :  { %v294_v21 = vstv %s8123_s2  ;;  %s3815_s25 = sld [smem:[#allocation2 + $0x141]]  ;;  %s3816_s21 = sld [smem:[#allocation2 + $0x145]] }
  0x49   :  { %s3817_s2 = sld [smem:[#allocation2 + $0x142]]  ;;  %s3819_s27 = sld [smem:[#allocation2 + $0x143]] }
  0x4a   :  { %s3818_s28 = sld [smem:[#allocation2 + $0x146]]  ;;  %s3820_s16 = sld [smem:[#allocation2 + $0x147]] }
  0x4b   :  { %s7850_s29 = smov 42   ;;  %s5198_s17 = sld [smem:[#allocation2 + $0x4a]] }
  0x4c   :  { %s5202_s26 = sld [smem:[#allocation2 + $0x8a]]  ;;  %s7857_s30 = smov 41  }
  0x4d   :  { %s5204_s12 = sld [smem:[#allocation2 + $0xca]]  ;;  %s7855_s5 = smov 40  }
  0x4e   :  { %s5206_s13 = sld [smem:[#allocation2 + $0x5a]]  ;;  %s5252_s15 = sld [smem:[#allocation2 + $0x80]] }
  0x4f   :  { %s5208_s10 = sld [smem:[#allocation2 + $0x10a]]  ;;  %s5254_s20 = sld [smem:[#allocation2 + $0xc0]] }
  0x50   :  { %s5213_s18 = sld [smem:[#allocation2 + $0x9a]] }
  0x51   :  { %s5215_s19 = sld [smem:[#allocation2 + $0xda]] }
  0x52   :  { %8135 = sst [smem:[#allocation13_spill]] %s5202_s26  ;;  %s5217_s9 = sld [smem:[#allocation2 + $0x11a]] }
  0x53   :  { %8136 = sst [smem:[#allocation14_spill]] %s5204_s12  ;;  %s5223_s8 = sld [smem:[#allocation2 + $0x6a]] }
  0x54   :  { %8137 = sst [smem:[#allocation5_spill]] %s5206_s13  ;;  %s5225_s11 = sld [smem:[#allocation2 + $0xaa]] }
  0x55   :  { %8138 = sst [smem:[#allocation6_spill]] %s5208_s10  ;;  %s5236_s4 = sld [smem:[#allocation2 + $0xba]] }
  0x56   :  { %8139 = sst [smem:[#allocation7_spill]] %s5213_s18 }
  0x57   :  { %8140 = sst [smem:[#allocation8_spill]] %s5215_s19 }
  0x58   :  { %8141 = sst [smem:[#allocation9_spill]] %s5217_s9 }
  0x59   :  { %8142 = sst [smem:[#allocation10_spill]] %s5223_s8 }
  0x5a   :  { %8143 = sst [smem:[#allocation11_spill]] %s5225_s11 }
  0x5b   :  { %8147 = sst [smem:[#allocation17_spill]] %s5236_s4 }
  0x5c   :  { %8151 = sst [smem:[#allocation21_spill]] %s5252_s15 }
  0x5d   :  { %8152 = sst [smem:[#allocation22_spill]] %s5254_s20 }
  0x91   :  { %v137_v10 = vpop.permute.xlu0 %136  ;;  %v145_v11 = vpop.permute.xlu1 %144 }
  0x92   :  { %v138_v16 = vrot.slane %v137_v10, 1  ;;  %v146_v17 = vrot.slane %v145_v11, 1 }
  0x94   :  { %v139_v24 = vsel %vm135_vm0, %v138_v16, %v137_v10  ;;  %v147_v25 = vsel %vm135_vm0, %v146_v17, %v145_v11 }
  0x95   :  { %v154_v28 = vmul.f32 %v153_v43, %v139_v24  ;;  %v170_v29 = vmul.f32 %v169_v44, %v139_v24  ;;  %v186_v30 = vmul.f32 %v185_v46, %v139_v24  ;;  %v202_v32 = vmul.f32 %v201_v50, %v139_v24  ;;  %v141_v33 = vpop.permute.xlu0 %140  ;;  %v149_v34 = vpop.permute.xlu1 %148 }
  0x96   :  { %v162_v39 = vmul.f32 %v161_v51, %v147_v25  ;;  %v178_v40 = vmul.f32 %v177_v52, %v147_v25  ;;  %v194_v45 = vmul.f32 %v193_v53, %v147_v25  ;;  %v210_v43 = vmul.f32 %v209_v54, %v147_v25 }
  0x97   :  { %v142_v44 = vrot.slane %v141_v33, 1  ;;  %v150_v46 = vrot.slane %v149_v34, 1  ;;  %v155_v48 = vadd.f32 %v154_v28, %v4980_v47  ;;  %v171_v49 = vadd.f32 %v170_v29, %v104_v58 }
  0x98   :  { %v187_v50 = vadd.f32 %v186_v30, %v119_v62  ;;  %v203_v51 = vadd.f32 %v202_v32, %v134_v63 }
  0x99   :  { %v218_v52 = vpop.permute.xlu0 %217  ;;  %v222_v10 = vpop.permute.xlu1 %221  ;;  %v143_v11 = vsel %vm135_vm0, %v142_v44, %v141_v33  ;;  %v151_v53 = vsel %vm135_vm0, %v150_v46, %v149_v34 }
  0x9a   :  { %v219_v54 = vrot.slane %v218_v52, 1  ;;  %v223_v16 = vrot.slane %v222_v10, 1  ;;  %v158_v17 = vmul.f32 %v157_v55, %v143_v11  ;;  %v174_v24 = vmul.f32 %v173_v56, %v143_v11 }
  0x9b   :  { %v190_v47 = vmul.f32 %v189_v57, %v143_v11  ;;  %v206_v58 = vmul.f32 %v205_v59, %v143_v11  ;;  %v166_v62 = vmul.f32 %v165_v60, %v151_v53  ;;  %v182_v63 = vmul.f32 %v181_v61, %v151_v53 }
  0x9c   :  { %v198_v25 = vmul.f32 %v197_v0, %v151_v53  ;;  %v214_v28 = vmul.f32 %v213_v1, %v151_v53  ;;  %v159_v29 = vadd.f32 %v158_v17, %v155_v48  ;;  %v175_v30 = vadd.f32 %v174_v24, %v171_v49 }
  0x9d   :  { %v191_v55 = vadd.f32 %v190_v47, %v187_v50  ;;  %v207_v56 = vadd.f32 %v206_v58, %v203_v51  ;;  %v226_v32 = vpop.permute.xlu0 %225  ;;  %v230_v57 = vpop.permute.xlu1 %229  ;;  %v220_v59 = vsel %vm216_vm1, %v219_v54, %v218_v52  ;;  %v224_v60 = vsel %vm216_vm1, %v223_v16, %v222_v10 }
  0x9e   :  { %v227_v61 = vrot.slane %v226_v32, 1  ;;  %v231_v0 = vrot.slane %v230_v57, 1  ;;  %v163_v1 = vadd.f32 %v162_v39, %v159_v29  ;;  %v179_v33 = vadd.f32 %v178_v40, %v175_v30 }
  0x9f   :  { %v195_v34 = vadd.f32 %v194_v45, %v191_v55  ;;  %v211_v44 = vadd.f32 %v210_v43, %v207_v56  ;;  %v235_v46 = vmul.f32 %v234_v2, %v220_v59  ;;  %v251_v48 = vmul.f32 %v250_v3, %v220_v59 }
  0xa0   :  { %v267_v49 = vmul.f32 %v266_v4, %v220_v59  ;;  %v283_v50 = vmul.f32 %v282_v5, %v220_v59  ;;  %v167_v51 = vadd.f32 %v166_v62, %v163_v1  ;;  %v183_v52 = vadd.f32 %v182_v63, %v179_v33 }
  0xa1   :  { %v199_v10 = vadd.f32 %v198_v25, %v195_v34  ;;  %v215_v11 = vadd.f32 %v214_v28, %v211_v44  ;;  %v299_v53 = vpop.permute.xlu0 %298  ;;  %v303_v54 = vpop.permute.xlu1 %302  ;;  %v239_v39 = vmul.f32 %v238_v6, %v224_v60  ;;  %v255_v40 = vmul.f32 %v254_v7, %v224_v60 }
  0xa2   :  { %v271_v45 = vmul.f32 %v270_v8, %v224_v60  ;;  %v287_v2 = vmul.f32 %v286_v9, %v224_v60  ;;  %v236_v3 = vadd.f32 %v235_v46, %v167_v51  ;;  %v252_v4 = vadd.f32 %v251_v48, %v183_v52 }
  0xa3   :  { %v268_v5 = vadd.f32 %v267_v49, %v199_v10  ;;  %v284_v43 = vadd.f32 %v283_v50, %v215_v11  ;;  %v228_v16 = vsel %vm216_vm1, %v227_v61, %v226_v32  ;;  %v232_v6 = vsel %vm216_vm1, %v231_v0, %v230_v57 }
  0xa4   :  { %v300_v7 = vrot.slane %v299_v53, 1  ;;  %v304_v17 = vrot.slane %v303_v54, 1  ;;  %v240_v8 = vadd.f32 %v239_v39, %v236_v3  ;;  %v256_v9 = vadd.f32 %v255_v40, %v252_v4 }
  0xa5   :  { %v272_v24 = vadd.f32 %v271_v45, %v268_v5  ;;  %v288_v47 = vadd.f32 %v287_v2, %v284_v43  ;;  %v243_v58 = vmul.f32 %v242_v12, %v228_v16  ;;  %v259_v62 = vmul.f32 %v258_v13, %v228_v16  ;;  %v307_v28 = vpop.permute.xlu0 %306  ;;  %v311_v29 = vpop.permute.xlu1 %310 }
  0xa6   :  { %v275_v63 = vmul.f32 %v274_v14, %v228_v16  ;;  %v291_v25 = vmul.f32 %v290_v15, %v228_v16  ;;  %v247_v30 = vmul.f32 %v246_v18, %v232_v6  ;;  %v263_v55 = vmul.f32 %v262_v19, %v232_v6 }
  0xa7   :  { %v279_v56 = vmul.f32 %v278_v20, %v232_v6  ;;  %v295_v12 = vmul.f32 %v294_v21, %v232_v6  ;;  %v244_v13 = vadd.f32 %v243_v58, %v240_v8  ;;  %v260_v14 = vadd.f32 %v259_v62, %v256_v9  ;;  %v5164_v6 = vld [vmem:[%s8134_s22] sm:$0xff]  ;;  %s5278_s22 = sld [smem:[#allocation2 + $0x41]] }
  0xa8   :  { %v276_v15 = vadd.f32 %v275_v63, %v272_v24  ;;  %v292_v32 = vadd.f32 %v291_v25, %v288_v47  ;;  %v301_v57 = vsel %vm297_vm2, %v300_v7, %v299_v53  ;;  %v305_v18 = vsel %vm297_vm2, %v304_v17, %v303_v54 }
  0xa9   :  { %v308_v19 = vrot.slane %v307_v28, 1  ;;  %v312_v20 = vrot.slane %v311_v29, 1  ;;  %v248_v21 = vadd.f32 %v247_v30, %v244_v13  ;;  %v264_v59 = vadd.f32 %v263_v55, %v260_v14 }
  0xaa   :  { %v280_v60 = vadd.f32 %v279_v56, %v276_v15  ;;  %v296_v61 = vadd.f32 %v295_v12, %v292_v32  ;;  %v316_v0 = vmul.f32 %v315_v22, %v301_v57  ;;  %v332_v1 = vmul.f32 %v331_v23, %v301_v57 }
  0xab   :  { %v348_v33 = vmul.f32 %v347_v26, %v301_v57  ;;  %v364_v34 = vmul.f32 %v363_v27, %v301_v57  ;;  %v320_v44 = vmul.f32 %v319_v35, %v305_v18  ;;  %v336_v46 = vmul.f32 %v335_v36, %v305_v18 }
  0xac   :  { %v352_v48 = vmul.f32 %v351_v37, %v305_v18  ;;  %v355_v49 = vstv %s5102_s6  ;;  %v317_v50 = vadd.f32 %v316_v0, %v248_v21  ;;  %v333_v51 = vadd.f32 %v332_v1, %v264_v59  ;;  %s5230_s6 = sld [smem:[#allocation2 + $0xea]] }
  0xad   :  { %v349_v22 = vadd.f32 %v348_v33, %v280_v60  ;;  %v365_v23 = vadd.f32 %v364_v34, %v296_v61  ;;  %v309_v26 = vsel %vm297_vm2, %v308_v19, %v307_v28  ;;  %v327_v27 = vstv %s5112_s7  ;;  %s5232_s7 = sld [smem:[#allocation2 + $0x12a]]  ;;  %8162 = sst [smem:[#allocation32_spill]] %s5278_s22 }
  0xae   :  { %v343_v35 = vstv %s5114_s14  ;;  %v313_v36 = vsel %vm297_vm2, %v312_v20, %v311_v29  ;;  %v321_v52 = vadd.f32 %v320_v44, %v317_v50  ;;  %v337_v10 = vadd.f32 %v336_v46, %v333_v51  ;;  %s5234_s14 = sld [smem:[#allocation2 + $0x7a]]  ;;  %s5296_s22 = sld [smem:[#allocation2 + $0x130]] }
  0xaf   :  { %v353_v37 = vadd.f32 %v352_v48, %v349_v22  ;;  %v368_v11 = vmul.f32 %v367_v38, %v305_v18  ;;  %v324_v53 = vmul.f32 %v323_v41, %v309_v26  ;;  %v340_v54 = vmul.f32 %v339_v42, %v309_v26 }
  0xb0   :  { %v356_v39 = vmul.f32 %v355_v49, %v309_v26  ;;  %v371_v45 = vstv %s5128_s1  ;;  %v359_v2 = vstv %s5130_s3  ;;  %v328_v3 = vmul.f32 %v327_v27, %v313_v36  ;;  %s5238_s1 = sld [smem:[#allocation2 + $0xfa]] }
  0xb1   :  { %v369_v40 = vadd.f32 %v368_v11, %v365_v23  ;;  %v344_v4 = vmul.f32 %v343_v35, %v313_v36  ;;  %v341_v5 = vadd.f32 %v340_v54, %v337_v10  ;;  %v325_v43 = vadd.f32 %v324_v53, %v321_v52  ;;  %s5240_s3 = sld [smem:[#allocation2 + $0x13a]] }
  0xb2   :  { %v357_v16 = vadd.f32 %v356_v39, %v353_v37  ;;  %v372_v7 = vmul.f32 %v371_v45, %v309_v26  ;;  %v360_v38 = vmul.f32 %v359_v2, %v313_v36  ;;  %v375_v42 = vstv %s3812_s0  ;;  %8144 = sst [smem:[#allocation12_spill]] %s5230_s6  ;;  %s5250_s0 = sld [smem:[#allocation2 + $0x40]] }
  0xb3   :  { %v5166_v17 = vadd.f32 %v344_v4, %v341_v5  ;;  %v5168_v41 = vadd.f32 %v328_v3, %v325_v43  ;;  %v376_v58 = vmul.f32 %v375_v42, %v313_v36  ;;  %8145 = sst [smem:[#allocation15_spill]] %s5232_s7 }
  0xb4   :  { %v5174_v24 = vadd.f32 %v360_v38, %v357_v16  ;;  %v373_v47 = vadd.f32 %v372_v7, %v369_v40  ;;  %8146 = sst [smem:[#allocation16_spill]] %s5234_s14 }
  0xb5   :  { %v411_v8 = vmul.f32 %v5166_v17, %v5164_v6  ;;  %v378_v9 = vmul.f32 %v5168_v41, %v5164_v6  ;;  %8170 = sst [smem:[#allocation39_spill]] %s5296_s22  ;;  %s5316_s22 = sld [smem:[#allocation2 + $0x111]] }
  0xb6   :  { %v444_v62 = vmul.f32 %v5174_v24, %v5164_v6  ;;  %v5179_v25 = vadd.f32 %v376_v58, %v373_v47  ;;  %8148 = sst [smem:[#allocation18_spill]] %s5238_s1 }
  0xb7   :  { %412 = vadd.xlane.f32.xlu1 %v411_v8  ;;  %379 = vadd.xlane.f32.xlu0 %v378_v9  ;;  %v388_v63 = vmul.f32 %v378_v9, %v5168_v41  ;;  %v421_v29 = vmul.f32 %v411_v8, %v5166_v17  ;;  %8149 = sst [smem:[#allocation19_spill]] %s5240_s3 }
  0xb8   :  { %v477_v28 = vmul.f32 %v5179_v25, %v5164_v6  ;;  %v454_v30 = vmul.f32 %v444_v62, %v5174_v24  ;;  %8150 = sst [smem:[#allocation20_spill]] %s5250_s0 }
  0xba   :  { %v487_v55 = vmul.f32 %v477_v28, %v5179_v25 }
  0xbb   :  { %445 = vadd.xlane.f32.xlu1 %v444_v62  ;;  %389 = vadd.xlane.f32.xlu0 %v388_v63  ;;  %8178 = sst [smem:[#allocation47_spill]] %s5316_s22  ;;  %s5334_s22 = sld [smem:[#allocation2 + $0xf1]] }
  0xbf   :  { %478 = vadd.xlane.f32.xlu1 %v477_v28  ;;  %422 = vadd.xlane.f32.xlu0 %v421_v29 }
  0xc1   :  { %8186 = sst [smem:[#allocation54_spill]] %s5334_s22  ;;  %s5354_s22 = sld [smem:[#allocation2 + $0xd2]] }
  0xc3   :  { %455 = vadd.xlane.f32.xlu0 %v454_v30 }
  0xc7   :  { %488 = vadd.xlane.f32.xlu0 %v487_v55  ;;  %8194 = sst [smem:[#allocation62_spill]] %s5354_s22  ;;  %s5372_s22 = sld [smem:[#allocation2 + $0xb2]] }
  0xcd   :  { %8202 = sst [smem:[#allocation69_spill]] %s5372_s22  ;;  %s5392_s22 = sld [smem:[#allocation2 + $0x93]] }
  0xd3   :  { %8210 = sst [smem:[#allocation77_spill]] %s5392_s22  ;;  %s5410_s22 = sld [smem:[#allocation2 + $0x73]] }
  0xd9   :  { %8218 = sst [smem:[#allocation84_spill]] %s5410_s22  ;;  %s5430_s22 = sld [smem:[#allocation2 + $0x54]] }
  0xdf   :  { %8226 = sst [smem:[#allocation92_spill]] %s5430_s22  ;;  %s5700_s22 = sld [smem:[#allocation2 + $0xc9]] }
  0xe5   :  { %8381 = sst [smem:[#allocation162_spill]] %s5700_s22  ;;  %s5733_s22 = sld [smem:[#allocation2 + $0xa9]] }
  0xeb   :  { %8396 = sst [smem:[#allocation13_spill]] %s5733_s22  ;;  %s8043_s22 = smov 109  }
 0x144   :  { %v413_v56 = vpop.xlane.xlu1 %412  ;;  %v380_v12 = vpop.xlane.xlu0 %379 }
 0x145   :  { %v414_v13 = vrot.slane %v413_v56, 4  ;;  %v381_v14 = vrot.slane %v380_v12, 4 }
 0x147   :  { %v415_v15 = vadd.f32 %v414_v13, %v413_v56  ;;  %v382_v32 = vadd.f32 %v381_v14, %v380_v12 }
 0x148   :  { %v446_v57 = vpop.xlane.xlu1 %445  ;;  %v390_v18 = vpop.xlane.xlu0 %389 }
 0x149   :  { %v416_v19 = vrot.slane %v415_v15, 2  ;;  %v383_v20 = vrot.slane %v382_v32, 2  ;;  %v447_v21 = vrot.slane %v446_v57, 4  ;;  %v391_v59 = vrot.slane %v390_v18, 4 }
 0x14b   :  { %v417_v60 = vadd.f32 %v416_v19, %v415_v15  ;;  %v384_v61 = vadd.f32 %v383_v20, %v382_v32  ;;  %v448_v0 = vadd.f32 %v447_v21, %v446_v57  ;;  %v392_v1 = vadd.f32 %v391_v59, %v390_v18 }
 0x14c   :  { %v479_v33 = vpop.xlane.xlu1 %478  ;;  %v423_v34 = vpop.xlane.xlu0 %422 }
 0x14d   :  { %v418_v44 = vrot.slane %v417_v60, 1  ;;  %v385_v46 = vrot.slane %v384_v61, 1  ;;  %v449_v48 = vrot.slane %v448_v0, 2  ;;  %v393_v49 = vrot.slane %v392_v1, 2 }
 0x14e   :  { %v480_v50 = vrot.slane %v479_v33, 4  ;;  %v424_v51 = vrot.slane %v423_v34, 4 }
 0x14f   :  { %v386_v22 = vadd.f32 %v385_v46, %v384_v61  ;;  %v450_v23 = vadd.f32 %v449_v48, %v448_v0  ;;  %v394_v26 = vadd.f32 %v393_v49, %v392_v1  ;;  %v419_v52 = vadd.f32 %v418_v44, %v417_v60 }
 0x150   :  { %v481_v27 = vadd.f32 %v480_v50, %v479_v33  ;;  %v425_v35 = vadd.f32 %v424_v51, %v423_v34  ;;  %v456_v36 = vpop.xlane.xlu0 %455  ;;  %v403_v33 = vstv %s3813_s23  ;;  %v407_v49 = vstv %s3814_s24  ;;  %s5256_s23 = sld [smem:[#allocation2 + $0x100]] }
 0x151   :  { %v387_v10 = vmul.f32 0.0012626263, %v386_v22  ;;  %v395_v37 = vrot.slane %v394_v26, 1  ;;  %v451_v11 = vrot.slane %v450_v23, 1  ;;  %v457_v39 = vrot.slane %v456_v36, 4  ;;  %s5258_s24 = sld [smem:[#allocation2 + $0x50]] }
 0x152   :  { %v482_v53 = vrot.slane %v481_v27, 2  ;;  %v426_v54 = vrot.slane %v425_v35, 2  ;;  %v420_v5 = vmul.f32 0.0012626263, %v419_v52  ;;  %v436_v51 = vstv %s3815_s25  ;;  %s5260_s25 = sld [smem:[#allocation2 + $0x90]] }
 0x153   :  { %v396_v40 = vadd.f32 %v395_v37, %v394_v26  ;;  %v458_v3 = vadd.f32 %v457_v39, %v456_v36  ;;  %v398_v43 = vmul.f32 %v387_v10, %v387_v10  ;;  %v452_v38 = vadd.f32 %v451_v11, %v450_v23 }
 0x154   :  { %v483_v45 = vadd.f32 %v482_v53, %v481_v27  ;;  %v427_v2 = vadd.f32 %v426_v54, %v425_v35  ;;  %v489_v4 = vpop.xlane.xlu0 %488  ;;  %v431_v55 = vmul.f32 %v420_v5, %v420_v5  ;;  %v440_v36 = vstv %s3816_s21  ;;  %s5262_s21 = sld [smem:[#allocation2 + $0xd0]] }
 0x155   :  { %v397_v16 = vmul.f32 0.0012626263, %v396_v40  ;;  %v490_v7 = vrot.slane %v489_v4, 4  ;;  %v459_v9 = vrot.slane %v458_v3, 2  ;;  %v453_v56 = vmul.f32 0.0012626263, %v452_v38 }
 0x156   :  { %v484_v42 = vrot.slane %v483_v45, 1  ;;  %v428_v8 = vrot.slane %v427_v2, 1  ;;  %v469_v52 = vstv %s3817_s2  ;;  %v506_v38 = vstv %s3820_s16  ;;  %8153 = sst [smem:[#allocation23_spill]] %s5256_s23  ;;  %s5264_s2 = sld [smem:[#allocation2 + $0x110]] }
 0x157   :  { %v399_v47 = vsub.f32 %v397_v16, %v398_v43  ;;  %v491_v58 = vadd.f32 %v490_v7, %v489_v4  ;;  %v460_v63 = vadd.f32 %v459_v9, %v458_v3  ;;  %v464_v19 = vmul.f32 %v453_v56, %v453_v56  ;;  %8154 = sst [smem:[#allocation24_spill]] %s5258_s24  ;;  %s5274_s16 = sld [smem:[#allocation2 + $0xe0]] }
 0x158   :  { %v429_v62 = vadd.f32 %v428_v8, %v427_v2  ;;  %v485_v29 = vadd.f32 %v484_v42, %v483_v45  ;;  %v502_v45 = vstv %s3819_s27  ;;  %v473_v2 = vstv %s3818_s28  ;;  %8155 = sst [smem:[#allocation25_spill]] %s5260_s25  ;;  %s5270_s27 = sld [smem:[#allocation2 + $0x60]] }
 0x159   :  { %v401_v28 = vadd.f32 1e-05, %v399_v47  ;;  %v492_v30 = vrot.slane %v491_v58, 2  ;;  %v461_v13 = vrot.slane %v460_v63, 1  ;;  %s5272_s28 = sld [smem:[#allocation2 + $0xa0]]  ;;  %s5280_s25 = sld [smem:[#allocation2 + $0x81]] }
 0x15a   :  { %v430_v12 = vmul.f32 0.0012626263, %v429_v62  ;;  %v486_v57 = vmul.f32 0.0012626263, %v485_v29  ;;  %8156 = sst [smem:[#allocation26_spill]] %s5262_s21  ;;  %s5282_s21 = sld [smem:[#allocation2 + $0xc1]]  ;;  %v1329_v29 = vstv %s5206_s13 }
 0x15b   :  { %4658 = vrsqrt.f32 %v401_v28  ;;  %v493_v14 = vadd.f32 %v492_v30, %v491_v58  ;;  %v462_v32 = vadd.f32 %v461_v13, %v460_v63  ;;  %v1341_v28 = vstv %s5202_s26  ;;  %s5492_s26 = sld [smem:[#allocation2 + $0xc6]] }
 0x15c   :  { %v432_v15 = vsub.f32 %v430_v12, %v431_v55  ;;  %v497_v61 = vmul.f32 %v486_v57, %v486_v57  ;;  %8157 = sst [smem:[#allocation27_spill]] %s5264_s2  ;;  %s5284_s2 = sld [smem:[#allocation2 + $0x101]]  ;;  %v1345_v30 = vstv %s5213_s18  ;;  %v1357_v55 = vstv %s5204_s12 }
 0x15d   :  { %v494_v18 = vrot.slane %v493_v14, 1  ;;  %v463_v21 = vmul.f32 0.0012626263, %v462_v32  ;;  %8160 = sst [smem:[#allocation30_spill]] %s5274_s16  ;;  %s5292_s16 = sld [smem:[#allocation2 + $0xb0]]  ;;  %v1361_v12 = vstv %s5215_s19  ;;  %v1377_v13 = vstv %s5217_s9 }
 0x15e   :  { %v434_v20 = vadd.f32 1e-05, %v432_v15  ;;  %8158 = sst [smem:[#allocation28_spill]] %s5270_s27  ;;  %s5304_s27 = sld [smem:[#allocation2 + $0x121]]  ;;  %v1349_v15 = vstv %s5225_s11  ;;  %v1337_v32 = vstv %s5234_s14 }
 0x15f   :  { %v495_v59 = vadd.f32 %v494_v18, %v493_v14  ;;  %v465_v60 = vsub.f32 %v463_v21, %v464_v19  ;;  %8159 = sst [smem:[#allocation29_spill]] %s5272_s28  ;;  %v1333_v14 = vstv %s5223_s8  ;;  %s5494_s13 = sld [smem:[#allocation2 + $0x106]]  ;;  %v1365_v18 = vstv %s5230_s6 }
 0x160   :  { %4660 = vrsqrt.f32 %v434_v20  ;;  %8163 = sst [smem:[#allocation33_spill]] %s5280_s25  ;;  %s5290_s28 = sld [smem:[#allocation2 + $0x70]]  ;;  %v1381_v19 = vstv %s5232_s7  ;;  %v1369_v20 = vstv %s5238_s1  ;;  %v1385_v21 = vstv %s5240_s3 }
 0x161   :  { %v496_v0 = vmul.f32 0.0012626263, %v495_v59  ;;  %v467_v1 = vadd.f32 1e-05, %v465_v60  ;;  %8164 = sst [smem:[#allocation34_spill]] %s5282_s21  ;;  %s5298_s25 = sld [smem:[#allocation2 + $0x61]]  ;;  %v536_v59 = vstv %s5250_s0  ;;  %v551_v60 = vstv %s5252_s15 }
 0x162   :  { %8165 = sst [smem:[#allocation35_spill]] %s5284_s2  ;;  %s5300_s21 = sld [smem:[#allocation2 + $0xa1]] }
 0x163   :  { %v498_v34 = vsub.f32 %v496_v0, %v497_v61  ;;  %4662 = vrsqrt.f32 %v467_v1  ;;  %8168 = sst [smem:[#allocation37_spill]] %s5292_s16  ;;  %s5302_s2 = sld [smem:[#allocation2 + $0xe1]]  ;;  %v566_v61 = vstv %s5254_s20  ;;  %v581_v0 = vstv %s5256_s23 }
 0x164   :  { %8174 = sst [smem:[#allocation43_spill]] %s5304_s27  ;;  %s5312_s16 = sld [smem:[#allocation2 + $0x91]]  ;;  %v539_v1 = vstv %s5258_s24 }
 0x165   :  { %v4659_v44 = vpop.eup %4658  ;;  %v500_v46 = vadd.f32 1e-05, %v498_v34  ;;  %s5324_s27 = sld [smem:[#allocation2 + $0x102]]  ;;  %8250 = sst [smem:[#allocation114_spill]] %s5492_s26 }
 0x166   :  { %v404_v48 = vmul.f32 %v4659_v44, %v403_v33  ;;  %8167 = sst [smem:[#allocation36_spill]] %s5290_s28  ;;  %s5310_s28 = sld [smem:[#allocation2 + $0x51]] }
 0x167   :  { %4664 = vrsqrt.f32 %v500_v46  ;;  %8171 = sst [smem:[#allocation40_spill]] %s5298_s25  ;;  %s5318_s25 = sld [smem:[#allocation2 + $0x42]] }
 0x168   :  { %v406_v50 = vmul.f32 %v404_v48, %v387_v10  ;;  %v409_v26 = vmul.f32 %v404_v48, %v5168_v41  ;;  %8172 = sst [smem:[#allocation41_spill]] %s5300_s21  ;;  %s5320_s21 = sld [smem:[#allocation2 + $0x82]] }
 0x169   :  { %8173 = sst [smem:[#allocation42_spill]] %s5302_s2  ;;  %s5322_s2 = sld [smem:[#allocation2 + $0xc2]] }
 0x16a   :  { %v4661_v22 = vpop.eup %4660  ;;  %v408_v23 = vsub.f32 %v407_v49, %v406_v50  ;;  %8176 = sst [smem:[#allocation45_spill]] %s5312_s16  ;;  %s5330_s16 = sld [smem:[#allocation2 + $0x71]] }
 0x16b   :  { %v437_v27 = vmul.f32 %v4661_v22, %v436_v51  ;;  %8182 = sst [smem:[#allocation51_spill]] %s5324_s27  ;;  %s5342_s27 = sld [smem:[#allocation2 + $0xe2]] }
 0x16c   :  { %v410_v35 = vadd.f32 %v409_v26, %v408_v23  ;;  %8175 = sst [smem:[#allocation44_spill]] %s5310_s28  ;;  %s5344_s28 = sld [smem:[#allocation2 + $0x122]] }
 0x16d   :  { %v439_v37 = vmul.f32 %v437_v27, %v420_v5  ;;  %v4663_v11 = vpop.eup %4662  ;;  %v442_v39 = vmul.f32 %v437_v27, %v5166_v17  ;;  %8179 = sst [smem:[#allocation48_spill]] %s5318_s25  ;;  %s5336_s25 = sld [smem:[#allocation2 + $0x131]] }
 0x16e   :  { %v510_v53 = vmax.f32 %v410_v35, 0.0  ;;  %v470_v40 = vmul.f32 %v4663_v11, %v469_v52  ;;  %8180 = sst [smem:[#allocation49_spill]] %s5320_s21  ;;  %s5338_s21 = sld [smem:[#allocation2 + $0x62]] }
 0x16f   :  { %v441_v54 = vsub.f32 %v440_v36, %v439_v37  ;;  %8181 = sst [smem:[#allocation50_spill]] %s5322_s2  ;;  %s5340_s2 = sld [smem:[#allocation2 + $0xa2]] }
 0x170   :  { %v5189_v10 = vmul.f32 %v510_v53, %v5164_v6  ;;  %v472_v41 = vmul.f32 %v470_v40, %v453_v56  ;;  %v475_v7 = vmul.f32 %v470_v40, %v5174_v24  ;;  %8184 = sst [smem:[#allocation52_spill]] %s5330_s16  ;;  %s5350_s16 = sld [smem:[#allocation2 + $0x52]]  ;;  %v1373_v56 = vstv %s5208_s10 }
 0x171   :  { %v4665_v3 = vpop.eup %4664  ;;  %v443_v4 = vadd.f32 %v442_v39, %v441_v54  ;;  %8190 = sst [smem:[#allocation58_spill]] %s5342_s27  ;;  %s5362_s27 = sld [smem:[#allocation2 + $0xc3]] }
 0x172   :  { %v503_v43 = vmul.f32 %v4665_v3, %v502_v45  ;;  %519 = vrot.lane.b32.xlu1 %v5189_v10, %s7850_s29  ;;  %v474_v16 = vsub.f32 %v473_v2, %v472_v41  ;;  %8191 = sst [smem:[#allocation59_spill]] %s5344_s28  ;;  %s5364_s28 = sld [smem:[#allocation2 + $0x103]] }
 0x173   :  { %v512_v5 = vmax.f32 %v443_v4, 0.0  ;;  %8187 = sst [smem:[#allocation55_spill]] %s5336_s25  ;;  %s8252_s10 = sld [smem:[#allocation25_spill]] }
 0x174   :  { %v505_v17 = vmul.f32 %v503_v43, %v486_v57  ;;  %v476_v8 = vadd.f32 %v475_v7, %v474_v16  ;;  %v508_v47 = vmul.f32 %v503_v43, %v5179_v25  ;;  %8188 = sst [smem:[#allocation56_spill]] %s5338_s21  ;;  %s5356_s25 = sld [smem:[#allocation2 + $0x112]]  ;;  %v1353_v57 = vstv %s5236_s4 }
 0x175   :  { %v5195_v42 = vmul.f32 %v512_v5, %v5164_v6  ;;  %8189 = sst [smem:[#allocation57_spill]] %s5340_s2  ;;  %s5358_s21 = sld [smem:[#allocation2 + $0x43]] }
 0x176   :  { %v507_v9 = vsub.f32 %v506_v38, %v505_v17  ;;  %v514_v58 = vmax.f32 %v476_v8, 0.0  ;;  %8192 = sst [smem:[#allocation60_spill]] %s5350_s16  ;;  %s5360_s2 = sld [smem:[#allocation2 + $0x83]] }
 0x177   :  { %523 = vrot.lane.b32.xlu0 %v5195_v42, %s7850_s29  ;;  %8198 = sst [smem:[#allocation66_spill]] %s5362_s27  ;;  %s5380_s27 = sld [smem:[#allocation2 + $0xa3]]  ;;  %v5800_v41 = vmul.f32 %v1345_v30, %v5195_v42  ;;  %v5840_v30 = vmul.f32 %v1361_v12, %v5195_v42 }
 0x178   :  { %v509_v24 = vadd.f32 %v508_v47, %v507_v9  ;;  %v5211_v62 = vmul.f32 %v514_v58, %v5164_v6  ;;  %8199 = sst [smem:[#allocation67_spill]] %s5364_s28  ;;  %s5382_s28 = sld [smem:[#allocation2 + $0xe3]]  ;;  %v5761_v47 = vmul.f32 %v1341_v28, %v5189_v10  ;;  %v5845_v28 = vmul.f32 %v1373_v56, %v5189_v10 }
 0x179   :  { %s5384_s16 = sld [smem:[#allocation2 + $0x123]]  ;;  %8251 = sst [smem:[#allocation115_spill]] %s5494_s13  ;;  %v554_v33 = vstv %s8252_s10  ;;  %v5884_v58 = vmul.f32 %v1377_v13, %v5195_v42 }
 0x17a   :  { %v516_v25 = vmax.f32 %v509_v24, 0.0  ;;  %527 = vrot.lane.b32.xlu1 %v5211_v62, %s7850_s29  ;;  %8195 = sst [smem:[#allocation63_spill]] %s5356_s25  ;;  %s8253_s12 = sld [smem:[#allocation26_spill]]  ;;  %v5934_v13 = vmul.f32 %v1365_v18, %v5211_v62  ;;  %v5973_v43 = vmul.f32 %v1381_v19, %v5211_v62 }
 0x17b   :  { %596 = vrot.lane.b32.xlu0 %v5189_v10, %s7857_s30  ;;  %8196 = sst [smem:[#allocation64_spill]] %s5358_s21  ;;  %s5374_s25 = sld [smem:[#allocation2 + $0xf2]] }
 0x17c   :  { %v5228_v63 = vmul.f32 %v516_v25, %v5164_v6  ;;  %8197 = sst [smem:[#allocation65_spill]] %s5360_s2  ;;  %s5376_s21 = sld [smem:[#allocation2 + $0x132]]  ;;  %v1325_v6 = vstv %s5198_s17  ;;  %v5756_v25 = vmul.f32 %v1329_v29, %v5195_v42  ;;  %v5929_v29 = vmul.f32 %v1349_v15, %v5211_v62 }
 0x17d   :  { %s5378_s2 = sld [smem:[#allocation2 + $0x63]]  ;;  %8206 = sst [smem:[#allocation73_spill]] %s5380_s27  ;;  %v5717_v8 = vmul.f32 %v1325_v6, %v5189_v10  ;;  %v5805_v6 = vmul.f32 %v1357_v55, %v5189_v10  ;;  %v5889_v55 = vmul.f32 %v1333_v14, %v5211_v62 }
 0x17e   :  { %531 = vrot.lane.b32.xlu1 %v5228_v63, %s7850_s29  ;;  %s5276_s29 = sld [smem:[#allocation2 + $0x120]]  ;;  %8207 = sst [smem:[#allocation74_spill]] %s5382_s28  ;;  %v5978_v9 = vmul.f32 %v1337_v32, %v5228_v63  ;;  %v6009_v14 = vmul.f32 %v1353_v57, %v5228_v63  ;;  %v6014_v15 = vmul.f32 %v1369_v20, %v5228_v63 }
 0x17f   :  { %604 = vrot.lane.b32.xlu0 %v5211_v62, %s7857_s30  ;;  %8208 = sst [smem:[#allocation75_spill]] %s5384_s16  ;;  %s5400_s27 = sld [smem:[#allocation2 + $0x84]] }
 0x180   :  { %s5402_s28 = sld [smem:[#allocation2 + $0xc4]]  ;;  %s7964_s19 = smov 2   ;;  %v569_v34 = vstv %s8253_s12 }
 0x181   :  { %8203 = sst [smem:[#allocation70_spill]] %s5374_s25  ;;  %s5394_s25 = sld [smem:[#allocation2 + $0xd3]] }
 0x182   :  { %600 = vrot.lane.b32.xlu1 %v5195_v42, %s7857_s30  ;;  %8204 = sst [smem:[#allocation71_spill]] %s5376_s21  ;;  %s5396_s21 = sld [smem:[#allocation2 + $0x113]] }
 0x183   :  { %677 = vrot.lane.b32.xlu0 %v5189_v10, %s7855_s5  ;;  %8205 = sst [smem:[#allocation72_spill]] %s5378_s2  ;;  %s5398_s2 = sld [smem:[#allocation2 + $0x44]] }
 0x184   :  { %8161 = sst [smem:[#allocation31_spill]] %s5276_s29  ;;  %s5294_s29 = sld [smem:[#allocation2 + $0xf0]] }
 0x185   :  { %8214 = sst [smem:[#allocation81_spill]] %s5400_s27  ;;  %s8254_s9 = sld [smem:[#allocation27_spill]] }
 0x186   :  { %608 = vrot.lane.b32.xlu1 %v5228_v63, %s7857_s30  ;;  %s8166_s30 = smov 40   ;;  %8215 = sst [smem:[#allocation82_spill]] %s5402_s28 }
 0x187   :  { %685 = vrot.lane.b32.xlu0 %v5211_v62, %s7855_s5  ;;  %s7875_s5 = smov 39   ;;  %8211 = sst [smem:[#allocation78_spill]] %s5394_s25 }
 0x188   :  { %8212 = sst [smem:[#allocation79_spill]] %s5396_s21  ;;  %s5404_s16 = sld [smem:[#allocation2 + $0x104]] }
 0x189   :  { %8213 = sst [smem:[#allocation80_spill]] %s5398_s2  ;;  %s5418_s27 = sld [smem:[#allocation2 + $0x64]] }
 0x18a   :  { %681 = vrot.lane.b32.xlu1 %v5195_v42, %s8166_s30  ;;  %8169 = sst [smem:[#allocation38_spill]] %s5294_s29  ;;  %s5412_s25 = sld [smem:[#allocation2 + $0xb3]] }
 0x18b   :  { %758 = vrot.lane.b32.xlu0 %v5189_v10, %s7875_s5  ;;  %s5314_s29 = sld [smem:[#allocation2 + $0xd1]]  ;;  %s5414_s21 = sld [smem:[#allocation2 + $0xf3]]  ;;  %v584_v44 = vstv %s8254_s9 }
 0x18c   :  { %s5416_s2 = sld [smem:[#allocation2 + $0x133]]  ;;  %s5420_s28 = sld [smem:[#allocation2 + $0xa4]] }
 0x18d   :  { %s5504_s11 = sld [smem:[#allocation2 + $0x75]]  ;;  %s8256_s8 = sld [smem:[#allocation28_spill]] }
 0x18e   :  { %689 = vrot.lane.b32.xlu1 %v5228_v63, %s8166_s30  ;;  %s8183_s30 = smov 39   ;;  %8216 = sst [smem:[#allocation83_spill]] %s5404_s16 }
 0x18f   :  { %766 = vrot.lane.b32.xlu0 %v5211_v62, %s7875_s5  ;;  %s7894_s5 = smov 22   ;;  %8222 = sst [smem:[#allocation88_spill]] %s5418_s27 }
 0x190   :  { %8219 = sst [smem:[#allocation85_spill]] %s5412_s25  ;;  %s5422_s16 = sld [smem:[#allocation2 + $0xe4]] }
 0x191   :  { %8177 = sst [smem:[#allocation46_spill]] %s5314_s29  ;;  %s5432_s25 = sld [smem:[#allocation2 + $0x94]] }
 0x192   :  { %762 = vrot.lane.b32.xlu1 %v5195_v42, %s8183_s30  ;;  %s5332_s29 = sld [smem:[#allocation2 + $0xb1]]  ;;  %8221 = sst [smem:[#allocation87_spill]] %s5416_s2 }
 0x193   :  { %839 = vrot.lane.b32.xlu0 %v5189_v10, %s7894_s5  ;;  %8220 = sst [smem:[#allocation86_spill]] %s5414_s21  ;;  %s5434_s21 = sld [smem:[#allocation2 + $0xd4]]  ;;  %v543_v46 = vstv %s8256_s8 }
 0x194   :  { %8223 = sst [smem:[#allocation89_spill]] %s5420_s28  ;;  %s5438_s27 = sld [smem:[#allocation2 + $0x45]] }
 0x195   :  { %s5436_s2 = sld [smem:[#allocation2 + $0x114]]  ;;  %s5440_s28 = sld [smem:[#allocation2 + $0x85]] }
 0x196   :  { %770 = vrot.lane.b32.xlu1 %v5228_v63, %s8183_s30  ;;  %s8200_s30 = smov 22   ;;  %8224 = sst [smem:[#allocation90_spill]] %s5422_s16 }
 0x197   :  { %847 = vrot.lane.b32.xlu0 %v5211_v62, %s7894_s5  ;;  %s7913_s5 = smov 21   ;;  %8227 = sst [smem:[#allocation93_spill]] %s5432_s25 }
 0x198   :  { %8185 = sst [smem:[#allocation53_spill]] %s5332_s29  ;;  %s5352_s29 = sld [smem:[#allocation2 + $0x92]] }
 0x199   :  { %8228 = sst [smem:[#allocation94_spill]] %s5434_s21  ;;  %s5442_s16 = sld [smem:[#allocation2 + $0xc5]] }
 0x19a   :  { %843 = vrot.lane.b32.xlu1 %v5195_v42, %s8200_s30  ;;  %8230 = sst [smem:[#allocation96_spill]] %s5438_s27  ;;  %s5450_s21 = sld [smem:[#allocation2 + $0x74]] }
 0x19b   :  { %920 = vrot.lane.b32.xlu0 %v5189_v10, %s7913_s5  ;;  %8229 = sst [smem:[#allocation95_spill]] %s5436_s2  ;;  %s5452_s2 = sld [smem:[#allocation2 + $0xb4]] }
 0x19c   :  { %8231 = sst [smem:[#allocation97_spill]] %s5440_s28  ;;  %s5460_s27 = sld [smem:[#allocation2 + $0xa5]] }
 0x19d   :  { %s5454_s28 = sld [smem:[#allocation2 + $0xf4]]  ;;  %s5464_s25 = sld [smem:[#allocation2 + $0x125]] }
 0x19e   :  { %8193 = sst [smem:[#allocation61_spill]] %s5352_s29  ;;  %s5370_s29 = sld [smem:[#allocation2 + $0x72]]  ;;  %851 = vrot.lane.b32.xlu1 %v5228_v63, %s8200_s30 }
 0x19f   :  { %928 = vrot.lane.b32.xlu0 %v5211_v62, %s7913_s5  ;;  %s7932_s5 = smov 20   ;;  %s8217_s30 = smov 21  }
 0x1a0   :  { %8232 = sst [smem:[#allocation98_spill]] %s5442_s16  ;;  %s5456_s16 = sld [smem:[#allocation2 + $0x134]] }
 0x1a1   :  { %8235 = sst [smem:[#allocation100_spill]] %s5450_s21  ;;  %s8243_s21 = smov 19  }
 0x1a2   :  { %924 = vrot.lane.b32.xlu1 %v5195_v42, %s8217_s30  ;;  %8236 = sst [smem:[#allocation101_spill]] %s5452_s2  ;;  %s5506_s18 = sld [smem:[#allocation2 + $0xb5]] }
 0x1a3   :  { %1001 = vrot.lane.b32.xlu0 %v5189_v10, %s7932_s5  ;;  %8237 = sst [smem:[#allocation102_spill]] %s5454_s28  ;;  %s5472_s28 = sld [smem:[#allocation2 + $0x95]] }
 0x1a4   :  { %8201 = sst [smem:[#allocation68_spill]] %s5370_s29  ;;  %s5390_s29 = sld [smem:[#allocation2 + $0x53]] }
 0x1a5   :  { %8240 = sst [smem:[#allocation105_spill]] %s5460_s27  ;;  %s5486_s27 = sld [smem:[#allocation2 + $0x86]] }
 0x1a6   :  { %932 = vrot.lane.b32.xlu1 %v5228_v63, %s8217_s30  ;;  %s8234_s30 = smov 20   ;;  %8238 = sst [smem:[#allocation103_spill]] %s5456_s16 }
 0x1a7   :  { %1009 = vrot.lane.b32.xlu0 %v5211_v62, %s7932_s5  ;;  %s7941_s5 = smov 19   ;;  %8242 = sst [smem:[#allocation107_spill]] %s5464_s25 }
 0x1a8   :  { %s5470_s16 = sld [smem:[#allocation2 + $0x55]]  ;;  %8255 = sst [smem:[#allocation116_spill]] %s5504_s11 }
 0x1a9   :  { %8245 = sst [smem:[#allocation109_spill]] %s5472_s28  ;;  %s5478_s25 = sld [smem:[#allocation2 + $0x115]] }
 0x1aa   :  { %8209 = sst [smem:[#allocation76_spill]] %s5390_s29  ;;  %s5424_s29 = sld [smem:[#allocation2 + $0x124]]  ;;  %1005 = vrot.lane.b32.xlu1 %v5195_v42, %s8234_s30 }
 0x1ab   :  { %1082 = vrot.lane.b32.xlu0 %v5189_v10, %s7941_s5  ;;  %s5462_s5 = sld [smem:[#allocation2 + $0xe5]]  ;;  %8249 = sst [smem:[#allocation113_spill]] %s5486_s27 }
 0x1ac   :  { %8257 = sst [smem:[#allocation117_spill]] %s5506_s18  ;;  %s8259_s4 = sld [smem:[#allocation30_spill]] }
 0x1ad   :  { %s8258_s14 = sld [smem:[#allocation29_spill]]  ;;  %s8260_s6 = sld [smem:[#allocation31_spill]] }
 0x1ae   :  { %1013 = vrot.lane.b32.xlu1 %v5228_v63, %s8234_s30  ;;  %8244 = sst [smem:[#allocation108_spill]] %s5470_s16  ;;  %s5484_s30 = sld [smem:[#allocation2 + $0x46]] }
 0x1af   :  { %1090 = vrot.lane.b32.xlu0 %v5211_v62, %s8243_s21  ;;  %8247 = sst [smem:[#allocation111_spill]] %s5478_s25  ;;  %s5514_s7 = sld [smem:[#allocation2 + $0xf5]] }
 0x1b0   :  { %8225 = sst [smem:[#allocation91_spill]] %s5424_s29  ;;  %s5444_s29 = sld [smem:[#allocation2 + $0x105]] }
 0x1b1   :  { %8241 = sst [smem:[#allocation106_spill]] %s5462_s5  ;;  %s8264_s26 = sld [smem:[#allocation33_spill]] }
 0x1b2   :  { %s5476_s5 = sld [smem:[#allocation2 + $0xd5]]  ;;  %1086 = vrot.lane.b32.xlu1 %v5195_v42, %s8243_s21  ;;  %s8266_s18 = sld [smem:[#allocation35_spill]]  ;;  %v573_v49 = vstv %s8259_s4 }
 0x1b3   :  { %1163 = vrot.lane.b32.xlu0 %v5189_v10, %s7964_s19  ;;  %s8262_s19 = sld [smem:[#allocation32_spill]]  ;;  %s5516_s13 = sld [smem:[#allocation2 + $0x135]]  ;;  %v558_v48 = vstv %s8258_s14  ;;  %v588_v50 = vstv %s8260_s6 }
 0x1b4   :  { %8248 = sst [smem:[#allocation112_spill]] %s5484_s30  ;;  %s8265_s11 = sld [smem:[#allocation34_spill]] }
 0x1b5   :  { %8261 = sst [smem:[#allocation118_spill]] %s5514_s7  ;;  %s5522_s1 = sld [smem:[#allocation2 + $0x66]] }
 0x1b6   :  { %8233 = sst [smem:[#allocation99_spill]] %s5444_s29  ;;  %s5458_s29 = sld [smem:[#allocation2 + $0x65]]  ;;  %1094 = vrot.lane.b32.xlu1 %v5228_v63, %s8243_s21 }
 0x1b7   :  { %s8268_s3 = sld [smem:[#allocation36_spill]]  ;;  %s5524_s27 = sld [smem:[#allocation2 + $0xa6]]  ;;  %v629_v22 = vstv %s8264_s26 }
 0x1b8   :  { %8246 = sst [smem:[#allocation110_spill]] %s5476_s5  ;;  %s8270_s15 = sld [smem:[#allocation37_spill]]  ;;  %v661_v26 = vstv %s8266_s18 }
 0x1b9   :  { %8263 = sst [smem:[#allocation119_spill]] %s5516_s13  ;;  %s8271_s23 = sld [smem:[#allocation38_spill]]  ;;  %v613_v51 = vstv %s8262_s19 }
 0x1ba   :  { %s8272_s20 = sld [smem:[#allocation39_spill]]  ;;  %s5530_s0 = sld [smem:[#allocation2 + $0xe6]]  ;;  %v645_v23 = vstv %s8265_s11 }
 0x1bb   :  { %8267 = sst [smem:[#allocation120_spill]] %s5522_s1  ;;  %s5532_s10 = sld [smem:[#allocation2 + $0x126]] }
 0x1bc   :  { %8239 = sst [smem:[#allocation104_spill]] %s5458_s29  ;;  %s8276_s12 = smov 2  }
 0x1bd   :  { %8269 = sst [smem:[#allocation121_spill]] %s5524_s27  ;;  %s8274_s24 = sld [smem:[#allocation40_spill]]  ;;  %1171 = vrot.lane.b32.xlu0 %v5211_v62, %s8276_s12  ;;  %v547_v27 = vstv %s8268_s3  ;;  %1167 = vrot.lane.b32.xlu1 %v5195_v42, %s8276_s12 }
 0x1be   :  { %s8277_s9 = sld [smem:[#allocation41_spill]]  ;;  %s8278_s27 = sld [smem:[#allocation42_spill]]  ;;  %v562_v35 = vstv %s8270_s15 }
 0x1bf   :  { %s8279_s14 = sld [smem:[#allocation43_spill]]  ;;  %s8281_s6 = sld [smem:[#allocation44_spill]]  ;;  %v577_v36 = vstv %s8271_s23 }
 0x1c0   :  { %8273 = sst [smem:[#allocation122_spill]] %s5530_s0  ;;  %s5540_s4 = sld [smem:[#allocation2 + $0x56]]  ;;  %v592_v52 = vstv %s8272_s20 }
 0x1c1   :  { %8275 = sst [smem:[#allocation123_spill]] %s5532_s10  ;;  %s8283_s0 = sld [smem:[#allocation45_spill]]  ;;  %1175 = vrot.lane.b32.xlu1 %v5228_v63, %s8276_s12 }
 0x1c2   :  { %s5542_s8 = sld [smem:[#allocation2 + $0x96]]  ;;  %s8286_s13 = sld [smem:[#allocation46_spill]] }
 0x1c3   :  { %s5548_s10 = sld [smem:[#allocation2 + $0xd6]]  ;;  %s8287_s21 = sld [smem:[#allocation47_spill]]  ;;  %v621_v37 = vstv %s8274_s24 }
 0x1c4   :  { %s5550_s1 = sld [smem:[#allocation2 + $0x116]]  ;;  %v637_v11 = vstv %s8277_s9  ;;  %s8288_s26 = sld [smem:[#allocation48_spill]]  ;;  %v653_v53 = vstv %s8278_s27 }
 0x1c5   :  { %s5556_s19 = sld [smem:[#allocation2 + $0x47]]  ;;  %v669_v54 = vstv %s8279_s14  ;;  %v617_v39 = vstv %s8281_s6  ;;  %s8296_s23 = sld [smem:[#allocation53_spill]] }
 0x1c6   :  { %8280 = sst [smem:[#allocation124_spill]] %s5540_s4  ;;  %s8298_s24 = sld [smem:[#allocation54_spill]] }
 0x1c7   :  { %v633_v40 = vstv %s8283_s0  ;;  %s8294_s15 = sld [smem:[#allocation52_spill]]  ;;  %s7990_s9 = smov 1  }
 0x1c8   :  { %8282 = sst [smem:[#allocation125_spill]] %s5542_s8  ;;  %s5558_s8 = sld [smem:[#allocation2 + $0x87]]  ;;  %1244 = vrot.lane.b32.xlu0 %v5189_v10, %s7990_s9  ;;  %v649_v45 = vstv %s8286_s13 }
 0x1c9   :  { %8284 = sst [smem:[#allocation126_spill]] %s5548_s10  ;;  %s5564_s18 = sld [smem:[#allocation2 + $0xc7]]  ;;  %v665_v2 = vstv %s8287_s21 }
 0x1ca   :  { %8285 = sst [smem:[#allocation127_spill]] %s5550_s1  ;;  %s5566_s1 = sld [smem:[#allocation2 + $0x107]]  ;;  %v694_v3 = vstv %s8288_s26 }
 0x1cb   :  { %8289 = sst [smem:[#allocation128_spill]] %s5556_s19  ;;  %s5574_s0 = sld [smem:[#allocation2 + $0x76]]  ;;  %v641_v16 = vstv %s8296_s23 }
 0x1cc   :  { %s5584_s19 = sld [smem:[#allocation2 + $0x136]]  ;;  %v657_v7 = vstv %s8298_s24  ;;  %s5592_s7 = sld [smem:[#allocation2 + $0xa7]] }
 0x1cd   :  { %v625_v5 = vstv %s8294_s15  ;;  %s5598_s26 = sld [smem:[#allocation2 + $0xe7]]  ;;  %s8321_s24 = smov 1  }
 0x1ce   :  { %8291 = sst [smem:[#allocation129_spill]] %s5558_s8  ;;  %s5600_s23 = sld [smem:[#allocation2 + $0x127]]  ;;  %1252 = vrot.lane.b32.xlu0 %v5211_v62, %s8321_s24  ;;  %1248 = vrot.lane.b32.xlu1 %v5195_v42, %s8321_s24 }
 0x1cf   :  { %8295 = sst [smem:[#allocation130_spill]] %s5564_s18  ;;  %s5576_s18 = sld [smem:[#allocation2 + $0xb6]] }
 0x1d0   :  { %8297 = sst [smem:[#allocation131_spill]] %s5566_s1  ;;  %s5608_s6 = sld [smem:[#allocation2 + $0x57]] }
 0x1d1   :  { %8302 = sst [smem:[#allocation132_spill]] %s5574_s0  ;;  %s5582_s1 = sld [smem:[#allocation2 + $0xf6]] }
 0x1d2   :  { %8308 = sst [smem:[#allocation135_spill]] %s5584_s19  ;;  %s5590_s0 = sld [smem:[#allocation2 + $0x67]]  ;;  %1256 = vrot.lane.b32.xlu1 %v5228_v63, %s8321_s24 }
 0x1d3   :  { %8314 = sst [smem:[#allocation137_spill]] %s5592_s7  ;;  %s5610_s27 = sld [smem:[#allocation2 + $0x97]] }
 0x1d4   :  { %8318 = sst [smem:[#allocation138_spill]] %s5598_s26  ;;  %s5618_s19 = sld [smem:[#allocation2 + $0x117]] }
 0x1d5   :  { %8304 = sst [smem:[#allocation133_spill]] %s5576_s18  ;;  %s8344_s15 = smov 127  }
 0x1d6   :  { %8320 = sst [smem:[#allocation139_spill]] %s5600_s23  ;;  %s5616_s23 = sld [smem:[#allocation2 + $0xd7]]  ;;  %1388 = vrot.lane.b32.xlu0 %v5189_v10, %s8344_s15  ;;  %1392 = vrot.lane.b32.xlu1 %v5195_v42, %s8344_s15 }
 0x1d7   :  { %8306 = sst [smem:[#allocation134_spill]] %s5582_s1  ;;  %s5626_s1 = sld [smem:[#allocation2 + $0x88]] }
 0x1d8   :  { %8312 = sst [smem:[#allocation136_spill]] %s5590_s0  ;;  %s5632_s21 = sld [smem:[#allocation2 + $0xc8]] }
 0x1d9   :  { %8325 = sst [smem:[#allocation140_spill]] %s5608_s6  ;;  %s5624_s6 = sld [smem:[#allocation2 + $0x48]] }
 0x1da   :  { %8327 = sst [smem:[#allocation141_spill]] %s5610_s27  ;;  %s5642_s8 = sld [smem:[#allocation2 + $0x77]]  ;;  %1396 = vrot.lane.b32.xlu0 %v5211_v62, %s8344_s15  ;;  %1400 = vrot.lane.b32.xlu1 %v5228_v63, %s8344_s15 }
 0x1db   :  { %8331 = sst [smem:[#allocation143_spill]] %s5618_s19  ;;  %s5634_s11 = sld [smem:[#allocation2 + $0x108]] }
 0x1dc   :  { %8329 = sst [smem:[#allocation142_spill]] %s5616_s23  ;;  %s5644_s7 = sld [smem:[#allocation2 + $0xb7]] }
 0x1dd   :  { %8337 = sst [smem:[#allocation145_spill]] %s5626_s1  ;;  %s5652_s19 = sld [smem:[#allocation2 + $0x137]] }
 0x1de   :  { %8341 = sst [smem:[#allocation146_spill]] %s5632_s21  ;;  %s5666_s10 = sld [smem:[#allocation2 + $0xe8]] }
 0x1df   :  { %8335 = sst [smem:[#allocation144_spill]] %s5624_s6  ;;  %s5668_s18 = sld [smem:[#allocation2 + $0x128]] }
 0x1e0   :  { %8348 = sst [smem:[#allocation148_spill]] %s5642_s8  ;;  %s5658_s8 = sld [smem:[#allocation2 + $0x68]] }
 0x1e1   :  { %8343 = sst [smem:[#allocation147_spill]] %s5634_s11  ;;  %s5650_s11 = sld [smem:[#allocation2 + $0xf7]] }
 0x1e2   :  { %8350 = sst [smem:[#allocation149_spill]] %s5644_s7  ;;  %s5692_s23 = sld [smem:[#allocation2 + $0x49]] }
 0x1e3   :  { %8354 = sst [smem:[#allocation151_spill]] %s5652_s19  ;;  %s5660_s7 = sld [smem:[#allocation2 + $0xa8]] }
 0x1e4   :  { %8363 = sst [smem:[#allocation154_spill]] %s5666_s10  ;;  %s5676_s26 = sld [smem:[#allocation2 + $0x58]] }
 0x1e5   :  { %8365 = sst [smem:[#allocation155_spill]] %s5668_s18  ;;  %s5678_s1 = sld [smem:[#allocation2 + $0x98]] }
 0x1e6   :  { %8358 = sst [smem:[#allocation152_spill]] %s5658_s8  ;;  %s5684_s18 = sld [smem:[#allocation2 + $0xd8]] }
 0x1e7   :  { %8352 = sst [smem:[#allocation150_spill]] %s5650_s11  ;;  %s5686_s10 = sld [smem:[#allocation2 + $0x118]] }
 0x1e8   :  { %8376 = sst [smem:[#allocation160_spill]] %s5692_s23  ;;  %s5694_s6 = sld [smem:[#allocation2 + $0x89]] }
 0x1e9   :  { %8359 = sst [smem:[#allocation153_spill]] %s5660_s7  ;;  %s5702_s13 = sld [smem:[#allocation2 + $0x109]]  ;;  %v524_v56 = vpop.permute.xlu0 %523 }
 0x1ea   :  { %8369 = sst [smem:[#allocation156_spill]] %s5676_s26  ;;  %s8020_s20 = smov 110   ;;  %v525_v57 = vrot.slane %v524_v56, 7 }
 0x1eb   :  { %8371 = sst [smem:[#allocation157_spill]] %s5678_s1  ;;  %1469 = vrot.lane.b32.xlu0 %v5189_v10, %s8020_s20  ;;  %s5739_s29 = sld [smem:[#allocation2 + $0xe9]] }
 0x1ec   :  { %8372 = sst [smem:[#allocation158_spill]] %s5684_s18  ;;  %s5710_s14 = sld [smem:[#allocation2 + $0x78]] }
 0x1ed   :  { %8373 = sst [smem:[#allocation159_spill]] %s5686_s10  ;;  %s5712_s4 = sld [smem:[#allocation2 + $0xb8]]  ;;  %v597_v18 = vpop.permute.xlu0 %596 }
 0x1ee   :  { %8377 = sst [smem:[#allocation161_spill]] %s5694_s6  ;;  %s5723_s20 = sld [smem:[#allocation2 + $0xf8]]  ;;  %v598_v4 = vrot.slane %v597_v18, 7 }
 0x1ef   :  { %8382 = sst [smem:[#allocation163_spill]] %s5702_s13  ;;  %s5725_s24 = sld [smem:[#allocation2 + $0x138]] }
 0x1f0   :  { %s5741_s28 = sld [smem:[#allocation2 + $0x129]]  ;;  %s8403_s5 = smov 110  }
 0x1f1   :  { %8400 = sst [smem:[#allocation168_spill]] %s5739_s29  ;;  %1477 = vrot.lane.b32.xlu0 %v5211_v62, %s8403_s5  ;;  %s5749_s3 = sld [smem:[#allocation2 + $0x59]]  ;;  %1473 = vrot.lane.b32.xlu1 %v5195_v42, %s8403_s5 }
 0x1f2   :  { %8383 = sst [smem:[#allocation164_spill]] %s5710_s14  ;;  %s5731_s14 = sld [smem:[#allocation2 + $0x69]] }
 0x1f3   :  { %8385 = sst [smem:[#allocation165_spill]] %s5712_s4  ;;  %s5751_s21 = sld [smem:[#allocation2 + $0x99]] }
 0x1f4   :  { %8388 = sst [smem:[#allocation166_spill]] %s5723_s20  ;;  %s5775_s17 = sld [smem:[#allocation2 + $0x4b]] }
 0x1f5   :  { %8390 = sst [smem:[#allocation167_spill]] %s5725_s24  ;;  %s5767_s15 = sld [smem:[#allocation2 + $0xd9]]  ;;  %1550 = vrot.lane.b32.xlu0 %v5189_v10, %s8043_s22  ;;  %1481 = vrot.lane.b32.xlu1 %v5228_v63, %s8403_s5 }
 0x1f6   :  { %8402 = sst [smem:[#allocation169_spill]] %s5741_s28  ;;  %s5769_s27 = sld [smem:[#allocation2 + $0x119]] }
 0x1f7   :  { %8407 = sst [smem:[#allocation170_spill]] %s5749_s3  ;;  %s5777_s24 = sld [smem:[#allocation2 + $0x8b]] }
 0x1f8   :  { %8394 = sst [smem:[#allocation5_spill]] %s5731_s14  ;;  %s5785_s16 = sld [smem:[#allocation2 + $0x10b]] }
 0x1f9   :  { %8409 = sst [smem:[#allocation171_spill]] %s5751_s21  ;;  %s5793_s28 = sld [smem:[#allocation2 + $0x79]] }
 0x1fa   :  { %8418 = sst [smem:[#allocation7_spill]] %s5775_s17  ;;  %s5795_s30 = sld [smem:[#allocation2 + $0xb9]] }
 0x1fb   :  { %8413 = sst [smem:[#allocation172_spill]] %s5767_s15  ;;  %s5811_s4 = sld [smem:[#allocation2 + $0xf9]] }
 0x1fc   :  { %8414 = sst [smem:[#allocation173_spill]] %s5769_s27  ;;  %s5783_s27 = sld [smem:[#allocation2 + $0xcb]] }
 0x1fd   :  { %8420 = sst [smem:[#allocation14_spill]] %s5777_s24  ;;  %s5819_s3 = sld [smem:[#allocation2 + $0x6b]] }
 0x1fe   :  { %8426 = sst [smem:[#allocation175_spill]] %s5785_s16  ;;  %s5821_s20 = sld [smem:[#allocation2 + $0xab]] }
 0x1ff   :  { %8431 = sst [smem:[#allocation176_spill]] %s5793_s28  ;;  %s5813_s28 = sld [smem:[#allocation2 + $0x139]] }
 0x200   :  { %8433 = sst [smem:[#allocation177_spill]] %s5795_s30  ;;  %s5827_s13 = sld [smem:[#allocation2 + $0xeb]] }
 0x201   :  { %8437 = sst [smem:[#allocation178_spill]] %s5811_s4  ;;  %s5829_s25 = sld [smem:[#allocation2 + $0x12b]] }
 0x202   :  { %8425 = sst [smem:[#allocation174_spill]] %s5783_s27  ;;  %s8451_s14 = smov 109  }
 0x203   :  { %8443 = sst [smem:[#allocation8_spill]] %s5819_s3  ;;  %1558 = vrot.lane.b32.xlu0 %v5211_v62, %s8451_s14  ;;  %s5863_s7 = sld [smem:[#allocation2 + $0x4c]]  ;;  %1554 = vrot.lane.b32.xlu1 %v5195_v42, %s8451_s14 }
 0x204   :  { %8445 = sst [smem:[#allocation6_spill]] %s5821_s20  ;;  %s5847_s22 = sld [smem:[#allocation2 + $0x5b]] }
 0x205   :  { %8439 = sst [smem:[#allocation179_spill]] %s5813_s28  ;;  %s5849_s16 = sld [smem:[#allocation2 + $0x9b]] }
 0x206   :  { %8449 = sst [smem:[#allocation180_spill]] %s5827_s13  ;;  %s5855_s5 = sld [smem:[#allocation2 + $0xdb]] }
 0x207   :  { %8450 = sst [smem:[#allocation181_spill]] %s5829_s25  ;;  %s5857_s21 = sld [smem:[#allocation2 + $0x11b]]  ;;  %1562 = vrot.lane.b32.xlu1 %v5228_v63, %s8451_s14 }
 0x208   :  { %s5865_s29 = sld [smem:[#allocation2 + $0x8c]]  ;;  %s8465_s19 = smov 108  }
 0x209   :  { %8458 = sst [smem:[#allocation9_spill]] %s5863_s7  ;;  %1630 = vrot.lane.b32.xlu0 %v5189_v10, %s8465_s19  ;;  %s5891_s24 = sld [smem:[#allocation2 + $0x7b]] }
 0x20a   :  { %s5871_s0 = sld [smem:[#allocation2 + $0xcc]]  ;;  %s5893_s26 = sld [smem:[#allocation2 + $0xbb]] }
 0x20b   :  { %s5873_s12 = sld [smem:[#allocation2 + $0x10c]]  ;;  %s5899_s10 = sld [smem:[#allocation2 + $0xfb]]  ;;  %1634 = vrot.lane.b32.xlu1 %v5195_v42, %s8465_s19 }
 0x20c   :  { %s5901_s17 = sld [smem:[#allocation2 + $0x13b]]  ;;  %s5916_s11 = sld [smem:[#allocation2 + $0xec]] }
 0x20d   :  { %8455 = sst [smem:[#allocation182_spill]] %s5857_s21  ;;  %s5907_s21 = sld [smem:[#allocation2 + $0x6c]]  ;;  %1638 = vrot.lane.b32.xlu0 %v5211_v62, %s8465_s19 }
 0x20e   :  { %8459 = sst [smem:[#allocation10_spill]] %s5865_s29  ;;  %s5918_s8 = sld [smem:[#allocation2 + $0x12c]] }
 0x20f   :  { %8470 = sst [smem:[#allocation185_spill]] %s5891_s24  ;;  %s5952_s27 = sld [smem:[#allocation2 + $0x4d]]  ;;  %1642 = vrot.lane.b32.xlu1 %v5228_v63, %s8465_s19 }
 0x210   :  { %8462 = sst [smem:[#allocation183_spill]] %s5871_s0  ;;  %s5936_s0 = sld [smem:[#allocation2 + $0x5c]] }
 0x211   :  { %8464 = sst [smem:[#allocation184_spill]] %s5873_s12  ;;  %s5938_s12 = sld [smem:[#allocation2 + $0x9c]] }
 0x212   :  { %8472 = sst [smem:[#allocation186_spill]] %s5893_s26  ;;  %s5909_s26 = sld [smem:[#allocation2 + $0xac]] }
 0x213   :  { %8475 = sst [smem:[#allocation187_spill]] %s5899_s10  ;;  %s5944_s14 = sld [smem:[#allocation2 + $0xdc]] }
 0x214   :  { %8476 = sst [smem:[#allocation188_spill]] %s5901_s17  ;;  %s5946_s7 = sld [smem:[#allocation2 + $0x11c]] }
 0x215   :  { %8481 = sst [smem:[#allocation11_spill]] %s5907_s21  ;;  %s5954_s30 = sld [smem:[#allocation2 + $0x8d]] }
 0x216   :  { %8487 = sst [smem:[#allocation189_spill]] %s5916_s11  ;;  %s5960_s9 = sld [smem:[#allocation2 + $0xcd]] }
 0x217   :  { %8489 = sst [smem:[#allocation190_spill]] %s5918_s8  ;;  %s5962_s2 = sld [smem:[#allocation2 + $0x10d]] }
 0x218   :  { %8482 = sst [smem:[#allocation12_spill]] %s5909_s26  ;;  %s8501_s29 = smov 107  }
 0x219   :  { %8493 = sst [smem:[#allocation191_spill]] %s5936_s0  ;;  %s8502_s26 = sld [smem:[#allocation9_spill]]  ;;  %1710 = vrot.lane.b32.xlu0 %v5189_v10, %s8501_s29  ;;  %v520_v10 = vpop.permute.xlu1 %519  ;;  %1714 = vrot.lane.b32.xlu1 %v5195_v42, %s8501_s29 }
 0x21a   :  { %8494 = sst [smem:[#allocation192_spill]] %s5938_s12  ;;  %s8503_s21 = sld [smem:[#allocation10_spill]]  ;;  %v521_v19 = vrot.slane %v520_v10, 7 }
 0x21b   :  { %8495 = sst [smem:[#allocation193_spill]] %s5944_s14  ;;  %s8504_s15 = sld [smem:[#allocation183_spill]] }
 0x21c   :  { %8496 = sst [smem:[#allocation194_spill]] %s5946_s7  ;;  %s5980_s28 = sld [smem:[#allocation2 + $0x7c]]  ;;  %v522_v20 = vsel %vm518_vm3, %v520_v10, %v521_v19  ;;  %v6045_v10 = vmul.f32 %v1385_v21, %v5228_v63  ;;  %v526_v21 = vsel %vm518_vm3, %v524_v56, %v525_v57  ;;  %v605_v57 = vpop.permute.xlu0 %604 }
 0x21d   :  { %8499 = sst [smem:[#allocation15_spill]] %s5952_s27  ;;  %s5982_s6 = sld [smem:[#allocation2 + $0xbc]]  ;;  %1718 = vrot.lane.b32.xlu0 %v5211_v62, %s8501_s29  ;;  %v537_v17 = vmul.f32 %v536_v59, %v522_v20  ;;  %v552_v42 = vmul.f32 %v551_v60, %v522_v20  ;;  %v567_v62 = vmul.f32 %v566_v61, %v522_v20  ;;  %v582_v19 = vmul.f32 %v581_v0, %v522_v20  ;;  %v528_v32 = vpop.permute.xlu1 %527 }
 0x21e   :  { %s5992_s18 = sld [smem:[#allocation2 + $0xfc]]  ;;  %s6000_s23 = sld [smem:[#allocation2 + $0x6d]]  ;;  %v540_v24 = vmul.f32 %v539_v1, %v526_v21  ;;  %v555_v38 = vmul.f32 %v554_v33, %v526_v21  ;;  %v570_v60 = vmul.f32 %v569_v34, %v526_v21  ;;  %v529_v61 = vrot.slane %v528_v32, 7  ;;  %1722 = vrot.lane.b32.xlu1 %v5228_v63, %s8501_s29 }
 0x21f   :  { %s6018_s10 = sld [smem:[#allocation2 + $0xad]]  ;;  %v585_v56 = vmul.f32 %v584_v44, %v526_v21  ;;  %s6079_s8 = sld [smem:[#allocation2 + $0x4e]]  ;;  %v599_v34 = vsel %vm595_vm4, %v597_v18, %v598_v4 }
 0x220   :  { %s6020_s4 = sld [smem:[#allocation2 + $0xed]]  ;;  %s6081_s14 = sld [smem:[#allocation2 + $0x8e]]  ;;  %v530_v33 = vsel %vm518_vm3, %v528_v32, %v529_v61  ;;  %v541_v18 = vadd.f32 %v540_v24, %v537_v17  ;;  %v556_v44 = vadd.f32 %v555_v38, %v552_v42  ;;  %v571_v1 = vadd.f32 %v570_v60, %v567_v62  ;;  %v678_v42 = vpop.permute.xlu0 %677 }
 0x221   :  { %s6026_s24 = sld [smem:[#allocation2 + $0x12d]]  ;;  %s6089_s7 = sld [smem:[#allocation2 + $0xce]]  ;;  %v544_v63 = vmul.f32 %v543_v46, %v530_v33  ;;  %v559_v21 = vmul.f32 %v558_v48, %v530_v33  ;;  %v574_v32 = vmul.f32 %v573_v49, %v530_v33  ;;  %v532_v61 = vpop.permute.xlu1 %531  ;;  %v589_v20 = vmul.f32 %v588_v50, %v530_v33 }
 0x222   :  { %s6028_s3 = sld [smem:[#allocation2 + $0x5d]]  ;;  %s6091_s25 = sld [smem:[#allocation2 + $0x10e]]  ;;  %v586_v0 = vadd.f32 %v585_v56, %v582_v19  ;;  %v614_v59 = vmul.f32 %v613_v51, %v599_v34  ;;  %v630_v48 = vmul.f32 %v629_v22, %v599_v34  ;;  %v646_v49 = vmul.f32 %v645_v23, %v599_v34 }
 0x223   :  { %8508 = sst [smem:[#allocation16_spill]] %s5982_s6  ;;  %s5994_s6 = sld [smem:[#allocation2 + $0x13c]]  ;;  %v533_v17 = vrot.slane %v532_v61, 7  ;;  %v606_v38 = vrot.slane %v605_v57, 7  ;;  %v545_v50 = vadd.f32 %v544_v63, %v541_v18  ;;  %v560_v24 = vadd.f32 %v559_v21, %v556_v44 }
 0x224   :  { %s8517_s19 = sld [smem:[#allocation16_spill]]  ;;  %s6035_s11 = sld [smem:[#allocation2 + $0x9d]]  ;;  %v575_v51 = vadd.f32 %v574_v32, %v571_v1  ;;  %v662_v62 = vmul.f32 %v661_v26, %v599_v34  ;;  %v590_v60 = vadd.f32 %v589_v20, %v586_v0  ;;  %v679_v18 = vrot.slane %v678_v42, 7 }
 0x225   :  { %8513 = sst [smem:[#allocation9_spill]] %s6018_s10  ;;  %s6050_s12 = sld [smem:[#allocation2 + $0xdd]]  ;;  %v601_v19 = vpop.permute.xlu1 %600  ;;  %v534_v22 = vsel %vm518_vm3, %v532_v61, %v533_v17  ;;  %v607_v23 = vsel %vm595_vm4, %v605_v57, %v606_v38  ;;  %v1647_v26 = vstv %s6079_s8 }
 0x226   :  { %8514 = sst [smem:[#allocation10_spill]] %s6020_s4  ;;  %v602_v56 = vrot.slane %v601_v19, 7  ;;  %v548_v33 = vmul.f32 %v547_v27, %v534_v22  ;;  %v563_v63 = vmul.f32 %v562_v35, %v534_v22  ;;  %v578_v44 = vmul.f32 %v577_v36, %v534_v22  ;;  %v686_v35 = vpop.permute.xlu0 %685  ;;  %s8553_s4 = sld [smem:[#allocation49_spill]] }
 0x227   :  { %8516 = sst [smem:[#allocation183_spill]] %s6026_s24  ;;  %s6052_s27 = sld [smem:[#allocation2 + $0x11d]]  ;;  %v593_v1 = vmul.f32 %v592_v52, %v534_v22  ;;  %v1663_v34 = vstv %s6081_s14  ;;  %v1679_v0 = vstv %s6089_s7  ;;  %v622_v36 = vmul.f32 %v621_v37, %v607_v23 }
 0x228   :  { %8529 = sst [smem:[#allocation17_spill]] %s6081_s14  ;;  %v1695_v20 = vstv %s6091_s25  ;;  %v549_v21 = vadd.f32 %v548_v33, %v545_v50  ;;  %v564_v32 = vadd.f32 %v563_v63, %v560_v24  ;;  %v579_v57 = vadd.f32 %v578_v44, %v575_v51  ;;  %s8554_s24 = sld [smem:[#allocation55_spill]] }
 0x229   :  { %8532 = sst [smem:[#allocation18_spill]] %s6089_s7  ;;  %v594_v61 = vadd.f32 %v593_v1, %v590_v60  ;;  %v609_v27 = vpop.permute.xlu1 %608  ;;  %v603_v52 = vsel %vm595_vm4, %v601_v19, %v602_v56  ;;  %v638_v19 = vmul.f32 %v637_v11, %v607_v23  ;;  %v654_v56 = vmul.f32 %v653_v53, %v607_v23  ;;  %s8556_s20 = sld [smem:[#allocation51_spill]] }
 0x22a   :  { %8533 = sst [smem:[#allocation19_spill]] %s6091_s25  ;;  %v1587_v4 = vstv %s6035_s11  ;;  %v610_v17 = vrot.slane %v609_v27, 7  ;;  %v615_v38 = vadd.f32 %v614_v59, %v549_v21  ;;  %v618_v50 = vmul.f32 %v617_v39, %v603_v52  ;;  %s8555_s0 = sld [smem:[#allocation50_spill]] }
 0x22b   :  { %v1603_v46 = vstv %s6050_s12  ;;  %v631_v24 = vadd.f32 %v630_v48, %v564_v32  ;;  %v634_v51 = vmul.f32 %v633_v40, %v603_v52  ;;  %v647_v60 = vadd.f32 %v646_v49, %v579_v57  ;;  %v759_v48 = vpop.permute.xlu0 %758  ;;  %s8560_s13 = sld [smem:[#allocation60_spill]]  ;;  %s8562_s17 = sld [smem:[#allocation61_spill]] }
 0x22c   :  { %v650_v22 = vmul.f32 %v649_v45, %v603_v52  ;;  %v663_v33 = vadd.f32 %v662_v62, %v594_v61  ;;  %v666_v37 = vmul.f32 %v665_v2, %v603_v52  ;;  %v619_v63 = vadd.f32 %v618_v50, %v615_v38  ;;  %s8563_s25 = sld [smem:[#allocation62_spill]]  ;;  %s8564_s7 = sld [smem:[#allocation63_spill]] }
 0x22d   :  { %v1619_v12 = vstv %s6052_s27  ;;  %v635_v59 = vadd.f32 %v634_v51, %v631_v24  ;;  %v682_v39 = vpop.permute.xlu1 %681  ;;  %v670_v40 = vmul.f32 %v669_v54, %v607_v23  ;;  %v680_v2 = vsel %vm676_vm5, %v678_v42, %v679_v18  ;;  %s8565_s10 = sld [smem:[#allocation56_spill]]  ;;  %s8566_s1 = sld [smem:[#allocation57_spill]] }
 0x22e   :  { %v651_v45 = vadd.f32 %v650_v22, %v647_v60  ;;  %v667_v49 = vadd.f32 %v666_v37, %v663_v33  ;;  %v611_v11 = vsel %vm595_vm4, %v609_v27, %v610_v17  ;;  %v623_v53 = vadd.f32 %v622_v36, %v619_v63  ;;  %s8567_s29 = sld [smem:[#allocation58_spill]]  ;;  %s8580_s14 = sld [smem:[#allocation70_spill]] }
 0x22f   :  { %v639_v62 = vadd.f32 %v638_v19, %v635_v59  ;;  %v687_v44 = vrot.slane %v686_v35, 7  ;;  %v626_v1 = vmul.f32 %v625_v5, %v611_v11  ;;  %v642_v21 = vmul.f32 %v641_v16, %v611_v11  ;;  %v767_v27 = vpop.permute.xlu0 %766  ;;  %s6667_s11 = sld [smem:[#allocation2 + $0x5e]]  ;;  %s6698_s8 = sld [smem:[#allocation2 + $0xcf]] }
 0x230   :  { %v655_v32 = vadd.f32 %v654_v56, %v651_v45  ;;  %v658_v54 = vmul.f32 %v657_v7, %v611_v11  ;;  %v695_v23 = vmul.f32 %v694_v3, %v680_v2  ;;  %v8557_v57 = vstv %s8553_s4  ;;  %s8568_s4 = sld [smem:[#allocation59_spill]]  ;;  %s6807_s27 = sld [smem:[#allocation2 + $0x14d]] }
 0x231   :  { %v711_v61 = vmul.f32 %v8557_v57, %v680_v2  ;;  %v671_v52 = vadd.f32 %v670_v40, %v667_v49  ;;  %v8558_v42 = vstv %s8554_s24  ;;  %v690_v38 = vpop.permute.xlu1 %689  ;;  %v8559_v36 = vstv %s8555_s0  ;;  %s8569_s24 = sld [smem:[#allocation64_spill]]  ;;  %s8576_s0 = sld [smem:[#allocation68_spill]] }
 0x232   :  { %v674_v18 = vmul.f32 %v8558_v42, %v611_v11  ;;  %v727_v17 = vmul.f32 %v8559_v36, %v680_v2  ;;  %v627_v50 = vadd.f32 %v626_v1, %v623_v53  ;;  %v643_v24 = vadd.f32 %v642_v21, %v639_v62  ;;  %s6669_s12 = sld [smem:[#allocation2 + $0x9e]] }
 0x233   :  { %v659_v5 = vadd.f32 %v658_v54, %v655_v32  ;;  %v8561_v51 = vstv %s8556_s20  ;;  %v683_v3 = vrot.slane %v682_v39, 7  ;;  %v760_v60 = vrot.slane %v759_v48, 7  ;;  %v840_v49 = vpop.permute.xlu0 %839  ;;  %s8579_s20 = sld [smem:[#allocation69_spill]] }
 0x234   :  { %v743_v16 = vmul.f32 %v8561_v51, %v680_v2  ;;  %v675_v7 = vadd.f32 %v674_v18, %v671_v52  ;;  %v688_v22 = vsel %vm676_vm5, %v686_v35, %v687_v44  ;;  %v696_v33 = vadd.f32 %v695_v23, %v627_v50 }
 0x235   :  { %v712_v37 = vadd.f32 %v711_v61, %v643_v24  ;;  %v728_v19 = vadd.f32 %v727_v17, %v659_v5  ;;  %v684_v56 = vsel %vm676_vm5, %v682_v39, %v683_v3  ;;  %v761_v59 = vsel %vm757_vm6, %v759_v48, %v760_v60  ;;  %v763_v45 = vpop.permute.xlu1 %762 }
 0x236   :  { %v744_v63 = vadd.f32 %v743_v16, %v675_v7  ;;  %v691_v40 = vrot.slane %v690_v38, 7  ;;  %v8570_v2 = vstv %s8560_s13  ;;  %v8571_v53 = vstv %s8562_s17  ;;  %s8581_s13 = sld [smem:[#allocation71_spill]]  ;;  %s8582_s17 = sld [smem:[#allocation65_spill]] }
 0x237   :  { %v699_v11 = vmul.f32 %v8570_v2, %v684_v56  ;;  %v715_v35 = vmul.f32 %v8571_v53, %v684_v56  ;;  %v8572_v62 = vstv %s8563_s25  ;;  %v8573_v1 = vstv %s8564_s7  ;;  %s8584_s25 = sld [smem:[#allocation66_spill]]  ;;  %s8585_s7 = sld [smem:[#allocation67_spill]]  ;;  %v848_v3 = vpop.permute.xlu0 %847 }
 0x238   :  { %v731_v44 = vmul.f32 %v8572_v62, %v684_v56  ;;  %v747_v21 = vmul.f32 %v8573_v1, %v684_v56  ;;  %v8574_v32 = vstv %s8565_s10  ;;  %v8575_v23 = vstv %s8566_s1  ;;  %s8590_s10 = sld [smem:[#allocation76_spill]]  ;;  %s8592_s1 = sld [smem:[#allocation77_spill]] }
 0x239   :  { %v703_v54 = vmul.f32 %v8574_v32, %v688_v22  ;;  %v719_v39 = vmul.f32 %v8575_v23, %v688_v22  ;;  %v8577_v57 = vstv %s8567_s29  ;;  %v8578_v48 = vstv %s8568_s4  ;;  %v771_v7 = vpop.permute.xlu1 %770  ;;  %s8594_s29 = sld [smem:[#allocation78_spill]]  ;;  %s8595_s4 = sld [smem:[#allocation72_spill]] }
 0x23a   :  { %v735_v61 = vmul.f32 %v8577_v57, %v688_v22  ;;  %v751_v52 = vmul.f32 %v8578_v48, %v688_v22  ;;  %v700_v42 = vadd.f32 %v699_v11, %v696_v33  ;;  %v716_v18 = vadd.f32 %v715_v35, %v712_v37 }
 0x23b   :  { %v732_v36 = vadd.f32 %v731_v44, %v728_v19  ;;  %v748_v17 = vadd.f32 %v747_v21, %v744_v63  ;;  %v8583_v50 = vstv %s8569_s24  ;;  %v692_v5 = vsel %vm676_vm5, %v690_v38, %v691_v40  ;;  %s8597_s24 = sld [smem:[#allocation73_spill]] }
 0x23c   :  { %v776_v24 = vmul.f32 %v8583_v50, %v761_v59  ;;  %v768_v51 = vrot.slane %v767_v27, 7  ;;  %v764_v16 = vrot.slane %v763_v45, 7  ;;  %v704_v60 = vadd.f32 %v703_v54, %v700_v42 }
 0x23d   :  { %v8586_v22 = vstv %s8576_s0  ;;  %v720_v37 = vadd.f32 %v719_v39, %v716_v18  ;;  %v8587_v19 = vstv %s8579_s20  ;;  %v736_v63 = vadd.f32 %v735_v61, %v732_v36  ;;  %s8598_s0 = sld [smem:[#allocation79_spill]]  ;;  %v844_v48 = vpop.permute.xlu1 %843  ;;  %s8601_s20 = sld [smem:[#allocation75_spill]] }
 0x23e   :  { %v707_v33 = vmul.f32 %v8586_v22, %v692_v5  ;;  %v723_v56 = vmul.f32 %v8587_v19, %v692_v5  ;;  %v8588_v2 = vstv %s8580_s14  ;;  %v752_v53 = vadd.f32 %v751_v52, %v748_v17  ;;  %s8599_s14 = sld [smem:[#allocation74_spill]]  ;;  %v6211_v52 = vpop.permute.xlu0 %920 }
 0x23f   :  { %v739_v11 = vmul.f32 %v8588_v2, %v692_v5  ;;  %v8589_v35 = vstv %s8581_s13  ;;  %v8591_v44 = vstv %s8582_s17  ;;  %v8593_v40 = vstv %s8584_s25  ;;  %s8608_s13 = sld [smem:[#allocation84_spill]]  ;;  %s8609_s17 = sld [smem:[#allocation85_spill]] }
 0x240   :  { %v755_v62 = vmul.f32 %v8589_v35, %v692_v5  ;;  %v792_v38 = vmul.f32 %v8591_v44, %v761_v59  ;;  %v808_v1 = vmul.f32 %v8593_v40, %v761_v59  ;;  %v708_v21 = vadd.f32 %v707_v33, %v704_v60  ;;  %s8610_s25 = sld [smem:[#allocation86_spill]] }
 0x241   :  { %v724_v32 = vadd.f32 %v723_v56, %v720_v37  ;;  %v8596_v54 = vstv %s8585_s7  ;;  %v740_v39 = vadd.f32 %v739_v11, %v736_v63  ;;  %v769_v61 = vsel %vm757_vm6, %v767_v27, %v768_v51  ;;  %s8612_s7 = sld [smem:[#allocation87_spill]] }
 0x242   :  { %v824_v23 = vmul.f32 %v8596_v54, %v761_v59  ;;  %v756_v57 = vadd.f32 %v755_v62, %v752_v53  ;;  %v765_v42 = vsel %vm757_vm6, %v763_v45, %v764_v16  ;;  %v777_v18 = vadd.f32 %v776_v24, %v708_v21  ;;  %v852_v62 = vpop.permute.xlu1 %851  ;;  %v6230_v44 = vpop.permute.xlu0 %928 }
 0x243   :  { %v793_v36 = vadd.f32 %v792_v38, %v724_v32  ;;  %v841_v17 = vrot.slane %v840_v49, 7  ;;  %v8600_v50 = vstv %s8590_s10  ;;  %v8602_v59 = vstv %s8592_s1  ;;  %s8613_s10 = sld [smem:[#allocation80_spill]]  ;;  %s8614_s1 = sld [smem:[#allocation81_spill]] }
 0x244   :  { %v780_v5 = vmul.f32 %v8600_v50, %v765_v42  ;;  %v796_v60 = vmul.f32 %v8602_v59, %v765_v42  ;;  %v809_v22 = vadd.f32 %v808_v1, %v740_v39  ;;  %v8603_v33 = vstv %s8594_s29  ;;  %s8615_s29 = sld [smem:[#allocation82_spill]] }
 0x245   :  { %v812_v37 = vmul.f32 %v8603_v33, %v765_v42  ;;  %v8604_v19 = vstv %s8595_s4  ;;  %v8605_v27 = vstv %s8597_s24  ;;  %v825_v63 = vadd.f32 %v824_v23, %v756_v57  ;;  %s8616_s4 = sld [smem:[#allocation83_spill]]  ;;  %s8617_s24 = sld [smem:[#allocation88_spill]] }
 0x246   :  { %v784_v56 = vmul.f32 %v8604_v19, %v769_v61  ;;  %v800_v51 = vmul.f32 %v8605_v27, %v769_v61  ;;  %v8606_v2 = vstv %s8598_s0  ;;  %v8607_v53 = vstv %s8599_s14  ;;  %s8622_s0 = sld [smem:[#allocation92_spill]]  ;;  %v1002_v19 = vpop.permute.xlu0 %1001  ;;  %s8625_s14 = sld [smem:[#allocation93_spill]] }
 0x247   :  { %v828_v11 = vmul.f32 %v8606_v2, %v765_v42  ;;  %v816_v45 = vmul.f32 %v8607_v53, %v769_v61  ;;  %v781_v24 = vadd.f32 %v780_v5, %v777_v18  ;;  %v797_v16 = vadd.f32 %v796_v60, %v793_v36 }
 0x248   :  { %v813_v35 = vadd.f32 %v812_v37, %v809_v22  ;;  %v8611_v38 = vstv %s8601_s20  ;;  %v772_v21 = vrot.slane %v771_v7, 7  ;;  %v849_v32 = vrot.slane %v848_v3, 7  ;;  %v925_v37 = vpop.permute.xlu1 %924  ;;  %s8628_s20 = sld [smem:[#allocation94_spill]] }
 0x249   :  { %v832_v40 = vmul.f32 %v8611_v38, %v769_v61  ;;  %v829_v1 = vadd.f32 %v828_v11, %v825_v63  ;;  %v842_v54 = vsel %vm838_vm7, %v840_v49, %v841_v17  ;;  %v785_v23 = vadd.f32 %v784_v56, %v781_v24 }
 0x24a   :  { %v801_v39 = vadd.f32 %v800_v51, %v797_v16  ;;  %v817_v57 = vadd.f32 %v816_v45, %v813_v35  ;;  %v773_v42 = vsel %vm757_vm6, %v771_v7, %v772_v21  ;;  %v850_v61 = vsel %vm838_vm7, %v848_v3, %v849_v32 }
 0x24b   :  { %v833_v18 = vadd.f32 %v832_v40, %v829_v1  ;;  %v845_v36 = vrot.slane %v844_v48, 7  ;;  %v8618_v50 = vstv %s8608_s13  ;;  %v8619_v59 = vstv %s8609_s17  ;;  %s8629_s13 = sld [smem:[#allocation95_spill]]  ;;  %s8631_s17 = sld [smem:[#allocation89_spill]] }
 0x24c   :  { %v788_v5 = vmul.f32 %v8618_v50, %v773_v42  ;;  %v804_v60 = vmul.f32 %v8619_v59, %v773_v42  ;;  %v8620_v22 = vstv %s8610_s25  ;;  %v8621_v17 = vstv %s8612_s7  ;;  %s8632_s25 = sld [smem:[#allocation90_spill]]  ;;  %s8633_s7 = sld [smem:[#allocation91_spill]]  ;;  %v6266_v50 = vpop.permute.xlu0 %1009 }
 0x24d   :  { %v820_v49 = vmul.f32 %v8620_v22, %v773_v42  ;;  %v836_v33 = vmul.f32 %v8621_v17, %v773_v42  ;;  %v8623_v56 = vstv %s8613_s10  ;;  %v8624_v7 = vstv %s8614_s1  ;;  %s8638_s10 = sld [smem:[#allocation100_spill]]  ;;  %s8640_s1 = sld [smem:[#allocation101_spill]] }
 0x24e   :  { %v857_v27 = vmul.f32 %v8623_v56, %v842_v54  ;;  %v873_v51 = vmul.f32 %v8624_v7, %v842_v54  ;;  %v8626_v63 = vstv %s8615_s29  ;;  %v8627_v2 = vstv %s8616_s4  ;;  %s8642_s29 = sld [smem:[#allocation102_spill]]  ;;  %s8643_s4 = sld [smem:[#allocation96_spill]] }
 0x24f   :  { %v889_v3 = vmul.f32 %v8626_v63, %v842_v54  ;;  %v905_v11 = vmul.f32 %v8627_v2, %v842_v54  ;;  %v789_v53 = vadd.f32 %v788_v5, %v785_v23  ;;  %v805_v45 = vadd.f32 %v804_v60, %v801_v39 }
 0x250   :  { %v821_v24 = vadd.f32 %v820_v49, %v817_v57  ;;  %v837_v16 = vadd.f32 %v836_v33, %v833_v18  ;;  %v8630_v35 = vstv %s8617_s24  ;;  %v846_v40 = vsel %vm838_vm7, %v844_v48, %v845_v36  ;;  %v933_v18 = vpop.permute.xlu1 %932  ;;  %s8645_s24 = sld [smem:[#allocation97_spill]] }
 0x251   :  { %v865_v38 = vmul.f32 %v8630_v35, %v850_v61  ;;  %v922_v1 = vrot.slane %v6211_v52, 7  ;;  %v853_v21 = vrot.slane %v852_v62, 7  ;;  %v858_v32 = vadd.f32 %v857_v27, %v789_v53 }
 0x252   :  { %v8634_v54 = vstv %s8622_s0  ;;  %v874_v39 = vadd.f32 %v873_v51, %v805_v45  ;;  %v8635_v57 = vstv %s8625_s14  ;;  %v890_v5 = vadd.f32 %v889_v3, %v821_v24  ;;  %s8646_s0 = sld [smem:[#allocation103_spill]]  ;;  %s8647_s14 = sld [smem:[#allocation98_spill]] }
 0x253   :  { %v861_v23 = vmul.f32 %v8634_v54, %v846_v40  ;;  %v877_v42 = vmul.f32 %v8635_v57, %v846_v40  ;;  %v8636_v59 = vstv %s8628_s20  ;;  %v906_v22 = vadd.f32 %v905_v11, %v837_v16  ;;  %s8648_s20 = sld [smem:[#allocation99_spill]] }
 0x254   :  { %v893_v60 = vmul.f32 %v8636_v59, %v846_v40  ;;  %v8637_v48 = vstv %s8629_s13  ;;  %v8639_v49 = vstv %s8631_s17  ;;  %v8641_v33 = vstv %s8632_s25  ;;  %v6284_v35 = vpop.permute.xlu1 %1005  ;;  %s8656_s13 = sld [smem:[#allocation108_spill]]  ;;  %s8658_s17 = sld [smem:[#allocation109_spill]] }
 0x255   :  { %v909_v36 = vmul.f32 %v8637_v48, %v846_v40  ;;  %v881_v17 = vmul.f32 %v8639_v49, %v850_v61  ;;  %v897_v56 = vmul.f32 %v8641_v33, %v850_v61  ;;  %v862_v27 = vadd.f32 %v861_v23, %v858_v32  ;;  %v6286_v40 = vpop.permute.xlu0 %1082  ;;  %s8659_s25 = sld [smem:[#allocation110_spill]] }
 0x256   :  { %v878_v7 = vadd.f32 %v877_v42, %v874_v39  ;;  %v8644_v51 = vstv %s8633_s7  ;;  %v894_v2 = vadd.f32 %v893_v60, %v890_v5  ;;  %v923_v11 = vsel %vm919_vm8, %v6211_v52, %v922_v1  ;;  %s8660_s7 = sld [smem:[#allocation111_spill]] }
 0x257   :  { %v913_v63 = vmul.f32 %v8644_v51, %v850_v61  ;;  %v910_v3 = vadd.f32 %v909_v36, %v906_v22  ;;  %v854_v53 = vsel %vm838_vm7, %v852_v62, %v853_v21  ;;  %v866_v45 = vadd.f32 %v865_v38, %v862_v27 }
 0x258   :  { %v882_v24 = vadd.f32 %v881_v17, %v878_v7  ;;  %v930_v16 = vrot.slane %v6230_v44, 7  ;;  %v8649_v61 = vstv %s8638_s10  ;;  %v8650_v54 = vstv %s8640_s1  ;;  %s8661_s10 = sld [smem:[#allocation104_spill]]  ;;  %s8662_s1 = sld [smem:[#allocation105_spill]]  ;;  %v6304_v51 = vpop.permute.xlu1 %1013 }
 0x259   :  { %v869_v32 = vmul.f32 %v8649_v61, %v854_v53  ;;  %v885_v23 = vmul.f32 %v8650_v54, %v854_v53  ;;  %v898_v39 = vadd.f32 %v897_v56, %v894_v2  ;;  %v8651_v57 = vstv %s8642_s29  ;;  %s8663_s29 = sld [smem:[#allocation106_spill]] }
 0x25a   :  { %v901_v42 = vmul.f32 %v8651_v57, %v854_v53  ;;  %v8652_v52 = vstv %s8643_s4  ;;  %v8653_v5 = vstv %s8645_s24  ;;  %v914_v38 = vadd.f32 %v913_v63, %v910_v3  ;;  %s8664_s4 = sld [smem:[#allocation107_spill]]  ;;  %s8665_s24 = sld [smem:[#allocation112_spill]] }
 0x25b   :  { %v938_v1 = vmul.f32 %v8652_v52, %v923_v11  ;;  %v954_v62 = vmul.f32 %v8653_v5, %v923_v11  ;;  %v8654_v21 = vstv %s8646_s0  ;;  %v8655_v60 = vstv %s8647_s14  ;;  %s8671_s0 = sld [smem:[#allocation116_spill]]  ;;  %s8674_s14 = sld [smem:[#allocation117_spill]] }
 0x25c   :  { %v917_v59 = vmul.f32 %v8654_v21, %v854_v53  ;;  %v970_v22 = vmul.f32 %v8655_v60, %v923_v11  ;;  %v870_v48 = vadd.f32 %v869_v32, %v866_v45  ;;  %v886_v36 = vadd.f32 %v885_v23, %v882_v24  ;;  %v6313_v32 = vpop.permute.xlu0 %1090 }
 0x25d   :  { %v902_v49 = vadd.f32 %v901_v42, %v898_v39  ;;  %v8657_v17 = vstv %s8648_s20  ;;  %v926_v27 = vrot.slane %v925_v37, 7  ;;  %v1003_v7 = vrot.slane %v1002_v19, 7  ;;  %s8676_s20 = sld [smem:[#allocation118_spill]] }
 0x25e   :  { %v986_v33 = vmul.f32 %v8657_v17, %v923_v11  ;;  %v918_v56 = vadd.f32 %v917_v59, %v914_v38  ;;  %v931_v63 = vsel %vm919_vm8, %v6230_v44, %v930_v16  ;;  %v939_v2 = vadd.f32 %v938_v1, %v870_v48 }
 0x25f   :  { %v955_v3 = vadd.f32 %v954_v62, %v886_v36  ;;  %v971_v53 = vadd.f32 %v970_v22, %v902_v49  ;;  %v927_v11 = vsel %vm919_vm8, %v925_v37, %v926_v27  ;;  %v1004_v24 = vsel %vm1000_vm9, %v1002_v19, %v1003_v7  ;;  %v6338_v7 = vpop.permute.xlu1 %1086 }
 0x260   :  { %v987_v45 = vadd.f32 %v986_v33, %v918_v56  ;;  %v934_v61 = vrot.slane %v933_v18, 7  ;;  %v8666_v54 = vstv %s8656_s13  ;;  %v8667_v39 = vstv %s8658_s17  ;;  %s8677_s13 = sld [smem:[#allocation119_spill]]  ;;  %s8678_s17 = sld [smem:[#allocation113_spill]] }
 0x261   :  { %v942_v23 = vmul.f32 %v8666_v54, %v927_v11  ;;  %v958_v57 = vmul.f32 %v8667_v39, %v927_v11  ;;  %v8668_v44 = vstv %s8659_s25  ;;  %v8669_v42 = vstv %s8660_s7  ;;  %s8680_s25 = sld [smem:[#allocation114_spill]]  ;;  %s8681_s7 = sld [smem:[#allocation115_spill]] }
 0x262   :  { %v974_v16 = vmul.f32 %v8668_v44, %v927_v11  ;;  %v990_v52 = vmul.f32 %v8669_v42, %v927_v11  ;;  %v8670_v1 = vstv %s8661_s10  ;;  %v8672_v37 = vstv %s8662_s1  ;;  %s8685_s10 = sld [smem:[#allocation124_spill]]  ;;  %s8687_s1 = sld [smem:[#allocation125_spill]] }
 0x263   :  { %v946_v5 = vmul.f32 %v8670_v1, %v931_v63  ;;  %v962_v62 = vmul.f32 %v8672_v37, %v931_v63  ;;  %v8673_v38 = vstv %s8663_s29  ;;  %v8675_v21 = vstv %s8664_s4  ;;  %s8689_s29 = sld [smem:[#allocation126_spill]]  ;;  %s8691_s4 = sld [smem:[#allocation120_spill]] }
 0x264   :  { %v978_v19 = vmul.f32 %v8673_v38, %v931_v63  ;;  %v994_v59 = vmul.f32 %v8675_v21, %v931_v63  ;;  %v943_v60 = vadd.f32 %v942_v23, %v939_v2  ;;  %v959_v22 = vadd.f32 %v958_v57, %v955_v3 }
 0x265   :  { %v975_v48 = vadd.f32 %v974_v16, %v971_v53  ;;  %v991_v36 = vadd.f32 %v990_v52, %v987_v45  ;;  %v8679_v49 = vstv %s8665_s24  ;;  %v935_v33 = vsel %vm919_vm8, %v933_v18, %v934_v61  ;;  %v6348_v61 = vpop.permute.xlu0 %1163  ;;  %s8692_s24 = sld [smem:[#allocation121_spill]] }
 0x266   :  { %v1019_v17 = vmul.f32 %v8679_v49, %v1004_v24  ;;  %v1011_v56 = vrot.slane %v6266_v50, 7  ;;  %v1007_v27 = vrot.slane %v6284_v35, 7  ;;  %v947_v63 = vadd.f32 %v946_v5, %v943_v60 }
 0x267   :  { %v8682_v2 = vstv %s8671_s0  ;;  %v963_v53 = vadd.f32 %v962_v62, %v959_v22  ;;  %v8683_v11 = vstv %s8674_s14  ;;  %v979_v54 = vadd.f32 %v978_v19, %v975_v48  ;;  %s8694_s0 = sld [smem:[#allocation127_spill]]  ;;  %s8695_s14 = sld [smem:[#allocation122_spill]] }
 0x268   :  { %v950_v3 = vmul.f32 %v8682_v2, %v935_v33  ;;  %v966_v45 = vmul.f32 %v8683_v11, %v935_v33  ;;  %v8684_v23 = vstv %s8676_s20  ;;  %v995_v57 = vadd.f32 %v994_v59, %v991_v36  ;;  %s8697_s20 = sld [smem:[#allocation123_spill]]  ;;  %v1095_v11 = vpop.permute.xlu1 %1094 }
 0x269   :  { %v982_v39 = vmul.f32 %v8684_v23, %v935_v33  ;;  %v8686_v44 = vstv %s8677_s13  ;;  %v8688_v16 = vstv %s8678_s17  ;;  %v8690_v52 = vstv %s8680_s25  ;;  %s8704_s13 = sld [smem:[#allocation132_spill]]  ;;  %s8705_s17 = sld [smem:[#allocation133_spill]] }
 0x26a   :  { %v998_v18 = vmul.f32 %v8686_v44, %v935_v33  ;;  %v1035_v42 = vmul.f32 %v8688_v16, %v1004_v24  ;;  %v1051_v1 = vmul.f32 %v8690_v52, %v1004_v24  ;;  %v951_v5 = vadd.f32 %v950_v3, %v947_v63  ;;  %s8706_s25 = sld [smem:[#allocation134_spill]]  ;;  %v6378_v16 = vpop.permute.xlu0 %1171 }
 0x26b   :  { %v967_v37 = vadd.f32 %v966_v45, %v963_v53  ;;  %v8693_v62 = vstv %s8681_s7  ;;  %v983_v19 = vadd.f32 %v982_v39, %v979_v54  ;;  %v1012_v59 = vsel %vm1000_vm9, %v6266_v50, %v1011_v56  ;;  %s8708_s7 = sld [smem:[#allocation135_spill]] }
 0x26c   :  { %v1067_v38 = vmul.f32 %v8693_v62, %v1004_v24  ;;  %v999_v21 = vadd.f32 %v998_v18, %v995_v57  ;;  %v1008_v60 = vsel %vm1000_vm9, %v6284_v35, %v1007_v27  ;;  %v1020_v22 = vadd.f32 %v1019_v17, %v951_v5 }
 0x26d   :  { %v1036_v48 = vadd.f32 %v1035_v42, %v967_v37  ;;  %v1084_v36 = vrot.slane %v6286_v40, 7  ;;  %v8696_v49 = vstv %s8685_s10  ;;  %v8698_v24 = vstv %s8687_s1  ;;  %s8709_s10 = sld [smem:[#allocation128_spill]]  ;;  %s8710_s1 = sld [smem:[#allocation129_spill]] }
 0x26e   :  { %v1023_v33 = vmul.f32 %v8696_v49, %v1008_v60  ;;  %v1039_v63 = vmul.f32 %v8698_v24, %v1008_v60  ;;  %v1052_v2 = vadd.f32 %v1051_v1, %v983_v19  ;;  %v8699_v3 = vstv %s8689_s29  ;;  %s8711_s29 = sld [smem:[#allocation130_spill]] }
 0x26f   :  { %v1055_v53 = vmul.f32 %v8699_v3, %v1008_v60  ;;  %v8700_v45 = vstv %s8691_s4  ;;  %v8701_v50 = vstv %s8692_s24  ;;  %v1068_v23 = vadd.f32 %v1067_v38, %v999_v21  ;;  %s8712_s4 = sld [smem:[#allocation131_spill]]  ;;  %s8713_s24 = sld [smem:[#allocation136_spill]] }
 0x270   :  { %v1027_v54 = vmul.f32 %v8700_v45, %v1012_v59  ;;  %v1043_v56 = vmul.f32 %v8701_v50, %v1012_v59  ;;  %v8702_v39 = vstv %s8694_s0  ;;  %v8703_v17 = vstv %s8695_s14  ;;  %s8719_s0 = sld [smem:[#allocation140_spill]]  ;;  %s8722_s14 = sld [smem:[#allocation141_spill]] }
 0x271   :  { %v1071_v35 = vmul.f32 %v8702_v39, %v1008_v60  ;;  %v1059_v27 = vmul.f32 %v8703_v17, %v1012_v59  ;;  %v1024_v57 = vadd.f32 %v1023_v33, %v1020_v22  ;;  %v1040_v44 = vadd.f32 %v1039_v63, %v1036_v48 }
 0x272   :  { %v1056_v18 = vadd.f32 %v1055_v53, %v1052_v2  ;;  %v8707_v42 = vstv %s8697_s20  ;;  %v1015_v5 = vrot.slane %v6304_v51, 7  ;;  %v1092_v37 = vrot.slane %v6313_v32, 7  ;;  %v1168_v53 = vpop.permute.xlu1 %1167  ;;  %s8724_s20 = sld [smem:[#allocation142_spill]] }
 0x273   :  { %v1075_v52 = vmul.f32 %v8707_v42, %v1012_v59  ;;  %v1072_v1 = vadd.f32 %v1071_v35, %v1068_v23  ;;  %v1085_v62 = vsel %vm1081_vm10, %v6286_v40, %v1084_v36  ;;  %v1028_v38 = vadd.f32 %v1027_v54, %v1024_v57 }
 0x274   :  { %v1044_v19 = vadd.f32 %v1043_v56, %v1040_v44  ;;  %v1060_v21 = vadd.f32 %v1059_v27, %v1056_v18  ;;  %v1016_v59 = vsel %vm1000_vm9, %v6304_v51, %v1015_v5  ;;  %v1093_v22 = vsel %vm1081_vm10, %v6313_v32, %v1092_v37  ;;  %v1245_v44 = vpop.permute.xlu0 %1244 }
 0x275   :  { %v1076_v60 = vadd.f32 %v1075_v52, %v1072_v1  ;;  %v1088_v48 = vrot.slane %v6338_v7, 7  ;;  %v8714_v49 = vstv %s8704_s13  ;;  %v8715_v24 = vstv %s8705_s17  ;;  %s8725_s13 = sld [smem:[#allocation143_spill]]  ;;  %s8726_s17 = sld [smem:[#allocation137_spill]] }
 0x276   :  { %v1031_v33 = vmul.f32 %v8714_v49, %v1016_v59  ;;  %v1047_v40 = vmul.f32 %v8715_v24, %v1016_v59  ;;  %v8716_v36 = vstv %s8706_s25  ;;  %v8717_v2 = vstv %s8708_s7  ;;  %s8727_s25 = sld [smem:[#allocation138_spill]]  ;;  %s8729_s7 = sld [smem:[#allocation139_spill]] }
 0x277   :  { %v1063_v63 = vmul.f32 %v8716_v36, %v1016_v59  ;;  %v1079_v3 = vmul.f32 %v8717_v2, %v1016_v59  ;;  %v8718_v45 = vstv %s8709_s10  ;;  %v8720_v54 = vstv %s8710_s1  ;;  %s8734_s10 = sld [smem:[#allocation148_spill]]  ;;  %s8736_s1 = sld [smem:[#allocation149_spill]] }
 0x278   :  { %v1100_v51 = vmul.f32 %v8718_v45, %v1085_v62  ;;  %v1116_v50 = vmul.f32 %v8720_v54, %v1085_v62  ;;  %v8721_v56 = vstv %s8711_s29  ;;  %v8723_v23 = vstv %s8712_s4  ;;  %s8738_s29 = sld [smem:[#allocation150_spill]]  ;;  %s8739_s4 = sld [smem:[#allocation144_spill]] }
 0x279   :  { %v1132_v32 = vmul.f32 %v8721_v56, %v1085_v62  ;;  %v1148_v39 = vmul.f32 %v8723_v23, %v1085_v62  ;;  %v1032_v35 = vadd.f32 %v1031_v33, %v1028_v38  ;;  %v1048_v17 = vadd.f32 %v1047_v40, %v1044_v19 }
 0x27a   :  { %v1064_v27 = vadd.f32 %v1063_v63, %v1060_v21  ;;  %v1080_v57 = vadd.f32 %v1079_v3, %v1076_v60  ;;  %v8728_v18 = vstv %s8713_s24  ;;  %v1089_v52 = vsel %vm1081_vm10, %v6338_v7, %v1088_v48  ;;  %s8740_s24 = sld [smem:[#allocation145_spill]] }
 0x27b   :  { %v1108_v42 = vmul.f32 %v8728_v18, %v1093_v22  ;;  %v1165_v1 = vrot.slane %v6348_v61, 7  ;;  %v1096_v5 = vrot.slane %v1095_v11, 7  ;;  %v1101_v37 = vadd.f32 %v1100_v51, %v1032_v35  ;;  %v1176_v51 = vpop.permute.xlu1 %1175 }
 0x27c   :  { %v8730_v62 = vstv %s8719_s0  ;;  %v1117_v19 = vadd.f32 %v1116_v50, %v1048_v17  ;;  %v8731_v21 = vstv %s8722_s14  ;;  %v1133_v60 = vadd.f32 %v1132_v32, %v1064_v27  ;;  %s8742_s0 = sld [smem:[#allocation151_spill]]  ;;  %s8743_s14 = sld [smem:[#allocation146_spill]] }
 0x27d   :  { %v1104_v38 = vmul.f32 %v8730_v62, %v1089_v52  ;;  %v1120_v59 = vmul.f32 %v8731_v21, %v1089_v52  ;;  %v8732_v49 = vstv %s8724_s20  ;;  %v1149_v24 = vadd.f32 %v1148_v39, %v1080_v57  ;;  %s8744_s20 = sld [smem:[#allocation147_spill]]  ;;  %v1253_v57 = vpop.permute.xlu0 %1252 }
 0x27e   :  { %v1136_v33 = vmul.f32 %v8732_v49, %v1089_v52  ;;  %v8733_v40 = vstv %s8725_s13  ;;  %v8735_v7 = vstv %s8726_s17  ;;  %v8737_v63 = vstv %s8727_s25  ;;  %s8752_s13 = sld [smem:[#allocation156_spill]]  ;;  %s8754_s17 = sld [smem:[#allocation157_spill]] }
 0x27f   :  { %v1152_v36 = vmul.f32 %v8733_v40, %v1089_v52  ;;  %v1124_v48 = vmul.f32 %v8735_v7, %v1093_v22  ;;  %v1140_v2 = vmul.f32 %v8737_v63, %v1093_v22  ;;  %v1105_v3 = vadd.f32 %v1104_v38, %v1101_v37  ;;  %s8755_s25 = sld [smem:[#allocation158_spill]] }
 0x280   :  { %v1121_v45 = vadd.f32 %v1120_v59, %v1117_v19  ;;  %v8741_v54 = vstv %s8729_s7  ;;  %v1137_v56 = vadd.f32 %v1136_v33, %v1133_v60  ;;  %v1166_v23 = vsel %vm1162_vm11, %v6348_v61, %v1165_v1  ;;  %s8756_s7 = sld [smem:[#allocation159_spill]] }
 0x281   :  { %v1156_v50 = vmul.f32 %v8741_v54, %v1093_v22  ;;  %v1153_v32 = vadd.f32 %v1152_v36, %v1149_v24  ;;  %v1097_v39 = vsel %vm1081_vm10, %v1095_v11, %v1096_v5  ;;  %v1109_v35 = vadd.f32 %v1108_v42, %v1105_v3  ;;  %v1249_v3 = vpop.permute.xlu1 %1248 }
 0x282   :  { %v1125_v17 = vadd.f32 %v1124_v48, %v1121_v45  ;;  %v1173_v27 = vrot.slane %v6378_v16, 7  ;;  %v8745_v18 = vstv %s8734_s10  ;;  %v8746_v22 = vstv %s8736_s1  ;;  %s8757_s10 = sld [smem:[#allocation152_spill]]  ;;  %s8758_s1 = sld [smem:[#allocation153_spill]] }
 0x283   :  { %v1112_v52 = vmul.f32 %v8745_v18, %v1097_v39  ;;  %v1128_v37 = vmul.f32 %v8746_v22, %v1097_v39  ;;  %v1141_v62 = vadd.f32 %v1140_v2, %v1137_v56  ;;  %v8747_v38 = vstv %s8738_s29  ;;  %s8759_s29 = sld [smem:[#allocation154_spill]] }
 0x284   :  { %v1144_v19 = vmul.f32 %v8747_v38, %v1097_v39  ;;  %v8748_v21 = vstv %s8739_s4  ;;  %v8749_v60 = vstv %s8740_s24  ;;  %v1157_v1 = vadd.f32 %v1156_v50, %v1153_v32  ;;  %s8760_s4 = sld [smem:[#allocation155_spill]]  ;;  %s8761_s24 = sld [smem:[#allocation160_spill]] }
 0x285   :  { %v1181_v59 = vmul.f32 %v8748_v21, %v1166_v23  ;;  %v1197_v61 = vmul.f32 %v8749_v60, %v1166_v23  ;;  %v8750_v49 = vstv %s8742_s0  ;;  %v8751_v42 = vstv %s8743_s14  ;;  %s8766_s0 = sld [smem:[#allocation164_spill]]  ;;  %s8769_s14 = sld [smem:[#allocation165_spill]] }
 0x286   :  { %v1160_v11 = vmul.f32 %v8750_v49, %v1097_v39  ;;  %v1213_v5 = vmul.f32 %v8751_v42, %v1166_v23  ;;  %v1113_v33 = vadd.f32 %v1112_v52, %v1109_v35  ;;  %v1129_v24 = vadd.f32 %v1128_v37, %v1125_v17  ;;  %v1389_v17 = vpop.permute.xlu0 %1388 }
 0x287   :  { %v1145_v40 = vadd.f32 %v1144_v19, %v1141_v62  ;;  %v8753_v36 = vstv %s8744_s20  ;;  %v1169_v63 = vrot.slane %v1168_v53, 7  ;;  %v1246_v2 = vrot.slane %v1245_v44, 7  ;;  %s8772_s20 = sld [smem:[#allocation166_spill]] }
 0x288   :  { %v1229_v7 = vmul.f32 %v8753_v36, %v1166_v23  ;;  %v1161_v48 = vadd.f32 %v1160_v11, %v1157_v1  ;;  %v1174_v45 = vsel %vm1162_vm11, %v6378_v16, %v1173_v27  ;;  %v1182_v54 = vadd.f32 %v1181_v59, %v1113_v33 }
 0x289   :  { %v1198_v50 = vadd.f32 %v1197_v61, %v1129_v24  ;;  %v1214_v56 = vadd.f32 %v1213_v5, %v1145_v40  ;;  %v1170_v32 = vsel %vm1162_vm11, %v1168_v53, %v1169_v63  ;;  %v1247_v39 = vsel %vm1243_vm12, %v1245_v44, %v1246_v2 }
 0x28a   :  { %v1230_v23 = vadd.f32 %v1229_v7, %v1161_v48  ;;  %v1177_v35 = vrot.slane %v1176_v51, 7  ;;  %v8762_v18 = vstv %s8752_s13  ;;  %v8763_v22 = vstv %s8754_s17  ;;  %s8773_s13 = sld [smem:[#allocation167_spill]]  ;;  %s8774_s17 = sld [smem:[#allocation161_spill]]  ;;  %v1257_v48 = vpop.permute.xlu1 %1256 }
 0x28b   :  { %v1185_v52 = vmul.f32 %v8762_v18, %v1170_v32  ;;  %v1201_v37 = vmul.f32 %v8763_v22, %v1170_v32  ;;  %v8764_v62 = vstv %s8755_s25  ;;  %v8765_v27 = vstv %s8756_s7  ;;  %s8776_s25 = sld [smem:[#allocation162_spill]]  ;;  %s8777_s7 = sld [smem:[#allocation163_spill]] }
 0x28c   :  { %v1217_v16 = vmul.f32 %v8764_v62, %v1170_v32  ;;  %v1233_v38 = vmul.f32 %v8765_v27, %v1170_v32  ;;  %v8767_v19 = vstv %s8757_s10  ;;  %v8768_v59 = vstv %s8758_s1  ;;  %s8781_s10 = sld [smem:[#allocation170_spill]]  ;;  %s8783_s1 = sld [smem:[#allocation171_spill]]  ;;  %v1397_v62 = vpop.permute.xlu0 %1396 }
 0x28d   :  { %v1189_v21 = vmul.f32 %v8767_v19, %v1174_v45  ;;  %v1205_v53 = vmul.f32 %v8768_v59, %v1174_v45  ;;  %v8770_v60 = vstv %s8759_s29  ;;  %v8771_v1 = vstv %s8760_s4  ;;  %s8785_s29 = sld [smem:[#allocation172_spill]]  ;;  %s8787_s4 = sld [smem:[#allocation5_spill]] }
 0x28e   :  { %v1221_v61 = vmul.f32 %v8770_v60, %v1174_v45  ;;  %v1237_v44 = vmul.f32 %v8771_v1, %v1174_v45  ;;  %v1186_v49 = vadd.f32 %v1185_v52, %v1182_v54  ;;  %v1202_v11 = vadd.f32 %v1201_v37, %v1198_v50 }
 0x28f   :  { %v1218_v42 = vadd.f32 %v1217_v16, %v1214_v56  ;;  %v1234_v5 = vadd.f32 %v1233_v38, %v1230_v23  ;;  %v8775_v33 = vstv %s8761_s24  ;;  %v1178_v40 = vsel %vm1162_vm11, %v1176_v51, %v1177_v35  ;;  %s8789_s24 = sld [smem:[#allocation13_spill]] }
 0x290   :  { %v1262_v24 = vmul.f32 %v8775_v33, %v1247_v39  ;;  %v1254_v36 = vrot.slane %v1253_v57, 7  ;;  %v1250_v7 = vrot.slane %v1249_v3, 7  ;;  %v1190_v63 = vadd.f32 %v1189_v21, %v1186_v49 }
 0x291   :  { %v8778_v2 = vstv %s8766_s0  ;;  %v1206_v45 = vadd.f32 %v1205_v53, %v1202_v11  ;;  %v8779_v54 = vstv %s8769_s14  ;;  %v1222_v50 = vadd.f32 %v1221_v61, %v1218_v42  ;;  %s8790_s0 = sld [smem:[#allocation173_spill]]  ;;  %s8791_s14 = sld [smem:[#allocation168_spill]] }
 0x292   :  { %v1193_v32 = vmul.f32 %v8778_v2, %v1178_v40  ;;  %v1209_v18 = vmul.f32 %v8779_v54, %v1178_v40  ;;  %v8780_v56 = vstv %s8772_s20  ;;  %v1238_v23 = vadd.f32 %v1237_v44, %v1234_v5  ;;  %s8793_s20 = sld [smem:[#allocation169_spill]] }
 0x293   :  { %v1225_v52 = vmul.f32 %v8780_v56, %v1178_v40  ;;  %v8782_v22 = vstv %s8773_s13  ;;  %v8784_v51 = vstv %s8774_s17  ;;  %v8786_v16 = vstv %s8776_s25  ;;  %s8800_s13 = sld [smem:[#allocation176_spill]]  ;;  %s8801_s17 = sld [smem:[#allocation177_spill]] }
 0x294   :  { %v1241_v37 = vmul.f32 %v8782_v22, %v1178_v40  ;;  %v1278_v35 = vmul.f32 %v8784_v51, %v1247_v39  ;;  %v1294_v27 = vmul.f32 %v8786_v16, %v1247_v39  ;;  %v1194_v38 = vadd.f32 %v1193_v32, %v1190_v63  ;;  %v1393_v32 = vpop.permute.xlu1 %1392  ;;  %s8802_s25 = sld [smem:[#allocation178_spill]]  ;;  %v1470_v22 = vpop.permute.xlu0 %1469 }
 0x295   :  { %v1210_v19 = vadd.f32 %v1209_v18, %v1206_v45  ;;  %v8788_v21 = vstv %s8777_s7  ;;  %v1226_v53 = vadd.f32 %v1225_v52, %v1222_v50  ;;  %v1255_v61 = vsel %vm1243_vm12, %v1253_v57, %v1254_v36  ;;  %s8804_s7 = sld [smem:[#allocation179_spill]] }
 0x296   :  { %v1310_v59 = vmul.f32 %v8788_v21, %v1247_v39  ;;  %v1242_v60 = vadd.f32 %v1241_v37, %v1238_v23  ;;  %v1251_v1 = vsel %vm1243_vm12, %v1249_v3, %v1250_v7  ;;  %v1263_v44 = vadd.f32 %v1262_v24, %v1194_v38 }
 0x297   :  { %v1279_v49 = vadd.f32 %v1278_v35, %v1210_v19  ;;  %v1390_v11 = vrot.slane %v1389_v17, 1  ;;  %v8792_v42 = vstv %s8781_s10  ;;  %v8794_v33 = vstv %s8783_s1  ;;  %s8805_s10 = sld [smem:[#allocation7_spill]]  ;;  %s8806_s1 = sld [smem:[#allocation14_spill]] }
 0x298   :  { %v1266_v5 = vmul.f32 %v8792_v42, %v1251_v1  ;;  %v1282_v40 = vmul.f32 %v8794_v33, %v1251_v1  ;;  %v1295_v63 = vadd.f32 %v1294_v27, %v1226_v53  ;;  %v8795_v39 = vstv %s8785_s29  ;;  %s8807_s29 = sld [smem:[#allocation174_spill]] }
 0x299   :  { %v1298_v2 = vmul.f32 %v8795_v39, %v1251_v1  ;;  %v8796_v45 = vstv %s8787_s4  ;;  %v8797_v57 = vstv %s8789_s24  ;;  %v1311_v18 = vadd.f32 %v1310_v59, %v1242_v60  ;;  %s8808_s4 = sld [smem:[#allocation175_spill]]  ;;  %s8810_s24 = sld [smem:[#allocation8_spill]] }
 0x29a   :  { %v1270_v54 = vmul.f32 %v8796_v45, %v1255_v61  ;;  %v1286_v36 = vmul.f32 %v8797_v57, %v1255_v61  ;;  %v8798_v3 = vstv %s8790_s0  ;;  %v8799_v7 = vstv %s8791_s14  ;;  %s8812_s0 = sld [smem:[#allocation6_spill]]  ;;  %s8818_s14 = sld [smem:[#allocation180_spill]] }
 0x29b   :  { %v1314_v24 = vmul.f32 %v8798_v3, %v1251_v1  ;;  %v1302_v50 = vmul.f32 %v8799_v7, %v1255_v61  ;;  %v1267_v56 = vadd.f32 %v1266_v5, %v1263_v44  ;;  %v1283_v52 = vadd.f32 %v1282_v40, %v1279_v49  ;;  %v1478_v7 = vpop.permute.xlu0 %1477 }
 0x29c   :  { %v1299_v23 = vadd.f32 %v1298_v2, %v1295_v63  ;;  %v8803_v37 = vstv %s8793_s20  ;;  %v1258_v16 = vrot.slane %v1257_v48, 7  ;;  %v1398_v27 = vrot.slane %v1397_v62, 1  ;;  %v1401_v63 = vpop.permute.xlu1 %1400  ;;  %s8819_s20 = sld [smem:[#allocation181_spill]] }
 0x29d   :  { %v1318_v51 = vmul.f32 %v8803_v37, %v1255_v61  ;;  %v1315_v35 = vadd.f32 %v1314_v24, %v1311_v18  ;;  %v1391_v38 = vsel %vm135_vm0, %v1390_v11, %v1389_v17  ;;  %v1271_v19 = vadd.f32 %v1270_v54, %v1267_v56 }
 0x29e   :  { %v1287_v21 = vadd.f32 %v1286_v36, %v1283_v52  ;;  %v1303_v59 = vadd.f32 %v1302_v50, %v1299_v23  ;;  %v1259_v53 = vsel %vm1243_vm12, %v1257_v48, %v1258_v16  ;;  %v1399_v1 = vsel %vm135_vm0, %v1398_v27, %v1397_v62 }
 0x29f   :  { %v1319_v60 = vadd.f32 %v1318_v51, %v1315_v35  ;;  %v1394_v61 = vrot.slane %v1393_v32, 1  ;;  %v8809_v44 = vstv %s8800_s13  ;;  %v8811_v42 = vstv %s8801_s17  ;;  %s8825_s13 = sld [smem:[#allocation182_spill]]  ;;  %s8829_s17 = sld [smem:[#allocation184_spill]] }
 0x2a0   :  { %v1274_v49 = vmul.f32 %v8809_v44, %v1259_v53  ;;  %v1290_v5 = vmul.f32 %v8811_v42, %v1259_v53  ;;  %v8813_v33 = vstv %s8802_s25  ;;  %v8814_v11 = vstv %s8804_s7  ;;  %s8840_s25 = sld [smem:[#allocation12_spill]]  ;;  %s8845_s7 = sld [smem:[#allocation190_spill]] }
 0x2a1   :  { %v1306_v17 = vmul.f32 %v8813_v33, %v1259_v53  ;;  %v1322_v40 = vmul.f32 %v8814_v11, %v1259_v53  ;;  %v8815_v39 = vstv %s8805_s10  ;;  %v8816_v48 = vstv %s8806_s1  ;;  %s8849_s10 = sld [smem:[#allocation191_spill]]  ;;  %s8850_s1 = sld [smem:[#allocation192_spill]] }
 0x2a2   :  { %v1406_v2 = vmul.f32 %v8815_v39, %v1391_v38  ;;  %v1422_v45 = vmul.f32 %v8816_v48, %v1391_v38  ;;  %v8817_v54 = vstv %s8807_s29  ;;  %v1471_v57 = vrot.slane %v1470_v22, 1  ;;  %s8851_s29 = sld [smem:[#allocation193_spill]] }
 0x2a3   :  { %v1438_v62 = vmul.f32 %v8817_v54, %v1391_v38  ;;  %v1275_v36 = vadd.f32 %v1274_v49, %v1271_v19  ;;  %v1291_v18 = vadd.f32 %v1290_v5, %v1287_v21  ;;  %v1307_v3 = vadd.f32 %v1306_v17, %v1303_v59 }
 0x2a4   :  { %v1323_v24 = vadd.f32 %v1322_v40, %v1319_v60  ;;  %v8820_v50 = vstv %s8808_s4  ;;  %v8821_v52 = vstv %s8810_s24  ;;  %v8822_v37 = vstv %s8812_s0  ;;  %v1551_v40 = vpop.permute.xlu0 %1550  ;;  %s8852_s4 = sld [smem:[#allocation194_spill]]  ;;  %s8859_s0 = sld [smem:[#allocation15_spill]] }
 0x2a5   :  { %v1454_v56 = vmul.f32 %v8820_v50, %v1391_v38  ;;  %v1414_v23 = vmul.f32 %v8821_v52, %v1399_v1  ;;  %v1430_v51 = vmul.f32 %v8822_v37, %v1399_v1  ;;  %v1395_v35 = vsel %vm135_vm0, %v1394_v61, %v1393_v32  ;;  %s6604_s24 = sld [smem:[#allocation2 + $0x7d]] }
 0x2a6   :  { %v1327_v16 = vadd.f32 %v5717_v8, %v1275_v36  ;;  %v1343_v27 = vadd.f32 %v5761_v47, %v1291_v18  ;;  %v1359_v19 = vadd.f32 %v5805_v6, %v1307_v3  ;;  %v1375_v21 = vadd.f32 %v5845_v28, %v1323_v24  ;;  %v1474_v28 = vpop.permute.xlu1 %1473 }
 0x2a7   :  { %v8823_v59 = vstv %s8818_s14  ;;  %v8824_v53 = vstv %s8819_s20  ;;  %v1472_v44 = vsel %vm1468_vm13, %v1471_v57, %v1470_v22  ;;  %v1402_v49 = vrot.slane %v1401_v63, 1  ;;  %s6628_s14 = sld [smem:[#allocation2 + $0xbd]] }
 0x2a8   :  { %v1446_v38 = vmul.f32 %v8823_v59, %v1399_v1  ;;  %v1462_v60 = vmul.f32 %v8824_v53, %v1399_v1  ;;  %v1331_v32 = vadd.f32 %v5756_v25, %v1327_v16  ;;  %v1347_v8 = vadd.f32 %v5800_v41, %v1343_v27  ;;  %s6630_s20 = sld [smem:[#allocation2 + $0xfd]] }
 0x2a9   :  { %v1363_v47 = vadd.f32 %v5840_v30, %v1359_v19  ;;  %v1379_v6 = vadd.f32 %v5884_v58, %v1375_v21  ;;  %v8826_v61 = vstv %s5847_s22  ;;  %v8827_v5 = vstv %s5849_s16  ;;  %s8833_s22 = sld [smem:[#allocation185_spill]]  ;;  %s8835_s16 = sld [smem:[#allocation187_spill]] }
 0x2aa   :  { %v1410_v42 = vmul.f32 %v8826_v61, %v1395_v35  ;;  %v1426_v1 = vmul.f32 %v8827_v5, %v1395_v35  ;;  %v8828_v33 = vstv %s5855_s5  ;;  %v1479_v22 = vrot.slane %v1478_v7, 1  ;;  %s8834_s5 = sld [smem:[#allocation186_spill]] }
 0x2ab   :  { %v1442_v17 = vmul.f32 %v8828_v33, %v1395_v35  ;;  %v1335_v11 = vadd.f32 %v5889_v55, %v1331_v32  ;;  %v1351_v25 = vadd.f32 %v5929_v29, %v1347_v8  ;;  %v1367_v41 = vadd.f32 %v5934_v13, %v1363_v47  ;;  %v1559_v47 = vpop.permute.xlu0 %1558 }
 0x2ac   :  { %v1383_v30 = vadd.f32 %v5973_v43, %v1379_v6  ;;  %v8830_v58 = vstv %s8825_s13  ;;  %v8831_v48 = vstv %s8502_s26  ;;  %v8832_v57 = vstv %s8503_s21  ;;  %s8838_s26 = sld [smem:[#allocation188_spill]]  ;;  %s8839_s21 = sld [smem:[#allocation11_spill]] }
 0x2ad   :  { %v1458_v39 = vmul.f32 %v8830_v58, %v1395_v35  ;;  %v1487_v54 = vmul.f32 %v8831_v48, %v1472_v44  ;;  %v1503_v36 = vmul.f32 %v8832_v57, %v1472_v44  ;;  %v1403_v18 = vsel %vm135_vm0, %v1402_v49, %v1401_v63  ;;  %s6677_s13 = sld [smem:[#allocation2 + $0x11e]] }
 0x2ae   :  { %v1339_v55 = vadd.f32 %v5978_v9, %v1335_v11  ;;  %v1355_v29 = vadd.f32 %v6009_v14, %v1351_v25  ;;  %v1371_v13 = vadd.f32 %v6014_v15, %v1367_v41  ;;  %v1387_v43 = vadd.f32 %v6045_v10, %v1383_v30  ;;  %v1482_v15 = vpop.permute.xlu1 %1481 }
 0x2af   :  { %v8836_v3 = vstv %s8504_s15  ;;  %v8837_v50 = vstv %s8829_s17  ;;  %v1480_v37 = vsel %vm1468_vm13, %v1479_v22, %v1478_v7  ;;  %v1475_v63 = vrot.slane %v1474_v28, 1  ;;  %s8844_s15 = sld [smem:[#allocation189_spill]]  ;;  %s6813_s17 = sld [smem:[#allocation2 + $0x14e]] }
 0x2b0   :  { %v1519_v24 = vmul.f32 %v8836_v3, %v1472_v44  ;;  %v1535_v52 = vmul.f32 %v8837_v50, %v1472_v44  ;;  %v1407_v9 = vadd.f32 %v1406_v2, %v1339_v55  ;;  %v1423_v35 = vadd.f32 %v1422_v45, %v1355_v29 }
 0x2b1   :  { %v1439_v14 = vadd.f32 %v1438_v62, %v1371_v13  ;;  %v1455_v16 = vadd.f32 %v1454_v56, %v1387_v43  ;;  %v8841_v27 = vstv %s8833_s22  ;;  %v8842_v19 = vstv %s8834_s5  ;;  %s6688_s5 = sld [smem:[#allocation2 + $0x4f]]  ;;  %s6816_s22 = sld [smem:[#allocation2 + $0x150]] }
 0x2b2   :  { %v1418_v10 = vmul.f32 %v8841_v27, %v1403_v18  ;;  %v1434_v21 = vmul.f32 %v8842_v19, %v1403_v18  ;;  %v8843_v59 = vstv %s8835_s16  ;;  %v1552_v44 = vrot.slane %v1551_v40, 1  ;;  %s6690_s16 = sld [smem:[#allocation2 + $0x8f]] }
 0x2b3   :  { %v1450_v53 = vmul.f32 %v8843_v59, %v1403_v18  ;;  %v1411_v49 = vadd.f32 %v1410_v42, %v1407_v9  ;;  %v1427_v7 = vadd.f32 %v1426_v1, %v1423_v35  ;;  %v1443_v32 = vadd.f32 %v1442_v17, %v1439_v14 }
 0x2b4   :  { %v1459_v8 = vadd.f32 %v1458_v39, %v1455_v16  ;;  %v8846_v2 = vstv %s8838_s26  ;;  %v8847_v45 = vstv %s8839_s21  ;;  %v8848_v56 = vstv %s8840_s25  ;;  %s6700_s26 = sld [smem:[#allocation2 + $0x10f]]  ;;  %s6702_s21 = sld [smem:[#allocation2 + $0x7e]] }
 0x2b5   :  { %v1466_v6 = vmul.f32 %v8846_v2, %v1403_v18  ;;  %v1495_v62 = vmul.f32 %v8847_v45, %v1480_v37  ;;  %v1511_v61 = vmul.f32 %v8848_v56, %v1480_v37  ;;  %v1476_v5 = vsel %vm1468_vm13, %v1475_v63, %v1474_v28  ;;  %v1555_v28 = vpop.permute.xlu1 %1554  ;;  %s6704_s25 = sld [smem:[#allocation2 + $0xbe]] }
 0x2b6   :  { %v1415_v33 = vadd.f32 %v1414_v23, %v1411_v49  ;;  %v1431_v22 = vadd.f32 %v1430_v51, %v1427_v7  ;;  %v1447_v42 = vadd.f32 %v1446_v38, %v1443_v32  ;;  %v1463_v1 = vadd.f32 %v1462_v60, %v1459_v8  ;;  %v1631_v8 = vpop.permute.xlu0 %1630 }
 0x2b7   :  { %v8853_v17 = vstv %s8844_s15  ;;  %v8854_v25 = vstv %s8845_s7  ;;  %v1483_v30 = vrot.slane %v1482_v15, 1  ;;  %v1560_v58 = vrot.slane %v1559_v47, 1  ;;  %s6711_s15 = sld [smem:[#allocation2 + $0xfe]] }
 0x2b8   :  { %v1527_v11 = vmul.f32 %v8853_v17, %v1480_v37  ;;  %v1543_v41 = vmul.f32 %v8854_v25, %v1480_v37  ;;  %v1419_v39 = vadd.f32 %v1418_v10, %v1415_v33  ;;  %v1435_v48 = vadd.f32 %v1434_v21, %v1431_v22  ;;  %s6713_s7 = sld [smem:[#allocation2 + $0x13e]] }
 0x2b9   :  { %v1451_v57 = vadd.f32 %v1450_v53, %v1447_v42  ;;  %v1467_v18 = vadd.f32 %v1466_v6, %v1463_v1  ;;  %v8855_v55 = vstv %s8849_s10  ;;  %v8856_v29 = vstv %s8850_s1  ;;  %s6722_s10 = sld [smem:[#allocation2 + $0x6f]] }
 0x2ba   :  { %v1491_v23 = vmul.f32 %v8855_v55, %v1476_v5  ;;  %v1507_v51 = vmul.f32 %v8856_v29, %v1476_v5  ;;  %v8857_v38 = vstv %s8851_s29  ;;  %v8858_v13 = vstv %s8852_s4  ;;  %v1563_v55 = vpop.permute.xlu1 %1562  ;;  %s6724_s1 = sld [smem:[#allocation2 + $0xaf]] }
 0x2bb   :  { %v1523_v60 = vmul.f32 %v8857_v38, %v1476_v5  ;;  %v1539_v43 = vmul.f32 %v8858_v13, %v1476_v5  ;;  %v1488_v3 = vadd.f32 %v1487_v54, %v1419_v39  ;;  %v1504_v50 = vadd.f32 %v1503_v36, %v1435_v48  ;;  %s6726_s29 = sld [smem:[#allocation2 + $0xef]] }
 0x2bc   :  { %v1520_v37 = vadd.f32 %v1519_v24, %v1451_v57  ;;  %v1536_v63 = vadd.f32 %v1535_v52, %v1467_v18  ;;  %v1553_v9 = vsel %vm1549_vm14, %v1552_v44, %v1551_v40  ;;  %v1484_v35 = vsel %vm1468_vm13, %v1483_v30, %v1482_v15  ;;  %s6728_s4 = sld [smem:[#allocation2 + $0x5f]] }
 0x2bd   :  { %v1561_v14 = vsel %vm1549_vm14, %v1560_v58, %v1559_v47  ;;  %v1556_v16 = vrot.slane %v1555_v28, 1  ;;  %v1492_v27 = vadd.f32 %v1491_v23, %v1488_v3  ;;  %v1508_v10 = vadd.f32 %v1507_v51, %v1504_v50 }
 0x2be   :  { %v1524_v19 = vadd.f32 %v1523_v60, %v1520_v37  ;;  %v1540_v54 = vadd.f32 %v1539_v43, %v1536_v63  ;;  %v8860_v36 = vstv %s5980_s28  ;;  %v8861_v52 = vstv %s8517_s19  ;;  %s6632_s28 = sld [smem:[#allocation2 + $0x13d]] }
 0x2bf   :  { %v1499_v24 = vmul.f32 %v8860_v36, %v1484_v35  ;;  %v1515_v21 = vmul.f32 %v8861_v52, %v1484_v35  ;;  %v8862_v40 = vstv %s5992_s18  ;;  %v8863_v53 = vstv %s5994_s6  ;;  %s8869_s18 = sld [smem:[#allocation9_spill]]  ;;  %s8870_s19 = sld [smem:[#allocation10_spill]] }
 0x2c0   :  { %v1531_v59 = vmul.f32 %v8862_v40, %v1484_v35  ;;  %v1547_v15 = vmul.f32 %v8863_v53, %v1484_v35  ;;  %v1496_v44 = vadd.f32 %v1495_v62, %v1492_v27  ;;  %v1512_v49 = vadd.f32 %v1511_v61, %v1508_v10  ;;  %s6651_s6 = sld [smem:[#allocation2 + $0x6e]] }
 0x2c1   :  { %v1528_v7 = vadd.f32 %v1527_v11, %v1524_v19  ;;  %v1544_v32 = vadd.f32 %v1543_v41, %v1540_v54  ;;  %v8864_v47 = vstv %s8859_s0  ;;  %v8865_v6 = vstv %s5954_s30  ;;  %s6675_s30 = sld [smem:[#allocation2 + $0xde]]  ;;  %s6737_s0 = sld [smem:[#allocation2 + $0xdf]] }
 0x2c2   :  { %v1568_v2 = vmul.f32 %v8864_v47, %v1553_v9  ;;  %v1584_v45 = vmul.f32 %v8865_v6, %v1553_v9  ;;  %v8866_v56 = vstv %s5960_s9  ;;  %v1579_v33 = vstv %s6604_s24  ;;  %s8872_s9 = sld [smem:[#allocation183_spill]]  ;;  %s6735_s24 = sld [smem:[#allocation2 + $0x9f]] }
 0x2c3   :  { %v1600_v5 = vmul.f32 %v8866_v56, %v1553_v9  ;;  %v1500_v22 = vadd.f32 %v1499_v24, %v1496_v44  ;;  %v1516_v62 = vadd.f32 %v1515_v21, %v1512_v49  ;;  %v1532_v61 = vadd.f32 %v1531_v59, %v1528_v7  ;;  %v1635_v59 = vpop.permute.xlu1 %1634 }
 0x2c4   :  { %v1548_v42 = vadd.f32 %v1547_v15, %v1544_v32  ;;  %v8867_v1 = vstv %s5962_s2  ;;  %v8868_v11 = vstv %s6000_s23  ;;  %v1557_v41 = vsel %vm1549_vm14, %v1556_v16, %v1555_v28  ;;  %s6653_s2 = sld [smem:[#allocation2 + $0xae]] }
 0x2c5   :  { %v1616_v17 = vmul.f32 %v8867_v1, %v1553_v9  ;;  %v1576_v25 = vmul.f32 %v8868_v11, %v1561_v14  ;;  %v1632_v30 = vrot.slane %v1631_v8, 1  ;;  %v1569_v58 = vadd.f32 %v1568_v2, %v1500_v22  ;;  %s6659_s23 = sld [smem:[#allocation2 + $0xee]]  ;;  %v1639_v9 = vpop.permute.xlu0 %1638 }
 0x2c6   :  { %v8871_v39 = vstv %s6028_s3  ;;  %v1585_v57 = vadd.f32 %v1584_v45, %v1516_v62  ;;  %v1588_v18 = vmul.f32 %v1587_v4, %v1557_v41  ;;  %v1601_v23 = vadd.f32 %v1600_v5, %v1532_v61  ;;  %s6661_s3 = sld [smem:[#allocation2 + $0x12e]] }
 0x2c7   :  { %v1572_v48 = vmul.f32 %v8871_v39, %v1557_v41  ;;  %v1604_v29 = vmul.f32 %v1603_v46, %v1557_v41  ;;  %v1617_v51 = vadd.f32 %v1616_v17, %v1548_v42  ;;  %v1620_v28 = vmul.f32 %v1619_v12, %v1557_v41 }
 0x2c8   :  { %v8873_v38 = vstv %s8869_s18  ;;  %v8874_v60 = vstv %s8870_s19  ;;  %v1589_v3 = vadd.f32 %v1588_v18, %v1585_v57  ;;  %v8875_v46 = vstv %s8872_s9  ;;  %s6750_s18 = sld [smem:[#allocation2 + $0x12f]] }
 0x2c9   :  { %v1592_v4 = vmul.f32 %v8873_v38, %v1561_v14  ;;  %v1608_v13 = vmul.f32 %v8874_v60, %v1561_v14  ;;  %v1573_v43 = vadd.f32 %v1572_v48, %v1569_v58  ;;  %v1624_v12 = vmul.f32 %v8875_v46, %v1561_v14  ;;  %v1711_v5 = vpop.permute.xlu0 %1710  ;;  %s6752_s19 = sld [smem:[#allocation2 + $0xbf]] }
 0x2ca   :  { %v1605_v50 = vadd.f32 %v1604_v29, %v1601_v23  ;;  %v1621_v37 = vadd.f32 %v1620_v28, %v1617_v51  ;;  %v1633_v63 = vsel %vm216_vm1, %v1632_v30, %v1631_v8  ;;  %v1595_v35 = vstv %s6628_s14  ;;  %s6742_s14 = sld [smem:[#allocation2 + $0x11f]] }
 0x2cb   :  { %v1611_v16 = vstv %s6630_s20  ;;  %v1627_v27 = vstv %s6632_s28  ;;  %v1564_v10 = vrot.slane %v1563_v55, 1  ;;  %v1577_v19 = vadd.f32 %v1576_v25, %v1573_v43  ;;  %v1643_v25 = vpop.permute.xlu1 %1642  ;;  %s6746_s20 = sld [smem:[#allocation2 + $0x7f]] }
 0x2cc   :  { %v1593_v54 = vadd.f32 %v1592_v4, %v1589_v3  ;;  %v1609_v14 = vadd.f32 %v1608_v13, %v1605_v50  ;;  %v1625_v36 = vadd.f32 %v1624_v12, %v1621_v37  ;;  %v1648_v24 = vmul.f32 %v1647_v26, %v1633_v63  ;;  %s6748_s28 = sld [smem:[#allocation2 + $0xff]] }
 0x2cd   :  { %v1664_v52 = vmul.f32 %v1663_v34, %v1633_v63  ;;  %v1565_v21 = vsel %vm1549_vm14, %v1564_v10, %v1563_v55  ;;  %v1640_v40 = vrot.slane %v1639_v9, 1  ;;  %v1680_v26 = vmul.f32 %v1679_v0, %v1633_v63  ;;  %v1719_v50 = vpop.permute.xlu0 %1718  ;;  %s6765_s9 = sld [smem:[#allocation2 + $0x13f]] }
 0x2ce   :  { %v1580_v53 = vmul.f32 %v1579_v33, %v1565_v21  ;;  %v1596_v15 = vmul.f32 %v1595_v35, %v1565_v21  ;;  %v1612_v44 = vmul.f32 %v1611_v16, %v1565_v21  ;;  %v1628_v49 = vmul.f32 %v1627_v27, %v1565_v21 }
 0x2cf   :  { %v1696_v34 = vmul.f32 %v1695_v20, %v1633_v63  ;;  %v1655_v7 = vstv %s6651_s6  ;;  %v1671_v32 = vstv %s6653_s2  ;;  %v1687_v0 = vstv %s6659_s23  ;;  %v1715_v16 = vpop.permute.xlu1 %1714  ;;  %s8879_s23 = sld [smem:[#allocation196_spill]]  ;;  %s6872_s6 = sld [smem:[#allocation2 + $0x1bb]] }
 0x2d0   :  { %v1581_v8 = vadd.f32 %v1580_v53, %v1577_v19  ;;  %v1597_v47 = vadd.f32 %v1596_v15, %v1593_v54  ;;  %v1613_v2 = vadd.f32 %v1612_v44, %v1609_v14  ;;  %v1629_v6 = vadd.f32 %v1628_v49, %v1625_v36  ;;  %s6877_s2 = sld [smem:[#allocation2 + $0x1bf]] }
 0x2d1   :  { %v1703_v45 = vstv %s6661_s3  ;;  %v1641_v20 = vsel %vm216_vm1, %v1640_v40, %v1639_v9  ;;  %v1651_v56 = vstv %s6667_s11  ;;  %v1667_v33 = vstv %s6669_s12  ;;  %s4077_s3 = sld [smem:[#allocation2 + $0x148]]  ;;  %s4078_s11 = sld [smem:[#allocation2 + $0x14c]] }
 0x2d2   :  { %v1683_v22 = vstv %s6675_s30  ;;  %v1699_v62 = vstv %s6677_s13  ;;  %v1636_v61 = vrot.slane %v1635_v59, 1  ;;  %v1649_v42 = vadd.f32 %v1648_v24, %v1581_v8  ;;  %s4079_s12 = sld [smem:[#allocation2 + $0x149]]  ;;  %s6809_s30 = sld [smem:[#allocation2 + $0x14a]] }
 0x2d3   :  { %v1665_v1 = vadd.f32 %v1664_v52, %v1597_v47  ;;  %v1681_v17 = vadd.f32 %v1680_v26, %v1613_v2  ;;  %v1697_v11 = vadd.f32 %v1696_v34, %v1629_v6  ;;  %v1656_v41 = vmul.f32 %v1655_v7, %v1641_v20  ;;  %v1723_v6 = vpop.permute.xlu1 %1722  ;;  %s6811_s13 = sld [smem:[#allocation2 + $0x14b]] }
 0x2d4   :  { %v1672_v30 = vmul.f32 %v1671_v32, %v1641_v20  ;;  %v1637_v58 = vsel %vm216_vm1, %v1636_v61, %v1635_v59  ;;  %v1712_v39 = vrot.slane %v1711_v5, 1  ;;  %v1688_v23 = vmul.f32 %v1687_v0, %v1641_v20 }
 0x2d5   :  { %v1652_v48 = vmul.f32 %v1651_v56, %v1637_v58  ;;  %v1668_v57 = vmul.f32 %v1667_v33, %v1637_v58  ;;  %v1684_v18 = vmul.f32 %v1683_v22, %v1637_v58  ;;  %v1700_v55 = vmul.f32 %v1699_v62, %v1637_v58 }
 0x2d6   :  { %v1704_v29 = vmul.f32 %v1703_v45, %v1641_v20  ;;  %v1727_v51 = vstv %s6688_s5  ;;  %v1743_v28 = vstv %s6690_s16  ;;  %v1759_v43 = vstv %s6698_s8  ;;  %s6818_s5 = sld [smem:[#allocation2 + $0x14f]]  ;;  %s6820_s16 = sld [smem:[#allocation2 + $0x160]] }
 0x2d7   :  { %v1653_v38 = vadd.f32 %v1652_v48, %v1649_v42  ;;  %v1669_v4 = vadd.f32 %v1668_v57, %v1665_v1  ;;  %v1685_v60 = vadd.f32 %v1684_v18, %v1681_v17  ;;  %v1701_v13 = vadd.f32 %v1700_v55, %v1697_v11  ;;  %s6824_s8 = sld [smem:[#allocation2 + $0x1b8]] }
 0x2d8   :  { %v1775_v3 = vstv %s6700_s26  ;;  %v1713_v46 = vsel %vm297_vm2, %v1712_v39, %v1711_v5  ;;  %v1659_v12 = vstv %s6702_s21  ;;  %v1675_v37 = vstv %s6704_s25  ;;  %s6826_s26 = sld [smem:[#allocation2 + $0x1bc]] }
 0x2d9   :  { %v1691_v63 = vstv %s6711_s15  ;;  %v1707_v9 = vstv %s6713_s7  ;;  %v1644_v35 = vrot.slane %v1643_v25, 1  ;;  %v1657_v27 = vadd.f32 %v1656_v41, %v1653_v38  ;;  %s6828_s21 = sld [smem:[#allocation2 + $0x154]]  ;;  %s6927_s15 = sld [smem:[#allocation2 + $0x152]] }
 0x2da   :  { %v1673_v10 = vadd.f32 %v1672_v30, %v1669_v4  ;;  %v1689_v19 = vadd.f32 %v1688_v23, %v1685_v60  ;;  %v1705_v54 = vadd.f32 %v1704_v29, %v1701_v13  ;;  %v1720_v36 = vrot.slane %v1719_v50, 1  ;;  %s6830_s25 = sld [smem:[#allocation2 + $0x164]]  ;;  %s6931_s7 = sld [smem:[#allocation2 + $0x162]] }
 0x2db   :  { %v1645_v14 = vsel %vm216_vm1, %v1644_v35, %v1643_v25  ;;  %v1728_v59 = vmul.f32 %v1727_v51, %v1713_v46  ;;  %v1744_v53 = vmul.f32 %v1743_v28, %v1713_v46  ;;  %v1760_v15 = vmul.f32 %v1759_v43, %v1713_v46 }
 0x2dc   :  { %v1660_v24 = vmul.f32 %v1659_v12, %v1645_v14  ;;  %v1676_v52 = vmul.f32 %v1675_v37, %v1645_v14  ;;  %v1692_v21 = vmul.f32 %v1691_v63, %v1645_v14  ;;  %v1708_v40 = vmul.f32 %v1707_v9, %v1645_v14 }
 0x2dd   :  { %v1776_v44 = vmul.f32 %v1775_v3, %v1713_v46  ;;  %v1735_v32 = vstv %s6722_s10  ;;  %v1751_v8 = vstv %s6724_s1  ;;  %v1767_v47 = vstv %s6726_s29  ;;  %v6776_v46 = vld [vmem:[%s8879_s23 + $0x8] sm:$0xff]  ;;  %s8880_s10 = sld [smem:[#allocation195_spill]]  ;;  %s6837_s29 = sld [smem:[#allocation2 + $0x1bd]] }
 0x2de   :  { %v1661_v49 = vadd.f32 %v1660_v24, %v1657_v27  ;;  %v1677_v26 = vadd.f32 %v1676_v52, %v1673_v10  ;;  %v1693_v34 = vadd.f32 %v1692_v21, %v1689_v19  ;;  %v1709_v7 = vadd.f32 %v1708_v40, %v1705_v54  ;;  %s6835_s1 = sld [smem:[#allocation2 + $0x1b9]] }
 0x2df   :  { %v1721_v2 = vsel %vm297_vm2, %v1720_v36, %v1719_v50  ;;  %v1731_v0 = vstv %s6728_s4  ;;  %v1747_v45 = vstv %s6735_s24  ;;  %v1763_v20 = vstv %s6737_s0  ;;  %s6841_s4 = sld [smem:[#allocation2 + $0x158]]  ;;  %s6846_s0 = sld [smem:[#allocation2 + $0x1ba]] }
 0x2e0   :  { %v1716_v56 = vrot.slane %v1715_v16, 1  ;;  %v1779_v5 = vstv %s6742_s14  ;;  %v1729_v33 = vadd.f32 %v1728_v59, %v1661_v49  ;;  %v1745_v22 = vadd.f32 %v1744_v53, %v1677_v26  ;;  %s6843_s24 = sld [smem:[#allocation2 + $0x168]]  ;;  %s6951_s14 = sld [smem:[#allocation2 + $0x16e]] }
 0x2e1   :  { %v1761_v62 = vadd.f32 %v1760_v15, %v1693_v34  ;;  %v1736_v61 = vmul.f32 %v1735_v32, %v1721_v2  ;;  %v1777_v1 = vadd.f32 %v1776_v44, %v1709_v7  ;;  %v1724_v17 = vrot.slane %v1723_v6, 1 }
 0x2e2   :  { %v1717_v42 = vsel %vm297_vm2, %v1716_v56, %v1715_v16  ;;  %v1739_v30 = vstv %s6746_s20  ;;  %v1752_v58 = vmul.f32 %v1751_v8, %v1721_v2  ;;  %v1771_v48 = vstv %s6748_s28  ;;  %s6858_s28 = sld [smem:[#allocation2 + $0x1be]]  ;;  %s6956_s20 = sld [smem:[#allocation2 + $0x163]] }
 0x2e3   :  { %v1732_v11 = vmul.f32 %v1731_v0, %v1717_v42  ;;  %v1748_v25 = vmul.f32 %v1747_v45, %v1717_v42  ;;  %v1764_v41 = vmul.f32 %v1763_v20, %v1717_v42  ;;  %v1780_v39 = vmul.f32 %v1779_v5, %v1717_v42 }
 0x2e4   :  { %v1725_v57 = vsel %vm297_vm2, %v1724_v17, %v1723_v6  ;;  %v1768_v18 = vmul.f32 %v1767_v47, %v1721_v2  ;;  %v1783_v51 = vstv %s6750_s18  ;;  %v1755_v38 = vstv %s6752_s19  ;;  %s8881_s18 = smov 127   ;;  %s6863_s19 = sld [smem:[#allocation2 + $0x15c]] }
 0x2e5   :  { %v1733_v55 = vadd.f32 %v1732_v11, %v1729_v33  ;;  %v1749_v23 = vadd.f32 %v1748_v25, %v1745_v22  ;;  %v1765_v29 = vadd.f32 %v1764_v41, %v1761_v62  ;;  %v1781_v28 = vadd.f32 %v1780_v39, %v1777_v1 }
 0x2e6   :  { %v1740_v4 = vmul.f32 %v1739_v30, %v1725_v57  ;;  %v1772_v60 = vmul.f32 %v1771_v48, %v1725_v57  ;;  %v1784_v12 = vmul.f32 %v1783_v51, %v1721_v2  ;;  %v1756_v50 = vmul.f32 %v1755_v38, %v1725_v57 }
 0x2e7   :  { %v1769_v13 = vadd.f32 %v1768_v18, %v1765_v29  ;;  %v1737_v43 = vadd.f32 %v1736_v61, %v1733_v55  ;;  %v1753_v3 = vadd.f32 %v1752_v58, %v1749_v23  ;;  %v1787_v9 = vstv %s6765_s9  ;;  %s6870_s9 = sld [smem:[#allocation2 + $0x16c]] }
 0x2e8   :  { %v1785_v10 = vadd.f32 %v1784_v12, %v1781_v28  ;;  %v1788_v19 = vmul.f32 %v1787_v9, %v1725_v57 }
 0x2e9   :  { %v6778_v37 = vadd.f32 %v1772_v60, %v1769_v13  ;;  %v6780_v63 = vadd.f32 %v1740_v4, %v1737_v43  ;;  %v6787_v27 = vadd.f32 %v1756_v50, %v1753_v3 }
 0x2ea   :  { %v6792_v36 = vadd.f32 %v1788_v19, %v1785_v10 }
 0x2eb   :  { %v1856_v35 = vmul.f32 %v6776_v46, %v6778_v37  ;;  %v1790_v16 = vmul.f32 %v6776_v46, %v6780_v63  ;;  %v1823_v54 = vmul.f32 %v6776_v46, %v6787_v27 }
 0x2ec   :  { %v1889_v52 = vmul.f32 %v6776_v46, %v6792_v36 }
 0x2ed   :  { %1857 = vadd.xlane.f32.xlu1 %v1856_v35  ;;  %1791 = vadd.xlane.f32.xlu0 %v1790_v16  ;;  %v1800_v14 = vmul.f32 %v1790_v16, %v6780_v63  ;;  %v1833_v24 = vmul.f32 %v1823_v54, %v6787_v27  ;;  %v1866_v21 = vmul.f32 %v1856_v35, %v6778_v37 }
 0x2ee   :  { %v1899_v40 = vmul.f32 %v1889_v52, %v6792_v36 }
 0x2f1   :  { %1824 = vadd.xlane.f32.xlu0 %v1823_v54  ;;  %1801 = vadd.xlane.f32.xlu1 %v1800_v14 }
 0x2f5   :  { %1834 = vadd.xlane.f32.xlu0 %v1833_v24  ;;  %1890 = vadd.xlane.f32.xlu1 %v1889_v52 }
 0x2f9   :  { %1867 = vadd.xlane.f32.xlu0 %v1866_v21 }
 0x2fd   :  { %1900 = vadd.xlane.f32.xlu0 %v1899_v40 }
 0x37a   :  { %v1858_v59 = vpop.xlane.xlu1 %1857  ;;  %v1792_v53 = vpop.xlane.xlu0 %1791 }
 0x37b   :  { %v1859_v15 = vrot.slane %v1858_v59, 4  ;;  %v1793_v44 = vrot.slane %v1792_v53, 4 }
 0x37d   :  { %v1860_v49 = vadd.f32 %v1859_v15, %v1858_v59  ;;  %v1794_v26 = vadd.f32 %v1793_v44, %v1792_v53 }
 0x37e   :  { %v1825_v34 = vpop.xlane.xlu0 %1824  ;;  %v1802_v7 = vpop.xlane.xlu1 %1801 }
 0x37f   :  { %v1861_v32 = vrot.slane %v1860_v49, 2  ;;  %v1795_v8 = vrot.slane %v1794_v26, 2  ;;  %v1826_v47 = vrot.slane %v1825_v34, 4  ;;  %v1803_v2 = vrot.slane %v1802_v7, 4 }
 0x381   :  { %v1796_v6 = vadd.f32 %v1795_v8, %v1794_v26  ;;  %v1827_v0 = vadd.f32 %v1826_v47, %v1825_v34  ;;  %v1804_v45 = vadd.f32 %v1803_v2, %v1802_v7  ;;  %v1862_v5 = vadd.f32 %v1861_v32, %v1860_v49 }
 0x382   :  { %v1835_v20 = vpop.xlane.xlu0 %1834  ;;  %v1891_v56 = vpop.xlane.xlu1 %1890 }
 0x383   :  { %v1797_v33 = vrot.slane %v1796_v6, 1  ;;  %v1828_v22 = vrot.slane %v1827_v0, 2  ;;  %v1805_v62 = vrot.slane %v1804_v45, 2  ;;  %v1836_v61 = vrot.slane %v1835_v20, 4 }
 0x384   :  { %v1892_v42 = vrot.slane %v1891_v56, 4  ;;  %v1863_v58 = vrot.slane %v1862_v5, 1 }
 0x385   :  { %v1798_v1 = vadd.f32 %v1797_v33, %v1796_v6  ;;  %v1829_v17 = vadd.f32 %v1828_v22, %v1827_v0  ;;  %v1806_v11 = vadd.f32 %v1805_v62, %v1804_v45  ;;  %v1837_v25 = vadd.f32 %v1836_v61, %v1835_v20 }
 0x386   :  { %v1893_v41 = vadd.f32 %v1892_v42, %v1891_v56  ;;  %v1868_v30 = vpop.xlane.xlu0 %1867  ;;  %v1864_v13 = vadd.f32 %v1863_v58, %v1862_v5  ;;  %v1815_v56 = vstv %s4077_s3  ;;  %v1819_v61 = vstv %s4078_s11  ;;  %s6982_s3 = sld [smem:[#allocation2 + $0x16f]]  ;;  %s7094_s11 = sld [smem:[#allocation2 + $0x192]] }
 0x387   :  { %v1799_v39 = vmul.f32 0.0014005603, %v1798_v1  ;;  %v1830_v48 = vrot.slane %v1829_v17, 1  ;;  %v1807_v57 = vrot.slane %v1806_v11, 1  ;;  %v1838_v18 = vrot.slane %v1837_v25, 2 }
 0x388   :  { %v1894_v55 = vrot.slane %v1893_v41, 2  ;;  %v1869_v23 = vrot.slane %v1868_v30, 4  ;;  %v6799_v40 = vmul.f32 0.0014005603, %v1864_v13  ;;  %v1848_v1 = vstv %s4079_s12  ;;  %s7098_s12 = sld [smem:[#allocation2 + $0x182]] }
 0x389   :  { %v1831_v29 = vadd.f32 %v1830_v48, %v1829_v17  ;;  %v1808_v51 = vadd.f32 %v1807_v57, %v1806_v11  ;;  %v1839_v28 = vadd.f32 %v1838_v18, %v1837_v25  ;;  %v1810_v43 = vmul.f32 %v1799_v39, %v1799_v39  ;;  %v4686_v57 = vld [vmem:[%s8880_s10] sm:$0xff] }
 0x38a   :  { %v1895_v38 = vadd.f32 %v1894_v55, %v1893_v41  ;;  %v1870_v4 = vadd.f32 %v1869_v23, %v1868_v30  ;;  %v1901_v60 = vpop.xlane.xlu0 %1900  ;;  %v1876_v32 = vmul.f32 %v6799_v40, %v6799_v40  ;;  %v1852_v58 = vstv %s6807_s27  ;;  %s4117_s27 = sld [smem:[#allocation2 + $0x1b0]] }
 0x38b   :  { %v1809_v3 = vmul.f32 0.0014005603, %v1808_v51  ;;  %v1902_v12 = vrot.slane %v1901_v60, 4  ;;  %v1832_v50 = vmul.f32 0.0014005603, %v1831_v29  ;;  %v1840_v9 = vrot.slane %v1839_v28, 1 }
 0x38c   :  { %v1896_v35 = vrot.slane %v1895_v38, 1  ;;  %v1871_v16 = vrot.slane %v1870_v4, 2  ;;  %v1881_v48 = vstv %s6809_s30  ;;  %v1914_v51 = vstv %s6811_s13  ;;  %s8882_s30 = smov 108   ;;  %s8883_s13 = smov 107  }
 0x38d   :  { %v1811_v10 = vsub.f32 %v1809_v3, %v1810_v43  ;;  %v1903_v19 = vadd.f32 %v1902_v12, %v1901_v60  ;;  %v1841_v54 = vadd.f32 %v1840_v9, %v1839_v28  ;;  %v1843_v59 = vmul.f32 %v1832_v50, %v1832_v50  ;;  %v4687_v12 = vld [vmem:[%s8880_s10 + $0x8] sm:$0xff] }
 0x38e   :  { %v1872_v14 = vadd.f32 %v1871_v16, %v1870_v4  ;;  %v1897_v52 = vadd.f32 %v1896_v35, %v1895_v38  ;;  %v1885_v28 = vstv %s6813_s17  ;;  %v1935_v3 = vstv %s6816_s22  ;;  %s4093_s17 = sld [smem:[#allocation2 + $0x151]] }
 0x38f   :  { %v1813_v24 = vadd.f32 1e-05, %v1811_v10  ;;  %v1904_v21 = vrot.slane %v1903_v19, 2  ;;  %v1842_v53 = vmul.f32 0.0014005603, %v1841_v54  ;;  %v1918_v16 = vstv %s6818_s5  ;;  %s4097_s22 = sld [smem:[#allocation2 + $0x161]] }
 0x390   :  { %v1873_v15 = vrot.slane %v1872_v14, 1  ;;  %v6801_v34 = vmul.f32 0.0014005603, %v1897_v52  ;;  %v2619_v54 = vstv %s6824_s8  ;;  %s4094_s5 = sld [smem:[#allocation2 + $0x155]]  ;;  %s6917_s8 = sld [smem:[#allocation2 + $0x159]] }
 0x391   :  { %4666 = vrsqrt.f32 %v1813_v24  ;;  %v1905_v44 = vadd.f32 %v1904_v21, %v1903_v19  ;;  %v1844_v49 = vsub.f32 %v1842_v53, %v1843_v59  ;;  %v1950_v19 = vstv %s6820_s16  ;;  %s4098_s16 = sld [smem:[#allocation2 + $0x165]] }
 0x392   :  { %v1874_v26 = vadd.f32 %v1873_v15, %v1872_v14  ;;  %v1909_v0 = vmul.f32 %v6801_v34, %v6801_v34  ;;  %v2637_v14 = vstv %s6826_s26  ;;  %v1953_v21 = vstv %s6830_s25  ;;  %s6919_s26 = sld [smem:[#allocation2 + $0x169]]  ;;  %s6925_s25 = sld [smem:[#allocation2 + $0x16d]] }
 0x393   :  { %v1906_v7 = vrot.slane %v1905_v44, 1  ;;  %v1846_v8 = vadd.f32 1e-05, %v1844_v49  ;;  %v2622_v53 = vstv %s6835_s1  ;;  %v2640_v15 = vstv %s6837_s29  ;;  %s6937_s1 = sld [smem:[#allocation2 + $0x166]]  ;;  %s6941_s29 = sld [smem:[#allocation2 + $0x15a]] }
 0x394   :  { %v1875_v47 = vmul.f32 0.0014005603, %v1874_v26 }
 0x395   :  { %v1907_v2 = vadd.f32 %v1906_v7, %v1905_v44  ;;  %4668 = vrsqrt.f32 %v1846_v8  ;;  %v4688_v44 = vld [vmem:[%s8880_s10 + $0x10] sm:$0xff]  ;;  %v1957_v7 = vstv %s6843_s24  ;;  %s6945_s24 = sld [smem:[#allocation2 + $0x153]] }
 0x396   :  { %v1877_v6 = vsub.f32 %v1875_v47, %v1876_v32 }
 0x397   :  { %v1908_v45 = vmul.f32 0.0014005603, %v1907_v2 }
 0x398   :  { %v1879_v20 = vadd.f32 1e-05, %v1877_v6 }
 0x399   :  { %v1910_v5 = vsub.f32 %v1908_v45, %v1909_v0 }
 0x39a   :  { %4670 = vrsqrt.f32 %v1879_v20  ;;  %v4689_v20 = vld [vmem:[%s8880_s10 + $0x18] sm:$0xff]  ;;  %s6935_s10 = sld [smem:[#allocation2 + $0x156]] }
 0x39b   :  { %v4667_v33 = vpop.eup %4666  ;;  %v1912_v22 = vadd.f32 1e-05, %v1910_v5 }
 0x39c   :  { %v1816_v62 = vmul.f32 %v4667_v33, %v1815_v56 }
 0x39d   :  { %4672 = vrsqrt.f32 %v1912_v22 }
 0x39e   :  { %v1818_v42 = vmul.f32 %v1816_v62, %v1799_v39  ;;  %v1821_v25 = vmul.f32 %v1816_v62, %v6780_v63 }
 0x39f   :  { %v4669_v17 = vpop.eup %4668 }
 0x3a0   :  { %v1820_v11 = vsub.f32 %v1819_v61, %v1818_v42  ;;  %v1849_v41 = vmul.f32 %v4669_v17, %v1848_v1  ;;  %v2644_v1 = vstv %s6858_s28  ;;  %s6961_s28 = sld [smem:[#allocation2 + $0x157]] }
 0x3a2   :  { %v1822_v30 = vadd.f32 %v1821_v25, %v1820_v11  ;;  %v1851_v39 = vmul.f32 %v1849_v41, %v1832_v50  ;;  %v1854_v23 = vmul.f32 %v1849_v41, %v6787_v27  ;;  %v1946_v11 = vstv %s6863_s19  ;;  %s6965_s19 = sld [smem:[#allocation2 + $0x167]] }
 0x3a4   :  { %v4671_v63 = vpop.eup %4670  ;;  %v1922_v18 = vadd.f32 %v4686_v57, %v1822_v30  ;;  %v1853_v55 = vsub.f32 %v1852_v58, %v1851_v39  ;;  %v2630_v39 = vstv %s6872_s6  ;;  %s6976_s6 = sld [smem:[#allocation2 + $0x16b]] }
 0x3a5   :  { %v1882_v29 = vmul.f32 %v4671_v63, %v1881_v48  ;;  %v1961_v48 = vstv %s6870_s9  ;;  %s6967_s9 = sld [smem:[#allocation2 + $0x15b]] }
 0x3a6   :  { %v1923_v38 = vmax.f32 %v1922_v18, 0.0  ;;  %v1855_v60 = vadd.f32 %v1854_v23, %v1853_v55  ;;  %v2648_v55 = vstv %s6877_s2  ;;  %s6979_s2 = sld [smem:[#allocation2 + $0x15f]] }
 0x3a7   :  { %v4673_v4 = vpop.eup %4672  ;;  %v1884_v13 = vmul.f32 %v1882_v29, %v6799_v40  ;;  %v1887_v35 = vmul.f32 %v1882_v29, %v6778_v37  ;;  %v1938_v37 = vstv %s6828_s21  ;;  %s6923_s21 = sld [smem:[#allocation2 + $0x15d]] }
 0x3a8   :  { %v1915_v43 = vmul.f32 %v4673_v4, %v1914_v51  ;;  %v6850_v27 = vmul.f32 %v6776_v46, %v1923_v38  ;;  %v1925_v50 = vadd.f32 %v4687_v12, %v1855_v60 }
 0x3a9   :  { %v1886_v9 = vsub.f32 %v1885_v28, %v1884_v13 }
 0x3aa   :  { %v1917_v10 = vmul.f32 %v1915_v43, %v6801_v34  ;;  %1964 = vrot.lane.b32.xlu1 %v6850_v27, %s8881_s18  ;;  %v1926_v52 = vmax.f32 %v1925_v50, 0.0  ;;  %v1920_v59 = vmul.f32 %v1915_v43, %v6792_v36  ;;  %v1942_v34 = vstv %s6841_s4  ;;  %s6943_s4 = sld [smem:[#allocation2 + $0x16a]] }
 0x3ab   :  { %v1888_v24 = vadd.f32 %v1887_v35, %v1886_v9  ;;  %v1936_v8 = vmul.f32 %v1935_v3, %v6850_v27  ;;  %v1951_v47 = vmul.f32 %v1950_v19, %v6850_v27  ;;  %v2626_v36 = vstv %s6846_s0  ;;  %s6947_s0 = sld [smem:[#allocation2 + $0x15e]] }
 0x3ac   :  { %v1919_v40 = vsub.f32 %v1918_v16, %v1917_v10  ;;  %v1927_v26 = vmul.f32 %v6776_v46, %v1926_v52  ;;  %v2620_v45 = vmul.f32 %v2619_v54, %v6850_v27  ;;  %v2638_v33 = vmul.f32 %v2637_v14, %v6850_v27 }
 0x3ad   :  { %v1928_v49 = vadd.f32 %v4688_v44, %v1888_v24  ;;  %v1981_v35 = vstv %s4093_s17  ;;  %v1997_v16 = vstv %s4097_s22  ;;  %v1985_v54 = vstv %s4094_s5  ;;  %s4118_s17 = sld [smem:[#allocation2 + $0x1b2]]  ;;  %s4119_s22 = sld [smem:[#allocation2 + $0x1b1]] }
 0x3ae   :  { %v1921_v32 = vadd.f32 %v1920_v59, %v1919_v40  ;;  %1968 = vrot.lane.b32.xlu0 %v1927_v26, %s8881_s18  ;;  %v1939_v6 = vmul.f32 %v1938_v37, %v1927_v26  ;;  %v1954_v0 = vmul.f32 %v1953_v21, %v1927_v26  ;;  %v2623_v5 = vmul.f32 %v2622_v53, %v1927_v26  ;;  %s4120_s5 = sld [smem:[#allocation2 + $0x1b3]] }
 0x3af   :  { %v1929_v2 = vmax.f32 %v1928_v49, 0.0  ;;  %v2641_v22 = vmul.f32 %v2640_v15, %v1927_v26  ;;  %v2001_v14 = vstv %s4098_s16  ;;  %v1989_v59 = vstv %s6917_s8  ;;  %s8884_s16 = smov 42   ;;  %s8885_s8 = smov 41  }
 0x3b0   :  { %v1931_v56 = vadd.f32 %v4689_v20, %v1921_v32  ;;  %v1940_v61 = vadd.f32 %v1939_v6, %v1936_v8  ;;  %v1955_v42 = vadd.f32 %v1954_v0, %v1951_v47  ;;  %v2624_v25 = vadd.f32 %v2623_v5, %v2620_v45 }
 0x3b1   :  { %v1930_v62 = vmul.f32 %v6776_v46, %v1929_v2  ;;  %v2642_v41 = vadd.f32 %v2641_v22, %v2638_v33  ;;  %v2005_v53 = vstv %s6919_s26  ;;  %v1993_v6 = vstv %s6923_s21  ;;  %s8886_s26 = smov 40   ;;  %s8887_s21 = smov 39  }
 0x3b2   :  { %v1932_v17 = vmax.f32 %v1931_v56, 0.0  ;;  %2012 = vrot.lane.b32.xlu0 %v6850_v27, %s8882_s30  ;;  %v2009_v0 = vstv %s6925_s25  ;;  %v2029_v5 = vstv %s6927_s15  ;;  %v2045_v22 = vstv %s6931_s7  ;;  %s8888_s25 = smov 22   ;;  %s8889_s15 = smov 21  }
 0x3b3   :  { %1972 = vrot.lane.b32.xlu1 %v1930_v62, %s8881_s18  ;;  %v1943_v30 = vmul.f32 %v1942_v34, %v1930_v62  ;;  %v1958_v58 = vmul.f32 %v1957_v7, %v1930_v62  ;;  %v2627_v57 = vmul.f32 %v2626_v36, %v1930_v62  ;;  %v2645_v18 = vmul.f32 %v2644_v1, %v1930_v62  ;;  %s8890_s7 = smov 20  }
 0x3b4   :  { %v1933_v63 = vmul.f32 %v6776_v46, %v1932_v17 }
 0x3b5   :  { %v1944_v23 = vadd.f32 %v1943_v30, %v1940_v61  ;;  %v1959_v29 = vadd.f32 %v1958_v58, %v1955_v42  ;;  %v2628_v38 = vadd.f32 %v2627_v57, %v2624_v25  ;;  %v2646_v60 = vadd.f32 %v2645_v18, %v2642_v41 }
 0x3b6   :  { %v1947_v51 = vmul.f32 %v1946_v11, %v1933_v63  ;;  %v1962_v28 = vmul.f32 %v1961_v48, %v1933_v63  ;;  %v2631_v4 = vmul.f32 %v2630_v39, %v1933_v63  ;;  %2020 = vrot.lane.b32.xlu0 %v1930_v62, %s8882_s30  ;;  %v2649_v13 = vmul.f32 %v2648_v55, %v1933_v63 }
 0x3b7   :  { %1976 = vrot.lane.b32.xlu1 %v1933_v63, %s8881_s18  ;;  %v2033_v58 = vstv %s6935_s10  ;;  %v2049_v48 = vstv %s6937_s1  ;;  %s8891_s10 = smov 19   ;;  %s8892_s1 = smov 2  }
 0x3b8   :  { %v1948_v43 = vadd.f32 %v1947_v51, %v1944_v23  ;;  %v1963_v3 = vadd.f32 %v1962_v28, %v1959_v29  ;;  %v6906_v12 = vadd.f32 %v2631_v4, %v2628_v38  ;;  %v6908_v46 = vadd.f32 %v2649_v13, %v2646_v60 }
 0x3b9   :  { %v2037_v23 = vstv %s6941_s29  ;;  %v2053_v29 = vstv %s6943_s4  ;;  %v2077_v38 = vstv %s6945_s24  ;;  %s8893_s29 = smov 1   ;;  %s8894_s4 = smov 110  }
 0x3ba   :  { %2060 = vrot.lane.b32.xlu0 %v6850_v27, %s8883_s13  ;;  %s8895_s24 = smov 109  }
 0x3bb   :  { %2016 = vrot.lane.b32.xlu1 %v1927_v26, %s8882_s30 }
 0x3be   :  { %2068 = vrot.lane.b32.xlu0 %v1930_v62, %s8883_s13 }
 0x3bf   :  { %2024 = vrot.lane.b32.xlu1 %v1933_v63, %s8882_s30 }
 0x3c3   :  { %2064 = vrot.lane.b32.xlu1 %v1927_v26, %s8883_s13 }
 0x3c7   :  { %2072 = vrot.lane.b32.xlu1 %v1933_v63, %s8883_s13 }
 0x41c   :  { %v1965_v50 = vpop.permute.xlu1 %1964 }
 0x41d   :  { %v1966_v9 = vrot.slane %v1965_v50, 1 }
 0x41f   :  { %v1967_v10 = vsel %vm135_vm0, %v1966_v9, %v1965_v50 }
 0x420   :  { %v1969_v27 = vpop.permute.xlu0 %1968  ;;  %v1982_v52 = vmul.f32 %v1981_v35, %v1967_v10  ;;  %v1998_v37 = vmul.f32 %v1997_v16, %v1967_v10 }
 0x421   :  { %v1970_v19 = vrot.slane %v1969_v27, 1 }
 0x422   :  { %v1983_v7 = vadd.f32 %v1982_v52, %v1948_v43  ;;  %v1999_v32 = vadd.f32 %v1998_v37, %v1963_v3  ;;  %v2041_v43 = vstv %s6947_s0  ;;  %s4121_s0 = sld [smem:[#allocation2 + $0x170]] }
 0x423   :  { %v1971_v24 = vsel %vm135_vm0, %v1970_v19, %v1969_v27  ;;  %v2057_v27 = vstv %s6951_s14  ;;  %v2093_v19 = vstv %s6956_s20  ;;  %s4123_s14 = sld [smem:[#allocation2 + $0x190]] }
 0x424   :  { %v2013_v21 = vpop.permute.xlu0 %2012  ;;  %v1986_v44 = vmul.f32 %v1985_v54, %v1971_v24  ;;  %v2002_v49 = vmul.f32 %v2001_v14, %v1971_v24  ;;  %s4122_s20 = sld [smem:[#allocation2 + $0x180]] }
 0x425   :  { %v1973_v40 = vpop.permute.xlu1 %1972  ;;  %v2014_v26 = vrot.slane %v2013_v21, 1 }
 0x426   :  { %v1974_v15 = vrot.slane %v1973_v40, 1  ;;  %v1987_v20 = vadd.f32 %v1986_v44, %v1983_v7  ;;  %v2003_v56 = vadd.f32 %v2002_v49, %v1999_v32  ;;  %v2097_v49 = vstv %s6965_s19  ;;  %s7084_s19 = sld [smem:[#allocation2 + $0x171]] }
 0x427   :  { %v2015_v33 = vsel %vm216_vm1, %v2014_v26, %v2013_v21  ;;  %v2085_v32 = vstv %s6967_s9  ;;  %s7086_s9 = sld [smem:[#allocation2 + $0x191]] }
 0x428   :  { %v1975_v34 = vsel %vm135_vm0, %v1974_v15, %v1973_v40  ;;  %v2021_v36 = vpop.permute.xlu0 %2020  ;;  %v2030_v30 = vmul.f32 %v2029_v5, %v2015_v33  ;;  %v2046_v63 = vmul.f32 %v2045_v22, %v2015_v33  ;;  %v2105_v22 = vstv %s6982_s3  ;;  %s7092_s3 = sld [smem:[#allocation2 + $0x172]] }
 0x429   :  { %v1990_v8 = vmul.f32 %v1989_v59, %v1975_v34  ;;  %v2006_v47 = vmul.f32 %v2005_v53, %v1975_v34  ;;  %v1977_v2 = vpop.permute.xlu1 %1976  ;;  %v2022_v62 = vrot.slane %v2021_v36, 1  ;;  %v2081_v59 = vstv %s6961_s28  ;;  %s4124_s28 = sld [smem:[#allocation2 + $0x1a0]] }
 0x42a   :  { %v1978_v45 = vrot.slane %v1977_v2, 1 }
 0x42b   :  { %v1991_v42 = vadd.f32 %v1990_v8, %v1987_v20  ;;  %v2007_v1 = vadd.f32 %v2006_v47, %v2003_v56  ;;  %v2023_v51 = vsel %vm216_vm1, %v2022_v62, %v2021_v36  ;;  %v2089_v20 = vstv %s6979_s2  ;;  %s7090_s2 = sld [smem:[#allocation2 + $0x1a1]] }
 0x42c   :  { %v1979_v61 = vsel %vm135_vm0, %v1978_v45, %v1977_v2  ;;  %v2061_v25 = vpop.permute.xlu0 %2060  ;;  %v2038_v16 = vmul.f32 %v2037_v23, %v2023_v51  ;;  %v2054_v10 = vmul.f32 %v2053_v29, %v2023_v51 }
 0x42d   :  { %v1994_v17 = vmul.f32 %v1993_v6, %v1979_v61  ;;  %v2010_v11 = vmul.f32 %v2009_v0, %v1979_v61  ;;  %v2017_v41 = vpop.permute.xlu1 %2016  ;;  %v2062_v55 = vrot.slane %v2061_v25, 1  ;;  %v2101_v6 = vstv %s6976_s6  ;;  %s7088_s6 = sld [smem:[#allocation2 + $0x181]] }
 0x42e   :  { %v2018_v39 = vrot.slane %v2017_v41, 1 }
 0x42f   :  { %v1995_v57 = vadd.f32 %v1994_v17, %v1991_v42  ;;  %v2011_v18 = vadd.f32 %v2010_v11, %v2007_v1  ;;  %v2063_v54 = vsel %vm297_vm2, %v2062_v55, %v2061_v25 }
 0x430   :  { %v2019_v28 = vsel %vm216_vm1, %v2018_v39, %v2017_v41  ;;  %v2069_v13 = vpop.permute.xlu0 %2068  ;;  %v2078_v34 = vmul.f32 %v2077_v38, %v2063_v54  ;;  %v2094_v7 = vmul.f32 %v2093_v19, %v2063_v54 }
 0x431   :  { %v2031_v4 = vadd.f32 %v2030_v30, %v1995_v57  ;;  %v2047_v60 = vadd.f32 %v2046_v63, %v2011_v18  ;;  %v2025_v3 = vpop.permute.xlu1 %2024  ;;  %v2034_v50 = vmul.f32 %v2033_v58, %v2019_v28  ;;  %v2050_v9 = vmul.f32 %v2049_v48, %v2019_v28  ;;  %v7008_v63 = vld [vmem:[%s8879_s23] sm:$0xff] }
 0x432   :  { %v2026_v35 = vrot.slane %v2025_v3, 1  ;;  %v2070_v52 = vrot.slane %v2069_v13, 1 }
 0x433   :  { %v2035_v14 = vadd.f32 %v2034_v50, %v2031_v4  ;;  %v2051_v24 = vadd.f32 %v2050_v9, %v2047_v60 }
 0x434   :  { %v2027_v37 = vsel %vm216_vm1, %v2026_v35, %v2025_v3  ;;  %v2071_v8 = vsel %vm297_vm2, %v2070_v52, %v2069_v13 }
 0x435   :  { %v2042_v21 = vmul.f32 %v2041_v43, %v2027_v37  ;;  %v2058_v40 = vmul.f32 %v2057_v27, %v2027_v37  ;;  %v2065_v53 = vpop.permute.xlu1 %2064  ;;  %v2039_v15 = vadd.f32 %v2038_v16, %v2035_v14  ;;  %v2055_v44 = vadd.f32 %v2054_v10, %v2051_v24 }
 0x436   :  { %v2066_v26 = vrot.slane %v2065_v53, 1  ;;  %v2086_v61 = vmul.f32 %v2085_v32, %v2071_v8  ;;  %v2102_v42 = vmul.f32 %v2101_v6, %v2071_v8 }
 0x437   :  { %v2043_v47 = vadd.f32 %v2042_v21, %v2039_v15  ;;  %v2059_v36 = vadd.f32 %v2058_v40, %v2055_v44 }
 0x438   :  { %v2067_v2 = vsel %vm297_vm2, %v2066_v26, %v2065_v53 }
 0x439   :  { %v2082_v0 = vmul.f32 %v2081_v59, %v2067_v2  ;;  %v2098_v45 = vmul.f32 %v2097_v49, %v2067_v2  ;;  %v2073_v56 = vpop.permute.xlu1 %2072  ;;  %v2079_v5 = vadd.f32 %v2078_v34, %v2043_v47  ;;  %v2095_v33 = vadd.f32 %v2094_v7, %v2059_v36 }
 0x43a   :  { %v2074_v62 = vrot.slane %v2073_v56, 1 }
 0x43b   :  { %v2083_v1 = vadd.f32 %v2082_v0, %v2079_v5  ;;  %v2099_v17 = vadd.f32 %v2098_v45, %v2095_v33  ;;  %v2133_v45 = vstv %s4117_s27  ;;  %v2137_v5 = vstv %s4118_s17  ;;  %s7100_s27 = sld [smem:[#allocation2 + $0x1a2]]  ;;  %s7108_s17 = sld [smem:[#allocation2 + $0x173]] }
 0x43c   :  { %v2075_v11 = vsel %vm297_vm2, %v2074_v62, %v2073_v56  ;;  %v2166_v33 = vstv %s4119_s22  ;;  %s7110_s22 = sld [smem:[#allocation2 + $0x193]] }
 0x43d   :  { %v2090_v25 = vmul.f32 %v2089_v20, %v2075_v11  ;;  %v2106_v41 = vmul.f32 %v2105_v22, %v2075_v11  ;;  %v2087_v30 = vadd.f32 %v2086_v61, %v2083_v1  ;;  %v2103_v58 = vadd.f32 %v2102_v42, %v2099_v17 }
 0x43e   :  { %v2170_v17 = vstv %s4120_s5  ;;  %s7114_s5 = sld [smem:[#allocation2 + $0x183]] }
 0x43f   :  { %v7001_v48 = vadd.f32 %v2090_v25, %v2087_v30  ;;  %v7003_v39 = vadd.f32 %v2106_v41, %v2103_v58 }
 0x441   :  { %v2141_v57 = vmul.f32 %v7008_v63, %v7003_v39  ;;  %v2108_v18 = vmul.f32 %v7008_v63, %v7001_v48 }
 0x443   :  { %2142 = vadd.xlane.f32.xlu1 %v2141_v57  ;;  %2109 = vadd.xlane.f32.xlu0 %v2108_v18  ;;  %v2118_v55 = vmul.f32 %v2108_v18, %v7001_v48  ;;  %v2151_v23 = vmul.f32 %v2141_v57, %v7003_v39 }
 0x447   :  { %2119 = vadd.xlane.f32.xlu0 %v2118_v55 }
 0x44b   :  { %2152 = vadd.xlane.f32.xlu0 %v2151_v23 }
 0x4d0   :  { %v2143_v29 = vpop.xlane.xlu1 %2142  ;;  %v2110_v51 = vpop.xlane.xlu0 %2109 }
 0x4d1   :  { %v2144_v28 = vrot.slane %v2143_v29, 4  ;;  %v2111_v38 = vrot.slane %v2110_v51, 4 }
 0x4d3   :  { %v2145_v4 = vadd.f32 %v2144_v28, %v2143_v29  ;;  %v2112_v60 = vadd.f32 %v2111_v38, %v2110_v51  ;;  %v2194_v29 = vstv %s4123_s14  ;;  %v2190_v28 = vstv %s4122_s20  ;;  %s7124_s14 = sld [smem:[#allocation2 + $0x174]] }
 0x4d4   :  { %v2120_v13 = vpop.xlane.xlu0 %2119  ;;  %s7126_s20 = sld [smem:[#allocation2 + $0x194]] }
 0x4d5   :  { %v2146_v43 = vrot.slane %v2145_v4, 2  ;;  %v2113_v3 = vrot.slane %v2112_v60, 2  ;;  %v2121_v50 = vrot.slane %v2120_v13, 4 }
 0x4d7   :  { %v2147_v9 = vadd.f32 %v2146_v43, %v2145_v4  ;;  %v2114_v27 = vadd.f32 %v2113_v3, %v2112_v60  ;;  %v2122_v35 = vadd.f32 %v2121_v50, %v2120_v13  ;;  %v2197_v13 = vstv %s4124_s28  ;;  %s7130_s28 = sld [smem:[#allocation2 + $0x184]] }
 0x4d8   :  { %v2153_v16 = vpop.xlane.xlu0 %2152  ;;  %v2209_v3 = vstv %s7084_s19  ;;  %v2217_v50 = vstv %s7086_s9  ;;  %s7132_s19 = sld [smem:[#allocation2 + $0x1a4]]  ;;  %s7140_s9 = sld [smem:[#allocation2 + $0x175]] }
 0x4d9   :  { %v2148_v10 = vrot.slane %v2147_v9, 1  ;;  %v2115_v19 = vrot.slane %v2114_v27, 1  ;;  %v2123_v54 = vrot.slane %v2122_v35, 2  ;;  %v2154_v14 = vrot.slane %v2153_v16, 4 }
 0x4db   :  { %v2116_v24 = vadd.f32 %v2115_v19, %v2114_v27  ;;  %v2124_v52 = vadd.f32 %v2123_v54, %v2122_v35  ;;  %v2155_v37 = vadd.f32 %v2154_v14, %v2153_v16  ;;  %v2149_v21 = vadd.f32 %v2148_v10, %v2147_v9 }
 0x4dd   :  { %v2117_v40 = vmul.f32 0.0012626263, %v2116_v24  ;;  %v2125_v59 = vrot.slane %v2124_v52, 1  ;;  %v2156_v53 = vrot.slane %v2155_v37, 2  ;;  %v2150_v49 = vmul.f32 0.0012626263, %v2149_v21 }
 0x4de   :  { %v2213_v24 = vstv %s7088_s6  ;;  %s7142_s6 = sld [smem:[#allocation2 + $0x195]] }
 0x4df   :  { %v2126_v15 = vadd.f32 %v2125_v59, %v2124_v52  ;;  %v2157_v44 = vadd.f32 %v2156_v53, %v2155_v37  ;;  %v2128_v26 = vmul.f32 %v2117_v40, %v2117_v40  ;;  %v2161_v47 = vmul.f32 %v2150_v49, %v2150_v49 }
 0x4e0   :  { %v2221_v52 = vstv %s7090_s2  ;;  %s7146_s2 = sld [smem:[#allocation2 + $0x185]] }
 0x4e1   :  { %v2127_v34 = vmul.f32 0.0012626263, %v2126_v15  ;;  %v2158_v7 = vrot.slane %v2157_v44, 1 }
 0x4e3   :  { %v2129_v32 = vsub.f32 %v2127_v34, %v2128_v26  ;;  %v2159_v8 = vadd.f32 %v2158_v7, %v2157_v44  ;;  %v2241_v26 = vstv %s7094_s11  ;;  %s7156_s11 = sld [smem:[#allocation2 + $0x176]] }
 0x4e5   :  { %v2131_v36 = vadd.f32 1e-05, %v2129_v32  ;;  %v2160_v2 = vmul.f32 0.0012626263, %v2159_v8 }
 0x4e7   :  { %4674 = vrsqrt.f32 %v2131_v36  ;;  %v2162_v6 = vsub.f32 %v2160_v2, %v2161_v47 }
 0x4e9   :  { %v2164_v0 = vadd.f32 1e-05, %v2162_v6  ;;  %v2237_v6 = vstv %s7098_s12  ;;  %s7158_s12 = sld [smem:[#allocation2 + $0x196]] }
 0x4eb   :  { %4676 = vrsqrt.f32 %v2164_v0  ;;  %v2245_v0 = vstv %s7100_s27  ;;  %s7162_s27 = sld [smem:[#allocation2 + $0x186]] }
 0x4f1   :  { %v4675_v20 = vpop.eup %4674 }
 0x4f2   :  { %v2134_v56 = vmul.f32 %v4675_v20, %v2133_v45 }
 0x4f4   :  { %v2136_v22 = vmul.f32 %v2134_v56, %v2117_v40  ;;  %v2139_v42 = vmul.f32 %v2134_v56, %v7001_v48 }
 0x4f5   :  { %v4677_v62 = vpop.eup %4676 }
 0x4f6   :  { %v2138_v61 = vsub.f32 %v2137_v5, %v2136_v22  ;;  %v2167_v1 = vmul.f32 %v4677_v62, %v2166_v33 }
 0x4f8   :  { %v2140_v11 = vadd.f32 %v2139_v42, %v2138_v61  ;;  %v2169_v25 = vmul.f32 %v2167_v1, %v2150_v49  ;;  %v2172_v58 = vmul.f32 %v2167_v1, %v7003_v39  ;;  %v2233_v49 = vstv %s7092_s3  ;;  %s7148_s3 = sld [smem:[#allocation2 + $0x1a5]] }
 0x4f9   :  { %v2257_v61 = vstv %s7108_s17  ;;  %v2265_v42 = vstv %s7110_s22  ;;  %s7164_s17 = sld [smem:[#allocation2 + $0x1a6]]  ;;  %s7172_s22 = sld [smem:[#allocation2 + $0x177]] }
 0x4fa   :  { %v2174_v41 = vmax.f32 %v2140_v11, 0.0  ;;  %v2171_v30 = vsub.f32 %v2170_v17, %v2169_v25 }
 0x4fc   :  { %v7019_v57 = vmul.f32 %v7008_v63, %v2174_v41  ;;  %v2173_v18 = vadd.f32 %v2172_v58, %v2171_v30 }
 0x4fe   :  { %v2176_v55 = vmax.f32 %v2173_v18, 0.0  ;;  %2178 = vrot.lane.b32.xlu1 %v7019_v57, %s8884_s16  ;;  %v2261_v18 = vstv %s7114_s5  ;;  %s7174_s5 = sld [smem:[#allocation2 + $0x197]] }
 0x500   :  { %v7024_v23 = vmul.f32 %v7008_v63, %v2176_v55  ;;  %v2187_v63 = vstv %s4121_s0  ;;  %s7116_s0 = sld [smem:[#allocation2 + $0x1a3]] }
 0x502   :  { %2200 = vrot.lane.b32.xlu1 %v7019_v57, %s8885_s8  ;;  %2182 = vrot.lane.b32.xlu0 %v7024_v23, %s8884_s16 }
 0x506   :  { %2204 = vrot.lane.b32.xlu1 %v7024_v23, %s8885_s8  ;;  %2224 = vrot.lane.b32.xlu0 %v7019_v57, %s8886_s26  ;;  %v2269_v55 = vstv %s7116_s0  ;;  %s7178_s0 = sld [smem:[#allocation2 + $0x187]] }
 0x50a   :  { %2228 = vrot.lane.b32.xlu1 %v7024_v23, %s8886_s26  ;;  %2248 = vrot.lane.b32.xlu0 %v7019_v57, %s8887_s21 }
 0x50e   :  { %2252 = vrot.lane.b32.xlu1 %v7024_v23, %s8887_s21  ;;  %2272 = vrot.lane.b32.xlu0 %v7019_v57, %s8888_s25 }
 0x512   :  { %2276 = vrot.lane.b32.xlu1 %v7024_v23, %s8888_s25  ;;  %2296 = vrot.lane.b32.xlu0 %v7019_v57, %s8889_s15 }
 0x516   :  { %2300 = vrot.lane.b32.xlu1 %v7024_v23, %s8889_s15  ;;  %2320 = vrot.lane.b32.xlu0 %v7019_v57, %s8890_s7 }
 0x51a   :  { %2324 = vrot.lane.b32.xlu1 %v7024_v23, %s8890_s7  ;;  %2344 = vrot.lane.b32.xlu0 %v7019_v57, %s8891_s10 }
 0x51e   :  { %2348 = vrot.lane.b32.xlu1 %v7024_v23, %s8891_s10  ;;  %2368 = vrot.lane.b32.xlu0 %v7019_v57, %s8892_s1 }
 0x522   :  { %2372 = vrot.lane.b32.xlu1 %v7024_v23, %s8892_s1  ;;  %2392 = vrot.lane.b32.xlu0 %v7019_v57, %s8893_s29 }
 0x526   :  { %2396 = vrot.lane.b32.xlu1 %v7024_v23, %s8893_s29  ;;  %2432 = vrot.lane.b32.xlu0 %v7019_v57, %s8881_s18 }
 0x52a   :  { %2436 = vrot.lane.b32.xlu1 %v7024_v23, %s8881_s18  ;;  %2456 = vrot.lane.b32.xlu0 %v7019_v57, %s8894_s4 }
 0x52e   :  { %2460 = vrot.lane.b32.xlu1 %v7024_v23, %s8894_s4  ;;  %2480 = vrot.lane.b32.xlu0 %v7019_v57, %s8895_s24 }
 0x532   :  { %2484 = vrot.lane.b32.xlu1 %v7024_v23, %s8895_s24  ;;  %2504 = vrot.lane.b32.xlu0 %v7019_v57, %s8882_s30 }
 0x536   :  { %2508 = vrot.lane.b32.xlu1 %v7024_v23, %s8882_s30  ;;  %2528 = vrot.lane.b32.xlu0 %v7019_v57, %s8883_s13 }
 0x53a   :  { %2532 = vrot.lane.b32.xlu1 %v7024_v23, %s8883_s13 }
 0x570   :  { %v2179_v48 = vpop.permute.xlu1 %2178 }
 0x571   :  { %v2180_v39 = vrot.slane %v2179_v48, 7 }
 0x573   :  { %v2181_v4 = vsel %vm518_vm3, %v2179_v48, %v2180_v39 }
 0x574   :  { %v2201_v51 = vpop.permute.xlu1 %2200  ;;  %v2183_v38 = vpop.permute.xlu0 %2182  ;;  %v2188_v35 = vmul.f32 %v2187_v63, %v2181_v4  ;;  %v2195_v16 = vmul.f32 %v2194_v29, %v2181_v4  ;;  %v2281_v4 = vstv %s7124_s14  ;;  %s7180_s14 = sld [smem:[#allocation2 + $0x1a7]] }
 0x575   :  { %v2202_v60 = vrot.slane %v2201_v51, 7  ;;  %v2184_v43 = vrot.slane %v2183_v38, 7 }
 0x577   :  { %v2203_v9 = vsel %vm595_vm4, %v2201_v51, %v2202_v60  ;;  %v2185_v27 = vsel %vm518_vm3, %v2183_v38, %v2184_v43  ;;  %v2289_v60 = vstv %s7126_s20  ;;  %s7188_s20 = sld [smem:[#allocation2 + $0x178]] }
 0x578   :  { %v2191_v10 = vmul.f32 %v2190_v28, %v2185_v27  ;;  %v2198_v19 = vmul.f32 %v2197_v13, %v2185_v27  ;;  %v2205_v54 = vpop.permute.xlu1 %2204  ;;  %v2225_v14 = vpop.permute.xlu0 %2224  ;;  %v2210_v40 = vmul.f32 %v2209_v3, %v2203_v9  ;;  %v2218_v59 = vmul.f32 %v2217_v50, %v2203_v9 }
 0x579   :  { %v2206_v37 = vrot.slane %v2205_v54, 7  ;;  %v2226_v21 = vrot.slane %v2225_v14, 7 }
 0x57a   :  { %v2192_v53 = vadd.f32 %v2191_v10, %v2188_v35  ;;  %v2199_v15 = vadd.f32 %v2198_v19, %v2195_v16  ;;  %v2285_v16 = vstv %s7130_s28  ;;  %v2293_v10 = vstv %s7132_s19  ;;  %s7190_s28 = sld [smem:[#allocation2 + $0x198]] }
 0x57b   :  { %v2207_v44 = vsel %vm595_vm4, %v2205_v54, %v2206_v37  ;;  %v2227_v34 = vsel %vm676_vm5, %v2225_v14, %v2226_v21  ;;  %s7194_s19 = sld [smem:[#allocation2 + $0x188]] }
 0x57c   :  { %v2211_v7 = vadd.f32 %v2210_v40, %v2192_v53  ;;  %v2214_v32 = vmul.f32 %v2213_v24, %v2207_v44  ;;  %v2219_v8 = vadd.f32 %v2218_v59, %v2199_v15  ;;  %v2222_v47 = vmul.f32 %v2221_v52, %v2207_v44  ;;  %v2229_v36 = vpop.permute.xlu1 %2228  ;;  %v2249_v2 = vpop.permute.xlu0 %2248 }
 0x57d   :  { %v2230_v45 = vrot.slane %v2229_v36, 7  ;;  %v2250_v20 = vrot.slane %v2249_v2, 7  ;;  %v2234_v33 = vmul.f32 %v2233_v49, %v2227_v34  ;;  %v2242_v22 = vmul.f32 %v2241_v26, %v2227_v34 }
 0x57e   :  { %v2215_v56 = vadd.f32 %v2214_v32, %v2211_v7  ;;  %v2223_v5 = vadd.f32 %v2222_v47, %v2219_v8  ;;  %v2305_v40 = vstv %s7140_s9  ;;  %v2313_v59 = vstv %s7142_s6  ;;  %s7196_s9 = sld [smem:[#allocation2 + $0x1a8]]  ;;  %s7204_s6 = sld [smem:[#allocation2 + $0x179]] }
 0x57f   :  { %v2231_v62 = vsel %vm676_vm5, %v2229_v36, %v2230_v45  ;;  %v2251_v1 = vsel %vm757_vm6, %v2249_v2, %v2250_v20  ;;  %v2309_v32 = vstv %s7146_s2  ;;  %v2317_v8 = vstv %s7148_s3  ;;  %s7206_s2 = sld [smem:[#allocation2 + $0x199]] }
 0x580   :  { %v2235_v17 = vadd.f32 %v2234_v33, %v2215_v56  ;;  %v2243_v11 = vadd.f32 %v2242_v22, %v2223_v5  ;;  %v2238_v25 = vmul.f32 %v2237_v6, %v2231_v62  ;;  %v2246_v41 = vmul.f32 %v2245_v0, %v2231_v62  ;;  %v2253_v30 = vpop.permute.xlu1 %2252  ;;  %v2273_v58 = vpop.permute.xlu0 %2272  ;;  %s7210_s3 = sld [smem:[#allocation2 + $0x189]] }
 0x581   :  { %v2254_v48 = vrot.slane %v2253_v30, 7  ;;  %v2274_v39 = vrot.slane %v2273_v58, 7  ;;  %v2258_v51 = vmul.f32 %v2257_v61, %v2251_v1  ;;  %v2266_v28 = vmul.f32 %v2265_v42, %v2251_v1 }
 0x582   :  { %v2239_v63 = vadd.f32 %v2238_v25, %v2235_v17  ;;  %v2247_v29 = vadd.f32 %v2246_v41, %v2243_v11  ;;  %v2329_v56 = vstv %s7156_s11  ;;  %v2337_v5 = vstv %s7158_s12  ;;  %s7212_s11 = sld [smem:[#allocation2 + $0x1a9]]  ;;  %s7220_s12 = sld [smem:[#allocation2 + $0x17a]] }
 0x583   :  { %v2255_v38 = vsel %vm757_vm6, %v2253_v30, %v2254_v48  ;;  %v2275_v13 = vsel %vm838_vm7, %v2273_v58, %v2274_v39  ;;  %v2333_v11 = vstv %s7162_s27  ;;  %v2341_v25 = vstv %s7164_s17  ;;  %s7222_s27 = sld [smem:[#allocation2 + $0x19a]] }
 0x584   :  { %v2259_v43 = vadd.f32 %v2258_v51, %v2239_v63  ;;  %v2267_v3 = vadd.f32 %v2266_v28, %v2247_v29  ;;  %v2262_v50 = vmul.f32 %v2261_v18, %v2255_v38  ;;  %v2270_v9 = vmul.f32 %v2269_v55, %v2255_v38  ;;  %v2277_v27 = vpop.permute.xlu1 %2276  ;;  %v2297_v35 = vpop.permute.xlu0 %2296  ;;  %s7226_s17 = sld [smem:[#allocation2 + $0x18a]] }
 0x585   :  { %v2278_v19 = vrot.slane %v2277_v27, 7  ;;  %v2298_v54 = vrot.slane %v2297_v35, 7  ;;  %v2282_v52 = vmul.f32 %v2281_v4, %v2275_v13  ;;  %v2290_v37 = vmul.f32 %v2289_v60, %v2275_v13 }
 0x586   :  { %v2263_v14 = vadd.f32 %v2262_v50, %v2259_v43  ;;  %v2271_v24 = vadd.f32 %v2270_v9, %v2267_v3  ;;  %v2353_v63 = vstv %s7172_s22  ;;  %v2361_v29 = vstv %s7174_s5  ;;  %s7228_s22 = sld [smem:[#allocation2 + $0x1aa]]  ;;  %s7236_s5 = sld [smem:[#allocation2 + $0x17b]] }
 0x587   :  { %v2279_v21 = vsel %vm838_vm7, %v2277_v27, %v2278_v19  ;;  %v2299_v53 = vsel %vm919_vm8, %v2297_v35, %v2298_v54  ;;  %v2357_v3 = vstv %s7178_s0  ;;  %v2365_v50 = vstv %s7180_s14  ;;  %s7238_s0 = sld [smem:[#allocation2 + $0x19b]] }
 0x588   :  { %v2283_v15 = vadd.f32 %v2282_v52, %v2263_v14  ;;  %v2291_v44 = vadd.f32 %v2290_v37, %v2271_v24  ;;  %v2286_v49 = vmul.f32 %v2285_v16, %v2279_v21  ;;  %v2294_v26 = vmul.f32 %v2293_v10, %v2279_v21  ;;  %v2301_v34 = vpop.permute.xlu1 %2300  ;;  %v2321_v7 = vpop.permute.xlu0 %2320  ;;  %s7242_s14 = sld [smem:[#allocation2 + $0x18b]] }
 0x589   :  { %v2302_v47 = vrot.slane %v2301_v34, 7  ;;  %v2322_v36 = vrot.slane %v2321_v7, 7  ;;  %v2306_v0 = vmul.f32 %v2305_v40, %v2299_v53  ;;  %v2314_v45 = vmul.f32 %v2313_v59, %v2299_v53 }
 0x58a   :  { %v2287_v2 = vadd.f32 %v2286_v49, %v2283_v15  ;;  %v2295_v6 = vadd.f32 %v2294_v26, %v2291_v44  ;;  %v2377_v14 = vstv %s7188_s20  ;;  %v2385_v24 = vstv %s7190_s28  ;;  %s7244_s20 = sld [smem:[#allocation2 + $0x1ab]]  ;;  %s7250_s28 = sld [smem:[#allocation2 + $0x17c]] }
 0x58b   :  { %v2303_v20 = vsel %vm919_vm8, %v2301_v34, %v2302_v47  ;;  %v2323_v33 = vsel %vm1000_vm9, %v2321_v7, %v2322_v36  ;;  %v2381_v44 = vstv %s7194_s19  ;;  %v2389_v49 = vstv %s7196_s9  ;;  %s7252_s19 = sld [smem:[#allocation2 + $0x19c]] }
 0x58c   :  { %v2307_v22 = vadd.f32 %v2306_v0, %v2287_v2  ;;  %v2315_v62 = vadd.f32 %v2314_v45, %v2295_v6  ;;  %v2310_v61 = vmul.f32 %v2309_v32, %v2303_v20  ;;  %v2318_v42 = vmul.f32 %v2317_v8, %v2303_v20  ;;  %v2325_v1 = vpop.permute.xlu1 %2324  ;;  %v2345_v17 = vpop.permute.xlu0 %2344  ;;  %s7256_s9 = sld [smem:[#allocation2 + $0x18c]] }
 0x58d   :  { %v2326_v41 = vrot.slane %v2325_v1, 7  ;;  %v2346_v30 = vrot.slane %v2345_v17, 7  ;;  %v2330_v55 = vmul.f32 %v2329_v56, %v2323_v33  ;;  %v2338_v48 = vmul.f32 %v2337_v5, %v2323_v33 }
 0x58e   :  { %v2311_v58 = vadd.f32 %v2310_v61, %v2307_v22  ;;  %v2319_v18 = vadd.f32 %v2318_v42, %v2315_v62  ;;  %v2401_v2 = vstv %s7204_s6  ;;  %v2409_v6 = vstv %s7206_s2  ;;  %s7258_s6 = sld [smem:[#allocation2 + $0x1ac]]  ;;  %s7266_s2 = sld [smem:[#allocation2 + $0x17d]] }
 0x58f   :  { %v2327_v39 = vsel %vm1000_vm9, %v2325_v1, %v2326_v41  ;;  %v2347_v51 = vsel %vm1081_vm10, %v2345_v17, %v2346_v30  ;;  %v2405_v62 = vstv %s7210_s3  ;;  %v2413_v61 = vstv %s7212_s11  ;;  %s7268_s3 = sld [smem:[#allocation2 + $0x19d]] }
 0x590   :  { %v2331_v28 = vadd.f32 %v2330_v55, %v2311_v58  ;;  %v2339_v38 = vadd.f32 %v2338_v48, %v2319_v18  ;;  %v2334_v4 = vmul.f32 %v2333_v11, %v2327_v39  ;;  %v2342_v60 = vmul.f32 %v2341_v25, %v2327_v39  ;;  %v2349_v13 = vpop.permute.xlu1 %2348  ;;  %v2369_v43 = vpop.permute.xlu0 %2368  ;;  %s7276_s11 = sld [smem:[#allocation2 + $0x18d]] }
 0x591   :  { %v2350_v9 = vrot.slane %v2349_v13, 7  ;;  %v2370_v27 = vrot.slane %v2369_v43, 7  ;;  %v2354_v10 = vmul.f32 %v2353_v63, %v2347_v51  ;;  %v2362_v19 = vmul.f32 %v2361_v29, %v2347_v51 }
 0x592   :  { %v2335_v35 = vadd.f32 %v2334_v4, %v2331_v28  ;;  %v2343_v16 = vadd.f32 %v2342_v60, %v2339_v38  ;;  %v2417_v41 = vstv %s7220_s12  ;;  %v2425_v30 = vstv %s7222_s27  ;;  %s7278_s12 = sld [smem:[#allocation2 + $0x1ad]]  ;;  %s7284_s27 = sld [smem:[#allocation2 + $0x17e]] }
 0x593   :  { %v2351_v54 = vsel %vm1081_vm10, %v2349_v13, %v2350_v9  ;;  %v2371_v52 = vsel %vm1162_vm11, %v2369_v43, %v2370_v27  ;;  %v2421_v28 = vstv %s7226_s17  ;;  %v2429_v38 = vstv %s7228_s22  ;;  %s7286_s17 = sld [smem:[#allocation2 + $0x19e]] }
 0x594   :  { %v2355_v37 = vadd.f32 %v2354_v10, %v2335_v35  ;;  %v2363_v21 = vadd.f32 %v2362_v19, %v2343_v16  ;;  %v2358_v40 = vmul.f32 %v2357_v3, %v2351_v54  ;;  %v2366_v59 = vmul.f32 %v2365_v50, %v2351_v54  ;;  %v2373_v53 = vpop.permute.xlu1 %2372  ;;  %v2393_v15 = vpop.permute.xlu0 %2392  ;;  %s7292_s22 = sld [smem:[#allocation2 + $0x18e]] }
 0x595   :  { %v2374_v26 = vrot.slane %v2373_v53, 7  ;;  %v2394_v34 = vrot.slane %v2393_v15, 7  ;;  %v2378_v8 = vmul.f32 %v2377_v14, %v2371_v52  ;;  %v2386_v47 = vmul.f32 %v2385_v24, %v2371_v52 }
 0x596   :  { %v2359_v7 = vadd.f32 %v2358_v40, %v2355_v37  ;;  %v2367_v32 = vadd.f32 %v2366_v59, %v2363_v21  ;;  %v2418_v60 = vmul.f32 %v2417_v41, %v7019_v57  ;;  %v2426_v13 = vmul.f32 %v2425_v30, %v7019_v57 }
 0x597   :  { %v2375_v36 = vsel %vm1162_vm11, %v2373_v53, %v2374_v26  ;;  %v2395_v0 = vsel %vm1243_vm12, %v2393_v15, %v2394_v34  ;;  %v2441_v50 = vstv %s7236_s5  ;;  %v2449_v9 = vstv %s7238_s0  ;;  %s7294_s5 = sld [smem:[#allocation2 + $0x1ae]]  ;;  %s7300_s0 = sld [smem:[#allocation2 + $0x17f]] }
 0x598   :  { %v2379_v45 = vadd.f32 %v2378_v8, %v2359_v7  ;;  %v2387_v20 = vadd.f32 %v2386_v47, %v2367_v32  ;;  %v2382_v56 = vmul.f32 %v2381_v44, %v2375_v36  ;;  %v2390_v5 = vmul.f32 %v2389_v49, %v2375_v36  ;;  %v2397_v33 = vpop.permute.xlu1 %2396  ;;  %v2433_v22 = vpop.permute.xlu0 %2432 }
 0x599   :  { %v2398_v42 = vrot.slane %v2397_v33, 7  ;;  %v2402_v11 = vmul.f32 %v2401_v2, %v2395_v0  ;;  %v2410_v25 = vmul.f32 %v2409_v6, %v2395_v0  ;;  %v2434_v18 = vrot.slane %v2433_v22, 1 }
 0x59a   :  { %v2383_v1 = vadd.f32 %v2382_v56, %v2379_v45  ;;  %v2391_v17 = vadd.f32 %v2390_v5, %v2387_v20  ;;  %v2422_v19 = vmul.f32 %v2421_v28, %v7024_v23  ;;  %v2430_v57 = vmul.f32 %v2429_v38, %v7024_v23 }
 0x59b   :  { %v2399_v58 = vsel %vm1243_vm12, %v2397_v33, %v2398_v42  ;;  %v2435_v27 = vsel %vm135_vm0, %v2434_v18, %v2433_v22  ;;  %v2445_v24 = vstv %s7242_s14  ;;  %v2453_v52 = vstv %s7244_s20  ;;  %s7302_s14 = sld [smem:[#allocation2 + $0x19f]] }
 0x59c   :  { %v2403_v55 = vadd.f32 %v2402_v11, %v2383_v1  ;;  %v2411_v48 = vadd.f32 %v2410_v25, %v2391_v17  ;;  %v2406_v39 = vmul.f32 %v2405_v62, %v2399_v58  ;;  %v2414_v63 = vmul.f32 %v2413_v61, %v2399_v58  ;;  %v2437_v29 = vpop.permute.xlu1 %2436  ;;  %v2457_v51 = vpop.permute.xlu0 %2456  ;;  %s7308_s20 = sld [smem:[#allocation2 + $0x18f]] }
 0x59d   :  { %v2438_v4 = vrot.slane %v2437_v29, 1  ;;  %v2458_v35 = vrot.slane %v2457_v51, 1  ;;  %v2442_v53 = vmul.f32 %v2441_v50, %v2435_v27  ;;  %v2450_v15 = vmul.f32 %v2449_v9, %v2435_v27 }
 0x59e   :  { %v2407_v43 = vadd.f32 %v2406_v39, %v2403_v55  ;;  %v2415_v3 = vadd.f32 %v2414_v63, %v2411_v48  ;;  %v2465_v44 = vstv %s7250_s28  ;;  %v2473_v23 = vstv %s7252_s19  ;;  %s7314_s28 = sld [smem:[#allocation2 + $0x1af]]  ;;  %s4204_s19 = sld [smem:[#allocation2 + $0x1c8]] }
 0x59f   :  { %v2439_v37 = vsel %vm135_vm0, %v2438_v4, %v2437_v29  ;;  %v2459_v49 = vsel %vm1468_vm13, %v2458_v35, %v2457_v51  ;;  %v2469_v2 = vstv %s7256_s9  ;;  %v2477_v6 = vstv %s7258_s6  ;;  %s4185_s6 = sld [smem:[#allocation2 + $0x1b4]]  ;;  %s4205_s9 = sld [smem:[#allocation2 + $0x1c5]] }
 0x5a0   :  { %v2419_v16 = vadd.f32 %v2418_v60, %v2407_v43  ;;  %v2427_v10 = vadd.f32 %v2426_v13, %v2415_v3  ;;  %v2461_v54 = vpop.permute.xlu1 %2460  ;;  %v2481_v14 = vpop.permute.xlu0 %2480  ;;  %v2446_v32 = vmul.f32 %v2445_v24, %v2439_v37  ;;  %v2454_v8 = vmul.f32 %v2453_v52, %v2439_v37 }
 0x5a1   :  { %v2462_v21 = vrot.slane %v2461_v54, 1  ;;  %v2482_v26 = vrot.slane %v2481_v14, 1  ;;  %v2466_v5 = vmul.f32 %v2465_v44, %v2459_v49  ;;  %v2474_v33 = vmul.f32 %v2473_v23, %v2459_v49 }
 0x5a2   :  { %v2423_v40 = vadd.f32 %v2422_v19, %v2419_v16  ;;  %v2431_v59 = vadd.f32 %v2430_v57, %v2427_v10  ;;  %v2489_v22 = vstv %s7266_s2  ;;  %v2497_v62 = vstv %s7268_s3  ;;  %s4186_s2 = sld [smem:[#allocation2 + $0x1b6]]  ;;  %s4187_s3 = sld [smem:[#allocation2 + $0x1b5]] }
 0x5a3   :  { %v2463_v0 = vsel %vm1468_vm13, %v2462_v21, %v2461_v54  ;;  %v2483_v61 = vsel %vm1549_vm14, %v2482_v26, %v2481_v14  ;;  %v2493_v58 = vstv %s7276_s11  ;;  %v2501_v18 = vstv %s7278_s12  ;;  %s4193_s11 = sld [smem:[#allocation2 + $0x1c0]]  ;;  %s4188_s12 = sld [smem:[#allocation2 + $0x1b7]] }
 0x5a4   :  { %v2443_v34 = vadd.f32 %v2442_v53, %v2423_v40  ;;  %v2451_v7 = vadd.f32 %v2450_v15, %v2431_v59  ;;  %v2485_v47 = vpop.permute.xlu1 %2484  ;;  %v2505_v36 = vpop.permute.xlu0 %2504  ;;  %v2470_v11 = vmul.f32 %v2469_v2, %v2463_v0  ;;  %v2478_v25 = vmul.f32 %v2477_v6, %v2463_v0  ;;  %v7335_v0 = vld [vmem:[%s8879_s23 + $0x8] sm:$0xff] }
 0x5a5   :  { %v2486_v45 = vrot.slane %v2485_v47, 1  ;;  %v2506_v42 = vrot.slane %v2505_v36, 1  ;;  %v2490_v29 = vmul.f32 %v2489_v22, %v2483_v61  ;;  %v2498_v51 = vmul.f32 %v2497_v62, %v2483_v61 }
 0x5a6   :  { %v2447_v20 = vadd.f32 %v2446_v32, %v2443_v34  ;;  %v2455_v56 = vadd.f32 %v2454_v8, %v2451_v7  ;;  %v2513_v28 = vstv %s7284_s27  ;;  %v2521_v38 = vstv %s7286_s17  ;;  %s4198_s27 = sld [smem:[#allocation2 + $0x1c1]]  ;;  %s4227_s17 = sld [smem:[#allocation2 + $0x1de]] }
 0x5a7   :  { %v2487_v55 = vsel %vm1549_vm14, %v2486_v45, %v2485_v47  ;;  %v2507_v4 = vsel %vm216_vm1, %v2506_v42, %v2505_v36  ;;  %v2517_v27 = vstv %s7292_s22  ;;  %v2525_v35 = vstv %s7294_s5  ;;  %s4199_s22 = sld [smem:[#allocation2 + $0x1c2]]  ;;  %s4228_s5 = sld [smem:[#allocation2 + $0x1df]] }
 0x5a8   :  { %v2467_v1 = vadd.f32 %v2466_v5, %v2447_v20  ;;  %v2475_v17 = vadd.f32 %v2474_v33, %v2455_v56  ;;  %v2509_v41 = vpop.permute.xlu1 %2508  ;;  %v2529_v30 = vpop.permute.xlu0 %2528  ;;  %v2494_v3 = vmul.f32 %v2493_v58, %v2487_v55  ;;  %v2502_v50 = vmul.f32 %v2501_v18, %v2487_v55 }
 0x5a9   :  { %v2510_v48 = vrot.slane %v2509_v41, 1  ;;  %v2530_v60 = vrot.slane %v2529_v30, 1  ;;  %v2514_v54 = vmul.f32 %v2513_v28, %v2507_v4  ;;  %v2522_v14 = vmul.f32 %v2521_v38, %v2507_v4 }
 0x5aa   :  { %v2471_v39 = vadd.f32 %v2470_v11, %v2467_v1  ;;  %v2479_v63 = vadd.f32 %v2478_v25, %v2475_v17  ;;  %v2537_v24 = vstv %s7300_s0  ;;  %v2545_v52 = vstv %s7302_s14  ;;  %s4200_s0 = sld [smem:[#allocation2 + $0x1c6]]  ;;  %s4201_s14 = sld [smem:[#allocation2 + $0x1c3]] }
 0x5ab   :  { %v2511_v16 = vsel %vm216_vm1, %v2510_v48, %v2509_v41  ;;  %v2531_v37 = vsel %vm297_vm2, %v2530_v60, %v2529_v30  ;;  %v2541_v15 = vstv %s7308_s20  ;;  %v2549_v7 = vstv %s7314_s28  ;;  %s4202_s20 = sld [smem:[#allocation2 + $0x1c7]]  ;;  %s4203_s28 = sld [smem:[#allocation2 + $0x1c4]] }
 0x5ac   :  { %v2491_v13 = vadd.f32 %v2490_v29, %v2471_v39  ;;  %v2499_v43 = vadd.f32 %v2498_v51, %v2479_v63  ;;  %v2533_v9 = vpop.permute.xlu1 %2532  ;;  %v2518_v59 = vmul.f32 %v2517_v27, %v2511_v16  ;;  %v2526_v53 = vmul.f32 %v2525_v35, %v2511_v16 }
 0x5ad   :  { %v2534_v10 = vrot.slane %v2533_v9, 1  ;;  %v2538_v26 = vmul.f32 %v2537_v24, %v2531_v37  ;;  %v2546_v34 = vmul.f32 %v2545_v52, %v2531_v37  ;;  %v2577_v37 = vstv %s4185_s6  ;;  %s4206_s6 = sld [smem:[#allocation2 + $0x1c9]] }
 0x5ae   :  { %v2495_v19 = vadd.f32 %v2494_v3, %v2491_v13  ;;  %v2503_v57 = vadd.f32 %v2502_v50, %v2499_v43 }
 0x5af   :  { %v2535_v44 = vsel %vm297_vm2, %v2534_v10, %v2533_v9 }
 0x5b0   :  { %v2515_v21 = vadd.f32 %v2514_v54, %v2495_v19  ;;  %v2523_v40 = vadd.f32 %v2522_v14, %v2503_v57  ;;  %v2542_v47 = vmul.f32 %v2541_v15, %v2535_v44  ;;  %v2550_v2 = vmul.f32 %v2549_v7, %v2535_v44 }
 0x5b1   :  { %v2610_v15 = vstv %s4187_s3  ;;  %v2634_v44 = vstv %s4193_s11  ;;  %s4208_s11 = sld [smem:[#allocation2 + $0x1db]]  ;;  %s4726_s3 = smov 35  }
 0x5b2   :  { %v2519_v23 = vadd.f32 %v2518_v59, %v2515_v21  ;;  %v2527_v49 = vadd.f32 %v2526_v53, %v2523_v40  ;;  %v2581_v59 = vstv %s4186_s2  ;;  %s8903_s2 = sld [smem:[#allocation204_spill]] }
 0x5b4   :  { %v2539_v32 = vadd.f32 %v2538_v26, %v2519_v23  ;;  %v2547_v8 = vadd.f32 %v2546_v34, %v2527_v49 }
 0x5b6   :  { %v7328_v36 = vadd.f32 %v2542_v47, %v2539_v32  ;;  %v7330_v6 = vadd.f32 %v2550_v2, %v2547_v8  ;;  %v2635_v32 = vadd.f32 %v2634_v44, %v6906_v12  ;;  %v2614_v8 = vstv %s4188_s12  ;;  %s4224_s12 = sld [smem:[#allocation2 + $0x1d9]] }
 0x5b8   :  { %v2552_v45 = vmul.f32 %v7335_v0, %v7328_v36  ;;  %v2585_v56 = vmul.f32 %v7335_v0, %v7330_v6 }
 0x5ba   :  { %2553 = vadd.xlane.f32.xlu0 %v2552_v45  ;;  %v2562_v20 = vmul.f32 %v2552_v45, %v7328_v36  ;;  %v2595_v5 = vmul.f32 %v2585_v56, %v7330_v6  ;;  %v2652_v45 = vstv %s4198_s27  ;;  %s8906_s27 = sld [smem:[#allocation206_spill]] }
 0x5bc   :  { %2563 = vadd.xlane.f32.xlu1 %v2562_v20 }
 0x5be   :  { %2586 = vadd.xlane.f32.xlu0 %v2585_v56 }
 0x5c2   :  { %2596 = vadd.xlane.f32.xlu0 %v2595_v5 }
 0x647   :  { %v2554_v33 = vpop.xlane.xlu0 %2553 }
 0x648   :  { %v2555_v22 = vrot.slane %v2554_v33, 4 }
 0x649   :  { %v2564_v62 = vpop.xlane.xlu1 %2563 }
 0x64a   :  { %v2556_v61 = vadd.f32 %v2555_v22, %v2554_v33  ;;  %v2565_v42 = vrot.slane %v2564_v62, 4  ;;  %v2653_v22 = vadd.f32 %v2652_v45, %v6908_v46 }
 0x64b   :  { %v2587_v1 = vpop.xlane.xlu0 %2586 }
 0x64c   :  { %v2557_v17 = vrot.slane %v2556_v61, 2  ;;  %v2566_v11 = vadd.f32 %v2565_v42, %v2564_v62  ;;  %v2588_v25 = vrot.slane %v2587_v1, 4  ;;  %v2910_v42 = vstv %s4228_s5 }
 0x64e   :  { %v2558_v41 = vadd.f32 %v2557_v17, %v2556_v61  ;;  %v2567_v30 = vrot.slane %v2566_v11, 2  ;;  %v2589_v58 = vadd.f32 %v2588_v25, %v2587_v1  ;;  %v2907_v61 = vstv %s4227_s17  ;;  %s8900_s17 = sld [smem:[#allocation200_spill]] }
 0x64f   :  { %v2597_v18 = vpop.xlane.xlu0 %2596  ;;  %v2661_v1 = vstv %s4199_s22  ;;  %v2664_v17 = vstv %s4200_s0  ;;  %s8896_s22 = sld [smem:[#allocation197_spill]]  ;;  %s8907_s0 = sld [smem:[#allocation208_spill]] }
 0x650   :  { %v2559_v55 = vrot.slane %v2558_v41, 1  ;;  %v2568_v48 = vadd.f32 %v2567_v30, %v2566_v11  ;;  %v2590_v39 = vrot.slane %v2589_v58, 2  ;;  %v2598_v63 = vrot.slane %v2597_v18, 4 }
 0x652   :  { %v2560_v29 = vadd.f32 %v2559_v55, %v2558_v41  ;;  %v2569_v51 = vrot.slane %v2568_v48, 1  ;;  %v2591_v28 = vadd.f32 %v2590_v39, %v2589_v58  ;;  %v2599_v38 = vadd.f32 %v2598_v63, %v2597_v18 }
 0x654   :  { %v2561_v4 = vmul.f32 0.0014005603, %v2560_v29  ;;  %v2570_v60 = vadd.f32 %v2569_v51, %v2568_v48  ;;  %v2592_v13 = vrot.slane %v2591_v28, 1  ;;  %v2600_v43 = vrot.slane %v2599_v38, 2 }
 0x655   :  { %v2676_v48 = vstv %s4201_s14  ;;  %v2925_v31 = vld [vmem:[%s8896_s22 + $0x8] sm:$0xff]  ;;  %s4225_s14 = sld [smem:[#allocation2 + $0x1dc]] }
 0x656   :  { %v2572_v3 = vmul.f32 %v2561_v4, %v2561_v4  ;;  %v2571_v50 = vmul.f32 0.0014005603, %v2570_v60  ;;  %v2593_v9 = vadd.f32 %v2592_v13, %v2591_v28  ;;  %v2601_v27 = vadd.f32 %v2600_v43, %v2599_v38 }
 0x657   :  { %v2680_v38 = vstv %s4202_s20  ;;  %v2692_v13 = vstv %s4203_s28  ;;  %s4226_s20 = sld [smem:[#allocation2 + $0x1dd]]  ;;  %s4229_s28 = sld [smem:[#allocation2 + $0x1e0]] }
 0x658   :  { %v2573_v35 = vsub.f32 %v2571_v50, %v2572_v3  ;;  %v2594_v16 = vmul.f32 0.0014005603, %v2593_v9  ;;  %v2602_v10 = vrot.slane %v2601_v27, 1 }
 0x65a   :  { %v2575_v19 = vadd.f32 1e-05, %v2573_v35  ;;  %v2603_v57 = vadd.f32 %v2602_v10, %v2601_v27  ;;  %v2605_v54 = vmul.f32 %v2594_v16, %v2594_v16 }
 0x65c   :  { %4678 = vrsqrt.f32 %v2575_v19  ;;  %v2604_v14 = vmul.f32 0.0014005603, %v2603_v57 }
 0x65e   :  { %v2606_v24 = vsub.f32 %v2604_v14, %v2605_v54 }
 0x660   :  { %v2608_v52 = vadd.f32 1e-05, %v2606_v24  ;;  %v2708_v24 = vstv %s4205_s9 }
 0x662   :  { %4680 = vrsqrt.f32 %v2608_v52 }
 0x666   :  { %v4679_v21 = vpop.eup %4678 }
 0x667   :  { %v2578_v40 = vmul.f32 %v4679_v21, %v2577_v37 }
 0x669   :  { %v2580_v53 = vmul.f32 %v2578_v40, %v2561_v4  ;;  %v2583_v49 = vmul.f32 %v2578_v40, %v7328_v36 }
 0x66b   :  { %v2582_v23 = vsub.f32 %v2581_v59, %v2580_v53  ;;  %v2712_v59 = vstv %s4206_s6 }
 0x66c   :  { %v4681_v26 = vpop.eup %4680 }
 0x66d   :  { %v2611_v34 = vmul.f32 %v4681_v26, %v2610_v15  ;;  %v2584_v7 = vadd.f32 %v2583_v49, %v2582_v23 }
 0x66f   :  { %v2654_v47 = vadd.f32 %v2635_v32, %v2584_v7  ;;  %v2613_v2 = vmul.f32 %v2611_v34, %v2594_v16  ;;  %v2616_v5 = vmul.f32 %v2611_v34, %v7330_v6  ;;  %v2696_v16 = vstv %s4204_s19  ;;  %v4692_v34 = vld [vmem:[%s8879_s23] sm:$0xff]  ;;  %s4207_s23 = sld [smem:[#allocation2 + $0x1da]]  ;;  %s8902_s19 = sld [smem:[#allocation202_spill]] }
 0x671   :  { %v2655_v20 = vmax.f32 %v2654_v47, 0.0  ;;  %v2615_v56 = vsub.f32 %v2614_v8, %v2613_v2 }
 0x673   :  { %v2656_v33 = vmul.f32 %v7335_v0, %v2655_v20  ;;  %v2617_v36 = vadd.f32 %v2616_v5, %v2615_v56 }
 0x675   :  { %2667 = vrot.lane.b32.xlu1 %v2656_v33, %s8881_s18  ;;  %v2657_v12 = vadd.f32 %v2653_v22, %v2617_v36  ;;  %v2908_v25 = vmul.f32 %v2907_v61, %v2656_v33  ;;  %v2662_v30 = vmul.f32 %v2661_v1, %v2656_v33 }
 0x677   :  { %v2658_v62 = vmax.f32 %v2657_v12, 0.0 }
 0x679   :  { %2683 = vrot.lane.b32.xlu1 %v2656_v33, %s8882_s30  ;;  %v2659_v11 = vmul.f32 %v7335_v0, %v2658_v62 }
 0x67b   :  { %2671 = vrot.lane.b32.xlu0 %v2659_v11, %s8881_s18  ;;  %v2911_v6 = vmul.f32 %v2910_v42, %v2659_v11  ;;  %v2665_v41 = vmul.f32 %v2664_v17, %v2659_v11 }
 0x67d   :  { %v7352_v58 = vadd.f32 %v2911_v6, %v2908_v25  ;;  %2687 = vrot.lane.b32.xlu1 %v2659_v11, %s8882_s30  ;;  %v2666_v46 = vadd.f32 %v2665_v41, %v2662_v30  ;;  %v2740_v41 = vstv %s4207_s23 }
 0x67f   :  { %2699 = vrot.lane.b32.xlu0 %v2656_v33, %s8883_s13 }
 0x681   :  { %2703 = vrot.lane.b32.xlu1 %v2659_v11, %s8883_s13 }
 0x6e7   :  { %v2668_v18 = vpop.permute.xlu1 %2667 }
 0x6e8   :  { %v2669_v55 = vrot.slane %v2668_v18, 1 }
 0x6ea   :  { %v2670_v39 = vsel %vm135_vm0, %v2669_v55, %v2668_v18  ;;  %v2744_v18 = vstv %s4208_s11  ;;  %s8897_s11 = sld [smem:[#allocation199_spill]] }
 0x6eb   :  { %v2684_v63 = vpop.permute.xlu1 %2683  ;;  %v2677_v51 = vmul.f32 %v2676_v48, %v2670_v39 }
 0x6ec   :  { %v2685_v29 = vrot.slane %v2684_v63, 1 }
 0x6ed   :  { %v2672_v28 = vpop.permute.xlu0 %2671  ;;  %v2678_v9 = vadd.f32 %v2677_v51, %v2666_v46 }
 0x6ee   :  { %v2673_v4 = vrot.slane %v2672_v28, 1  ;;  %v2686_v43 = vsel %vm216_vm1, %v2685_v29, %v2684_v63 }
 0x6ef   :  { %v2688_v60 = vpop.permute.xlu1 %2687  ;;  %v2693_v57 = vmul.f32 %v2692_v13, %v2686_v43 }
 0x6f0   :  { %v2674_v3 = vsel %vm135_vm0, %v2673_v4, %v2672_v28  ;;  %v2689_v50 = vrot.slane %v2688_v60, 1 }
 0x6f1   :  { %v2681_v27 = vmul.f32 %v2680_v38, %v2674_v3  ;;  %v2700_v35 = vpop.permute.xlu0 %2699 }
 0x6f2   :  { %v2690_v10 = vsel %vm216_vm1, %v2689_v50, %v2688_v60  ;;  %v2701_v19 = vrot.slane %v2700_v35, 1 }
 0x6f3   :  { %v2682_v54 = vadd.f32 %v2681_v27, %v2678_v9  ;;  %v2704_v14 = vpop.permute.xlu1 %2703  ;;  %v2697_v40 = vmul.f32 %v2696_v16, %v2690_v10 }
 0x6f4   :  { %v2702_v52 = vsel %vm297_vm2, %v2701_v19, %v2700_v35  ;;  %v2705_v37 = vrot.slane %v2704_v14, 1 }
 0x6f5   :  { %v2694_v21 = vadd.f32 %v2693_v57, %v2682_v54  ;;  %v2709_v44 = vmul.f32 %v2708_v24, %v2702_v52 }
 0x6f6   :  { %v2706_v53 = vsel %vm297_vm2, %v2705_v37, %v2704_v14 }
 0x6f7   :  { %v2698_v15 = vadd.f32 %v2697_v40, %v2694_v21  ;;  %v2713_v49 = vmul.f32 %v2712_v59, %v2706_v53 }
 0x6f9   :  { %v2710_v23 = vadd.f32 %v2709_v44, %v2698_v15 }
 0x6fb   :  { %v2714_v26 = vadd.f32 %v2713_v49, %v2710_v23 }
 0x6fd   :  { %v2715_v7 = vmul.f32 %v4692_v34, %v2714_v26 }
 0x6ff   :  { %2716 = vadd.xlane.f32.xlu0 %v2715_v7  ;;  %v2725_v32 = vmul.f32 %v2715_v7, %v2714_v26 }
 0x701   :  { %2726 = vadd.xlane.f32.xlu1 %v2725_v32 }
 0x78c   :  { %v2717_v8 = vpop.xlane.xlu0 %2716 }
 0x78d   :  { %v2718_v47 = vrot.slane %v2717_v8, 4 }
 0x78e   :  { %v2727_v2 = vpop.xlane.xlu1 %2726 }
 0x78f   :  { %v2719_v45 = vadd.f32 %v2718_v47, %v2717_v8  ;;  %v2728_v20 = vrot.slane %v2727_v2, 4 }
 0x791   :  { %v2720_v56 = vrot.slane %v2719_v45, 2  ;;  %v2729_v5 = vadd.f32 %v2728_v20, %v2727_v2 }
 0x793   :  { %v2721_v33 = vadd.f32 %v2720_v56, %v2719_v45  ;;  %v2730_v36 = vrot.slane %v2729_v5, 2 }
 0x795   :  { %v2722_v22 = vrot.slane %v2721_v33, 1  ;;  %v2731_v12 = vadd.f32 %v2730_v36, %v2729_v5 }
 0x797   :  { %v2723_v62 = vadd.f32 %v2722_v22, %v2721_v33  ;;  %v2732_v61 = vrot.slane %v2731_v12, 1 }
 0x799   :  { %v2724_v42 = vmul.f32 0.0012626263, %v2723_v62  ;;  %v2733_v1 = vadd.f32 %v2732_v61, %v2731_v12 }
 0x79b   :  { %v2735_v17 = vmul.f32 %v2724_v42, %v2724_v42  ;;  %v2734_v11 = vmul.f32 0.0012626263, %v2733_v1 }
 0x79d   :  { %v2736_v25 = vsub.f32 %v2734_v11, %v2735_v17 }
 0x79f   :  { %v2738_v6 = vadd.f32 1e-05, %v2736_v25 }
 0x7a1   :  { %4682 = vrsqrt.f32 %v2738_v6 }
 0x7ab   :  { %v4683_v30 = vpop.eup %4682 }
 0x7ac   :  { %v2741_v46 = vmul.f32 %v4683_v30, %v2740_v41 }
 0x7ae   :  { %v2743_v55 = vmul.f32 %v2741_v46, %v2724_v42  ;;  %v2746_v39 = vmul.f32 %v2741_v46, %v2714_v26 }
 0x7b0   :  { %v2745_v48 = vsub.f32 %v2744_v18, %v2743_v55 }
 0x7b2   :  { %v2747_v63 = vadd.f32 %v2746_v39, %v2745_v48 }
 0x7b4   :  { %v2748_v29 = vmax.f32 %v2747_v63, 0.0 }
 0x7b6   :  { %v7372_v51 = vmul.f32 %v4692_v34, %v2748_v29 }
 0x7b8   :  { %2757 = vrot.lane.b32.xlu1 %v7372_v51, %s8885_s8  ;;  %2750 = vrot.lane.b32.xlu0 %v7372_v51, %s8884_s16  ;;  %s4210_s16 = sld [smem:[#allocation2 + $0x1cb]]  ;;  %s4209_s8 = sld [smem:[#allocation2 + $0x1ca]] }
 0x7bc   :  { %2773 = vrot.lane.b32.xlu1 %v7372_v51, %s8887_s21  ;;  %2765 = vrot.lane.b32.xlu0 %v7372_v51, %s8886_s26  ;;  %s4211_s26 = sld [smem:[#allocation2 + $0x1cc]]  ;;  %s7404_s21 = sld [smem:[#allocation2 + $0x1cd]] }
 0x7be   :  { %v2762_v4 = vstv %s4210_s16  ;;  %v2755_v13 = vstv %s4209_s8  ;;  %s8904_s16 = sld [smem:[#allocation205_spill]] }
 0x7c0   :  { %2789 = vrot.lane.b32.xlu1 %v7372_v51, %s8889_s15  ;;  %2781 = vrot.lane.b32.xlu0 %v7372_v51, %s8888_s25  ;;  %s7421_s25 = sld [smem:[#allocation2 + $0x1d1]]  ;;  %s7424_s15 = sld [smem:[#allocation2 + $0x1d2]] }
 0x7c2   :  { %v2770_v19 = vstv %s4211_s26  ;;  %v2778_v54 = vstv %s7404_s21 }
 0x7c4   :  { %2805 = vrot.lane.b32.xlu1 %v7372_v51, %s8891_s10  ;;  %2797 = vrot.lane.b32.xlu0 %v7372_v51, %s8890_s7  ;;  %s7431_s7 = sld [smem:[#allocation2 + $0x1d3]]  ;;  %s7434_s10 = sld [smem:[#allocation2 + $0x1d4]] }
 0x7c6   :  { %v2810_v33 = vstv %s7421_s25  ;;  %v2818_v17 = vstv %s7424_s15  ;;  %s4727_s15 = smov 93  }
 0x7c8   :  { %2821 = vrot.lane.b32.xlu1 %v7372_v51, %s8893_s29  ;;  %2813 = vrot.lane.b32.xlu0 %v7372_v51, %s8892_s1  ;;  %s7441_s1 = sld [smem:[#allocation2 + $0x1d5]]  ;;  %s7444_s29 = sld [smem:[#allocation2 + $0x1d6]] }
 0x7ca   :  { %v2826_v41 = vstv %s7431_s7  ;;  %v2830_v29 = vstv %s7434_s10  ;;  %s8898_s7 = sld [smem:[#allocation198_spill]] }
 0x7cc   :  { %2841 = vrot.lane.b32.xlu1 %v7372_v51, %s8894_s4  ;;  %2833 = vrot.lane.b32.xlu0 %v7372_v51, %s8881_s18  ;;  %s7406_s18 = sld [smem:[#allocation2 + $0x1ce]]  ;;  %s7451_s4 = sld [smem:[#allocation2 + $0x1d7]] }
 0x7d0   :  { %2857 = vrot.lane.b32.xlu1 %v7372_v51, %s8882_s30  ;;  %2849 = vrot.lane.b32.xlu0 %v7372_v51, %s8895_s24  ;;  %s7412_s30 = sld [smem:[#allocation2 + $0x1cf]]  ;;  %s4223_s24 = sld [smem:[#allocation2 + $0x1d8]] }
 0x7d2   :  { %v2786_v53 = vstv %s7406_s18 }
 0x7d4   :  { %2865 = vrot.lane.b32.xlu0 %v7372_v51, %s8883_s13  ;;  %s7414_s13 = sld [smem:[#allocation2 + $0x1d0]] }
 0x7d6   :  { %v2794_v49 = vstv %s7412_s30 }
 0x7da   :  { %v2802_v45 = vstv %s7414_s13 }
 0x82a   :  { %v2758_v28 = vpop.permute.xlu1 %2757  ;;  %v2751_v38 = vpop.permute.xlu0 %2750 }
 0x82b   :  { %v2759_v60 = vrot.slane %v2758_v28, 7  ;;  %v2752_v43 = vrot.slane %v2751_v38, 7 }
 0x82d   :  { %v2760_v3 = vsel %vm595_vm4, %v2758_v28, %v2759_v60  ;;  %v2753_v50 = vsel %vm518_vm3, %v2751_v38, %v2752_v43  ;;  %v2838_v60 = vstv %s7441_s1  ;;  %vm3392_vm3 = vcmask 130048   ;;  %s8905_s1 = sld [smem:[#allocation207_spill]] }
 0x82e   :  { %v2763_v9 = vmul.f32 %v2762_v4, %v2760_v3  ;;  %v2756_v27 = vmul.f32 %v2755_v13, %v2753_v50  ;;  %v2774_v35 = vpop.permute.xlu1 %2773  ;;  %v2766_v16 = vpop.permute.xlu0 %2765  ;;  %v2831_v3 = vmul.f32 %v2830_v29, %v7372_v51  ;;  %vm3471_vm4 = vcmask 1043456  }
 0x82f   :  { %v2775_v10 = vrot.slane %v2774_v35, 7  ;;  %v2767_v57 = vrot.slane %v2766_v16, 7 }
 0x830   :  { %v2764_v52 = vadd.f32 %v2763_v9, %v2756_v27  ;;  %v2846_v27 = vstv %s7444_s29  ;;  %s8899_s29 = sld [smem:[#allocation201_spill]] }
 0x831   :  { %v2776_v14 = vsel %vm757_vm6, %v2774_v35, %v2775_v10  ;;  %v2768_v24 = vsel %vm676_vm5, %v2766_v16, %v2767_v57  ;;  %vm3467_vm5 = vcmask 31744   ;;  %vm3739_vm6 = vcmask 58368  }
 0x832   :  { %v2771_v37 = vmul.f32 %v2770_v19, %v2768_v24  ;;  %v2790_v21 = vpop.permute.xlu1 %2789  ;;  %v2782_v40 = vpop.permute.xlu0 %2781  ;;  %v2779_v44 = vmul.f32 %v2778_v54, %v2776_v14  ;;  %v2854_v54 = vstv %s7451_s4 }
 0x833   :  { %v2791_v59 = vrot.slane %v2790_v21, 7  ;;  %v2783_v15 = vrot.slane %v2782_v40, 7 }
 0x834   :  { %v2772_v23 = vadd.f32 %v2771_v37, %v2764_v52 }
 0x835   :  { %v2792_v26 = vsel %vm919_vm8, %v2790_v21, %v2791_v59  ;;  %v2784_v34 = vsel %vm838_vm7, %v2782_v40, %v2783_v15  ;;  %v2862_v21 = vstv %s4223_s24  ;;  %v2870_v15 = vstv %s4224_s12 }
 0x836   :  { %v2780_v7 = vadd.f32 %v2779_v44, %v2772_v23  ;;  %v2787_v32 = vmul.f32 %v2786_v53, %v2784_v34  ;;  %v2806_v8 = vpop.permute.xlu1 %2805  ;;  %v2798_v47 = vpop.permute.xlu0 %2797  ;;  %v2795_v56 = vmul.f32 %v2794_v49, %v2792_v26 }
 0x837   :  { %v2807_v2 = vrot.slane %v2806_v8, 7  ;;  %v2799_v20 = vrot.slane %v2798_v47, 7 }
 0x838   :  { %v2788_v5 = vadd.f32 %v2787_v32, %v2780_v7 }
 0x839   :  { %v2808_v36 = vsel %vm1081_vm10, %v2806_v8, %v2807_v2  ;;  %v2800_v22 = vsel %vm1000_vm9, %v2798_v47, %v2799_v20  ;;  %v2924_v47 = vld [vmem:[%s8896_s22] sm:$0xff]  ;;  %v2946_v20 = vld [vmem:[%s8896_s22 + $0x88] sm:$0xff] }
 0x83a   :  { %v2796_v12 = vadd.f32 %v2795_v56, %v2788_v5  ;;  %v2803_v62 = vmul.f32 %v2802_v45, %v2800_v22  ;;  %v2822_v61 = vpop.permute.xlu1 %2821  ;;  %v2814_v42 = vpop.permute.xlu0 %2813  ;;  %v2811_v25 = vmul.f32 %v2810_v33, %v2808_v36  ;;  %v4542_v2 = vpack.c.bf16 %v2925_v31, %v2924_v47  ;;  %v2945_v45 = vld [vmem:[%s8896_s22 + $0x80] sm:$0xff]  ;;  %v2926_v33 = vld [vmem:[%s8896_s22 + $0x10] sm:$0xff]  ;;  %v2927_v36 = vld [vmem:[%s8896_s22 + $0x18] sm:$0xff] }
 0x83b   :  { %v2823_v1 = vrot.slane %v2822_v61, 7  ;;  %v2815_v11 = vrot.slane %v2814_v42, 7  ;;  %v4723_v56 = vmov 0.0|0.0   ;;  %v4518_v5 = vpack.c.bf16 %v2946_v20, %v2945_v45 }
 0x83c   :  { %v2804_v6 = vadd.f32 %v2803_v62, %v2796_v12  ;;  %4541 = vmatprep.subr.bf16.mxu0 %v4723_v56  ;;  %4517 = vmatprep.subr.bf16.mxu1 %v4723_v56  ;;  %v4545_v22 = vpack.c.bf16 %v2927_v36, %v2926_v33  ;;  %v2947_v12 = vld [vmem:[%s8896_s22 + $0x90] sm:$0xff]  ;;  %v2948_v62 = vld [vmem:[%s8896_s22 + $0x98] sm:$0xff] }
 0x83d   :  { %v2824_v30 = vsel %vm1243_vm12, %v2822_v61, %v2823_v1  ;;  %v2816_v46 = vsel %vm1162_vm11, %v2814_v42, %v2815_v11  ;;  %4543 = vmatpush3.bf16.msra.mxu0 %v4542_v2  ;;  %4519 = vmatpush3.bf16.msra.mxu1 %v4518_v5  ;;  %v4521_v61 = vpack.c.bf16 %v2948_v62, %v2947_v12  ;;  %v2928_v42 = vld [vmem:[%s8896_s22 + $0x20] sm:$0xff]  ;;  %v2929_v1 = vld [vmem:[%s8896_s22 + $0x28] sm:$0xff] }
 0x83e   :  { %v2812_v18 = vadd.f32 %v2811_v25, %v2804_v6  ;;  %v2819_v55 = vmul.f32 %v2818_v17, %v2816_v46  ;;  %v2842_v48 = vpop.permute.xlu1 %2841  ;;  %v2834_v39 = vpop.permute.xlu0 %2833  ;;  %v2827_v38 = vmul.f32 %v2826_v41, %v2824_v30  ;;  %4544 = vmatprep.subr.bf16.mxu0 %v4723_v56  ;;  %4520 = vmatprep.subr.bf16.mxu1 %v4723_v56  ;;  %v2949_v11 = vld [vmem:[%s8896_s22 + $0xa0] sm:$0xff]  ;;  %v2950_v25 = vld [vmem:[%s8896_s22 + $0xa8] sm:$0xff]  ;;  %v2930_v41 = vld [vmem:[%s8896_s22 + $0x30] sm:$0xff] }
 0x83f   :  { %v2843_v63 = vrot.slane %v2842_v48, 1  ;;  %v2835_v28 = vrot.slane %v2834_v39, 1  ;;  %v4548_v17 = vpack.c.bf16 %v2929_v1, %v2928_v42  ;;  %v4524_v6 = vpack.c.bf16 %v2950_v25, %v2949_v11  ;;  %v2931_v30 = vld [vmem:[%s8896_s22 + $0x38] sm:$0xff] }
 0x840   :  { %v2820_v4 = vadd.f32 %v2819_v55, %v2812_v18  ;;  %v4551_v46 = vpack.c.bf16 %v2931_v30, %v2930_v41  ;;  %v2951_v18 = vld [vmem:[%s8896_s22 + $0xb0] sm:$0xff]  ;;  %v2952_v55 = vld [vmem:[%s8896_s22 + $0xb8] sm:$0xff]  ;;  %v2914_v1 = vstv %s4229_s28 }
 0x841   :  { %v2836_v13 = vsel %vm135_vm0, %v2835_v28, %v2834_v39  ;;  %v2844_v35 = vsel %vm1468_vm13, %v2843_v63, %v2842_v48  ;;  %4546 = vmatpush3.bf16.msra.mxu0 %v4545_v22  ;;  %4522 = vmatpush3.bf16.msra.mxu1 %v4521_v61  ;;  %v4527_v48 = vpack.c.bf16 %v2952_v55, %v2951_v18  ;;  %v2932_v39 = vld [vmem:[%s8896_s22 + $0x40] sm:$0xff]  ;;  %v2933_v63 = vld [vmem:[%s8896_s22 + $0x48] sm:$0xff]  ;;  %v2898_v22 = vstv %s4225_s14  ;;  %s8901_s14 = sld [smem:[#allocation203_spill]] }
 0x842   :  { %v2828_v43 = vadd.f32 %v2827_v38, %v2820_v4  ;;  %v2858_v50 = vpop.permute.xlu1 %2857  ;;  %v2850_v9 = vpop.permute.xlu0 %2849  ;;  %v2839_v57 = vmul.f32 %v2838_v60, %v2836_v13  ;;  %v2847_v24 = vmul.f32 %v2846_v27, %v2844_v35  ;;  %4547 = vmatprep.subr.bf16.mxu0 %v4723_v56  ;;  %4523 = vmatprep.subr.bf16.mxu1 %v4723_v56  ;;  %v2953_v28 = vld [vmem:[%s8896_s22 + $0xc0] sm:$0xff]  ;;  %v2954_v38 = vld [vmem:[%s8896_s22 + $0xc8] sm:$0xff]  ;;  %v2934_v60 = vld [vmem:[%s8896_s22 + $0x50] sm:$0xff]  ;;  %v2902_v61 = vstv %s4226_s20 }
 0x843   :  { %v2859_v16 = vrot.slane %v2858_v50, 1  ;;  %v2851_v10 = vrot.slane %v2850_v9, 1  ;;  %v4554_v29 = vpack.c.bf16 %v2933_v63, %v2932_v39  ;;  %v4530_v4 = vpack.c.bf16 %v2954_v38, %v2953_v28  ;;  %v2935_v13 = vld [vmem:[%s8896_s22 + $0x58] sm:$0xff]  ;;  %v2936_v27 = vld [vmem:[%s8896_s22 + $0x60] sm:$0xff]  ;;  %v2937_v35 = vld [vmem:[%s8896_s22 + $0x68] sm:$0xff] }
 0x844   :  { %v2832_v19 = vadd.f32 %v2831_v3, %v2828_v43  ;;  %v4557_v43 = vpack.c.bf16 %v2935_v13, %v2934_v60  ;;  %v2955_v3 = vld [vmem:[%s8896_s22 + $0xd0] sm:$0xff]  ;;  %v2915_v25 = vadd.f32 %v2914_v1, %v7352_v58  ;;  %v3107_v18 = vld [vmem:[%s8896_s22 + $0x108] sm:$0xff]  ;;  %vm2922_vm0 = vcmask 1040384   ;;  %v3110_v13 = vld [vmem:[%s8896_s22 + $0x120] sm:$0xff] }
 0x845   :  { %v2852_v14 = vsel %vm1549_vm14, %v2851_v10, %v2850_v9  ;;  %v2860_v51 = vsel %vm216_vm1, %v2859_v16, %v2858_v50  ;;  %4549 = vmatpush3.bf16.msra.mxu0 %v4548_v17  ;;  %4525 = vmatpush3.bf16.msra.mxu1 %v4524_v6  ;;  %v2956_v50 = vld [vmem:[%s8896_s22 + $0xd8] sm:$0xff]  ;;  %v2957_v16 = vld [vmem:[%s8896_s22 + $0xe0] sm:$0xff]  ;;  %v4560_v10 = vpack.c.bf16 %v2937_v35, %v2936_v27  ;;  %v3108_v58 = vld [vmem:[%s8896_s22 + $0x110] sm:$0xff]  ;;  %vm3308_vm1 = vcmask 1042432  }
 0x846   :  { %v2840_v52 = vadd.f32 %v2839_v57, %v2832_v19  ;;  %v2866_v37 = vpop.permute.xlu0 %2865  ;;  %v2855_v53 = vmul.f32 %v2854_v54, %v2852_v14  ;;  %v2863_v23 = vmul.f32 %v2862_v21, %v2860_v51  ;;  %4550 = vmatprep.subr.bf16.mxu0 %v4723_v56  ;;  %4526 = vmatprep.subr.bf16.mxu1 %v4723_v56  ;;  %v2958_v19 = vld [vmem:[%s8896_s22 + $0xe8] sm:$0xff]  ;;  %v2938_v57 = vld [vmem:[%s8896_s22 + $0x70] sm:$0xff]  ;;  %v2939_v54 = vld [vmem:[%s8896_s22 + $0x78] sm:$0xff]  ;;  %v4725_v14 = vmov 0.0  }
 0x847   :  { %v2867_v40 = vrot.slane %v2866_v37, 1  ;;  %v4533_v9 = vpack.c.bf16 %v2956_v50, %v2955_v3  ;;  %4364 = vmatprep.mubr.msk.f32.mxu1 %vm4724_vm15, %v4725_v14  ;;  %4399 = vmatprep.mubr.msk.f32.mxu0 %vm4724_vm15, %v4725_v14  ;;  %v4563_v21 = vpack.c.bf16 %v2939_v54, %v2938_v57  ;;  %v3112_v50 = vld [vmem:[%s8896_s22 + $0x130] sm:$0xff]  ;;  %v3114_v35 = vld [vmem:[%s8896_s22 + $0x140] sm:$0xff]  ;;  %v3117_v57 = vld [vmem:[%s8896_s22 + $0x158] sm:$0xff] }
 0x848   :  { %v2848_v59 = vadd.f32 %v2847_v24, %v2840_v52  ;;  %v4536_v24 = vpack.c.bf16 %v2958_v19, %v2957_v16  ;;  %v2959_v52 = vld [vmem:[%s8896_s22 + $0xf0] sm:$0xff]  ;;  %v3115_v16 = vld [vmem:[%s8896_s22 + $0x148] sm:$0xff] }
 0x849   :  { %v2868_v44 = vsel %vm297_vm2, %v2867_v40, %v2866_v37  ;;  %4552 = vmatpush3.bf16.msra.mxu0 %v4551_v46  ;;  %4528 = vmatpush3.bf16.msra.mxu1 %v4527_v48  ;;  %v2960_v37 = vld [vmem:[%s8896_s22 + $0xf8] sm:$0xff]  ;;  %v3106_v46 = vld [vmem:[%s8896_s22 + $0x100] sm:$0xff]  ;;  %v3116_v19 = vld [vmem:[%s8896_s22 + $0x150] sm:$0xff]  ;;  %vm3304_vm2 = vcmask 285696  }
 0x84a   :  { %v2856_v49 = vadd.f32 %v2855_v53, %v2848_v59  ;;  %v2871_v34 = vmul.f32 %v2870_v15, %v2868_v44  ;;  %4553 = vmatprep.subr.bf16.mxu0 %v4723_v56  ;;  %4529 = vmatprep.subr.bf16.mxu1 %v4723_v56  ;;  %v4539_v51 = vpack.c.bf16 %v2960_v37, %v2959_v52  ;;  %v3119_v52 = vld [vmem:[%s8896_s22 + $0x168] sm:$0xff] }
 0x84b   :  { %v4581_v54 = vpack.c.bf16 %v3117_v57, %v3116_v19 }
 0x84c   :  { %v2864_v26 = vadd.f32 %v2863_v23, %v2856_v49 }
 0x84d   :  { %4555 = vmatpush3.bf16.msra.mxu0 %v4554_v29  ;;  %4531 = vmatpush3.bf16.msra.mxu1 %v4530_v4  ;;  %v3109_v29 = vld [vmem:[%s8896_s22 + $0x118] sm:$0xff] }
 0x84e   :  { %v7468_v7 = vadd.f32 %v2871_v34, %v2864_v26  ;;  %4556 = vmatprep.subr.bf16.mxu0 %v4723_v56  ;;  %4532 = vmatprep.subr.bf16.mxu1 %v4723_v56  ;;  %v4569_v60 = vpack.c.bf16 %v3109_v29, %v3108_v58  ;;  %v4230_v58 = vld [vmem:[%s8898_s7] ss:$0 sm:$0xff] }
 0x850   :  { %v2873_v32 = vmul.f32 %v7335_v0, %v7468_v7 }
 0x851   :  { %4558 = vmatpush3.bf16.msra.mxu0 %v4557_v43  ;;  %4534 = vmatpush3.bf16.msra.mxu1 %v4533_v9  ;;  %v3111_v43 = vld [vmem:[%s8896_s22 + $0x128] sm:$0xff]  ;;  %v3113_v9 = vld [vmem:[%s8896_s22 + $0x138] sm:$0xff] }
 0x852   :  { %2874 = vadd.xlane.f32.xlu1 %v2873_v32  ;;  %v2883_v8 = vmul.f32 %v2873_v32, %v7468_v7  ;;  %4559 = vmatprep.subr.bf16.mxu0 %v4723_v56  ;;  %v4572_v3 = vpack.c.bf16 %v3111_v43, %v3110_v13  ;;  %v4575_v27 = vpack.c.bf16 %v3113_v9, %v3112_v50  ;;  %v4231_v43 = vld [vmem:[%s8900_s17] ss:$0 sm:$0xff] }
 0x853   :  { %4535 = vmatprep.subr.bf16.mxu1 %v4723_v56 }
 0x854   :  { %2884 = vadd.xlane.f32.xlu0 %v2883_v8 }
 0x855   :  { %4561 = vmatpush3.bf16.msra.mxu0 %v4560_v10  ;;  %4537 = vmatpush3.bf16.msra.mxu1 %v4536_v24  ;;  %v4578_v10 = vpack.c.bf16 %v3115_v16, %v3114_v35  ;;  %v3118_v24 = vld [vmem:[%s8896_s22 + $0x160] sm:$0xff] }
 0x856   :  { %4562 = vmatprep.subr.bf16.mxu0 %v4723_v56  ;;  %4538 = vmatprep.subr.bf16.mxu1 %v4723_v56  ;;  %v4584_v37 = vpack.c.bf16 %v3119_v52, %v3118_v24  ;;  %v3466_v35 = vld [vmem:[%s8901_s14] sm:$0xf]  ;;  %v3562_v52 = vld [vmem:[%s8904_s16 + $0x8] sm:$0xff]  ;;  %s4728_s14 = smov 4  }
 0x857   :  { %v4234_v16 = vld [vmem:[%s8902_s19] ss:$0 sm:$0xff]  ;;  %s8908_s19 = sld [smem:[#allocation209_spill]] }
 0x858   :  { %v3561_v24 = vld [vmem:[%s8904_s16] sm:$0xff] }
 0x859   :  { %4564 = vmatpush3.bf16.msra.mxu0 %v4563_v21  ;;  %4540 = vmatpush3.bf16.msra.mxu1 %v4539_v51  ;;  %v3120_v21 = vld [vmem:[%s8896_s22 + $0x170] sm:$0xff]  ;;  %v3121_v51 = vld [vmem:[%s8896_s22 + $0x178] sm:$0xff] }
 0x85a   :  { %4565 = vmatprep.subr.bf16.mxu0 %v4723_v56  ;;  %4613 = vmatprep.subr.bf16.mxu1 %v4723_v56 }
 0x8df   :  { %v2875_v40 = vpop.xlane.xlu1 %2874 }
 0x8e0   :  { %v2876_v59 = vrot.slane %v2875_v40, 4 }
 0x8e1   :  { %v2885_v53 = vpop.xlane.xlu0 %2884 }
 0x8e2   :  { %v2877_v15 = vadd.f32 %v2876_v59, %v2875_v40  ;;  %v2886_v44 = vrot.slane %v2885_v53, 4  ;;  %v4587_v40 = vpack.c.bf16 %v3121_v51, %v3120_v21  ;;  %v3196_v59 = vld [vmem:[%s8896_s22 + $0x180] sm:$0xff]  ;;  %v4623_v21 = vpack.c.bf16 %v3562_v52, %v3561_v24  ;;  %v3564_v51 = vld [vmem:[%s8904_s16 + $0x18] sm:$0xff] }
 0x8e4   :  { %v2878_v23 = vrot.slane %v2877_v15, 2  ;;  %v2887_v49 = vadd.f32 %v2886_v44, %v2885_v53  ;;  %v3197_v53 = vld [vmem:[%s8896_s22 + $0x188] sm:$0xff] }
 0x8e6   :  { %v2879_v26 = vadd.f32 %v2878_v23, %v2877_v15  ;;  %v2888_v34 = vrot.slane %v2887_v49, 2  ;;  %v4590_v23 = vpack.c.bf16 %v3197_v53, %v3196_v59 }
 0x8e8   :  { %v2880_v32 = vrot.slane %v2879_v26, 1  ;;  %v2889_v8 = vadd.f32 %v2888_v34, %v2887_v49  ;;  %v3198_v49 = vld [vmem:[%s8896_s22 + $0x190] sm:$0xff] }
 0x8ea   :  { %v2881_v47 = vadd.f32 %v2880_v32, %v2879_v26  ;;  %v2890_v31 = vrot.slane %v2889_v8, 1  ;;  %v3199_v26 = vld [vmem:[%s8896_s22 + $0x198] sm:$0xff] }
 0x8eb   :  { %v4593_v32 = vpack.c.bf16 %v3199_v26, %v3198_v49 }
 0x8ec   :  { %v2882_v2 = vmul.f32 0.0014005603, %v2881_v47  ;;  %v2891_v45 = vadd.f32 %v2890_v31, %v2889_v8  ;;  %v3200_v8 = vld [vmem:[%s8896_s22 + $0x1a0] sm:$0xff]  ;;  %v3201_v47 = vld [vmem:[%s8896_s22 + $0x1a8] sm:$0xff] }
 0x8ed   :  { %v4596_v31 = vpack.c.bf16 %v3201_v47, %v3200_v8  ;;  %v3652_v8 = vld [vmem:[%s8905_s1] sm:$0xff] }
 0x8ee   :  { %v2893_v20 = vmul.f32 %v2882_v2, %v2882_v2  ;;  %v2892_v5 = vmul.f32 0.0014005603, %v2891_v45  ;;  %v3203_v45 = vld [vmem:[%s8896_s22 + $0x1b8] sm:$0xff] }
 0x8f0   :  { %v2894_v33 = vsub.f32 %v2892_v5, %v2893_v20  ;;  %v3204_v5 = vld [vmem:[%s8896_s22 + $0x1c0] sm:$0xff] }
 0x8f2   :  { %v2896_v36 = vadd.f32 1e-05, %v2894_v33  ;;  %v3205_v33 = vld [vmem:[%s8896_s22 + $0x1c8] sm:$0xff] }
 0x8f4   :  { %4684 = vrsqrt.f32 %v2896_v36  ;;  %v4602_v36 = vpack.c.bf16 %v3205_v33, %v3204_v5 }
 0x8fe   :  { %v4685_v12 = vpop.eup %4684 }
 0x8ff   :  { %v2899_v62 = vmul.f32 %v4685_v12, %v2898_v22  ;;  %v3206_v22 = vld [vmem:[%s8896_s22 + $0x1d0] sm:$0xff]  ;;  %v3207_v12 = vld [vmem:[%s8896_s22 + $0x1d8] sm:$0xff] }
 0x901   :  { %v2901_v42 = vmul.f32 %v2899_v62, %v2882_v2  ;;  %v2904_v11 = vmul.f32 %v2899_v62, %v7468_v7  ;;  %v4566_v7 = vpack.c.bf16 %v3107_v18, %v3106_v46  ;;  %v3202_v2 = vld [vmem:[%s8896_s22 + $0x1b0] sm:$0xff]  ;;  %v4605_v62 = vpack.c.bf16 %v3207_v12, %v3206_v22  ;;  %v3295_v18 = vld [vmem:[%s8897_s11 + $0x18] sm:$0xff] }
 0x902   :  { %v4599_v20 = vpack.c.bf16 %v3203_v45, %v3202_v2  ;;  %v3294_v46 = vld [vmem:[%s8897_s11 + $0x10] sm:$0xff] }
 0x903   :  { %v2903_v17 = vsub.f32 %v2902_v61, %v2901_v42  ;;  %v3208_v61 = vld [vmem:[%s8896_s22 + $0x1e0] sm:$0xff]  ;;  %v3209_v42 = vld [vmem:[%s8896_s22 + $0x1e8] sm:$0xff] }
 0x904   :  { %v4608_v1 = vpack.c.bf16 %v3209_v42, %v3208_v61 }
 0x905   :  { %v2905_v6 = vadd.f32 %v2904_v11, %v2903_v17  ;;  %v3210_v17 = vld [vmem:[%s8896_s22 + $0x1f0] sm:$0xff]  ;;  %v3211_v11 = vld [vmem:[%s8896_s22 + $0x1f8] sm:$0xff] }
 0x907   :  { %v2916_v41 = vadd.f32 %v2915_v25, %v2905_v6  ;;  %v4611_v25 = vpack.c.bf16 %v3211_v11, %v3210_v17  ;;  %v3292_v6 = vld [vmem:[%s8897_s11] sm:$0xff] }
 0x909   :  { %v2917_v30 = vmax.f32 %v2916_v41, 0.0  ;;  %v3293_v41 = vld [vmem:[%s8897_s11 + $0x8] sm:$0xff] }
 0x90b   :  { %v2918_v55 = vmul.f32 %v7335_v0, %v2917_v30  ;;  %v4614_v30 = vpack.c.bf16 %v3293_v41, %v3292_v6 }
 0x90d   :  { %v2940_v48 = vrot.slane %v2918_v55, 1  ;;  %v2942_v39 = vrot.slane %v2918_v55, 4  ;;  %v2920_v63 = vrot.slane %v2918_v55, 3  ;;  %v3193_v28 = vrot.slane %v2918_v55, 6 }
 0x90e   :  { %v3101_v15 = vrot.slane %v2918_v55, 2  ;;  %v3103_v44 = vrot.slane %v2918_v55, 5 }
 0x90f   :  { %v2944_v38 = vsel %vm2922_vm0, %v2940_v48, %v2942_v39  ;;  %v2923_v4 = vsel %vm2922_vm0, %v2918_v55, %v2920_v63  ;;  %v7609_v0 = vsel %vm2922_vm0, %v2920_v63, %v3193_v28  ;;  %v4617_v55 = vpack.c.bf16 %v3295_v18, %v3294_v46  ;;  %v3296_v48 = vld [vmem:[%s8897_s11 + $0x20] sm:$0x7] }
 0x910   :  { %4365 = vmatmul.mubr.f32.vlgmr.msra.gmra.mrb[0].mxu1 %v2944_v38  ;;  %4400 = vmatmul.mubr.f32.vlgmr.msra.gmra.mrb[0].mxu0 %v2923_v4  ;;  %v3105_v34 = vsel %vm2922_vm0, %v3101_v15, %v3103_v44  ;;  %v3565_v15 = vld [vmem:[%s8904_s16 + $0x20] sm:$0x7] }
 0x911   :  { %4567 = vmatpush3.bf16.msra.mxu0 %v4566_v7  ;;  %4434 = vmatprep.mubr.msk.f32.mxu0 %vm4724_vm15, %v4725_v14 }
 0x912   :  { %4568 = vmatprep.subr.bf16.mxu0 %v4723_v56  ;;  %4482 = vmatprep.mubr.msk.f32.mxu1 %vm4724_vm15, %v4725_v14 }
 0x913   :  { %4615 = vmatpush3.bf16.msra.mxu1 %v4614_v30 }
 0x914   :  { %4616 = vmatprep.subr.bf16.mxu1 %v4723_v56 }
 0x915   :  { %4570 = vmatpush3.bf16.msra.mxu0 %v4569_v60  ;;  %v3384_v60 = vld [vmem:[%s8899_s29 + $0x8] sm:$0xff] }
 0x916   :  { %4571 = vmatprep.subr.bf16.mxu0 %v4723_v56 }
 0x917   :  { %4618 = vmatpush3.bf16.msra.mxu1 %v4617_v55 }
 0x918   :  { %4480 = vmatprep.subr.mxu1 %v4725_v14 }
 0x919   :  { %4573 = vmatpush3.bf16.msra.mxu0 %v4572_v3 }
 0x91a   :  { %4574 = vmatprep.subr.bf16.mxu0 %v4723_v56 }
 0x91b   :  { %4481 = vmatpush3.msk.msra.mxu1 %vm3308_vm1, %v3296_v48 }
 0x91c   :  { %4619 = vmatprep.subr.bf16.mxu1 %v4723_v56 }
 0x91d   :  { %4576 = vmatpush3.bf16.msra.mxu0 %v4575_v27 }
 0x91e   :  { %4577 = vmatprep.subr.bf16.mxu0 %v4723_v56 }
 0x921   :  { %4579 = vmatpush3.bf16.msra.mxu0 %v4578_v10 }
 0x922   :  { %4580 = vmatprep.subr.bf16.mxu0 %v4723_v56 }
 0x925   :  { %4582 = vmatpush3.bf16.msra.mxu0 %v4581_v54  ;;  %v4238_v54 = vld [vmem:[%s8903_s2] ss:$0 sm:$0xff] }
 0x926   :  { %4583 = vmatprep.subr.bf16.mxu0 %v4723_v56  ;;  %3556 = vrot.lane.b32.xlu1 %v4238_v54, %s4726_s3 }
 0x929   :  { %4585 = vmatpush3.bf16.msra.mxu0 %v4584_v37  ;;  %v3563_v37 = vld [vmem:[%s8904_s16 + $0x10] sm:$0xff] }
 0x92a   :  { %4586 = vmatprep.subr.bf16.mxu0 %v4723_v56 }
 0x92d   :  { %4588 = vmatpush3.bf16.msra.mxu0 %v4587_v40  ;;  %v4626_v40 = vpack.c.bf16 %v3564_v51, %v3563_v37 }
 0x92e   :  { %4589 = vmatprep.subr.bf16.mxu0 %v4723_v56 }
 0x930   :  { %4435 = vmatmul.mubr.f32.vlgmr.msra.gmra.mrb[0].mxu0 %v3105_v34 }
 0x931   :  { %4591 = vmatpush3.bf16.msra.mxu0 %v4590_v23  ;;  %4469 = vmatprep.mubr.msk.f32.mxu0 %vm4724_vm15, %v4725_v14 }
 0x932   :  { %4592 = vmatprep.subr.bf16.mxu0 %v4723_v56 }
 0x935   :  { %4594 = vmatpush3.bf16.msra.mxu0 %v4593_v32 }
 0x936   :  { %4595 = vmatprep.subr.bf16.mxu0 %v4723_v56 }
 0x939   :  { %4597 = vmatpush3.bf16.msra.mxu0 %v4596_v31  ;;  %v4239_v31 = vld [vmem:[%s8906_s27] ss:$0 sm:$0xff] }
 0x93a   :  { %4598 = vmatprep.subr.bf16.mxu0 %v4723_v56 }
 0x93d   :  { %4600 = vmatpush3.bf16.msra.mxu0 %v4599_v20 }
 0x93e   :  { %4601 = vmatprep.subr.bf16.mxu0 %v4723_v56 }
 0x941   :  { %4603 = vmatpush3.bf16.msra.mxu0 %v4602_v36 }
 0x942   :  { %4604 = vmatprep.subr.bf16.mxu0 %v4723_v56 }
 0x945   :  { %4606 = vmatpush3.bf16.msra.mxu0 %v4605_v62 }
 0x946   :  { %4607 = vmatprep.subr.bf16.mxu0 %v4723_v56 }
 0x949   :  { %4609 = vmatpush3.bf16.msra.mxu0 %v4608_v1 }
 0x94a   :  { %4610 = vmatprep.subr.bf16.mxu0 %v4723_v56 }
 0x94d   :  { %4612 = vmatpush3.bf16.msra.mxu0 %v4611_v25 }
 0x950   :  { %4470 = vmatmul.mubr.f32.vlgmr.msra.gmra.mrb[0].mxu0 %v7609_v0  ;;  %v3383_v0 = vld [vmem:[%s8899_s29] sm:$0xff] }
 0x951   :  { %v4620_v13 = vpack.c.bf16 %v3384_v60, %v3383_v0 }
 0x998   :  { %v3557_v23 = vpop.permute.xlu1 %3556 }
 0x9e3   :  { %v3027_v39 = vpop.f32.mrb[0].mxu1 }
 0x9e4   :  { %v4366_v63 = vpop.f32.mrb[1].mxu1 }
 0xa23   :  { %v3278_v7 = vpop.f32.mrb[0].mxu0 }
 0xa24   :  { %v4631_v29 = vadd.f32 %v3278_v7, %v3027_v39  ;;  %v4471_v28 = vpop.f32.mrb[1].mxu0 }
 0xa26   :  { %v3290_v38 = vadd.f32 %v4631_v29, %v4230_v58 }
 0xa28   :  { %v3291_v4 = vmax.f32 %v3290_v38, 0.0 }
 0xa2a   :  { %4483 = vmatmul.mubr.msk.f32.vlgmr.msra.gmra.mrb[2].mxu1 %vm3304_vm2, %v3291_v4 }
 0xa2b   :  { %4489 = vmatprep.mubr.msk.f32.mxu1 %vm4724_vm15, %v4725_v14  ;;  %4621 = vmatpush3.bf16.msra.mxu1 %v4620_v13 }
 0xa2c   :  { %4492 = vmatprep.subr.mxu1 %v4725_v14 }
 0xafd   :  { %v3378_v3 = vpop.f32.mrb[2].mxu1 }
 0xafe   :  { %v3379_v50 = vadd.f32 %v4231_v43, %v3378_v3  ;;  %v4484_v9 = vpop.f32.mrb[3].mxu1 }
 0xb00   :  { %v3382_v27 = vmax.f32 %v3379_v50, 0.0 }
 0xb02   :  { %4490 = vmatmul.mubr.msk.f32.vlgmr.msra.gmra.mrb[4].mxu1 %vm3392_vm3, %v3382_v27 }
 0xb03   :  { %4493 = vmatpush3.msk.msra.mxu1 %vm3471_vm4, %v3466_v35  ;;  %4494 = vmatprep.mubr.msk.f32.mxu1 %vm4724_vm15, %v4725_v14 }
 0xb04   :  { %4622 = vmatprep.subr.bf16.mxu1 %v4723_v56 }
 0xbd5   :  { %v3462_v10 = vpop.f32.mrb[4].mxu1 }
 0xbd6   :  { %v3463_v19 = vadd.f32 %v4234_v16, %v3462_v10  ;;  %v4491_v57 = vpop.f32.mrb[5].mxu1 }
 0xbd8   :  { %4495 = vmatmul.mubr.msk.f32.vlgmr.msra.gmra.mrb[6].mxu1 %vm3467_vm5, %v3463_v19 }
 0xbd9   :  { %4507 = vmatprep.mubr.msk.f32.mxu1 %vm4724_vm15, %v4725_v14  ;;  %4624 = vmatpush3.bf16.msra.mxu1 %v4623_v21 }
 0xbda   :  { %4625 = vmatprep.subr.bf16.mxu1 %v4723_v56 }
 0xbdd   :  { %4627 = vmatpush3.bf16.msra.mxu1 %v4626_v40 }
 0xbde   :  { %4505 = vmatprep.subr.mxu1 %v4725_v14 }
 0xbe1   :  { %4506 = vmatpush3.msk.msra.mxu1 %vm3308_vm1, %v3565_v15 }
 0xbe2   :  { %4628 = vmatprep.subr.bf16.mxu1 %v4723_v56  ;;  %v3653_v56 = vld [vmem:[%s8905_s1 + $0x8] sm:$0xff] }
 0xbe3   :  { %v4629_v47 = vpack.c.bf16 %v3653_v56, %v3652_v8 }
 0xcab   :  { %v3541_v59 = vpop.f32.mrb[6].mxu1 }
 0xcac   :  { %3546 = vrot.lane.b32.xlu0 %v3541_v59, %s4726_s3  ;;  %v4496_v53 = vpop.f32.mrb[7].mxu1 }
 0xd1e   :  { %v3547_v44 = vpop.permute.xlu0 %3546 }
 0xd1f   :  { %v3549_v49 = vadd.f32 %v4631_v29, %v3547_v44 }
 0xd21   :  { %v3559_v26 = vadd.f32 %v3557_v23, %v3549_v49 }
 0xd23   :  { %v3560_v34 = vmax.f32 %v3559_v26, 0.0 }
 0xd25   :  { %3574 = vrot.lane.b32.xlu1 %v3560_v34, %s4727_s15 }
 0xd97   :  { %v3575_v32 = vpop.permute.xlu1 %3574 }
 0xd98   :  { %4508 = vmatmul.mubr.msk.f32.vlgmr.msra.gmra.mrb[8].mxu1 %vm3304_vm2, %v3575_v32 }
 0xd99   :  { %4514 = vmatprep.mubr.msk.f32.mxu1 %vm4724_vm15, %v4725_v14  ;;  %4630 = vmatpush3.bf16.msra.mxu1 %v4629_v47  ;;  %v4242_v14 = vld [vmem:[%s8907_s0] ss:$0 sm:$0xff] }
 0xe6b   :  { %v3647_v2 = vpop.f32.mrb[8].mxu1 }
 0xe6c   :  { %v3648_v45 = vadd.f32 %v4239_v31, %v3647_v2  ;;  %v4509_v20 = vpop.f32.mrb[9].mxu1 }
 0xe6e   :  { %v3651_v5 = vmax.f32 %v3648_v45, 0.0 }
 0xe70   :  { %4515 = vmatmul.mubr.msk.f32.vlgmr.msra.gmra.mrb[10].mxu1 %vm3392_vm3, %v3651_v5 }
 0xf43   :  { %v3730_v33 = vpop.f32.mrb[10].mxu1 }
 0xf44   :  { %v3731_v36 = vadd.f32 %v4242_v14, %v3730_v33  ;;  %v4516_v22 = vpop.f32.mrb[11].mxu1 }
 0xf46   :  { %3735 = vrot.lane.b32.xlu0 %v3731_v36, %s4728_s14 }
 0xfb8   :  { %v3736_v12 = vpop.permute.xlu0 %3735 }
 0xfb9   :  { %v3738_v62 = vsel %vm3467_vm5, %v3463_v19, %v3736_v12 }
 0xfba   :  { %3740 = vst.msk [vmem:[%s8908_s19] sm:$0x3] %vm3739_vm6, %v3738_v62 }
 0xfbb   :  { %3745 = vsyncpa [#allocation3], 1 }

</bundles_post_ra>
